<compile_context>
chip_gen: v7x
topology: tpu7x:2x2x1
jax: 0.10.0
libtpu: 0.0.40
codegen_flags: <defaults>
</compile_context>

<pallas_src>
import jax
import jax.numpy as jnp
import numpy as np
from jax import lax
from jax.experimental import pallas as pl
from jax.experimental.pallas import tpu as pltpu


# ---------------------------------------------------------------------------
# Model constants (fixed by the PyTorch module: classifier input is 64*55*55)
# ---------------------------------------------------------------------------
KH = KW = 11
STRIDE = 4
PAD = 2
OH = OW = 55
CIN, COUT = 3, 64

TM = 1024                           # conv M-tile (patch rows per step)
VMEM_LIMIT = 32 * 1024 * 1024       # explicit scoped-VMEM limit
W_BUF_BUDGET = 16 * 1024 * 1024     # double-buffered classifier weight block budget


def pick_tk(num_classes, itemsize=2):
    """Classifier K-tile: largest multiple of 128 whose double-buffered
    (num_classes, tk) bf16 weight block stays under W_BUF_BUDGET.  For the
    module-default 1000-class head this gives tk=4096 (16 MiB of weight
    buffers, fits v7x's 64 MiB physical VMEM); for the 16-class toy head it
    gives tk=32768 (6 K-steps)."""
    tk = W_BUF_BUDGET // (2 * num_classes * itemsize)
    tk = max(512, min(tk, 32768))
    return (tk // 128) * 128


# ---------------------------------------------------------------------------
# Kernel 1: im2col-conv matmul  (patches @ Wc + bc, fused ReLU), bf16 streams
# ---------------------------------------------------------------------------
def conv_mm_kernel(p_ref, w_ref, b_ref, o_ref):
    acc = jnp.dot(p_ref[...], w_ref[...], preferred_element_type=jnp.float32)
    o_ref[...] = jnp.maximum(acc + b_ref[...], 0.0).astype(o_ref.dtype)


def conv_matmul_relu(patches, wc, bc, *, tm=TM):
    # patches: (M, K1) bf16, wc: (K1, 64) bf16, bc: (1, 64) f32.
    # K1 block equals the full dim; the partial last M block is masked on write.
    M, K1 = patches.shape
    cout = wc.shape[1]
    return pl.pallas_call(
        conv_mm_kernel,
        out_shape=jax.ShapeDtypeStruct((M, cout), jnp.bfloat16),
        grid_spec=pltpu.PrefetchScalarGridSpec(
            num_scalar_prefetch=0,
            grid=(pl.cdiv(M, tm),),
            in_specs=[
                pl.BlockSpec((tm, K1), lambda i: (i, 0)),
                pl.BlockSpec((K1, cout), lambda i: (0, 0)),
                pl.BlockSpec((1, cout), lambda i: (0, 0)),
            ],
            out_specs=pl.BlockSpec((tm, cout), lambda i: (i, 0)),
        ),
        compiler_params=pltpu.CompilerParams(
            dimension_semantics=("parallel",),
            vmem_limit_bytes=VMEM_LIMIT),
    )(patches, wc, bc)


# ---------------------------------------------------------------------------
# Kernel 2: classifier Linear  (x @ W^T + b), native (N, K) bf16 weight layout,
# K-tiled with the bias-initialized output block used as the f32 accumulator.
# ---------------------------------------------------------------------------
def linear_kernel(x_ref, w_ref, b_ref, o_ref):
    k = pl.program_id(0)

    @pl.when(k == 0)
    def _():
        o_ref[...] = jnp.broadcast_to(b_ref[...], o_ref.shape)

    # out[b, n] += sum_k x[b, k] * w[n, k]   (contract last dims of both)
    o_ref[...] += lax.dot_general(
        x_ref[...], w_ref[...],
        dimension_numbers=(((1,), (1,)), ((), ())),
        preferred_element_type=jnp.float32)


def linear(flat, w_nk, b):
    # flat: (B, K) bf16, w_nk: (N, Kp) bf16 (K zero-padded once in
    # prepare_params to a multiple of tk), b: (1, N) f32.
    B, K = flat.shape
    N, Kp = w_nk.shape
    tk = pick_tk(N)
    assert Kp % tk == 0 and Kp >= K
    flat_p = jnp.pad(flat, ((0, 0), (0, Kp - K)))   # cheap: activation only
    kb = Kp // tk

    return pl.pallas_call(
        linear_kernel,
        out_shape=jax.ShapeDtypeStruct((B, N), jnp.float32),
        grid_spec=pltpu.PrefetchScalarGridSpec(
            num_scalar_prefetch=0,
            grid=(kb,),
            in_specs=[
                pl.BlockSpec((B, tk), lambda k: (0, k)),
                pl.BlockSpec((N, tk), lambda k: (0, k)),
                pl.BlockSpec((1, N), lambda k: (0, 0)),
            ],
            out_specs=pl.BlockSpec((B, N), lambda k: (0, 0)),
        ),
        compiler_params=pltpu.CompilerParams(
            dimension_semantics=("arbitrary",),
            vmem_limit_bytes=VMEM_LIMIT),
    )(flat_p, w_nk, b)


# ---------------------------------------------------------------------------
# Glue: patch extraction (single fused XLA op) and one-time weight prep
# ---------------------------------------------------------------------------
def extract_patches(x):
    # x: (B, 3, 224, 224) -> (B*55*55, 3*11*11); rows ordered (b, oh, ow),
    # columns ordered (c, kh, kw) -- matches PyTorch's OIHW weight flatten.
    p = lax.conv_general_dilated_patches(
        x, filter_shape=(KH, KW), window_strides=(STRIDE, STRIDE),
        padding=((PAD, PAD), (PAD, PAD)),
        dimension_numbers=("NCHW", "OIHW", "NHWC"))      # (B, 55, 55, 363)
    return p.reshape(x.shape[0] * OH * OW, CIN * KH * KW)


def prepare_params(conv_w, conv_b, fc_w, fc_b):
    """One-time (constant-side) weight layout/dtype prep -- hoisted out of
    forward: bf16 casts, NHWC column permutation and K zero-padding."""
    # Conv weight -> (K1, Cout) so the conv kernel is a plain patches @ W.
    wc = conv_w.reshape(COUT, CIN * KH * KW).T.astype(jnp.bfloat16)  # (363, 64)
    bc = conv_b.reshape(1, COUT).astype(jnp.float32)

    # Classifier weight: permute columns from PyTorch flatten order (c, oh, ow)
    # to the conv kernel's NHWC order (oh, ow, c), keep native (N, K) layout,
    # cast to bf16, and zero-pad K once to a multiple of the K tile.
    N, K = fc_w.shape
    tk = pick_tk(N)
    wl = fc_w.reshape(N, COUT, OH, OW).transpose(0, 2, 3, 1).reshape(N, K)
    Kp = ((K + tk - 1) // tk) * tk
    wl = jnp.pad(wl, ((0, 0), (0, Kp - K))).astype(jnp.bfloat16)
    bl = fc_b.reshape(1, N).astype(jnp.float32)
    return wc, bc, wl, bl


def mini_model_forward(x, wc, bc, wl, bl):
    B = x.shape[0]
    # bf16 input stream -> im2col buffer materializes at half the bytes.
    patches = extract_patches(x.astype(jnp.bfloat16))   # (B*3025, 363) bf16
    conv_out = conv_matmul_relu(patches, wc, bc)         # (B*3025, 64) bf16, NHWC order
    flat = conv_out.reshape(B, OH * OW * COUT)           # free reshape (no transpose)
    return linear(flat, wl, bl)                          # (B, num_classes) f32


# ---------------------------------------------------------------------------
# Pure-JAX f32 reference for verification (PyTorch-layout params)
# ---------------------------------------------------------------------------
def reference_forward(x, conv_w, conv_b, fc_w, fc_b):
    y = lax.conv_general_dilated(
        x, conv_w, window_strides=(STRIDE, STRIDE),
        padding=((PAD, PAD), (PAD, PAD)),
        dimension_numbers=("NCHW", "OIHW", "NCHW"))
    y = y + conv_b[None, :, None, None]
    y = jnp.maximum(y, 0.0)
    flat = y.reshape(x.shape[0], -1)
    return flat @ fc_w.T + fc_b[None, :]


if __name__ == "__main__":
    B = 2
    num_classes = 16   # small synthetic head (module default is 1000)

    key = jax.random.PRNGKey(0)
    k_x, k_cw, k_cb, k_fw, k_fb = jax.random.split(key, 5)

    # Input must be (B, 3, 224, 224): the classifier hard-codes 64*55*55 features.
    x = jax.random.normal(k_x, (B, 3, 224, 224), dtype=jnp.float32)
    conv_w = jax.random.normal(k_cw, (COUT, CIN, KH, KW), dtype=jnp.float32) * 0.05
    conv_b = jax.random.normal(k_cb, (COUT,), dtype=jnp.float32) * 0.05
    fc_w = jax.random.normal(k_fw, (num_classes, COUT * OH * OW), dtype=jnp.float32) * 0.01
    fc_b = jax.random.normal(k_fb, (num_classes,), dtype=jnp.float32) * 0.05

    # One-time constant-side weight prep (permute/pad/bf16), then jitted forward.
    wc, bc, wl, bl = prepare_params(conv_w, conv_b, fc_w, fc_b)
    fwd = jax.jit(mini_model_forward)

    out = jax.block_until_ready(fwd(x, wc, bc, wl, bl))
    ref = jax.block_until_ready(reference_forward(x, conv_w, conv_b, fc_w, fc_b))
    # bf16 operands / f32 accumulation over K=193600: relative error ~<1% of the
    # ~O(3) output scale; atol covers near-zero outputs.
    np.testing.assert_allclose(np.asarray(out), np.asarray(ref),
                               rtol=2e-2, atol=5e-2)

    assert out.shape == (B, num_classes)
    print("KERNEL_OK")
</pallas_src>

<mosaic_0001>
module attributes {stable_mosaic.version = 11 : i64} {
  func.func @conv_mm_kernel(%arg0: i32, %arg1: memref<1024x363xbf16, #tpu.memory_space<vmem>>, %arg2: memref<363x64xbf16, #tpu.memory_space<vmem>>, %arg3: memref<1x64xf32, #tpu.memory_space<vmem>>, %arg4: memref<1024x64xbf16, #tpu.memory_space<vmem>>) attributes {dimension_semantics = [#tpu.dimension_semantics<parallel>], iteration_bounds = array<i64: 6>, scalar_prefetch = 0 : i64, scratch_operands = 0 : i64, tpu.core_type = #tpu.core_type<tc>, window_params = [{transform_indices = @transform_0, window_bounds = array<i64: 1024, 363>}, {pipeline_mode = #tpu.pipeline_mode<synchronous>, transform_indices = @transform_1, window_bounds = array<i64: 363, 64>}, {pipeline_mode = #tpu.pipeline_mode<synchronous>, transform_indices = @transform_2, window_bounds = array<i64: 1, 64>}, {transform_indices = @transform_3, window_bounds = array<i64: 1024, 64>}]} {
    %c0 = arith.constant 0 : index
    %c0_0 = arith.constant 0 : index
    %0 = vector.load %arg1[%c0, %c0_0] : memref<1024x363xbf16, #tpu.memory_space<vmem>>, vector<1024x363xbf16>
    %c0_1 = arith.constant 0 : index
    %c0_2 = arith.constant 0 : index
    %1 = vector.load %arg2[%c0_1, %c0_2] : memref<363x64xbf16, #tpu.memory_space<vmem>>, vector<363x64xbf16>
    %cst = arith.constant dense<0.000000e+00> : vector<1024x64xf32>
    %2 = tpu.matmul %0, %1, %cst {dimension_numbers = #tpu.dot_dimension_numbers<[1], [0], [0], [1], [0, 0, 1, 1], [], []>} : vector<1024x363xbf16>, vector<363x64xbf16>, vector<1024x64xf32> -> vector<1024x64xf32>
    %c0_3 = arith.constant 0 : index
    %c0_4 = arith.constant 0 : index
    %3 = vector.load %arg3[%c0_3, %c0_4] : memref<1x64xf32, #tpu.memory_space<vmem>>, vector<1x64xf32>
    %4 = vector.broadcast %3 : vector<1x64xf32> to vector<1024x64xf32>
    %5 = arith.addf %2, %4 : vector<1024x64xf32>
    %cst_5 = arith.constant 0.000000e+00 : f32
    %6 = vector.broadcast %cst_5 : f32 to vector<1024x64xf32>
    %7 = arith.maximumf %5, %6 : vector<1024x64xf32>
    %8 = arith.truncf %7 : vector<1024x64xf32> to vector<1024x64xbf16>
    %c0_6 = arith.constant 0 : index
    %c0_7 = arith.constant 0 : index
    %9 = vector.load %arg4[%c0_6, %c0_7] : memref<1024x64xbf16, #tpu.memory_space<vmem>>, vector<1024x64xbf16>
    tpu.vector_store %arg4[%c0_6, %c0_7], %8 {strides = array<i32>} : memref<1024x64xbf16, #tpu.memory_space<vmem>>, vector<1024x64xbf16>,
    return
  }
  func.func @transform_0(%arg0: i32) -> (i32, i32) {
    %c0_i32 = arith.constant 0 : i32
    %c0_i32_0 = arith.constant 0 : i32
    return %arg0, %c0_i32 : i32, i32
  }
  func.func @transform_1(%arg0: i32) -> (i32, i32) {
    %c0_i32 = arith.constant 0 : i32
    %c0_i32_0 = arith.constant 0 : i32
    %c0_i32_1 = arith.constant 0 : i32
    return %c0_i32, %c0_i32_0 : i32, i32
  }
  func.func @transform_2(%arg0: i32) -> (i32, i32) {
    %c0_i32 = arith.constant 0 : i32
    %c0_i32_0 = arith.constant 0 : i32
    %c0_i32_1 = arith.constant 0 : i32
    return %c0_i32, %c0_i32_0 : i32, i32
  }
  func.func @transform_3(%arg0: i32) -> (i32, i32) {
    %c0_i32 = arith.constant 0 : i32
    %c0_i32_0 = arith.constant 0 : i32
    return %arg0, %c0_i32 : i32, i32
  }
}

module attributes {stable_mosaic.version = 11 : i64} {
  func.func @linear_kernel(%arg0: i32, %arg1: memref<2x32768xbf16, #tpu.memory_space<vmem>>, %arg2: memref<16x32768xbf16, #tpu.memory_space<vmem>>, %arg3: memref<1x16xf32, #tpu.memory_space<vmem>>, %arg4: memref<2x16xf32, #tpu.memory_space<vmem>>) attributes {dimension_semantics = [#tpu.dimension_semantics<arbitrary>], iteration_bounds = array<i64: 6>, scalar_prefetch = 0 : i64, scratch_operands = 0 : i64, tpu.core_type = #tpu.core_type<tc>, window_params = [{transform_indices = @transform_0, window_bounds = array<i64: 2, 32768>}, {transform_indices = @transform_1, window_bounds = array<i64: 16, 32768>}, {pipeline_mode = #tpu.pipeline_mode<synchronous>, transform_indices = @transform_2, window_bounds = array<i64: 1, 16>}, {pipeline_mode = #tpu.pipeline_mode<synchronous>, transform_indices = @transform_3, window_bounds = array<i64: 2, 16>}]} {
    %c0_i32 = arith.constant 0 : i32
    %0 = arith.cmpi eq, %arg0, %c0_i32 : i32
    %1 = arith.extui %0 : i1 to i32
    %c0_i32_0 = arith.constant 0 : i32
    %2 = arith.cmpi ne, %1, %c0_i32_0 : i32
    scf.if %2 {
      %c0_8 = arith.constant 0 : index
      %c0_9 = arith.constant 0 : index
      %9 = vector.load %arg3[%c0_8, %c0_9] : memref<1x16xf32, #tpu.memory_space<vmem>>, vector<1x16xf32>
      %10 = vector.shape_cast %9 : vector<1x16xf32> to vector<1x16xf32>
      %11 = vector.broadcast %10 : vector<1x16xf32> to vector<2x16xf32>
      %c0_10 = arith.constant 0 : index
      %c0_11 = arith.constant 0 : index
      %12 = vector.load %arg4[%c0_10, %c0_11] : memref<2x16xf32, #tpu.memory_space<vmem>>, vector<2x16xf32>
      tpu.vector_store %arg4[%c0_10, %c0_11], %11 {strides = array<i32>} : memref<2x16xf32, #tpu.memory_space<vmem>>, vector<2x16xf32>,
    } else {
    }
    %c0 = arith.constant 0 : index
    %c0_1 = arith.constant 0 : index
    %3 = vector.load %arg4[%c0, %c0_1] : memref<2x16xf32, #tpu.memory_space<vmem>>, vector<2x16xf32>
    %c0_2 = arith.constant 0 : index
    %c0_3 = arith.constant 0 : index
    %4 = vector.load %arg1[%c0_2, %c0_3] : memref<2x32768xbf16, #tpu.memory_space<vmem>>, vector<2x32768xbf16>
    %c0_4 = arith.constant 0 : index
    %c0_5 = arith.constant 0 : index
    %5 = vector.load %arg2[%c0_4, %c0_5] : memref<16x32768xbf16, #tpu.memory_space<vmem>>, vector<16x32768xbf16>
    %cst = arith.constant dense<0.000000e+00> : vector<2x16xf32>
    %6 = tpu.matmul %4, %5, %cst {dimension_numbers = #tpu.dot_dimension_numbers<[1], [1], [0], [0], [0, 0, 1, 0], [], []>} : vector<2x32768xbf16>, vector<16x32768xbf16>, vector<2x16xf32> -> vector<2x16xf32>
    %7 = arith.addf %3, %6 : vector<2x16xf32>
    %c0_6 = arith.constant 0 : index
    %c0_7 = arith.constant 0 : index
    %8 = vector.load %arg4[%c0_6, %c0_7] : memref<2x16xf32, #tpu.memory_space<vmem>>, vector<2x16xf32>
    tpu.vector_store %arg4[%c0_6, %c0_7], %7 {strides = array<i32>} : memref<2x16xf32, #tpu.memory_space<vmem>>, vector<2x16xf32>,
    return
  }
  func.func @transform_0(%arg0: i32) -> (i32, i32) {
    %c0_i32 = arith.constant 0 : i32
    %c0_i32_0 = arith.constant 0 : i32
    return %c0_i32, %arg0 : i32, i32
  }
  func.func @transform_1(%arg0: i32) -> (i32, i32) {
    %c0_i32 = arith.constant 0 : i32
    %c0_i32_0 = arith.constant 0 : i32
    return %c0_i32, %arg0 : i32, i32
  }
  func.func @transform_2(%arg0: i32) -> (i32, i32) {
    %c0_i32 = arith.constant 0 : i32
    %c0_i32_0 = arith.constant 0 : i32
    %c0_i32_1 = arith.constant 0 : i32
    return %c0_i32, %c0_i32_0 : i32, i32
  }
  func.func @transform_3(%arg0: i32) -> (i32, i32) {
    %c0_i32 = arith.constant 0 : i32
    %c0_i32_0 = arith.constant 0 : i32
    %c0_i32_1 = arith.constant 0 : i32
    return %c0_i32, %c0_i32_0 : i32, i32
  }
}

</mosaic_0001>

<bundles_post_ra>
// kernel: mini_model_forward.2
= control target key start
LH: loop header
LB: loop body
LE: loop exit
PB: predicated region body
PF: predicated region fallthrough
CT: control target
= control target key end

     0   :  { %s5421_s12 = smov 0   ;;  %s5423_s13 = smov 0   ;;  %s6728_s0 = inlined_call_operand.vmem [shape: bf16[6050,363], index: 0, kind: input, shape index: {}]   ;;  %s6729_s1 = inlined_call_operand.vmem [shape: bf16[363,64], index: 1, kind: input, shape index: {}]   ;;  %s6730_s2 = inlined_call_operand.vmem [shape: f32[1,64], index: 2, kind: input, shape index: {}]   ;;  %s6731_s3 = inlined_call_operand.vmem [shape: bf16[6050,64], index: 3, kind: output, shape index: {}]  }
   0x1   :  { %s5425_s14 = smov 0  }
   0x2 LB: > { %s5434_s15 = sadd.s32 4294967295, %s5365_s14   ;;  %s5436_s16 = sadd.s32 1, %s5365_s14   ;;  %s5365_s14 = sphi %s5425_s14, %s6778_s14   ;;  %s5361_s13 = sphi %s5423_s13, %s6777_s13   ;;  %s5357_s12 = sphi %s5421_s12, %s6776_s12  }
   0x3   : > { %s85_s17 = ssub.s32 %s5365_s14, %s5436_s16  ;;  %s88_s18 = sadd.s32 1, %s5361_s13 }
   0x4   : > { %p86_p0 = scmp.eq.s32.totalorder %s85_s17, 0  ;;  %p98_p1 = scmp.ne.s32.totalorder %s5361_s13, %s5357_s12 }
   0x5   : > { %p99_p2 = scmp.eq.s32.totalorder %s5434_s15, 5  ;;  %p4135_p3 = scmp.ge.s32.totalorder %s5365_s14, 1 }
   0x6   : > { %s5444_s19 = scalar_select %p86_p0, %s5361_s13, %s88_s18  }
   0x7   : > { %p5446_p4 = por %p99_p2, %p98_p1  ;;  %p149_p5 = scmp.lt.s32.totalorder %s5365_s14, 7 }
   0x9   : > { %p150_p6 = pnand %p4135_p3, %p149_p5 }
   0xb   : > { %153 = sbr.rel (%p150_p6) target bundleno = 773 (0x305), region = 32 }
  0x12   : > { %v5031_v0 = vld [vmem:[%s6729_s1] sm:$0xff]   ;;  %v5399_v1 = vmov 0   ;;  %s5456_s23 = sshll.u32 %s5434_s15, 7  ;;  %v5032_v2 = vld [vmem:[%s6729_s1 + $0x8] sm:$0xff]   ;;  %v5033_v3 = vld [vmem:[%s6729_s1 + $0x10] sm:$0xff]   ;;  %vm1800_vm0 = vcmask 1044480  }
  0x13   : > { %1807 = vmatprep.subr.bf16.mxu0 %v5399_v1  ;;  %4908 = vmatprep.subr.bf16.mxu1 %v5399_v1  ;;  %p184_p7 = scmp.lt.s32.totalorder %s5456_s23, 756  ;;  %v5034_v4 = vld [vmem:[%s6729_s1 + $0x18] sm:$0xff]   ;;  %v5035_v5 = vld [vmem:[%s6729_s1 + $0x20] sm:$0xff]   ;;  %v5036_v7 = vld [vmem:[%s6729_s1 + $0x28] sm:$0xff]   ;;  %vm1801_vm1 = vcmask 1045504   ;;  %v5400_v36 = vmov 65535  }
  0x14   : > { %1808 = vmatpush1.bf16.msra.mxu0 %v5031_v0  ;;  %4924 = vmatpush1.bf16.msra.mxu1 %v5031_v0  ;;  %v5037_v9 = vld [vmem:[%s6729_s1 + $0x30] sm:$0xff]   ;;  %v5038_v10 = vld [vmem:[%s6729_s1 + $0x38] sm:$0xff]   ;;  %v5039_v11 = vld [vmem:[%s6729_s1 + $0x40] sm:$0xff]   ;;  %v1802_v37 = vsel %vm1800_vm0, 4294967295, %v5400_v36  ;;  %vm1607_vm2 = vcmask 875520   ;;  %s175_s10 = sand.u32 1, %s5357_s12  }
  0x15   : > { %1809 = vmatprep.subr.bf16.mxu0 %v5399_v1  ;;  %4909 = vmatprep.subr.bf16.mxu1 %v5399_v1  ;;  %s185_s28 = scalar_select %p184_p7, %s5456_s23, 756  ;;  %v5040_v12 = vld [vmem:[%s6729_s1 + $0x48] sm:$0xff]   ;;  %v5041_v13 = vld [vmem:[%s6729_s1 + $0x50] sm:$0xff]   ;;  %v5042_v14 = vld [vmem:[%s6729_s1 + $0x58] sm:$0xff]   ;;  %v1803_v40 = vsel %vm1801_vm1, %v1802_v37, 0  ;;  %vm3537_vm3 = vcmask 519168  }
  0x16   : > { %v5043_v15 = vld [vmem:[%s6729_s1 + $0x60] sm:$0xff]   ;;  %v5044_v16 = vld [vmem:[%s6729_s1 + $0x68] sm:$0xff]   ;;  %v5045_v17 = vld [vmem:[%s6729_s1 + $0x70] sm:$0xff]   ;;  %s4136_s11 = sshll.u32 %s175_s10, 9  ;;  %s3674_s17 = ssub.s32 (%p5446_p4), 757, %s5456_s23 }
  0x17   : > { %s4940_s4 = smul.u32 12, %s185_s28  ;;  %v5046_v18 = vld [vmem:[%s6729_s1 + $0x78] sm:$0xff]   ;;  %v5053_v19 = vld [vmem:[%s6729_s1 + $0x80] sm:$0xff]   ;;  %v5066_v24 = vld [vmem:[%s6729_s1 + $0x88] sm:$0xff]   ;;  %s5944_s12 = scalar_lea.vmem [#allocation2], %s4136_s11  }
  0x18   : > { %1810 = vmatpush1.bf16.msra.mxu0 %v5032_v2  ;;  %4925 = vmatpush1.bf16.msra.mxu1 %v5032_v2  ;;  %v5079_v26 = vld [vmem:[%s6729_s1 + $0x90] sm:$0xff]   ;;  %v5096_v30 = vld [vmem:[%s6729_s1 + $0x98] sm:$0xff]   ;;  %v5111_v31 = vld [vmem:[%s6729_s1 + $0xa0] sm:$0xff]   ;;  %s4692_s18 = sshll.u32 (%p5446_p4), %s5434_s15, 9  ;;  %p3675_p8 = scmp.lt.s32.totalorder (%p5446_p4), %s3674_s17, 128 }
  0x19   : > { %1811 = vmatprep.subr.bf16.mxu0 %v5399_v1  ;;  %4910 = vmatprep.subr.bf16.mxu1 %v5399_v1  ;;  %s5481_s9 = scalar_lea.vmem %s6728_s0, %s4940_s4  ;;  %v5124_v38 = vld [vmem:[%s6729_s1 + $0xa8] sm:$0xff]   ;;  %v5137_v39 = vld [vmem:[%s6729_s1 + $0xb0] sm:$0x3f]   ;;  %s6536_s24 = scalar_lea.vmem (%p5446_p4), %s6731_s3, %s4692_s18  }
  0x1a   : > { %v5049_v6 = vld [vmem:[%s5481_s9 + $0x4] ss:$12 sps:$4 sm:$0xff]   ;;  %v5047_v20 = vld [vmem:[%s5481_s9] ss:$12 sps:$4 sm:$0xff]   ;;  %v5054_v22 = vld [vmem:[%s5481_s9 + $0x1c] ss:$12 sps:$4 sm:$0xff]   ;;  %v1805_v45 = vand.u32 %v5137_v39, %v1803_v40 }
  0x1b   : > { %v5052_v8 = vld [vmem:[%s5481_s9 + $0x484] ss:$12 sps:$4 sm:$0xff]   ;;  %1839 = vmatprep.mubr.bf16.mxu0 %v5049_v6  ;;  %v5050_v21 = vld [vmem:[%s5481_s9 + $0x480] ss:$12 sps:$4 sm:$0xff]   ;;  %v5056_v23 = vld [vmem:[%s5481_s9 + $0x49c] ss:$12 sps:$4 sm:$0xff]  }
  0x1c   : > { %1812 = vmatpush1.bf16.msra.mxu0 %v5033_v3  ;;  %4926 = vmatpush1.bf16.msra.mxu1 %v5033_v3  ;;  %v5058_v25 = vld [vmem:[%s5481_s9 + $0x18] ss:$12 sps:$4 sm:$0xff]   ;;  %v5060_v28 = vld [vmem:[%s5481_s9 + $0x34] ss:$12 sps:$4 sm:$0xff]   ;;  %v5064_v32 = vld [vmem:[%s5481_s9 + $0x30] ss:$12 sps:$4 sm:$0xff]  }
  0x1d   : > { %1813 = vmatprep.subr.bf16.mxu0 %v5399_v1  ;;  %4911 = vmatprep.subr.bf16.mxu1 %v5399_v1  ;;  %v5059_v27 = vld [vmem:[%s5481_s9 + $0x498] ss:$12 sps:$4 sm:$0xff]   ;;  %v5062_v29 = vld [vmem:[%s5481_s9 + $0x4b4] ss:$12 sps:$4 sm:$0xff]   ;;  %v5065_v33 = vld [vmem:[%s5481_s9 + $0x4b0] ss:$12 sps:$4 sm:$0xff]  }
  0x1e   : > { %2223 = vmatprep.mubr.bf16.mxu1 %v5052_v8  ;;  %v5067_v34 = vld [vmem:[%s5481_s9 + $0x4c] ss:$12 sps:$4 sm:$0xff]   ;;  %v5071_v41 = vld [vmem:[%s5481_s9 + $0x48] ss:$12 sps:$4 sm:$0xff]   ;;  %v5073_v43 = vld [vmem:[%s5481_s9 + $0x64] ss:$12 sps:$4 sm:$0xff]  }
  0x1f   : > { %v5069_v35 = vld [vmem:[%s5481_s9 + $0x4cc] ss:$12 sps:$4 sm:$0xff]   ;;  %v5072_v42 = vld [vmem:[%s5481_s9 + $0x4c8] ss:$12 sps:$4 sm:$0xff]   ;;  %v5075_v44 = vld [vmem:[%s5481_s9 + $0x4e4] ss:$12 sps:$4 sm:$0xff]  }
  0x20   : > { %1814 = vmatpush1.bf16.msra.mxu0 %v5034_v4  ;;  %4927 = vmatpush1.bf16.msra.mxu1 %v5034_v4  ;;  %v5077_v46 = vld [vmem:[%s5481_s9 + $0x60] ss:$12 sps:$4 sm:$0xff]   ;;  %v5080_v48 = vld [vmem:[%s5481_s9 + $0x7c] ss:$12 sps:$4 sm:$0xff]   ;;  %v5084_v50 = vld [vmem:[%s5481_s9 + $0x78] ss:$12 sps:$4 sm:$0xff]  }
  0x21   : > { %1815 = vmatprep.subr.bf16.mxu0 %v5399_v1  ;;  %4912 = vmatprep.subr.bf16.mxu1 %v5399_v1  ;;  %v5078_v47 = vld [vmem:[%s5481_s9 + $0x4e0] ss:$12 sps:$4 sm:$0xff]   ;;  %v5082_v49 = vld [vmem:[%s5481_s9 + $0x4fc] ss:$12 sps:$4 sm:$0xff]   ;;  %v5085_v51 = vld [vmem:[%s5481_s9 + $0x4f8] ss:$12 sps:$4 sm:$0xff]  }
  0x22   : > { %v5086_v52 = vld [vmem:[%s5481_s9 + $0x94] ss:$12 sps:$4 sm:$0xff]   ;;  %v5090_v54 = vld [vmem:[%s5481_s9 + $0x90] ss:$12 sps:$4 sm:$0xff]   ;;  %v5092_v56 = vld [vmem:[%s5481_s9 + $0xac] ss:$12 sps:$4 sm:$0xff]  }
  0x23   : > { %v5088_v53 = vld [vmem:[%s5481_s9 + $0x514] ss:$12 sps:$4 sm:$0xff]   ;;  %v5091_v55 = vld [vmem:[%s5481_s9 + $0x510] ss:$12 sps:$4 sm:$0xff]   ;;  %v5094_v57 = vld [vmem:[%s5481_s9 + $0x52c] ss:$12 sps:$4 sm:$0xff]  }
  0x24   : > { %1816 = vmatpush1.bf16.msra.mxu0 %v5035_v5  ;;  %4928 = vmatpush1.bf16.msra.mxu1 %v5035_v5  ;;  %v5097_v58 = vld [vmem:[%s5481_s9 + $0xa8] ss:$12 sps:$4 sm:$0xff]   ;;  %v5099_v60 = vld [vmem:[%s5481_s9 + $0xc4] ss:$12 sps:$4 sm:$0xff]   ;;  %v5103_v62 = vld [vmem:[%s5481_s9 + $0xc0] ss:$12 sps:$4 sm:$0xff]  }
  0x25   : > { %1817 = vmatprep.subr.bf16.mxu0 %v5399_v1  ;;  %4913 = vmatprep.subr.bf16.mxu1 %v5399_v1  ;;  %v5098_v59 = vld [vmem:[%s5481_s9 + $0x528] ss:$12 sps:$4 sm:$0xff]   ;;  %v5101_v61 = vld [vmem:[%s5481_s9 + $0x544] ss:$12 sps:$4 sm:$0xff]   ;;  %v5104_v63 = vld [vmem:[%s5481_s9 + $0x540] ss:$12 sps:$4 sm:$0xff]  }
  0x26   : > { %v5105_v0 = vld [vmem:[%s5481_s9 + $0xdc] ss:$12 sps:$4 sm:$0xff]   ;;  %v5109_v2 = vld [vmem:[%s5481_s9 + $0xd8] ss:$12 sps:$4 sm:$0xff]   ;;  %v5112_v4 = vld [vmem:[%s5481_s9 + $0xf4] ss:$12 sps:$4 sm:$0xff]  }
  0x27   : > { %v5110_v3 = vld [vmem:[%s5481_s9 + $0x558] ss:$12 sps:$4 sm:$0xff]   ;;  %v5114_v5 = vld [vmem:[%s5481_s9 + $0x574] ss:$12 sps:$4 sm:$0xff]   ;;  %v5116_v6 = vld [vmem:[%s5481_s9 + $0xf0] ss:$12 sps:$4 sm:$0xff]  }
  0x28   : > { %1818 = vmatpush1.bf16.msra.mxu0 %v5036_v7  ;;  %4929 = vmatpush1.bf16.msra.mxu1 %v5036_v7  ;;  %v5117_v7 = vld [vmem:[%s5481_s9 + $0x570] ss:$12 sps:$4 sm:$0xff]   ;;  %v5118_v8 = vld [vmem:[%s5481_s9 + $0x10c] ss:$12 sps:$4 sm:$0xff]   ;;  %v5160_v36 = vld [vmem:[%s5481_s9 + $0x1b4] ss:$12 sps:$4 sm:$0xff]  }
  0x29   : > { %1819 = vmatprep.subr.bf16.mxu0 %v5399_v1  ;;  %4914 = vmatprep.subr.bf16.mxu1 %v5399_v1  ;;  %v5162_v37 = vld [vmem:[%s5481_s9 + $0x68] ss:$12 sps:$4 sm:$0xff]   ;;  %v5164_v39 = vld [vmem:[%s5481_s9 + $0x80] ss:$12 sps:$4 sm:$0xff]  }
  0x2a   : > { %v5165_v40 = vld [vmem:[%s5481_s9 + $0x1cc] ss:$12 sps:$4 sm:$0xff]  }
  0x2c   : > { %1820 = vmatpush1.bf16.msra.mxu0 %v5037_v9  ;;  %4930 = vmatpush1.bf16.msra.mxu1 %v5037_v9  ;;  %v5120_v9 = vld [vmem:[%s5481_s9 + $0x58c] ss:$12 sps:$4 sm:$0xff]  }
  0x2d   : > { %1821 = vmatprep.subr.bf16.mxu0 %v5399_v1  ;;  %4915 = vmatprep.subr.bf16.mxu1 %v5399_v1 }
  0x30   : > { %1822 = vmatpush1.bf16.msra.mxu0 %v5038_v10  ;;  %4931 = vmatpush1.bf16.msra.mxu1 %v5038_v10  ;;  %v5122_v10 = vld [vmem:[%s5481_s9 + $0x108] ss:$12 sps:$4 sm:$0xff]  }
  0x31   : > { %1823 = vmatprep.subr.bf16.mxu0 %v5399_v1  ;;  %4916 = vmatprep.subr.bf16.mxu1 %v5399_v1 }
  0x34   : > { %1824 = vmatpush1.bf16.msra.mxu0 %v5039_v11  ;;  %4932 = vmatpush1.bf16.msra.mxu1 %v5039_v11  ;;  %v5123_v11 = vld [vmem:[%s5481_s9 + $0x588] ss:$12 sps:$4 sm:$0xff]  }
  0x35   : > { %1825 = vmatprep.subr.bf16.mxu0 %v5399_v1  ;;  %4917 = vmatprep.subr.bf16.mxu1 %v5399_v1 }
  0x38   : > { %1826 = vmatpush1.bf16.msra.mxu0 %v5040_v12  ;;  %4933 = vmatpush1.bf16.msra.mxu1 %v5040_v12  ;;  %v5125_v12 = vld [vmem:[%s5481_s9 + $0x124] ss:$12 sps:$4 sm:$0xff]  }
  0x39   : > { %1827 = vmatprep.subr.bf16.mxu0 %v5399_v1  ;;  %4918 = vmatprep.subr.bf16.mxu1 %v5399_v1 }
  0x3c   : > { %1828 = vmatpush1.bf16.msra.mxu0 %v5041_v13  ;;  %4934 = vmatpush1.bf16.msra.mxu1 %v5041_v13  ;;  %v5127_v13 = vld [vmem:[%s5481_s9 + $0x5a4] ss:$12 sps:$4 sm:$0xff]  }
  0x3d   : > { %1829 = vmatprep.subr.bf16.mxu0 %v5399_v1  ;;  %4919 = vmatprep.subr.bf16.mxu1 %v5399_v1 }
  0x40   : > { %1830 = vmatpush1.bf16.msra.mxu0 %v5042_v14  ;;  %4935 = vmatpush1.bf16.msra.mxu1 %v5042_v14  ;;  %v5129_v14 = vld [vmem:[%s5481_s9 + $0x120] ss:$12 sps:$4 sm:$0xff]  }
  0x41   : > { %1831 = vmatprep.subr.bf16.mxu0 %v5399_v1  ;;  %4920 = vmatprep.subr.bf16.mxu1 %v5399_v1 }
  0x44   : > { %1832 = vmatpush1.bf16.msra.mxu0 %v5043_v15  ;;  %4936 = vmatpush1.bf16.msra.mxu1 %v5043_v15  ;;  %v5130_v15 = vld [vmem:[%s5481_s9 + $0x5a0] ss:$12 sps:$4 sm:$0xff]  }
  0x45   : > { %1833 = vmatprep.subr.bf16.mxu0 %v5399_v1  ;;  %4921 = vmatprep.subr.bf16.mxu1 %v5399_v1 }
  0x48   : > { %1834 = vmatpush1.bf16.msra.mxu0 %v5044_v16  ;;  %4937 = vmatpush1.bf16.msra.mxu1 %v5044_v16  ;;  %v5131_v16 = vld [vmem:[%s5481_s9 + $0x13c] ss:$12 sps:$4 sm:$0xff]  }
  0x49   : > { %1835 = vmatprep.subr.bf16.mxu0 %v5399_v1  ;;  %4922 = vmatprep.subr.bf16.mxu1 %v5399_v1 }
  0x4c   : > { %1836 = vmatpush1.bf16.msra.mxu0 %v5045_v17  ;;  %4938 = vmatpush1.bf16.msra.mxu1 %v5045_v17  ;;  %v5133_v17 = vld [vmem:[%s5481_s9 + $0x5bc] ss:$12 sps:$4 sm:$0xff]  }
  0x4d   : > { %1837 = vmatprep.subr.bf16.mxu0 %v5399_v1  ;;  %4923 = vmatprep.subr.bf16.mxu1 %v5399_v1  ;;  %v5107_v1 = vld [vmem:[%s5481_s9 + $0x55c] ss:$12 sps:$4 sm:$0xff]  }
  0x50   : > { %1838 = vmatpush1.bf16.msra.mxu0 %v5046_v18  ;;  %4939 = vmatpush1.bf16.msra.mxu1 %v5046_v18  ;;  %v5135_v18 = vld [vmem:[%s5481_s9 + $0x138] ss:$12 sps:$4 sm:$0xff]  }
  0x51   : > { %4766 = vmatprep.subr.bf16.mxu1 %v5053_v19 }
  0x53   : > { %1840 = vmatmul.mubr.bf16.vlgmr.msra.gmra.mrb[0].mxu0 %v5047_v20  ;;  %2224 = vmatmul.mubr.bf16.vlgmr.msra.gmra.mrb[0].mxu1 %v5050_v21  ;;  %v5138_v20 = vld [vmem:[%s5481_s9 + $0x154] ss:$12 sps:$4 sm:$0xff]  }
  0x54   : > { %4767 = vmatpush3.bf16.msra.mxu1 %v5053_v19  ;;  %1847 = vmatprep.mubr.bf16.mxu0 %v5054_v22  ;;  %v5136_v19 = vld [vmem:[%s5481_s9 + $0x5b8] ss:$12 sps:$4 sm:$0xff]   ;;  %v5140_v21 = vld [vmem:[%s5481_s9 + $0x5d4] ss:$12 sps:$4 sm:$0xff]   ;;  %v5142_v22 = vld [vmem:[%s5481_s9 + $0x150] ss:$12 sps:$4 sm:$0xff]  }
  0x55   : > { %2231 = vmatprep.mubr.bf16.mxu1 %v5056_v23  ;;  %4768 = vmatprep.subr.bf16.mxu1 %v5066_v24  ;;  %v5143_v23 = vld [vmem:[%s5481_s9 + $0x5d0] ss:$12 sps:$4 sm:$0xff]  }
  0x58   : > { %4769 = vmatpush3.bf16.msra.mxu1 %v5066_v24  ;;  %v5144_v24 = vld [vmem:[%s5481_s9 + $0x16c] ss:$12 sps:$4 sm:$0xff]  }
  0x59   : > { %4770 = vmatprep.subr.bf16.mxu1 %v5079_v26 }
  0x5b   : > { %1848 = vmatmul.mubr.bf16.gmra.mrb[4].mxu0 %v5058_v25  ;;  %2232 = vmatmul.mubr.bf16.gmra.mrb[4].mxu1 %v5059_v27  ;;  %v5146_v25 = vld [vmem:[%s5481_s9 + $0x5ec] ss:$12 sps:$4 sm:$0xff]   ;;  %v5149_v27 = vld [vmem:[%s5481_s9 + $0x5e8] ss:$12 sps:$4 sm:$0xff]  }
  0x5c   : > { %1855 = vmatprep.mubr.bf16.mxu0 %v5060_v28  ;;  %2239 = vmatprep.mubr.bf16.mxu1 %v5062_v29  ;;  %v5150_v28 = vld [vmem:[%s5481_s9 + $0x184] ss:$12 sps:$4 sm:$0xff]   ;;  %v5152_v29 = vld [vmem:[%s5481_s9 + $0x8] ss:$12 sps:$4 sm:$0xff]  }
  0x5d   : > { %4771 = vmatpush3.bf16.msra.mxu1 %v5079_v26  ;;  %v5148_v26 = vld [vmem:[%s5481_s9 + $0x168] ss:$12 sps:$4 sm:$0xff]  }
  0x5e   : > { %4772 = vmatprep.subr.bf16.mxu1 %v5096_v30 }
  0x61   : > { %4773 = vmatpush3.bf16.msra.mxu1 %v5096_v30  ;;  %v5153_v30 = vld [vmem:[%s5481_s9 + $0x180] ss:$12 sps:$4 sm:$0xff]  }
  0x62   : > { %4774 = vmatprep.subr.bf16.mxu1 %v5111_v31 }
  0x63   : > { %1856 = vmatmul.mubr.bf16.gmra.mrb[8].mxu0 %v5064_v32  ;;  %2240 = vmatmul.mubr.bf16.gmra.mrb[8].mxu1 %v5065_v33  ;;  %v5155_v32 = vld [vmem:[%s5481_s9 + $0x19c] ss:$12 sps:$4 sm:$0xff]   ;;  %v5157_v33 = vld [vmem:[%s5481_s9 + $0x38] ss:$12 sps:$4 sm:$0xff]  }
  0x64   : > { %1863 = vmatprep.mubr.bf16.mxu0 %v5067_v34  ;;  %2247 = vmatprep.mubr.bf16.mxu1 %v5069_v35  ;;  %v5158_v34 = vld [vmem:[%s5481_s9 + $0x198] ss:$12 sps:$4 sm:$0xff]   ;;  %v5159_v35 = vld [vmem:[%s5481_s9 + $0x50] ss:$12 sps:$4 sm:$0xff]  }
  0x65   : > { %4775 = vmatpush3.bf16.msra.mxu1 %v5111_v31  ;;  %v5154_v31 = vld [vmem:[%s5481_s9 + $0x20] ss:$12 sps:$4 sm:$0xff]  }
  0x66   : > { %4776 = vmatprep.subr.bf16.mxu1 %v5124_v38 }
  0x69   : > { %4777 = vmatpush3.bf16.msra.mxu1 %v5124_v38  ;;  %v5163_v38 = vld [vmem:[%s5481_s9 + $0x1b0] ss:$12 sps:$4 sm:$0xff]  }
  0x6a   : > { %4778 = vmatprep.subr.bf16.mxu1 %v1805_v45 }
  0x6b   : > { %1864 = vmatmul.mubr.bf16.gmra.mrb[12].mxu0 %v5071_v41  ;;  %2248 = vmatmul.mubr.bf16.gmra.mrb[12].mxu1 %v5072_v42  ;;  %v5167_v41 = vld [vmem:[%s5481_s9 + $0x98] ss:$12 sps:$4 sm:$0xff]   ;;  %v5168_v42 = vld [vmem:[%s5481_s9 + $0x1c8] ss:$12 sps:$4 sm:$0xff]  }
  0x6c   : > { %1871 = vmatprep.mubr.bf16.mxu0 %v5073_v43  ;;  %2255 = vmatprep.mubr.bf16.mxu1 %v5075_v44  ;;  %v5169_v43 = vld [vmem:[%s5481_s9 + $0xb0] ss:$12 sps:$4 sm:$0xff]  }
  0x6d   : > { %4779 = vmatpush3.bf16.msra.mxu1 %v1805_v45  ;;  %v5170_v44 = vld [vmem:[%s5481_s9 + $0x1e4] ss:$12 sps:$4 sm:$0xff]   ;;  %v5172_v45 = vld [vmem:[%s5481_s9 + $0xc8] ss:$12 sps:$4 sm:$0xff]  }
  0x73   : > { %1872 = vmatmul.mubr.bf16.gmra.mrb[16].mxu0 %v5077_v46  ;;  %2256 = vmatmul.mubr.bf16.gmra.mrb[16].mxu1 %v5078_v47  ;;  %v5173_v46 = vld [vmem:[%s5481_s9 + $0x1e0] ss:$12 sps:$4 sm:$0xff]  }
  0x74   : > { %1879 = vmatprep.mubr.bf16.mxu0 %v5080_v48  ;;  %2263 = vmatprep.mubr.bf16.mxu1 %v5082_v49  ;;  %v5174_v47 = vld [vmem:[%s5481_s9 + $0xe0] ss:$12 sps:$4 sm:$0xff]   ;;  %v5175_v48 = vld [vmem:[%s5481_s9 + $0x1fc] ss:$12 sps:$4 sm:$0xff]   ;;  %v5177_v49 = vld [vmem:[%s5481_s9 + $0xf8] ss:$12 sps:$4 sm:$0xff]  }
  0x7b   : > { %1880 = vmatmul.mubr.bf16.gmra.mrb[20].mxu0 %v5084_v50  ;;  %2264 = vmatmul.mubr.bf16.gmra.mrb[20].mxu1 %v5085_v51  ;;  %v5178_v50 = vld [vmem:[%s5481_s9 + $0x1f8] ss:$12 sps:$4 sm:$0xff]   ;;  %v5179_v51 = vld [vmem:[%s5481_s9 + $0x110] ss:$12 sps:$4 sm:$0xff]  }
  0x7c   : > { %1887 = vmatprep.mubr.bf16.mxu0 %v5086_v52  ;;  %2271 = vmatprep.mubr.bf16.mxu1 %v5088_v53  ;;  %v5180_v52 = vld [vmem:[%s5481_s9 + $0x214] ss:$12 sps:$4 sm:$0xff]  }
  0x7d   : > { %v5182_v53 = vld [vmem:[%s5481_s9 + $0x128] ss:$12 sps:$4 sm:$0xff]  }
  0x83   : > { %1888 = vmatmul.mubr.bf16.gmra.mrb[24].mxu0 %v5090_v54  ;;  %2272 = vmatmul.mubr.bf16.gmra.mrb[24].mxu1 %v5091_v55  ;;  %v5183_v54 = vld [vmem:[%s5481_s9 + $0x210] ss:$12 sps:$4 sm:$0xff]   ;;  %v5184_v55 = vld [vmem:[%s5481_s9 + $0x140] ss:$12 sps:$4 sm:$0xff]  }
  0x84   : > { %1895 = vmatprep.mubr.bf16.mxu0 %v5092_v56  ;;  %2279 = vmatprep.mubr.bf16.mxu1 %v5094_v57  ;;  %v5185_v56 = vld [vmem:[%s5481_s9 + $0x22c] ss:$12 sps:$4 sm:$0xff]  }
  0x85   : > { %v5187_v57 = vld [vmem:[%s5481_s9 + $0x158] ss:$12 sps:$4 sm:$0xff]  }
  0x8b   : > { %1896 = vmatmul.mubr.bf16.gmra.mrb[28].mxu0 %v5097_v58  ;;  %2280 = vmatmul.mubr.bf16.gmra.mrb[28].mxu1 %v5098_v59  ;;  %v5188_v58 = vld [vmem:[%s5481_s9 + $0x228] ss:$12 sps:$4 sm:$0xff]   ;;  %v5189_v59 = vld [vmem:[%s5481_s9 + $0x170] ss:$12 sps:$4 sm:$0xff]  }
  0x8c   : > { %1903 = vmatprep.mubr.bf16.mxu0 %v5099_v60  ;;  %2287 = vmatprep.mubr.bf16.mxu1 %v5101_v61  ;;  %v5190_v60 = vld [vmem:[%s5481_s9 + $0x244] ss:$12 sps:$4 sm:$0xff]   ;;  %v5192_v61 = vld [vmem:[%s5481_s9 + $0x188] ss:$12 sps:$4 sm:$0xff]  }
  0x93   : > { %1904 = vmatmul.mubr.bf16.gmra.mrb[32].mxu0 %v5103_v62  ;;  %2288 = vmatmul.mubr.bf16.gmra.mrb[32].mxu1 %v5104_v63  ;;  %v5193_v62 = vld [vmem:[%s5481_s9 + $0x240] ss:$12 sps:$4 sm:$0xff]  }
  0x94   : > { %1911 = vmatprep.mubr.bf16.mxu0 %v5105_v0  ;;  %2295 = vmatprep.mubr.bf16.mxu1 %v5107_v1  ;;  %v5194_v63 = vld [vmem:[%s5481_s9 + $0x1a0] ss:$12 sps:$4 sm:$0xff]   ;;  %v5195_v0 = vld [vmem:[%s5481_s9 + $0x25c] ss:$12 sps:$4 sm:$0xff]   ;;  %v5197_v1 = vld [vmem:[%s5481_s9 + $0x1b8] ss:$12 sps:$4 sm:$0xff]  }
  0x9b   : > { %1912 = vmatmul.mubr.bf16.gmra.mrb[36].mxu0 %v5109_v2  ;;  %2296 = vmatmul.mubr.bf16.gmra.mrb[36].mxu1 %v5110_v3  ;;  %v5198_v2 = vld [vmem:[%s5481_s9 + $0x258] ss:$12 sps:$4 sm:$0xff]   ;;  %v5199_v3 = vld [vmem:[%s5481_s9 + $0x1d0] ss:$12 sps:$4 sm:$0xff]  }
  0x9c   : > { %1919 = vmatprep.mubr.bf16.mxu0 %v5112_v4  ;;  %2303 = vmatprep.mubr.bf16.mxu1 %v5114_v5  ;;  %v5200_v4 = vld [vmem:[%s5481_s9 + $0x274] ss:$12 sps:$4 sm:$0xff]  }
  0x9d   : > { %v5202_v5 = vld [vmem:[%s5481_s9 + $0x1e8] ss:$12 sps:$4 sm:$0xff]  }
  0xa3   : > { %1920 = vmatmul.mubr.bf16.gmra.mrb[40].mxu0 %v5116_v6  ;;  %2304 = vmatmul.mubr.bf16.gmra.mrb[40].mxu1 %v5117_v7  ;;  %v5203_v6 = vld [vmem:[%s5481_s9 + $0x270] ss:$12 sps:$4 sm:$0xff]   ;;  %v5204_v7 = vld [vmem:[%s5481_s9 + $0x200] ss:$12 sps:$4 sm:$0xff]  }
  0xa4   : > { %1927 = vmatprep.mubr.bf16.mxu0 %v5118_v8  ;;  %2311 = vmatprep.mubr.bf16.mxu1 %v5120_v9  ;;  %v5205_v8 = vld [vmem:[%s5481_s9 + $0x28c] ss:$12 sps:$4 sm:$0xff]  }
  0xa5   : > { %v5207_v9 = vld [vmem:[%s5481_s9 + $0x218] ss:$12 sps:$4 sm:$0xff]  }
  0xab   : > { %1928 = vmatmul.mubr.bf16.gmra.mrb[44].mxu0 %v5122_v10  ;;  %2312 = vmatmul.mubr.bf16.gmra.mrb[44].mxu1 %v5123_v11 }
  0xac   : > { %1935 = vmatprep.mubr.bf16.mxu0 %v5125_v12  ;;  %2319 = vmatprep.mubr.bf16.mxu1 %v5127_v13 }
  0xb3   : > { %1936 = vmatmul.mubr.bf16.gmra.mrb[48].mxu0 %v5129_v14  ;;  %2320 = vmatmul.mubr.bf16.gmra.mrb[48].mxu1 %v5130_v15  ;;  %v5208_v14 = vld [vmem:[%s5481_s9 + $0x288] ss:$12 sps:$4 sm:$0xff]   ;;  %v5209_v15 = vld [vmem:[%s5481_s9 + $0x230] ss:$12 sps:$4 sm:$0xff]  }
  0xb4   : > { %1943 = vmatprep.mubr.bf16.mxu0 %v5131_v16  ;;  %2327 = vmatprep.mubr.bf16.mxu1 %v5133_v17 }
  0xbb   : > { %1944 = vmatmul.mubr.bf16.gmra.mrb[52].mxu0 %v5135_v18  ;;  %2328 = vmatmul.mubr.bf16.gmra.mrb[52].mxu1 %v5136_v19  ;;  %v5210_v18 = vld [vmem:[%s5481_s9 + $0x2a4] ss:$12 sps:$4 sm:$0xff]   ;;  %v5212_v19 = vld [vmem:[%s5481_s9 + $0x248] ss:$12 sps:$4 sm:$0xff]  }
  0xbc   : > { %1951 = vmatprep.mubr.bf16.mxu0 %v5138_v20  ;;  %2335 = vmatprep.mubr.bf16.mxu1 %v5140_v21 }
  0xc3   : > { %1952 = vmatmul.mubr.bf16.gmra.mrb[56].mxu0 %v5142_v22  ;;  %2336 = vmatmul.mubr.bf16.gmra.mrb[56].mxu1 %v5143_v23 }
  0xc4   : > { %1959 = vmatprep.mubr.bf16.mxu0 %v5144_v24  ;;  %2343 = vmatprep.mubr.bf16.mxu1 %v5146_v25 }
  0xcb   : > { %1960 = vmatmul.mubr.bf16.gmra.mrb[60].mxu0 %v5148_v26  ;;  %2344 = vmatmul.mubr.bf16.gmra.mrb[60].mxu1 %v5149_v27  ;;  %v5213_v26 = vld [vmem:[%s5481_s9 + $0x2a0] ss:$12 sps:$4 sm:$0xff]  }
  0xcc   : > { %1967 = vmatprep.mubr.bf16.mxu0 %v5150_v28  ;;  %4780 = vmatprep.mubr.msk.bf16.mxu1 %vm1607_vm2, %v5152_v29  ;;  %v5214_v27 = vld [vmem:[%s5481_s9 + $0x260] ss:$12 sps:$4 sm:$0xff]  }
  0xd3   : > { %1968 = vmatmul.mubr.bf16.gmra.mrb[64].mxu0 %v5153_v30  ;;  %4781 = vmatmul.mubr.msk.bf16.vlgmr.msra.gmra.mrb[64].mxu1 %vm1607_vm2, %v5154_v31  ;;  %v5215_v30 = vld [vmem:[%s5481_s9 + $0x2bc] ss:$12 sps:$4 sm:$0xff]   ;;  %v5217_v31 = vld [vmem:[%s5481_s9 + $0x278] ss:$12 sps:$4 sm:$0xff]  }
  0xd4   : > { %1975 = vmatprep.mubr.bf16.mxu0 %v5155_v32  ;;  %4784 = vmatprep.mubr.msk.bf16.mxu1 %vm1607_vm2, %v5157_v33 }
  0xdb   : > { %1976 = vmatmul.mubr.bf16.gmra.mrb[68].mxu0 %v5158_v34  ;;  %4785 = vmatmul.mubr.msk.bf16.gmra.mrb[68].mxu1 %vm1607_vm2, %v5159_v35 }
  0xdc   : > { %1983 = vmatprep.mubr.bf16.mxu0 %v5160_v36  ;;  %4788 = vmatprep.mubr.msk.bf16.mxu1 %vm1607_vm2, %v5162_v37 }
  0xe3   : > { %1984 = vmatmul.mubr.bf16.gmra.mrb[72].mxu0 %v5163_v38  ;;  %4789 = vmatmul.mubr.msk.bf16.gmra.mrb[72].mxu1 %vm1607_vm2, %v5164_v39  ;;  %v5218_v38 = vld [vmem:[%s5481_s9 + $0x2b8] ss:$12 sps:$4 sm:$0xff]   ;;  %v5219_v39 = vld [vmem:[%s5481_s9 + $0x290] ss:$12 sps:$4 sm:$0xff]  }
  0xe4   : > { %1991 = vmatprep.mubr.bf16.mxu0 %v5165_v40  ;;  %4792 = vmatprep.mubr.msk.bf16.mxu1 %vm1607_vm2, %v5167_v41 }
  0xeb   : > { %1992 = vmatmul.mubr.bf16.gmra.mrb[76].mxu0 %v5168_v42  ;;  %4793 = vmatmul.mubr.msk.bf16.gmra.mrb[76].mxu1 %vm1607_vm2, %v5169_v43  ;;  %v5220_v42 = vld [vmem:[%s5481_s9 + $0x2d4] ss:$12 sps:$4 sm:$0xff]  }
  0xec   : > { %1999 = vmatprep.mubr.bf16.mxu0 %v5170_v44  ;;  %4796 = vmatprep.mubr.msk.bf16.mxu1 %vm1607_vm2, %v5172_v45  ;;  %v5222_v43 = vld [vmem:[%s5481_s9 + $0x2a8] ss:$12 sps:$4 sm:$0xff]  }
  0xf3   : > { %2000 = vmatmul.mubr.bf16.gmra.mrb[80].mxu0 %v5173_v46  ;;  %4797 = vmatmul.mubr.msk.bf16.gmra.mrb[80].mxu1 %vm1607_vm2, %v5174_v47 }
  0xf4   : > { %2007 = vmatprep.mubr.bf16.mxu0 %v5175_v48  ;;  %4800 = vmatprep.mubr.msk.bf16.mxu1 %vm1607_vm2, %v5177_v49 }
  0xfb   : > { %2008 = vmatmul.mubr.bf16.gmra.mrb[84].mxu0 %v5178_v50  ;;  %4801 = vmatmul.mubr.msk.bf16.gmra.mrb[84].mxu1 %vm1607_vm2, %v5179_v51  ;;  %v5223_v50 = vld [vmem:[%s5481_s9 + $0x2d0] ss:$12 sps:$4 sm:$0xff]   ;;  %v5224_v51 = vld [vmem:[%s5481_s9 + $0x2c0] ss:$12 sps:$4 sm:$0xff]  }
  0xfc   : > { %2015 = vmatprep.mubr.bf16.mxu0 %v5180_v52  ;;  %4804 = vmatprep.mubr.msk.bf16.mxu1 %vm1607_vm2, %v5182_v53 }
 0x103   : > { %2016 = vmatmul.mubr.bf16.gmra.mrb[88].mxu0 %v5183_v54  ;;  %4805 = vmatmul.mubr.msk.bf16.gmra.mrb[88].mxu1 %vm1607_vm2, %v5184_v55  ;;  %v5225_v54 = vld [vmem:[%s5481_s9 + $0x2ec] ss:$12 sps:$4 sm:$0xff]  }
 0x104   : > { %2023 = vmatprep.mubr.bf16.mxu0 %v5185_v56  ;;  %4808 = vmatprep.mubr.msk.bf16.mxu1 %vm1607_vm2, %v5187_v57  ;;  %v5227_v55 = vld [vmem:[%s5481_s9 + $0x2d8] ss:$12 sps:$4 sm:$0xff]  }
 0x10b   : > { %2024 = vmatmul.mubr.bf16.gmra.mrb[92].mxu0 %v5188_v58  ;;  %4809 = vmatmul.mubr.msk.bf16.gmra.mrb[92].mxu1 %vm1607_vm2, %v5189_v59 }
 0x10c   : > { %2031 = vmatprep.mubr.bf16.mxu0 %v5190_v60  ;;  %4812 = vmatprep.mubr.msk.bf16.mxu1 %vm1607_vm2, %v5192_v61 }
 0x113   : > { %2032 = vmatmul.mubr.bf16.gmra.mrb[96].mxu0 %v5193_v62  ;;  %4813 = vmatmul.mubr.msk.bf16.gmra.mrb[96].mxu1 %vm1607_vm2, %v5194_v63  ;;  %v5228_v62 = vld [vmem:[%s5481_s9 + $0x2e8] ss:$12 sps:$4 sm:$0xff]   ;;  %v5229_v63 = vld [vmem:[%s5481_s9 + $0x2f0] ss:$12 sps:$4 sm:$0xff]  }
 0x114   : > { %2039 = vmatprep.mubr.bf16.mxu0 %v5195_v0  ;;  %4816 = vmatprep.mubr.msk.bf16.mxu1 %vm1607_vm2, %v5197_v1 }
 0x11b   : > { %2040 = vmatmul.mubr.bf16.gmra.mrb[100].mxu0 %v5198_v2  ;;  %4817 = vmatmul.mubr.msk.bf16.gmra.mrb[100].mxu1 %vm1607_vm2, %v5199_v3  ;;  %v5230_v2 = vld [vmem:[%s5481_s9 + $0x304] ss:$12 sps:$4 sm:$0xff]   ;;  %v5232_v3 = vld [vmem:[%s5481_s9 + $0x308] ss:$12 sps:$4 sm:$0xff]  }
 0x11c   : > { %2047 = vmatprep.mubr.bf16.mxu0 %v5200_v4  ;;  %4820 = vmatprep.mubr.msk.bf16.mxu1 %vm1607_vm2, %v5202_v5 }
 0x123   : > { %2048 = vmatmul.mubr.bf16.gmra.mrb[104].mxu0 %v5203_v6  ;;  %4821 = vmatmul.mubr.msk.bf16.gmra.mrb[104].mxu1 %vm1607_vm2, %v5204_v7 }
 0x124   : > { %2055 = vmatprep.mubr.bf16.mxu0 %v5205_v8  ;;  %4824 = vmatprep.mubr.msk.bf16.mxu1 %vm1607_vm2, %v5207_v9 }
 0x126   : > { %v5694_v10 = vpop.f32.mrb[0].mxu0  ;;  %v5696_v11 = vpop.f32.mrb[0].mxu1 }
 0x127   : > { %v1843_v12 = vpop.f32.mrb[1].mxu0  ;;  %v2227_v13 = vpop.f32.mrb[1].mxu1 }
 0x128   : > { %v5700_v16 = vpop.f32.mrb[2].mxu0  ;;  %v5702_v17 = vpop.f32.mrb[2].mxu1  ;;  %v5233_v12 = vld [vmem:[%s5481_s9 + $0x300] ss:$12 sps:$4 sm:$0xff]  }
 0x129   : > { %v1846_v20 = vpop.f32.mrb[3].mxu0  ;;  %v2230_v21 = vpop.f32.mrb[3].mxu1  ;;  %v5234_v13 = vld [vmem:[%s5481_s9 + $0x320] ss:$12 sps:$4 sm:$0xff]  }
 0x12b   : > { %2056 = vmatmul.mubr.bf16.gmra.mrb[108].mxu0 %v5208_v14  ;;  %4825 = vmatmul.mubr.msk.bf16.gmra.mrb[108].mxu1 %vm1607_vm2, %v5209_v15 }
 0x12c   : > { %2063 = vmatprep.mubr.bf16.mxu0 %v5210_v18  ;;  %4828 = vmatprep.mubr.msk.bf16.mxu1 %vm1607_vm2, %v5212_v19  ;;  %v5235_v18 = vld [vmem:[%s5481_s9 + $0x31c] ss:$12 sps:$4 sm:$0xff]   ;;  %v5237_v19 = vld [vmem:[%s5481_s9 + $0x338] ss:$12 sps:$4 sm:$0xff]  }
 0x12e   : > { %v5708_v22 = vpop.f32.mrb[4].mxu0  ;;  %v5710_v23 = vpop.f32.mrb[4].mxu1 }
 0x12f   : > { %v1851_v24 = vpop.f32.mrb[5].mxu0  ;;  %v2235_v25 = vpop.f32.mrb[5].mxu1 }
 0x130   : > { %v5714_v28 = vpop.f32.mrb[6].mxu0  ;;  %v5716_v29 = vpop.f32.mrb[6].mxu1 }
 0x131   : > { %v1854_v32 = vpop.f32.mrb[7].mxu0  ;;  %v2238_v33 = vpop.f32.mrb[7].mxu1 }
 0x133   : > { %2064 = vmatmul.mubr.bf16.gmra.mrb[112].mxu0 %v5213_v26  ;;  %4829 = vmatmul.mubr.msk.bf16.gmra.mrb[112].mxu1 %vm1607_vm2, %v5214_v27 }
 0x134   : > { %2071 = vmatprep.mubr.bf16.mxu0 %v5215_v30  ;;  %4832 = vmatprep.mubr.msk.bf16.mxu1 %vm1607_vm2, %v5217_v31  ;;  %v5238_v30 = vld [vmem:[%s5481_s9 + $0x318] ss:$12 sps:$4 sm:$0xff]   ;;  %v5239_v31 = vld [vmem:[%s5481_s9 + $0x350] ss:$12 sps:$4 sm:$0xff]  }
 0x136   : > { %v5722_v34 = vpop.f32.mrb[8].mxu0  ;;  %v5724_v35 = vpop.f32.mrb[8].mxu1 }
 0x137   : > { %v1859_v36 = vpop.f32.mrb[9].mxu0  ;;  %v2243_v37 = vpop.f32.mrb[9].mxu1 }
 0x138   : > { %v5728_v40 = vpop.f32.mrb[10].mxu0  ;;  %v5730_v41 = vpop.f32.mrb[10].mxu1  ;;  %v5240_v36 = vld [vmem:[%s5481_s9 + $0x334] ss:$12 sps:$4 sm:$0xff]  }
 0x139   : > { %v1862_v44 = vpop.f32.mrb[11].mxu0  ;;  %v2246_v45 = vpop.f32.mrb[11].mxu1  ;;  %v5242_v37 = vld [vmem:[%s5481_s9 + $0x368] ss:$12 sps:$4 sm:$0xff]  }
 0x13b   : > { %2072 = vmatmul.mubr.bf16.gmra.mrb[116].mxu0 %v5218_v38  ;;  %4833 = vmatmul.mubr.msk.bf16.gmra.mrb[116].mxu1 %vm1607_vm2, %v5219_v39 }
 0x13c   : > { %2079 = vmatprep.mubr.bf16.mxu0 %v5220_v42  ;;  %4836 = vmatprep.mubr.msk.bf16.mxu1 %vm1607_vm2, %v5222_v43 }
 0x13e   : > { %v5736_v46 = vpop.f32.mrb[12].mxu0  ;;  %v5738_v47 = vpop.f32.mrb[12].mxu1 }
 0x13f   : > { %v1867_v48 = vpop.f32.mrb[13].mxu0  ;;  %v2251_v49 = vpop.f32.mrb[13].mxu1 }
 0x140   : > { %v5742_v52 = vpop.f32.mrb[14].mxu0  ;;  %v5744_v53 = vpop.f32.mrb[14].mxu1  ;;  %v5243_v48 = vld [vmem:[%s5481_s9 + $0x330] ss:$12 sps:$4 sm:$0xff]   ;;  %v5244_v49 = vld [vmem:[%s5481_s9 + $0x380] ss:$12 sps:$4 sm:$0xff]  }
 0x141   : > { %v1870_v56 = vpop.f32.mrb[15].mxu0  ;;  %v2254_v57 = vpop.f32.mrb[15].mxu1 }
 0x143   : > { %2080 = vmatmul.mubr.bf16.gmra.mrb[120].mxu0 %v5223_v50  ;;  %4837 = vmatmul.mubr.msk.bf16.gmra.mrb[120].mxu1 %vm1607_vm2, %v5224_v51 }
 0x144   : > { %2087 = vmatprep.mubr.bf16.mxu0 %v5225_v54  ;;  %4840 = vmatprep.mubr.msk.bf16.mxu1 %vm1607_vm2, %v5227_v55  ;;  %v5245_v54 = vld [vmem:[%s5481_s9 + $0x34c] ss:$12 sps:$4 sm:$0xff]  }
 0x145   : > { %v5247_v55 = vld [vmem:[%s5481_s9 + $0x398] ss:$12 sps:$4 sm:$0xff]  }
 0x146   : > { %v5750_v58 = vpop.f32.mrb[16].mxu0  ;;  %v5752_v59 = vpop.f32.mrb[16].mxu1 }
 0x147   : > { %v1875_v60 = vpop.f32.mrb[17].mxu0  ;;  %v2259_v61 = vpop.f32.mrb[17].mxu1 }
 0x148   : > { %v5756_v0 = vpop.f32.mrb[18].mxu0  ;;  %v5758_v1 = vpop.f32.mrb[18].mxu1 }
 0x149   : > { %v1878_v4 = vpop.f32.mrb[19].mxu0  ;;  %v2262_v5 = vpop.f32.mrb[19].mxu1 }
 0x14b   : > { %2088 = vmatmul.mubr.bf16.gmra.mrb[124].mxu0 %v5228_v62  ;;  %4841 = vmatmul.mubr.msk.bf16.gmra.mrb[124].mxu1 %vm1607_vm2, %v5229_v63 }
 0x14c   : > { %2095 = vmatprep.mubr.bf16.mxu0 %v5230_v2  ;;  %4844 = vmatprep.mubr.msk.bf16.mxu1 %vm1607_vm2, %v5232_v3  ;;  %v5248_v2 = vld [vmem:[%s5481_s9 + $0x348] ss:$12 sps:$4 sm:$0xff]   ;;  %v5249_v3 = vld [vmem:[%s5481_s9 + $0x3b0] ss:$12 sps:$4 sm:$0xff]  }
 0x14e   : > { %v5764_v6 = vpop.f32.mrb[20].mxu0  ;;  %v5766_v7 = vpop.f32.mrb[20].mxu1 }
 0x14f   : > { %v1883_v8 = vpop.f32.mrb[21].mxu0  ;;  %v2267_v9 = vpop.f32.mrb[21].mxu1 }
 0x150   : > { %v5770_v14 = vpop.f32.mrb[22].mxu0  ;;  %v5772_v15 = vpop.f32.mrb[22].mxu1  ;;  %v5250_v8 = vld [vmem:[%s5481_s9 + $0x364] ss:$12 sps:$4 sm:$0xff]   ;;  %v5252_v9 = vld [vmem:[%s5481_s9 + $0x3c8] ss:$12 sps:$4 sm:$0xff]  }
 0x151   : > { %v1886_v20 = vpop.f32.mrb[23].mxu0  ;;  %v2270_v21 = vpop.f32.mrb[23].mxu1 }
 0x153   : > { %2096 = vmatmul.mubr.bf16.gmra.mrb[128].mxu0 %v5233_v12  ;;  %4845 = vmatmul.mubr.msk.bf16.gmra.mrb[128].mxu1 %vm1607_vm2, %v5234_v13 }
 0x154   : > { %2103 = vmatprep.mubr.bf16.mxu0 %v5235_v18  ;;  %4848 = vmatprep.mubr.msk.bf16.mxu1 %vm1607_vm2, %v5237_v19 }
 0x156   : > { %v5778_v24 = vpop.f32.mrb[24].mxu0  ;;  %v5780_v25 = vpop.f32.mrb[24].mxu1 }
 0x157   : > { %6733 = vst [vmem:[#allocation3_spill] sm:$0xff] %v5780_v25  ;;  %v1891_v26 = vpop.f32.mrb[25].mxu0  ;;  %v2275_v27 = vpop.f32.mrb[25].mxu1 }
 0x158   : > { %v5784_v32 = vpop.f32.mrb[26].mxu0  ;;  %v5786_v33 = vpop.f32.mrb[26].mxu1  ;;  %v5253_v26 = vld [vmem:[%s5481_s9 + $0x360] ss:$12 sps:$4 sm:$0xff]  }
 0x159   : > { %6734 = vst [vmem:[#allocation4_spill] sm:$0xff] %v5786_v33  ;;  %v1894_v38 = vpop.f32.mrb[27].mxu0  ;;  %v2278_v39 = vpop.f32.mrb[27].mxu1  ;;  %v5254_v27 = vld [vmem:[%s5481_s9 + $0x3e0] ss:$12 sps:$4 sm:$0xff]  }
 0x15b   : > { %2104 = vmatmul.mubr.bf16.gmra.mrb[132].mxu0 %v5238_v30  ;;  %4849 = vmatmul.mubr.msk.bf16.gmra.mrb[132].mxu1 %vm1607_vm2, %v5239_v31 }
 0x15c   : > { %2111 = vmatprep.mubr.bf16.mxu0 %v5240_v36  ;;  %4852 = vmatprep.mubr.msk.bf16.mxu1 %vm1607_vm2, %v5242_v37  ;;  %v5255_v36 = vld [vmem:[%s5481_s9 + $0x37c] ss:$12 sps:$4 sm:$0xff]   ;;  %v5257_v37 = vld [vmem:[%s5481_s9 + $0x3f8] ss:$12 sps:$4 sm:$0xff]  }
 0x15e   : > { %v5792_v42 = vpop.f32.mrb[28].mxu0  ;;  %v5794_v43 = vpop.f32.mrb[28].mxu1 }
 0x15f   : > { %6735 = vst [vmem:[#allocation5_spill] sm:$0xff] %v5794_v43  ;;  %v1899_v44 = vpop.f32.mrb[29].mxu0  ;;  %v2283_v45 = vpop.f32.mrb[29].mxu1 }
 0x160   : > { %v5798_v50 = vpop.f32.mrb[30].mxu0  ;;  %v5800_v51 = vpop.f32.mrb[30].mxu1 }
 0x161   : > { %6736 = vst [vmem:[#allocation6_spill] sm:$0xff] %v5800_v51  ;;  %v1902_v56 = vpop.f32.mrb[31].mxu0  ;;  %v2286_v57 = vpop.f32.mrb[31].mxu1 }
 0x163   : > { %2112 = vmatmul.mubr.bf16.gmra.mrb[136].mxu0 %v5243_v48  ;;  %4853 = vmatmul.mubr.msk.bf16.gmra.mrb[136].mxu1 %vm1607_vm2, %v5244_v49 }
 0x164   : > { %2119 = vmatprep.mubr.bf16.mxu0 %v5245_v54  ;;  %4856 = vmatprep.mubr.msk.bf16.mxu1 %vm1607_vm2, %v5247_v55  ;;  %v5258_v54 = vld [vmem:[%s5481_s9 + $0x378] ss:$12 sps:$4 sm:$0xff]   ;;  %v5259_v55 = vld [vmem:[%s5481_s9 + $0x410] ss:$12 sps:$4 sm:$0xff]  }
 0x166   : > { %v5806_v60 = vpop.f32.mrb[32].mxu0  ;;  %v5808_v61 = vpop.f32.mrb[32].mxu1 }
 0x167   : > { %6737 = vst [vmem:[#allocation7_spill] sm:$0xff] %v5808_v61  ;;  %v1907_v62 = vpop.f32.mrb[33].mxu0  ;;  %v2291_v63 = vpop.f32.mrb[33].mxu1  ;;  %v5292_v61 = vld [vmem:[%s5481_s9 + $0x548] ss:$12 sps:$4 sm:$0xff]  }
 0x168   : > { %v5812_v4 = vpop.f32.mrb[34].mxu0  ;;  %v5814_v5 = vpop.f32.mrb[34].mxu1  ;;  %v5260_v62 = vld [vmem:[%s5481_s9 + $0x394] ss:$12 sps:$4 sm:$0xff]  }
 0x169   : > { %6738 = vst [vmem:[#allocation8_spill] sm:$0xff] %v5814_v5  ;;  %v1910_v12 = vpop.f32.mrb[35].mxu0  ;;  %v2294_v13 = vpop.f32.mrb[35].mxu1  ;;  %v5262_v63 = vld [vmem:[%s5481_s9 + $0x428] ss:$12 sps:$4 sm:$0xff]  }
 0x16b   : > { %2120 = vmatmul.mubr.bf16.gmra.mrb[140].mxu0 %v5248_v2  ;;  %4857 = vmatmul.mubr.msk.bf16.gmra.mrb[140].mxu1 %vm1607_vm2, %v5249_v3 }
 0x16c   : > { %2127 = vmatprep.mubr.bf16.mxu0 %v5250_v8  ;;  %4860 = vmatprep.mubr.msk.bf16.mxu1 %vm1607_vm2, %v5252_v9 }
 0x16e   : > { %v5820_v18 = vpop.f32.mrb[36].mxu0  ;;  %v5822_v19 = vpop.f32.mrb[36].mxu1 }
 0x16f   : > { %6739 = vst [vmem:[#allocation9_spill] sm:$0xff] %v5822_v19  ;;  %v1915_v20 = vpop.f32.mrb[37].mxu0  ;;  %v2299_v21 = vpop.f32.mrb[37].mxu1 }
 0x170   : > { %v5826_v30 = vpop.f32.mrb[38].mxu0  ;;  %v5828_v31 = vpop.f32.mrb[38].mxu1  ;;  %v5263_v20 = vld [vmem:[%s5481_s9 + $0x390] ss:$12 sps:$4 sm:$0xff]   ;;  %v5264_v21 = vld [vmem:[%s5481_s9 + $0x440] ss:$12 sps:$4 sm:$0xff]  }
 0x171   : > { %6740 = vst [vmem:[#allocation10_spill] sm:$0xff] %v5828_v31  ;;  %v1918_v38 = vpop.f32.mrb[39].mxu0  ;;  %v2302_v39 = vpop.f32.mrb[39].mxu1 }
 0x173   : > { %2128 = vmatmul.mubr.bf16.gmra.mrb[144].mxu0 %v5253_v26  ;;  %4861 = vmatmul.mubr.msk.bf16.gmra.mrb[144].mxu1 %vm1607_vm2, %v5254_v27 }
 0x174   : > { %2135 = vmatprep.mubr.bf16.mxu0 %v5255_v36  ;;  %4864 = vmatprep.mubr.msk.bf16.mxu1 %vm1607_vm2, %v5257_v37  ;;  %v5265_v36 = vld [vmem:[%s5481_s9 + $0x3ac] ss:$12 sps:$4 sm:$0xff]  }
 0x175   : > { %v5267_v37 = vld [vmem:[%s5481_s9 + $0x458] ss:$12 sps:$4 sm:$0xff]  }
 0x176   : > { %v5834_v44 = vpop.f32.mrb[40].mxu0  ;;  %v5836_v45 = vpop.f32.mrb[40].mxu1 }
 0x177   : > { %6741 = vst [vmem:[#allocation11_spill] sm:$0xff] %v5836_v45  ;;  %v1923_v48 = vpop.f32.mrb[41].mxu0  ;;  %v2307_v49 = vpop.f32.mrb[41].mxu1 }
 0x178   : > { %v5840_v56 = vpop.f32.mrb[42].mxu0  ;;  %v5842_v57 = vpop.f32.mrb[42].mxu1 }
 0x179   : > { %6742 = vst [vmem:[#allocation12_spill] sm:$0xff] %v5842_v57  ;;  %v1926_v2 = vpop.f32.mrb[43].mxu0  ;;  %v2310_v3 = vpop.f32.mrb[43].mxu1 }
 0x17b   : > { %2136 = vmatmul.mubr.bf16.gmra.mrb[148].mxu0 %v5258_v54  ;;  %4865 = vmatmul.mubr.msk.bf16.gmra.mrb[148].mxu1 %vm1607_vm2, %v5259_v55 }
 0x17c   : > { %2143 = vmatprep.mubr.bf16.mxu0 %v5260_v62  ;;  %4868 = vmatprep.mubr.msk.bf16.mxu1 %vm1607_vm2, %v5262_v63  ;;  %v5268_v62 = vld [vmem:[%s5481_s9 + $0x3a8] ss:$12 sps:$4 sm:$0xff]   ;;  %v5269_v63 = vld [vmem:[%s5481_s9 + $0x470] ss:$12 sps:$4 sm:$0xff]  }
 0x17e   : > { %v5848_v8 = vpop.f32.mrb[44].mxu0  ;;  %v5850_v9 = vpop.f32.mrb[44].mxu1 }
 0x17f   : > { %6743 = vst [vmem:[#allocation13_spill] sm:$0xff] %v5850_v9  ;;  %v1931_v12 = vpop.f32.mrb[45].mxu0  ;;  %v2315_v13 = vpop.f32.mrb[45].mxu1 }
 0x180   : > { %v5854_v26 = vpop.f32.mrb[46].mxu0  ;;  %v5856_v27 = vpop.f32.mrb[46].mxu1  ;;  %v5270_v12 = vld [vmem:[%s5481_s9 + $0x3c4] ss:$12 sps:$4 sm:$0xff]   ;;  %v5272_v13 = vld [vmem:[%s5481_s9 + $0x488] ss:$12 sps:$4 sm:$0xff]  }
 0x181   : > { %6744 = vst [vmem:[#allocation14_spill] sm:$0xff] %v5856_v27  ;;  %v1934_v38 = vpop.f32.mrb[47].mxu0  ;;  %v2318_v39 = vpop.f32.mrb[47].mxu1  ;;  %v5284_v27 = vld [vmem:[%s5481_s9 + $0x500] ss:$12 sps:$4 sm:$0xff]  }
 0x183   : > { %2144 = vmatmul.mubr.bf16.gmra.mrb[152].mxu0 %v5263_v20  ;;  %4869 = vmatmul.mubr.msk.bf16.gmra.mrb[152].mxu1 %vm1607_vm2, %v5264_v21 }
 0x184   : > { %2151 = vmatprep.mubr.bf16.mxu0 %v5265_v36  ;;  %4872 = vmatprep.mubr.msk.bf16.mxu1 %vm1607_vm2, %v5267_v37 }
 0x186   : > { %v5862_v48 = vpop.f32.mrb[48].mxu0  ;;  %v5864_v49 = vpop.f32.mrb[48].mxu1 }
 0x187   : > { %6745 = vst [vmem:[#allocation15_spill] sm:$0xff] %v5864_v49  ;;  %v1939_v54 = vpop.f32.mrb[49].mxu0  ;;  %v2323_v55 = vpop.f32.mrb[49].mxu1 }
 0x188   : > { %v5868_v2 = vpop.f32.mrb[50].mxu0  ;;  %v5870_v3 = vpop.f32.mrb[50].mxu1  ;;  %v5273_v54 = vld [vmem:[%s5481_s9 + $0x3c0] ss:$12 sps:$4 sm:$0xff]  }
 0x189   : > { %6746 = vst [vmem:[#allocation16_spill] sm:$0xff] %v5870_v3  ;;  %v1942_v20 = vpop.f32.mrb[51].mxu0  ;;  %v2326_v21 = vpop.f32.mrb[51].mxu1  ;;  %v5274_v55 = vld [vmem:[%s5481_s9 + $0x4a0] ss:$12 sps:$4 sm:$0xff]  }
 0x18b   : > { %2152 = vmatmul.mubr.bf16.gmra.mrb[156].mxu0 %v5268_v62  ;;  %4873 = vmatmul.mubr.msk.bf16.gmra.mrb[156].mxu1 %vm1607_vm2, %v5269_v63  ;;  %v5275_v62 = vld [vmem:[%s5481_s9 + $0x3dc] ss:$12 sps:$4 sm:$0xff]   ;;  %v5277_v63 = vld [vmem:[%s5481_s9 + $0x4b8] ss:$12 sps:$4 sm:$0xff]  }
 0x18c   : > { %2159 = vmatprep.mubr.bf16.mxu0 %v5270_v12  ;;  %4876 = vmatprep.mubr.msk.bf16.mxu1 %vm1607_vm2, %v5272_v13 }
 0x18e   : > { %v5876_v36 = vpop.f32.mrb[52].mxu0  ;;  %v5878_v37 = vpop.f32.mrb[52].mxu1 }
 0x18f   : > { %6747 = vst [vmem:[#allocation17_spill] sm:$0xff] %v5878_v37  ;;  %v1947_v38 = vpop.f32.mrb[53].mxu0  ;;  %v2331_v39 = vpop.f32.mrb[53].mxu1  ;;  %v5278_v37 = vld [vmem:[%s5481_s9 + $0x3d8] ss:$12 sps:$4 sm:$0xff]  }
 0x190   : > { %v5882_v3 = vpop.f32.mrb[54].mxu0  ;;  %v5884_v20 = vpop.f32.mrb[54].mxu1 }
 0x191   : > { %6748 = vst [vmem:[#allocation18_spill] sm:$0xff] %v5884_v20  ;;  %v1950_v12 = vpop.f32.mrb[55].mxu0  ;;  %v2334_v13 = vpop.f32.mrb[55].mxu1  ;;  %v5279_v20 = vld [vmem:[%s5481_s9 + $0x4d0] ss:$12 sps:$4 sm:$0xff]  }
 0x193   : > { %2160 = vmatmul.mubr.bf16.gmra.mrb[160].mxu0 %v5273_v54  ;;  %4877 = vmatmul.mubr.msk.bf16.gmra.mrb[160].mxu1 %vm1607_vm2, %v5274_v55  ;;  %v5280_v54 = vld [vmem:[%s5481_s9 + $0x3f4] ss:$12 sps:$4 sm:$0xff]  }
 0x194   : > { %2167 = vmatprep.mubr.bf16.mxu0 %v5275_v62  ;;  %4880 = vmatprep.mubr.msk.bf16.mxu1 %vm1607_vm2, %v5277_v63  ;;  %v5282_v55 = vld [vmem:[%s5481_s9 + $0x4e8] ss:$12 sps:$4 sm:$0xff]  }
 0x196   : > { %v5890_v21 = vpop.f32.mrb[56].mxu0  ;;  %v5892_v38 = vpop.f32.mrb[56].mxu1 }
 0x197   : > { %6749 = vst [vmem:[#allocation19_spill] sm:$0xff] %v5892_v38  ;;  %v1955_v39 = vpop.f32.mrb[57].mxu0  ;;  %v2339_v49 = vpop.f32.mrb[57].mxu1 }
 0x198   : > { %v5896_v57 = vpop.f32.mrb[58].mxu0  ;;  %v5898_v12 = vpop.f32.mrb[58].mxu1 }
 0x199   : > { %6750 = vst [vmem:[#allocation20_spill] sm:$0xff] %v5898_v12  ;;  %v1958_v62 = vpop.f32.mrb[59].mxu0  ;;  %v2342_v63 = vpop.f32.mrb[59].mxu1  ;;  %v5283_v12 = vld [vmem:[%s5481_s9 + $0x3f0] ss:$12 sps:$4 sm:$0xff]  }
 0x19a   : > { %v5285_v62 = vld [vmem:[%s5481_s9 + $0x40c] ss:$12 sps:$4 sm:$0xff]  }
 0x19b   : > { %2168 = vmatmul.mubr.bf16.gmra.mrb[164].mxu0 %v5278_v37  ;;  %4881 = vmatmul.mubr.msk.bf16.gmra.mrb[164].mxu1 %vm1607_vm2, %v5279_v20  ;;  %v5287_v37 = vld [vmem:[%s5481_s9 + $0x518] ss:$12 sps:$4 sm:$0xff]  }
 0x19c   : > { %2175 = vmatprep.mubr.bf16.mxu0 %v5280_v54  ;;  %4884 = vmatprep.mubr.msk.bf16.mxu1 %vm1607_vm2, %v5282_v55  ;;  %v5919_v54 = vld [vmem:[%s6730_s2] ss:$0 sm:$0xff] }
 0x19d   : > { %v1842_v55 = vadd.f32 %v5919_v54, %v5694_v10  ;;  %v5290_v10 = vld [vmem:[%s5481_s9 + $0x424] ss:$12 sps:$4 sm:$0xff]  }
 0x19e   : > { %v5904_v49 = vpop.f32.mrb[60].mxu0  ;;  %v5906_v13 = vpop.f32.mrb[60].mxu1 }
 0x19f   : > { %6751 = vst [vmem:[#allocation21_spill] sm:$0xff] %v5906_v13  ;;  %v1963_v39 = vpop.f32.mrb[61].mxu0  ;;  %v2347_v38 = vpop.f32.mrb[61].mxu1  ;;  %v1845_v13 = vadd.f32 %v5919_v54, %v5700_v16 }
 0x1a0   : > { %v5910_v45 = vpop.f32.mrb[62].mxu0  ;;  %v5912_v9 = vpop.f32.mrb[62].mxu1  ;;  %v1850_v38 = vadd.f32 %v5919_v54, %v5708_v22 }
 0x1a1   : > { %6752 = vst [vmem:[#allocation22_spill] sm:$0xff] %v5912_v9  ;;  %v1966_v63 = vpop.f32.mrb[63].mxu0  ;;  %v2350_v20 = vpop.f32.mrb[63].mxu1  ;;  %v5288_v9 = vld [vmem:[%s5481_s9 + $0x408] ss:$12 sps:$4 sm:$0xff]  }
 0x1a3   : > { %2176 = vmatmul.mubr.bf16.gmra.mrb[168].mxu0 %v5283_v12  ;;  %4885 = vmatmul.mubr.msk.bf16.gmra.mrb[168].mxu1 %vm1607_vm2, %v5284_v27  ;;  %v1853_v12 = vadd.f32 %v5919_v54, %v5714_v28 }
 0x1a4   : > { %2183 = vmatprep.mubr.bf16.mxu0 %v5285_v62  ;;  %4888 = vmatprep.mubr.msk.bf16.mxu1 %vm1607_vm2, %v5287_v37  ;;  %v5289_v37 = vld [vmem:[%s5481_s9 + $0x530] ss:$12 sps:$4 sm:$0xff]  }
 0x1a6   : > { %v5928_v39 = vpop.f32.mrb[64].mxu0  ;;  %v4782_v63 = vpop.f32.mrb[64].mxu1 }
 0x1a7   : > { %v2395_v27 = vadd.f32 %v4782_v63, %v1850_v38  ;;  %v1971_v20 = vpop.f32.mrb[65].mxu0  ;;  %v2386_v62 = vpop.f32.mrb[65].mxu1 }
 0x1a8   : > { %v2387_v22 = vadd.f32 %v2386_v62, %v1842_v55  ;;  %v5936_v5 = vpop.f32.mrb[66].mxu0  ;;  %v4783_v31 = vpop.f32.mrb[66].mxu1 }
 0x1a9   : > { %v2899_v19 = vmax.f32 %v2395_v27, 0.0  ;;  %v2398_v33 = vadd.f32 %v4783_v31, %v1853_v12  ;;  %v1974_v51 = vpop.f32.mrb[67].mxu0  ;;  %v2389_v25 = vpop.f32.mrb[67].mxu1  ;;  %v1866_v31 = vadd.f32 %v5919_v54, %v5736_v46  ;;  %v5293_v12 = vld [vmem:[%s5481_s9 + $0x420] ss:$12 sps:$4 sm:$0xff]  }
 0x1aa   : > { %v2897_v28 = vmax.f32 %v2387_v22, 0.0  ;;  %v2390_v38 = vadd.f32 %v2389_v25, %v1845_v13  ;;  %v5294_v27 = vld [vmem:[%s5481_s9 + $0x560] ss:$12 sps:$4 sm:$0xff]   ;;  %v5295_v22 = vld [vmem:[%s5481_s9 + $0x43c] ss:$12 sps:$4 sm:$0xff]  }
 0x1ab   : > { %v4566_v63 = vpack.c.bf16 %v2899_v19, %v2899_v19  ;;  %v2900_v20 = vmax.f32 %v2398_v33, 0.0  ;;  %2184 = vmatmul.mubr.bf16.gmra.mrb[172].mxu0 %v5288_v9  ;;  %4889 = vmatmul.mubr.msk.bf16.gmra.mrb[172].mxu1 %vm1607_vm2, %v5289_v37  ;;  %v1858_v33 = vadd.f32 %v5919_v54, %v5722_v34  ;;  %v1869_v19 = vadd.f32 %v5919_v54, %v5742_v52 }
 0x1ac   : > { %v4564_v43 = vpack.c.bf16 %v2897_v28, %v2897_v28  ;;  %v2898_v16 = vmax.f32 %v2390_v38, 0.0  ;;  %2191 = vmatprep.mubr.bf16.mxu0 %v5290_v10  ;;  %4892 = vmatprep.mubr.msk.bf16.mxu1 %vm1607_vm2, %v5292_v61  ;;  %v1861_v34 = vadd.f32 %v5919_v54, %v5728_v40  ;;  %v5297_v10 = vld [vmem:[%s5481_s9 + $0x578] ss:$12 sps:$4 sm:$0xff]  }
 0x1ad   : > { %3540 = vst.msk [vmem:[%s5944_s12 + $0x8] sm:$0xf] %vm3537_vm3, %v4566_v63  ;;  %v4567_v25 = vpack.c.bf16 %v2900_v20, %v2900_v20 }
 0x1ae   : > { %3538 = vst.msk [vmem:[%s5944_s12] sm:$0xf] %vm3537_vm3, %v4564_v43  ;;  %v4565_v51 = vpack.c.bf16 %v2898_v16, %v2898_v16  ;;  %v5952_v61 = vpop.f32.mrb[68].mxu0  ;;  %v4786_v46 = vpop.f32.mrb[68].mxu1 }
 0x1af   : > { %3541 = vst.msk [vmem:[%s5944_s12 + $0xc] sm:$0xf] %vm3537_vm3, %v4567_v25  ;;  %v2411_v9 = vadd.f32 %v4786_v46, %v1866_v31  ;;  %v1979_v13 = vpop.f32.mrb[69].mxu0  ;;  %v2402_v55 = vpop.f32.mrb[69].mxu1 }
 0x1b0   : > { %3539 = vst.msk [vmem:[%s5944_s12 + $0x4] sm:$0xf] %vm3537_vm3, %v4565_v51  ;;  %v2403_v43 = vadd.f32 %v2402_v55, %v1858_v33  ;;  %v5964_v62 = vpop.f32.mrb[70].mxu0  ;;  %v4787_v37 = vpop.f32.mrb[70].mxu1  ;;  %v1882_v51 = vadd.f32 %v5919_v54, %v5764_v6 }
 0x1b1   : > { %v2903_v52 = vmax.f32 %v2411_v9, 0.0  ;;  %v2414_v28 = vadd.f32 %v4787_v37, %v1869_v19  ;;  %v1982_v38 = vpop.f32.mrb[71].mxu0  ;;  %v2405_v63 = vpop.f32.mrb[71].mxu1  ;;  %v1874_v19 = vadd.f32 %v5919_v54, %v5750_v58  ;;  %v5299_v37 = vld [vmem:[%s5481_s9 + $0x590] ss:$12 sps:$4 sm:$0xff]   ;;  %v1877_v58 = vadd.f32 %v5919_v54, %v5756_v0 }
 0x1b2   : > { %v2901_v20 = vmax.f32 %v2403_v43, 0.0  ;;  %v2406_v16 = vadd.f32 %v2405_v63, %v1861_v34  ;;  %v5298_v43 = vld [vmem:[%s5481_s9 + $0x438] ss:$12 sps:$4 sm:$0xff]   ;;  %v5302_v38 = vld [vmem:[%s5481_s9 + $0x5a8] ss:$12 sps:$4 sm:$0xff]  }
 0x1b3   : > { %v4570_v31 = vpack.c.bf16 %v2903_v52, %v2903_v52  ;;  %v2904_v25 = vmax.f32 %v2414_v28, 0.0  ;;  %2192 = vmatmul.mubr.bf16.gmra.mrb[176].mxu0 %v5293_v12  ;;  %4893 = vmatmul.mubr.msk.bf16.gmra.mrb[176].mxu1 %vm1607_vm2, %v5294_v27  ;;  %v1885_v12 = vadd.f32 %v5919_v54, %v5770_v14  ;;  %v5300_v28 = vld [vmem:[%s5481_s9 + $0x454] ss:$12 sps:$4 sm:$0xff]  }
 0x1b4   : > { %v4568_v40 = vpack.c.bf16 %v2901_v20, %v2901_v20  ;;  %v2902_v33 = vmax.f32 %v2406_v16, 0.0  ;;  %2199 = vmatprep.mubr.bf16.mxu0 %v5295_v22  ;;  %4896 = vmatprep.mubr.msk.bf16.mxu1 %vm1607_vm2, %v5297_v10 }
 0x1b5   : > { %3544 = vst.msk [vmem:[%s5944_s12 + $0x18] sm:$0xf] %vm3537_vm3, %v4570_v31  ;;  %v4571_v46 = vpack.c.bf16 %v2904_v25, %v2904_v25 }
 0x1b6   : > { %3542 = vst.msk [vmem:[%s5944_s12 + $0x10] sm:$0xf] %vm3537_vm3, %v4568_v40  ;;  %v4569_v9 = vpack.c.bf16 %v2902_v33, %v2902_v33  ;;  %v5978_v13 = vpop.f32.mrb[72].mxu0  ;;  %v4790_v55 = vpop.f32.mrb[72].mxu1 }
 0x1b7   : > { %3545 = vst.msk [vmem:[%s5944_s12 + $0x1c] sm:$0xf] %vm3537_vm3, %v4571_v46  ;;  %v2427_v6 = vadd.f32 %v4790_v55, %v1882_v51  ;;  %v1987_v27 = vpop.f32.mrb[73].mxu0  ;;  %v2418_v34 = vpop.f32.mrb[73].mxu1  ;;  %v1898_v46 = vadd.f32 %v5919_v54, %v5792_v42 }
 0x1b8   : > { %3543 = vst.msk [vmem:[%s5944_s12 + $0x14] sm:$0xf] %vm3537_vm3, %v4569_v9  ;;  %v2419_v22 = vadd.f32 %v2418_v34, %v1874_v19  ;;  %v5990_v10 = vpop.f32.mrb[74].mxu0  ;;  %v4791_v52 = vpop.f32.mrb[74].mxu1  ;;  %v1890_v9 = vadd.f32 %v5919_v54, %v5778_v24  ;;  %v1901_v27 = vadd.f32 %v5919_v54, %v5798_v50  ;;  %v1893_v24 = vadd.f32 %v5919_v54, %v5784_v32 }
 0x1b9   : > { %v2907_v14 = vmax.f32 %v2427_v6, 0.0  ;;  %v2430_v63 = vadd.f32 %v4791_v52, %v1885_v12  ;;  %v1990_v20 = vpop.f32.mrb[75].mxu0  ;;  %v2421_v16 = vpop.f32.mrb[75].mxu1 }
 0x1ba   : > { %v2905_v31 = vmax.f32 %v2419_v22, 0.0  ;;  %v2422_v25 = vadd.f32 %v2421_v16, %v1877_v58  ;;  %v5304_v58 = vld [vmem:[%s5481_s9 + $0x5c0] ss:$12 sps:$4 sm:$0xff]  }
 0x1bb   : > { %v4574_v40 = vpack.c.bf16 %v2907_v14, %v2907_v14  ;;  %v2908_v33 = vmax.f32 %v2430_v63, 0.0  ;;  %2200 = vmatmul.mubr.bf16.gmra.mrb[180].mxu0 %v5298_v43  ;;  %4897 = vmatmul.mubr.msk.bf16.gmra.mrb[180].mxu1 %vm1607_vm2, %v5299_v37  ;;  %v5303_v37 = vld [vmem:[%s5481_s9 + $0x450] ss:$12 sps:$4 sm:$0xff]   ;;  %v5307_v14 = vld [vmem:[%s5481_s9 + $0x5d8] ss:$12 sps:$4 sm:$0xff]  }
 0x1bc   : > { %v4572_v0 = vpack.c.bf16 %v2905_v31, %v2905_v31  ;;  %v2906_v51 = vmax.f32 %v2422_v25, 0.0  ;;  %2207 = vmatprep.mubr.bf16.mxu0 %v5300_v28  ;;  %4900 = vmatprep.mubr.msk.bf16.mxu1 %vm1607_vm2, %v5302_v38  ;;  %v5305_v38 = vld [vmem:[%s5481_s9 + $0x46c] ss:$12 sps:$4 sm:$0xff]  }
 0x1bd   : > { %3548 = vst.msk [vmem:[%s5944_s12 + $0x28] sm:$0xf] %vm3537_vm3, %v4574_v40  ;;  %v4575_v19 = vpack.c.bf16 %v2908_v33, %v2908_v33 }
 0x1be   : > { %3546 = vst.msk [vmem:[%s5944_s12 + $0x20] sm:$0xf] %vm3537_vm3, %v4572_v0  ;;  %v4573_v55 = vpack.c.bf16 %v2906_v51, %v2906_v51  ;;  %v6004_v12 = vpop.f32.mrb[76].mxu0  ;;  %v4794_v6 = vpop.f32.mrb[76].mxu1  ;;  %v1914_v51 = vadd.f32 %v5919_v54, %v5820_v18 }
 0x1bf   : > { %3549 = vst.msk [vmem:[%s5944_s12 + $0x2c] sm:$0xf] %vm3537_vm3, %v4575_v19  ;;  %v2443_v42 = vadd.f32 %v4794_v6, %v1898_v46  ;;  %v1995_v34 = vpop.f32.mrb[77].mxu0  ;;  %v2434_v43 = vpop.f32.mrb[77].mxu1  ;;  %v1906_v19 = vadd.f32 %v5919_v54, %v5806_v60 }
 0x1c0   : > { %3547 = vst.msk [vmem:[%s5944_s12 + $0x24] sm:$0xf] %vm3537_vm3, %v4573_v55  ;;  %v2435_v22 = vadd.f32 %v2434_v43, %v1890_v9  ;;  %v6016_v52 = vpop.f32.mrb[78].mxu0  ;;  %v4795_v28 = vpop.f32.mrb[78].mxu1  ;;  %v5308_v43 = vld [vmem:[%s5481_s9 + $0x468] ss:$12 sps:$4 sm:$0xff]  }
 0x1c1   : > { %v2911_v50 = vmax.f32 %v2443_v42, 0.0  ;;  %v2446_v63 = vadd.f32 %v4795_v28, %v1901_v27  ;;  %v1998_v20 = vpop.f32.mrb[79].mxu0  ;;  %v2437_v16 = vpop.f32.mrb[79].mxu1  ;;  %v1917_v27 = vadd.f32 %v5919_v54, %v5826_v30 }
 0x1c2   : > { %v2909_v31 = vmax.f32 %v2435_v22, 0.0  ;;  %v2438_v25 = vadd.f32 %v2437_v16, %v1893_v24 }
 0x1c3   : > { %v4578_v40 = vpack.c.bf16 %v2911_v50, %v2911_v50  ;;  %v2912_v33 = vmax.f32 %v2446_v63, 0.0  ;;  %2208 = vmatmul.mubr.bf16.gmra.mrb[184].mxu0 %v5303_v37  ;;  %4901 = vmatmul.mubr.msk.bf16.gmra.mrb[184].mxu1 %vm1607_vm2, %v5304_v58  ;;  %v5309_v37 = vld [vmem:[%s5481_s9 + $0x5f0] ss:$12 sps:$4 sm:$0xff]   ;;  %v1909_v58 = vadd.f32 %v5919_v54, %v5812_v4 }
 0x1c4   : > { %v4576_v32 = vpack.c.bf16 %v2909_v31, %v2909_v31  ;;  %v2910_v0 = vmax.f32 %v2438_v25, 0.0  ;;  %2215 = vmatprep.mubr.bf16.mxu0 %v5305_v38  ;;  %4904 = vmatprep.mubr.msk.bf16.mxu1 %vm1607_vm2, %v5307_v14  ;;  %v1930_v25 = vadd.f32 %v5919_v54, %v5848_v8 }
 0x1c5   : > { %3552 = vst.msk [vmem:[%s5944_s12 + $0x38] sm:$0xf] %vm3537_vm3, %v4578_v40  ;;  %v4579_v46 = vpack.c.bf16 %v2912_v33, %v2912_v33  ;;  %v1922_v33 = vadd.f32 %v5919_v54, %v5834_v44 }
 0x1c6   : > { %3550 = vst.msk [vmem:[%s5944_s12 + $0x30] sm:$0xf] %vm3537_vm3, %v4576_v32  ;;  %v4577_v9 = vpack.c.bf16 %v2910_v0, %v2910_v0  ;;  %v6030_v55 = vpop.f32.mrb[80].mxu0  ;;  %v4798_v6 = vpop.f32.mrb[80].mxu1 }
 0x1c7   : > { %3553 = vst.msk [vmem:[%s5944_s12 + $0x3c] sm:$0xf] %vm3537_vm3, %v4579_v46  ;;  %v2459_v42 = vadd.f32 %v4798_v6, %v1914_v51  ;;  %v2003_v18 = vpop.f32.mrb[81].mxu0  ;;  %v2450_v34 = vpop.f32.mrb[81].mxu1  ;;  %v1933_v46 = vadd.f32 %v5919_v54, %v5854_v26  ;;  %v1925_v6 = vadd.f32 %v5919_v54, %v5840_v56 }
 0x1c8   : > { %3551 = vst.msk [vmem:[%s5944_s12 + $0x34] sm:$0xf] %vm3537_vm3, %v4577_v9  ;;  %v2451_v60 = vadd.f32 %v2450_v34, %v1906_v19  ;;  %v6042_v24 = vpop.f32.mrb[82].mxu0  ;;  %v4799_v22 = vpop.f32.mrb[82].mxu1 }
 0x1c9   : > { %v2915_v28 = vmax.f32 %v2459_v42, 0.0  ;;  %v2462_v30 = vadd.f32 %v4799_v22, %v1917_v27  ;;  %v2006_v38 = vpop.f32.mrb[83].mxu0  ;;  %v2453_v14 = vpop.f32.mrb[83].mxu1 }
 0x1ca   : > { %v2913_v50 = vmax.f32 %v2451_v60, 0.0  ;;  %v2454_v63 = vadd.f32 %v2453_v14, %v1909_v58  ;;  %v1938_v14 = vadd.f32 %v5919_v54, %v5862_v48 }
 0x1cb   : > { %v4582_v20 = vpack.c.bf16 %v2915_v28, %v2915_v28  ;;  %v2916_v16 = vmax.f32 %v2462_v30, 0.0  ;;  %2216 = vmatmul.mubr.bf16.gmra.mrb[188].mxu0 %v5308_v43  ;;  %4905 = vmatmul.mubr.msk.bf16.gmra.mrb[188].mxu1 %vm1607_vm2, %v5309_v37  ;;  %v1946_v30 = vadd.f32 %v5919_v54, %v5876_v36 }
 0x1cc   : > { %v4580_v4 = vpack.c.bf16 %v2913_v50, %v2913_v50  ;;  %v2914_v31 = vmax.f32 %v2454_v63, 0.0 }
 0x1cd   : > { %3556 = vst.msk [vmem:[%s5944_s12 + $0x48] sm:$0xf] %vm3537_vm3, %v4582_v20  ;;  %v4583_v40 = vpack.c.bf16 %v2916_v16, %v2916_v16  ;;  %v1949_v16 = vadd.f32 %v5919_v54, %v5882_v3 }
 0x1ce   : > { %3554 = vst.msk [vmem:[%s5944_s12 + $0x40] sm:$0xf] %vm3537_vm3, %v4580_v4  ;;  %v4581_v32 = vpack.c.bf16 %v2914_v31, %v2914_v31  ;;  %v6053_v0 = vpop.f32.mrb[84].mxu0  ;;  %v4802_v51 = vpop.f32.mrb[84].mxu1 }
 0x1cf   : > { %3557 = vst.msk [vmem:[%s5944_s12 + $0x4c] sm:$0xf] %vm3537_vm3, %v4583_v40  ;;  %v2475_v19 = vadd.f32 %v4802_v51, %v1930_v25  ;;  %v2011_v9 = vpop.f32.mrb[85].mxu0  ;;  %v2466_v8 = vpop.f32.mrb[85].mxu1  ;;  %v1941_v25 = vadd.f32 %v5919_v54, %v5868_v2 }
 0x1d0   : > { %3555 = vst.msk [vmem:[%s5944_s12 + $0x44] sm:$0xf] %vm3537_vm3, %v4581_v32  ;;  %v2467_v44 = vadd.f32 %v2466_v8, %v1922_v33  ;;  %v6063_v27 = vpop.f32.mrb[86].mxu0  ;;  %v4803_v42 = vpop.f32.mrb[86].mxu1 }
 0x1d1   : > { %v2919_v18 = vmax.f32 %v2475_v19, 0.0  ;;  %v2478_v34 = vadd.f32 %v4803_v42, %v1933_v46  ;;  %v2014_v43 = vpop.f32.mrb[87].mxu0  ;;  %v2469_v26 = vpop.f32.mrb[87].mxu1  ;;  %v1962_v42 = vadd.f32 %v5919_v54, %v5904_v49 }
 0x1d2   : > { %v2917_v37 = vmax.f32 %v2467_v44, 0.0  ;;  %v2470_v58 = vadd.f32 %v2469_v26, %v1925_v6 }
 0x1d3   : > { %v4586_v60 = vpack.c.bf16 %v2919_v18, %v2919_v18  ;;  %v2920_v22 = vmax.f32 %v2478_v34, 0.0  ;;  %v1954_v34 = vadd.f32 %v5919_v54, %v5890_v21 }
 0x1d4   : > { %v4584_v28 = vpack.c.bf16 %v2917_v37, %v2917_v37  ;;  %v2918_v56 = vmax.f32 %v2470_v58, 0.0  ;;  %v1965_v58 = vadd.f32 %v5919_v54, %v5910_v45 }
 0x1d5   : > { %3560 = vst.msk [vmem:[%s5944_s12 + $0x58] sm:$0xf] %vm3537_vm3, %v4586_v60  ;;  %v4587_v38 = vpack.c.bf16 %v2920_v22, %v2920_v22 }
 0x1d6   : > { %3558 = vst.msk [vmem:[%s5944_s12 + $0x50] sm:$0xf] %vm3537_vm3, %v4584_v28  ;;  %v4585_v50 = vpack.c.bf16 %v2918_v56, %v2918_v56  ;;  %v6073_v63 = vpop.f32.mrb[88].mxu0  ;;  %v4806_v20 = vpop.f32.mrb[88].mxu1  ;;  %v1957_v28 = vadd.f32 %v5919_v54, %v5896_v57 }
 0x1d7   : > { %3561 = vst.msk [vmem:[%s5944_s12 + $0x5c] sm:$0xf] %vm3537_vm3, %v4587_v38  ;;  %v2491_v4 = vadd.f32 %v4806_v20, %v1946_v30  ;;  %v2019_v31 = vpop.f32.mrb[89].mxu0  ;;  %v2482_v36 = vpop.f32.mrb[89].mxu1 }
 0x1d8   : > { %3559 = vst.msk [vmem:[%s5944_s12 + $0x54] sm:$0xf] %vm3537_vm3, %v4585_v50  ;;  %v2483_v48 = vadd.f32 %v2482_v36, %v1938_v14  ;;  %v6083_v40 = vpop.f32.mrb[90].mxu0  ;;  %v4807_v33 = vpop.f32.mrb[90].mxu1 }
 0x1d9   : > { %v2923_v32 = vmax.f32 %v2491_v4, 0.0  ;;  %v2494_v51 = vadd.f32 %v4807_v33, %v1949_v16  ;;  %v2022_v46 = vpop.f32.mrb[91].mxu0  ;;  %v2485_v3 = vpop.f32.mrb[91].mxu1  ;;  %v1970_v33 = vadd.f32 %v5919_v54, %v5928_v39 }
 0x1da   : > { %v2921_v19 = vmax.f32 %v2483_v48, 0.0  ;;  %v2486_v9 = vadd.f32 %v2485_v3, %v1941_v25  ;;  %v1978_v25 = vadd.f32 %v5919_v54, %v5952_v61  ;;  %v1981_v3 = vadd.f32 %v5919_v54, %v5964_v62 }
 0x1db   : > { %v4590_v8 = vpack.c.bf16 %v2923_v32, %v2923_v32  ;;  %v2924_v6 = vmax.f32 %v2494_v51, 0.0 }
 0x1dc   : > { %v4588_v44 = vpack.c.bf16 %v2921_v19, %v2921_v19  ;;  %v2922_v2 = vmax.f32 %v2486_v9, 0.0 }
 0x1dd   : > { %3564 = vst.msk [vmem:[%s5944_s12 + $0x68] sm:$0xf] %vm3537_vm3, %v4590_v8  ;;  %v4591_v18 = vpack.c.bf16 %v2924_v6, %v2924_v6  ;;  %v1973_v8 = vadd.f32 %v5919_v54, %v5936_v5 }
 0x1de   : > { %3562 = vst.msk [vmem:[%s5944_s12 + $0x60] sm:$0xf] %vm3537_vm3, %v4588_v44  ;;  %v4589_v43 = vpack.c.bf16 %v2922_v2, %v2922_v2  ;;  %v6093_v26 = vpop.f32.mrb[92].mxu0  ;;  %v4810_v37 = vpop.f32.mrb[92].mxu1 }
 0x1df   : > { %3565 = vst.msk [vmem:[%s5944_s12 + $0x6c] sm:$0xf] %vm3537_vm3, %v4591_v18  ;;  %v2507_v60 = vadd.f32 %v4810_v37, %v1962_v42  ;;  %v2027_v22 = vpop.f32.mrb[93].mxu0  ;;  %v2498_v49 = vpop.f32.mrb[93].mxu1 }
 0x1e0   : > { %3563 = vst.msk [vmem:[%s5944_s12 + $0x64] sm:$0xf] %vm3537_vm3, %v4589_v43  ;;  %v2499_v21 = vadd.f32 %v2498_v49, %v1954_v34  ;;  %v6103_v56 = vpop.f32.mrb[94].mxu0  ;;  %v4811_v30 = vpop.f32.mrb[94].mxu1  ;;  %v1994_v22 = vadd.f32 %v5919_v54, %v6004_v12 }
 0x1e1   : > { %v2927_v38 = vmax.f32 %v2507_v60, 0.0  ;;  %v2510_v14 = vadd.f32 %v4811_v30, %v1965_v58  ;;  %v2030_v50 = vpop.f32.mrb[95].mxu0  ;;  %v2501_v45 = vpop.f32.mrb[95].mxu1 }
 0x1e2   : > { %v2925_v20 = vmax.f32 %v2499_v21, 0.0  ;;  %v2502_v16 = vadd.f32 %v2501_v45, %v1957_v28  ;;  %v1986_v28 = vadd.f32 %v5919_v54, %v5978_v13 }
 0x1e3   : > { %v4594_v4 = vpack.c.bf16 %v2927_v38, %v2927_v38  ;;  %v2928_v31 = vmax.f32 %v2510_v14, 0.0  ;;  %v1997_v14 = vadd.f32 %v5919_v54, %v6016_v52 }
 0x1e4   : > { %v4592_v36 = vpack.c.bf16 %v2925_v20, %v2925_v20  ;;  %v2926_v57 = vmax.f32 %v2502_v16, 0.0  ;;  %v1989_v20 = vadd.f32 %v5919_v54, %v5990_v10 }
 0x1e5   : > { %3568 = vst.msk [vmem:[%s5944_s12 + $0x78] sm:$0xf] %vm3537_vm3, %v4594_v4  ;;  %v4595_v48 = vpack.c.bf16 %v2928_v31, %v2928_v31 }
 0x1e6   : > { %3566 = vst.msk [vmem:[%s5944_s12 + $0x70] sm:$0xf] %vm3537_vm3, %v4592_v36  ;;  %v4593_v32 = vpack.c.bf16 %v2926_v57, %v2926_v57  ;;  %v6113_v51 = vpop.f32.mrb[96].mxu0  ;;  %v4814_v46 = vpop.f32.mrb[96].mxu1 }
 0x1e7   : > { %3569 = vst.msk [vmem:[%s5944_s12 + $0x7c] sm:$0xf] %vm3537_vm3, %v4595_v48  ;;  %v2523_v19 = vadd.f32 %v4814_v46, %v1978_v25  ;;  %v2035_v9 = vpop.f32.mrb[97].mxu0  ;;  %v2514_v61 = vpop.f32.mrb[97].mxu1 }
 0x1e8   : > { %3567 = vst.msk [vmem:[%s5944_s12 + $0x74] sm:$0xf] %vm3537_vm3, %v4593_v32  ;;  %v2515_v39 = vadd.f32 %v2514_v61, %v1970_v33  ;;  %v6123_v6 = vpop.f32.mrb[98].mxu0  ;;  %v4815_v44 = vpop.f32.mrb[98].mxu1  ;;  %v2002_v9 = vadd.f32 %v5919_v54, %v6030_v55 }
 0x1e9   : > { %v2931_v2 = vmax.f32 %v2523_v19, 0.0  ;;  %v2526_v42 = vadd.f32 %v4815_v44, %v1981_v3  ;;  %v2038_v18 = vpop.f32.mrb[99].mxu0  ;;  %v2517_v62 = vpop.f32.mrb[99].mxu1  ;;  %v2010_v3 = vadd.f32 %v5919_v54, %v6053_v0  ;;  %v2013_v44 = vadd.f32 %v5919_v54, %v6063_v27 }
 0x1ea   : > { %v2929_v34 = vmax.f32 %v2515_v39, 0.0  ;;  %v2518_v43 = vadd.f32 %v2517_v62, %v1973_v8  ;;  %v2005_v18 = vadd.f32 %v5919_v54, %v6042_v24 }
 0x1eb   : > { %v4598_v37 = vpack.c.bf16 %v2931_v2, %v2931_v2  ;;  %v2932_v58 = vmax.f32 %v2526_v42, 0.0 }
 0x1ec   : > { %v4596_v60 = vpack.c.bf16 %v2929_v34, %v2929_v34  ;;  %v2930_v5 = vmax.f32 %v2518_v43, 0.0 }
 0x1ed   : > { %3572 = vst.msk [vmem:[%s5944_s12 + $0x88] sm:$0xf] %vm3537_vm3, %v4598_v37  ;;  %v4599_v49 = vpack.c.bf16 %v2932_v58, %v2932_v58 }
 0x1ee   : > { %3570 = vst.msk [vmem:[%s5944_s12 + $0x80] sm:$0xf] %vm3537_vm3, %v4596_v60  ;;  %v4597_v21 = vpack.c.bf16 %v2930_v5, %v2930_v5  ;;  %v6133_v30 = vpop.f32.mrb[100].mxu0  ;;  %v4818_v38 = vpop.f32.mrb[100].mxu1 }
 0x1ef   : > { %3573 = vst.msk [vmem:[%s5944_s12 + $0x8c] sm:$0xf] %vm3537_vm3, %v4599_v49  ;;  %v2539_v50 = vadd.f32 %v4818_v38, %v1994_v22  ;;  %v2043_v45 = vpop.f32.mrb[101].mxu0  ;;  %v2530_v12 = vpop.f32.mrb[101].mxu1 }
 0x1f0   : > { %3571 = vst.msk [vmem:[%s5944_s12 + $0x84] sm:$0xf] %vm3537_vm3, %v4597_v21  ;;  %v2531_v13 = vadd.f32 %v2530_v12, %v1986_v28  ;;  %v6143_v16 = vpop.f32.mrb[102].mxu0  ;;  %v4819_v4 = vpop.f32.mrb[102].mxu1  ;;  %v2026_v21 = vadd.f32 %v5919_v54, %v6093_v26  ;;  %v2021_v26 = vadd.f32 %v5919_v54, %v6083_v40  ;;  %v2042_v40 = vadd.f32 %v5919_v54, %v6133_v30 }
 0x1f1   : > { %v2935_v31 = vmax.f32 %v2539_v50, 0.0  ;;  %v2542_v36 = vadd.f32 %v4819_v4, %v1997_v14  ;;  %v2046_v57 = vpop.f32.mrb[103].mxu0  ;;  %v2533_v52 = vpop.f32.mrb[103].mxu1  ;;  %v2018_v14 = vadd.f32 %v5919_v54, %v6073_v63  ;;  %v2037_v30 = vadd.f32 %v5919_v54, %v6123_v6 }
 0x1f2   : > { %v2933_v25 = vmax.f32 %v2531_v13, 0.0  ;;  %v2534_v48 = vadd.f32 %v2533_v52, %v1989_v20  ;;  %v2029_v20 = vadd.f32 %v5919_v54, %v6103_v56 }
 0x1f3   : > { %v4602_v33 = vpack.c.bf16 %v2935_v31, %v2935_v31  ;;  %v2936_v32 = vmax.f32 %v2542_v36, 0.0 }
 0x1f4   : > { %v4600_v46 = vpack.c.bf16 %v2933_v25, %v2933_v25  ;;  %v2934_v10 = vmax.f32 %v2534_v48, 0.0 }
 0x1f5   : > { %3576 = vst.msk [vmem:[%s5944_s12 + $0x98] sm:$0xf] %vm3537_vm3, %v4602_v33  ;;  %v4603_v19 = vpack.c.bf16 %v2936_v32, %v2936_v32 }
 0x1f6   : > { %3574 = vst.msk [vmem:[%s5944_s12 + $0x90] sm:$0xf] %vm3537_vm3, %v4600_v46  ;;  %v4601_v61 = vpack.c.bf16 %v2934_v10, %v2934_v10  ;;  %v6153_v8 = vpop.f32.mrb[104].mxu0  ;;  %v4822_v39 = vpop.f32.mrb[104].mxu1 }
 0x1f7   : > { %3577 = vst.msk [vmem:[%s5944_s12 + $0x9c] sm:$0xf] %vm3537_vm3, %v4603_v19  ;;  %v2555_v2 = vadd.f32 %v4822_v39, %v2010_v3  ;;  %v2051_v42 = vpop.f32.mrb[105].mxu0  ;;  %v2546_v0 = vpop.f32.mrb[105].mxu1 }
 0x1f8   : > { %3575 = vst.msk [vmem:[%s5944_s12 + $0x94] sm:$0xf] %vm3537_vm3, %v4601_v61  ;;  %v2547_v55 = vadd.f32 %v2546_v0, %v2002_v9  ;;  %v6163_v62 = vpop.f32.mrb[106].mxu0  ;;  %v4823_v34 = vpop.f32.mrb[106].mxu1  ;;  %v2034_v61 = vadd.f32 %v5919_v54, %v6113_v51  ;;  %v2045_v42 = vadd.f32 %v5919_v54, %v6143_v16 }
 0x1f9   : > { %v2939_v43 = vmax.f32 %v2555_v2, 0.0  ;;  %v2558_v37 = vadd.f32 %v4823_v34, %v2013_v44  ;;  %v2054_v58 = vpop.f32.mrb[107].mxu0  ;;  %v2549_v27 = vpop.f32.mrb[107].mxu1 }
 0x1fa   : > { %v2937_v60 = vmax.f32 %v2547_v55, 0.0  ;;  %v2550_v5 = vadd.f32 %v2549_v27, %v2005_v18 }
 0x1fb   : > { %v4606_v22 = vpack.c.bf16 %v2939_v43, %v2939_v43  ;;  %v2940_v49 = vmax.f32 %v2558_v37, 0.0 }
 0x1fc   : > { %v4604_v28 = vpack.c.bf16 %v2937_v60, %v2937_v60  ;;  %v2938_v24 = vmax.f32 %v2550_v5, 0.0 }
 0x1fd   : > { %3580 = vst.msk [vmem:[%s5944_s12 + $0xa8] sm:$0xf] %vm3537_vm3, %v4606_v22  ;;  %v4607_v38 = vpack.c.bf16 %v2940_v49, %v2940_v49 }
 0x1fe   : > { %3578 = vst.msk [vmem:[%s5944_s12 + $0xa0] sm:$0xf] %vm3537_vm3, %v4604_v28  ;;  %v4605_v50 = vpack.c.bf16 %v2938_v24, %v2938_v24  ;;  %v2057_v45 = vpop.f32.mrb[108].mxu0  ;;  %v4826_v12 = vpop.f32.mrb[108].mxu1 }
 0x1ff   : > { %3581 = vst.msk [vmem:[%s5944_s12 + $0xac] sm:$0xf] %vm3537_vm3, %v4607_v38  ;;  %v2571_v13 = vadd.f32 %v4826_v12, %v2026_v21  ;;  %v2059_v4 = vpop.f32.mrb[109].mxu0  ;;  %v2562_v31 = vpop.f32.mrb[109].mxu1  ;;  %v2058_v6 = vadd.f32 %v5919_v54, %v2057_v45  ;;  %v2050_v38 = vadd.f32 %v5919_v54, %v6153_v8  ;;  %v2053_v45 = vadd.f32 %v5919_v54, %v6163_v62 }
 0x200   : > { %3579 = vst.msk [vmem:[%s5944_s12 + $0xa4] sm:$0xf] %vm3537_vm3, %v4605_v50  ;;  %v2563_v63 = vadd.f32 %v2562_v31, %v2018_v14  ;;  %v2060_v36 = vpop.f32.mrb[110].mxu0  ;;  %v4827_v57 = vpop.f32.mrb[110].mxu1 }
 0x201   : > { %v2943_v52 = vmax.f32 %v2571_v13, 0.0  ;;  %v2574_v25 = vadd.f32 %v4827_v57, %v2029_v20  ;;  %v2062_v48 = vpop.f32.mrb[111].mxu0  ;;  %v2565_v33 = vpop.f32.mrb[111].mxu1  ;;  %v2061_v20 = vadd.f32 %v5919_v54, %v2060_v36 }
 0x202   : > { %v2941_v56 = vmax.f32 %v2563_v63, 0.0  ;;  %v2566_v32 = vadd.f32 %v2565_v33, %v2021_v26 }
 0x203   : > { %v4610_v46 = vpack.c.bf16 %v2943_v52, %v2943_v52  ;;  %v2944_v10 = vmax.f32 %v2574_v25, 0.0 }
 0x204   : > { %v4608_v3 = vpack.c.bf16 %v2941_v56, %v2941_v56  ;;  %v2942_v19 = vmax.f32 %v2566_v32, 0.0 }
 0x205   : > { %3584 = vst.msk [vmem:[%s5944_s12 + $0xb8] sm:$0xf] %vm3537_vm3, %v4610_v46  ;;  %v4611_v9 = vpack.c.bf16 %v2944_v10, %v2944_v10 }
 0x206   : > { %3582 = vst.msk [vmem:[%s5944_s12 + $0xb0] sm:$0xf] %vm3537_vm3, %v4608_v3  ;;  %v4609_v39 = vpack.c.bf16 %v2942_v19, %v2942_v19  ;;  %v2065_v44 = vpop.f32.mrb[112].mxu0  ;;  %v4830_v2 = vpop.f32.mrb[112].mxu1 }
 0x207   : > { %3585 = vst.msk [vmem:[%s5944_s12 + $0xbc] sm:$0xf] %vm3537_vm3, %v4611_v9  ;;  %v2587_v0 = vadd.f32 %v4830_v2, %v2042_v40  ;;  %v2067_v18 = vpop.f32.mrb[113].mxu0  ;;  %v2578_v55 = vpop.f32.mrb[113].mxu1  ;;  %v2066_v19 = vadd.f32 %v5919_v54, %v2065_v44 }
 0x208   : > { %3583 = vst.msk [vmem:[%s5944_s12 + $0xb4] sm:$0xf] %vm3537_vm3, %v4609_v39  ;;  %v2579_v51 = vadd.f32 %v2578_v55, %v2034_v61  ;;  %v2068_v34 = vpop.f32.mrb[114].mxu0  ;;  %v4831_v43 = vpop.f32.mrb[114].mxu1 }
 0x209   : > { %v2947_v37 = vmax.f32 %v2587_v0, 0.0  ;;  %v2590_v58 = vadd.f32 %v4831_v43, %v2045_v42  ;;  %v2070_v27 = vpop.f32.mrb[115].mxu0  ;;  %v2581_v60 = vpop.f32.mrb[115].mxu1  ;;  %v2069_v18 = vadd.f32 %v5919_v54, %v2068_v34 }
 0x20a   : > { %v2945_v16 = vmax.f32 %v2579_v51, 0.0  ;;  %v2582_v5 = vadd.f32 %v2581_v60, %v2037_v30 }
 0x20b   : > { %v4614_v22 = vpack.c.bf16 %v2947_v37, %v2947_v37  ;;  %v2948_v49 = vmax.f32 %v2590_v58, 0.0 }
 0x20c   : > { %v4612_v28 = vpack.c.bf16 %v2945_v16, %v2945_v16  ;;  %v2946_v24 = vmax.f32 %v2582_v5, 0.0 }
 0x20d   : > { %3588 = vst.msk [vmem:[%s5944_s12 + $0xc8] sm:$0xf] %vm3537_vm3, %v4614_v22  ;;  %v4615_v21 = vpack.c.bf16 %v2948_v49, %v2948_v49 }
 0x20e   : > { %3586 = vst.msk [vmem:[%s5944_s12 + $0xc0] sm:$0xf] %vm3537_vm3, %v4612_v28  ;;  %v4613_v14 = vpack.c.bf16 %v2946_v24, %v2946_v24  ;;  %v2073_v50 = vpop.f32.mrb[116].mxu0  ;;  %v4834_v12 = vpop.f32.mrb[116].mxu1 }
 0x20f   : > { %3589 = vst.msk [vmem:[%s5944_s12 + $0xcc] sm:$0xf] %vm3537_vm3, %v4615_v21  ;;  %v2603_v13 = vadd.f32 %v4834_v12, %v2058_v6  ;;  %v2075_v4 = vpop.f32.mrb[117].mxu0  ;;  %v2594_v31 = vpop.f32.mrb[117].mxu1  ;;  %v2074_v62 = vadd.f32 %v5919_v54, %v2073_v50 }
 0x210   : > { %3587 = vst.msk [vmem:[%s5944_s12 + $0xc4] sm:$0xf] %vm3537_vm3, %v4613_v14  ;;  %v2595_v26 = vadd.f32 %v2594_v31, %v2050_v38  ;;  %v2076_v8 = vpop.f32.mrb[118].mxu0  ;;  %v4835_v63 = vpop.f32.mrb[118].mxu1 }
 0x211   : > { %v2951_v57 = vmax.f32 %v2603_v13, 0.0  ;;  %v2606_v52 = vadd.f32 %v4835_v63, %v2061_v20  ;;  %v2078_v25 = vpop.f32.mrb[119].mxu0  ;;  %v2597_v48 = vpop.f32.mrb[119].mxu1  ;;  %v2077_v39 = vadd.f32 %v5919_v54, %v2076_v8 }
 0x212   : > { %v2949_v36 = vmax.f32 %v2595_v26, 0.0  ;;  %v2598_v33 = vadd.f32 %v2597_v48, %v2053_v45 }
 0x213   : > { %v4618_v56 = vpack.c.bf16 %v2951_v57, %v2951_v57  ;;  %v2952_v32 = vmax.f32 %v2606_v52, 0.0 }
 0x214   : > { %v4616_v46 = vpack.c.bf16 %v2949_v36, %v2949_v36  ;;  %v2950_v10 = vmax.f32 %v2598_v33, 0.0 }
 0x215   : > { %3592 = vst.msk [vmem:[%s5944_s12 + $0xd8] sm:$0xf] %vm3537_vm3, %v4618_v56  ;;  %v4619_v3 = vpack.c.bf16 %v2952_v32, %v2952_v32 }
 0x216   : > { %3590 = vst.msk [vmem:[%s5944_s12 + $0xd0] sm:$0xf] %vm3537_vm3, %v4616_v46  ;;  %v4617_v40 = vpack.c.bf16 %v2950_v10, %v2950_v10  ;;  %v2081_v9 = vpop.f32.mrb[120].mxu0  ;;  %v4838_v61 = vpop.f32.mrb[120].mxu1 }
 0x217   : > { %3593 = vst.msk [vmem:[%s5944_s12 + $0xdc] sm:$0xf] %vm3537_vm3, %v4619_v3  ;;  %v2619_v2 = vadd.f32 %v4838_v61, %v2074_v62  ;;  %v2083_v42 = vpop.f32.mrb[121].mxu0  ;;  %v2610_v0 = vpop.f32.mrb[121].mxu1  ;;  %v2082_v28 = vadd.f32 %v5919_v54, %v2081_v9 }
 0x218   : > { %3591 = vst.msk [vmem:[%s5944_s12 + $0xd4] sm:$0xf] %vm3537_vm3, %v4617_v40  ;;  %v2611_v55 = vadd.f32 %v2610_v0, %v2066_v19  ;;  %v2084_v44 = vpop.f32.mrb[122].mxu0  ;;  %v4839_v30 = vpop.f32.mrb[122].mxu1 }
 0x219   : > { %v2955_v51 = vmax.f32 %v2619_v2, 0.0  ;;  %v2622_v43 = vadd.f32 %v4839_v30, %v2077_v39  ;;  %v2086_v37 = vpop.f32.mrb[123].mxu0  ;;  %v2613_v58 = vpop.f32.mrb[123].mxu1  ;;  %v2085_v12 = vadd.f32 %v5919_v54, %v2084_v44 }
 0x21a   : > { %v2953_v27 = vmax.f32 %v2611_v55, 0.0  ;;  %v2614_v60 = vadd.f32 %v2613_v58, %v2069_v18  ;;  %v6250_v58 = vld [vmem:[%s6730_s2] ss:$0 sm:$0xff] }
 0x21b   : > { %v4622_v16 = vpack.c.bf16 %v2955_v51, %v2955_v51  ;;  %v2956_v5 = vmax.f32 %v2622_v43, 0.0 }
 0x21c   : > { %v4620_v22 = vpack.c.bf16 %v2953_v27, %v2953_v27  ;;  %v2954_v49 = vmax.f32 %v2614_v60, 0.0 }
 0x21d   : > { %3596 = vst.msk [vmem:[%s5944_s12 + $0xe8] sm:$0xf] %vm3537_vm3, %v4622_v16  ;;  %v4623_v34 = vpack.c.bf16 %v2956_v5, %v2956_v5 }
 0x21e   : > { %3594 = vst.msk [vmem:[%s5944_s12 + $0xe0] sm:$0xf] %vm3537_vm3, %v4620_v22  ;;  %v4621_v24 = vpack.c.bf16 %v2954_v49, %v2954_v49  ;;  %v2089_v6 = vpop.f32.mrb[124].mxu0  ;;  %v4842_v21 = vpop.f32.mrb[124].mxu1 }
 0x21f   : > { %3597 = vst.msk [vmem:[%s5944_s12 + $0xec] sm:$0xf] %vm3537_vm3, %v4623_v34  ;;  %v2090_v38 = vadd.f32 %v5919_v54, %v2089_v6  ;;  %v2091_v14 = vpop.f32.mrb[125].mxu0  ;;  %v2626_v50 = vpop.f32.mrb[125].mxu1 }
 0x220   : > { %3595 = vst.msk [vmem:[%s5944_s12 + $0xe4] sm:$0xf] %vm3537_vm3, %v4621_v24  ;;  %v2627_v20 = vadd.f32 %v2626_v50, %v2082_v28  ;;  %v2092_v13 = vpop.f32.mrb[126].mxu0  ;;  %v4843_v4 = vpop.f32.mrb[126].mxu1 }
 0x221   : > { %v2635_v31 = vadd.f32 %v4842_v21, %v2090_v38  ;;  %v2093_v45 = vadd.f32 %v5919_v54, %v2092_v13  ;;  %v2094_v26 = vpop.f32.mrb[127].mxu0  ;;  %v2629_v8 = vpop.f32.mrb[127].mxu1 }
 0x222   : > { %v2957_v63 = vmax.f32 %v2627_v20, 0.0  ;;  %v2630_v57 = vadd.f32 %v2629_v8, %v2085_v12 }
 0x223   : > { %v2959_v52 = vmax.f32 %v2635_v31, 0.0  ;;  %v2638_v25 = vadd.f32 %v4843_v4, %v2093_v45 }
 0x224   : > { %v4624_v48 = vpack.c.bf16 %v2957_v63, %v2957_v63  ;;  %v2958_v36 = vmax.f32 %v2630_v57, 0.0 }
 0x225   : > { %v4626_v33 = vpack.c.bf16 %v2959_v52, %v2959_v52  ;;  %v2960_v56 = vmax.f32 %v2638_v25, 0.0 }
 0x226   : > { %3598 = vst.msk [vmem:[%s5944_s12 + $0xf0] sm:$0xf] %vm3537_vm3, %v4624_v48  ;;  %v4625_v32 = vpack.c.bf16 %v2958_v36, %v2958_v36  ;;  %v2097_v46 = vpop.f32.mrb[128].mxu0  ;;  %v4846_v10 = vpop.f32.mrb[128].mxu1 }
 0x227   : > { %3600 = vst.msk [vmem:[%s5944_s12 + $0xf8] sm:$0xf] %vm3537_vm3, %v4626_v33  ;;  %v4627_v62 = vpack.c.bf16 %v2960_v56, %v2960_v56  ;;  %v2098_v3 = vadd.f32 %v5919_v54, %v2097_v46  ;;  %v2099_v19 = vpop.f32.mrb[129].mxu0  ;;  %v2642_v40 = vpop.f32.mrb[129].mxu1 }
 0x228   : > { %3599 = vst.msk [vmem:[%s5944_s12 + $0xf4] sm:$0xf] %vm3537_vm3, %v4625_v32  ;;  %v2100_v9 = vpop.f32.mrb[130].mxu0  ;;  %v4847_v61 = vpop.f32.mrb[130].mxu1 }
 0x229   : > { %3601 = vst.msk [vmem:[%s5944_s12 + $0xfc] sm:$0xf] %vm3537_vm3, %v4627_v62  ;;  %v2643_v39 = vadd.f32 %v2642_v40, %v2098_v3  ;;  %v2101_v2 = vadd.f32 %v5919_v54, %v2100_v9  ;;  %v2102_v42 = vpop.f32.mrb[131].mxu0  ;;  %v2645_v0 = vpop.f32.mrb[131].mxu1 }
 0x22b   : > { %v2961_v18 = vmax.f32 %v2643_v39, 0.0  ;;  %v2646_v55 = vadd.f32 %v2645_v0, %v2101_v2 }
 0x22d   : > { %v4628_v44 = vpack.c.bf16 %v2961_v18, %v2961_v18  ;;  %v2962_v30 = vmax.f32 %v2646_v55, 0.0 }
 0x22e   : > { %v2105_v51 = vpop.f32.mrb[132].mxu0  ;;  %v4850_v43 = vpop.f32.mrb[132].mxu1 }
 0x22f   : > { %3602 = vst.msk [vmem:[%s5944_s12 + $0x100] sm:$0xf] %vm3537_vm3, %v4628_v44  ;;  %v4629_v37 = vpack.c.bf16 %v2962_v30, %v2962_v30  ;;  %v2106_v27 = vadd.f32 %v6250_v58, %v2105_v51  ;;  %v2107_v54 = vpop.f32.mrb[133].mxu0  ;;  %v2658_v60 = vpop.f32.mrb[133].mxu1 }
 0x230   : > { %v2108_v16 = vpop.f32.mrb[134].mxu0  ;;  %v4851_v5 = vpop.f32.mrb[134].mxu1 }
 0x231   : > { %3603 = vst.msk [vmem:[%s5944_s12 + $0x104] sm:$0xf] %vm3537_vm3, %v4629_v37  ;;  %v2651_v22 = vadd.f32 %v4846_v10, %v2106_v27  ;;  %v2109_v49 = vadd.f32 %v6250_v58, %v2108_v16  ;;  %v2110_v34 = vpop.f32.mrb[135].mxu0  ;;  %v2661_v28 = vpop.f32.mrb[135].mxu1 }
 0x233   : > { %v2963_v24 = vmax.f32 %v2651_v22, 0.0  ;;  %v2654_v6 = vadd.f32 %v4847_v61, %v2109_v49 }
 0x235   : > { %v4630_v21 = vpack.c.bf16 %v2963_v24, %v2963_v24  ;;  %v2964_v38 = vmax.f32 %v2654_v6, 0.0 }
 0x236   : > { %v2113_v14 = vpop.f32.mrb[136].mxu0  ;;  %v6256_v50 = vpop.f32.mrb[136].mxu1 }
 0x237   : > { %3604 = vst.msk [vmem:[%s5944_s12 + $0x108] sm:$0xf] %vm3537_vm3, %v4630_v21  ;;  %v4631_v12 = vpack.c.bf16 %v2964_v38, %v2964_v38  ;;  %v2114_v20 = vadd.f32 %v6250_v58, %v2113_v14  ;;  %v2115_v13 = vpop.f32.mrb[137].mxu0  ;;  %v2674_v4 = vpop.f32.mrb[137].mxu1 }
 0x238   : > { %v2116_v31 = vpop.f32.mrb[138].mxu0  ;;  %v4855_v45 = vpop.f32.mrb[138].mxu1 }
 0x239   : > { %3605 = vst.msk [vmem:[%s5944_s12 + $0x10c] sm:$0xf] %vm3537_vm3, %v4631_v12  ;;  %v2659_v26 = vadd.f32 %v2658_v60, %v2114_v20  ;;  %v2117_v8 = vadd.f32 %v6250_v58, %v2116_v31  ;;  %v2118_v63 = vpop.f32.mrb[139].mxu0  ;;  %v2677_v57 = vpop.f32.mrb[139].mxu1 }
 0x23b   : > { %v2965_v52 = vmax.f32 %v2659_v26, 0.0  ;;  %v2662_v25 = vadd.f32 %v2661_v28, %v2117_v8 }
 0x23d   : > { %v4632_v48 = vpack.c.bf16 %v2965_v52, %v2965_v52  ;;  %v2966_v36 = vmax.f32 %v2662_v25, 0.0 }
 0x23e   : > { %v2121_v33 = vpop.f32.mrb[140].mxu0  ;;  %v6264_v56 = vpop.f32.mrb[140].mxu1 }
 0x23f   : > { %3606 = vst.msk [vmem:[%s5944_s12 + $0x110] sm:$0xf] %vm3537_vm3, %v4632_v48  ;;  %v4633_v32 = vpack.c.bf16 %v2966_v36, %v2966_v36  ;;  %v2122_v46 = vadd.f32 %v6250_v58, %v2121_v33  ;;  %v2123_v10 = vpop.f32.mrb[141].mxu0  ;;  %v2690_v62 = vpop.f32.mrb[141].mxu1 }
 0x240   : > { %v2124_v3 = vpop.f32.mrb[142].mxu0  ;;  %v6269_v19 = vpop.f32.mrb[142].mxu1 }
 0x241   : > { %3607 = vst.msk [vmem:[%s5944_s12 + $0x114] sm:$0xf] %vm3537_vm3, %v4633_v32  ;;  %v2667_v40 = vadd.f32 %v4850_v43, %v2122_v46  ;;  %v2125_v9 = vadd.f32 %v6250_v58, %v2124_v3  ;;  %v2126_v61 = vpop.f32.mrb[143].mxu0  ;;  %v2693_v39 = vpop.f32.mrb[143].mxu1 }
 0x243   : > { %v2967_v2 = vmax.f32 %v2667_v40, 0.0  ;;  %v2670_v42 = vadd.f32 %v4851_v5, %v2125_v9 }
 0x245   : > { %v4634_v0 = vpack.c.bf16 %v2967_v2, %v2967_v2  ;;  %v2968_v18 = vmax.f32 %v2670_v42, 0.0 }
 0x246   : > { %v2129_v55 = vpop.f32.mrb[144].mxu0  ;;  %v6274_v44 = vpop.f32.mrb[144].mxu1 }
 0x247   : > { %3608 = vst.msk [vmem:[%s5944_s12 + $0x118] sm:$0xf] %vm3537_vm3, %v4634_v0  ;;  %v4635_v30 = vpack.c.bf16 %v2968_v18, %v2968_v18  ;;  %v2130_v51 = vadd.f32 %v6250_v58, %v2129_v55  ;;  %v2131_v37 = vpop.f32.mrb[145].mxu0  ;;  %v6279_v43 = vpop.f32.mrb[145].mxu1 }
 0x248   : > { %v2132_v27 = vpop.f32.mrb[146].mxu0  ;;  %v6281_v54 = vpop.f32.mrb[146].mxu1 }
 0x249   : > { %3609 = vst.msk [vmem:[%s5944_s12 + $0x11c] sm:$0xf] %vm3537_vm3, %v4635_v30  ;;  %v2675_v60 = vadd.f32 %v2674_v4, %v2130_v51  ;;  %v2133_v16 = vadd.f32 %v6250_v58, %v2132_v27  ;;  %v2134_v5 = vpop.f32.mrb[147].mxu0  ;;  %v6286_v22 = vpop.f32.mrb[147].mxu1 }
 0x24b   : > { %v2969_v49 = vmax.f32 %v2675_v60, 0.0  ;;  %v2678_v34 = vadd.f32 %v2677_v57, %v2133_v16 }
 0x24d   : > { %v4636_v28 = vpack.c.bf16 %v2969_v49, %v2969_v49  ;;  %v2970_v24 = vmax.f32 %v2678_v34, 0.0 }
 0x24e   : > { %v2137_v6 = vpop.f32.mrb[148].mxu0  ;;  %v6288_v21 = vpop.f32.mrb[148].mxu1 }
 0x24f   : > { %3610 = vst.msk [vmem:[%s5944_s12 + $0x120] sm:$0xf] %vm3537_vm3, %v4636_v28  ;;  %v4637_v38 = vpack.c.bf16 %v2970_v24, %v2970_v24  ;;  %v2138_v14 = vadd.f32 %v6250_v58, %v2137_v6  ;;  %v2139_v12 = vpop.f32.mrb[149].mxu0  ;;  %v6293_v20 = vpop.f32.mrb[149].mxu1 }
 0x250   : > { %v2140_v13 = vpop.f32.mrb[150].mxu0  ;;  %v6295_v4 = vpop.f32.mrb[150].mxu1 }
 0x251   : > { %3611 = vst.msk [vmem:[%s5944_s12 + $0x124] sm:$0xf] %vm3537_vm3, %v4637_v38  ;;  %v2683_v31 = vadd.f32 %v6256_v50, %v2138_v14  ;;  %v2141_v26 = vadd.f32 %v6250_v58, %v2140_v13  ;;  %v2142_v8 = vpop.f32.mrb[151].mxu0  ;;  %v6301_v63 = vpop.f32.mrb[151].mxu1  ;;  %v2234_v38 = vadd.f32 %v6250_v58, %v5710_v23  ;;  %v2226_v13 = vadd.f32 %v6250_v58, %v5696_v11 }
 0x252   : > { %v2229_v23 = vadd.f32 %v6250_v58, %v5702_v17 }
 0x253   : > { %v2971_v57 = vmax.f32 %v2683_v31, 0.0  ;;  %v2686_v52 = vadd.f32 %v4855_v45, %v2141_v26 }
 0x255   : > { %v4638_v25 = vpack.c.bf16 %v2971_v57, %v2971_v57  ;;  %v2972_v48 = vmax.f32 %v2686_v52, 0.0 }
 0x256   : > { %v2145_v36 = vpop.f32.mrb[152].mxu0  ;;  %v6303_v33 = vpop.f32.mrb[152].mxu1 }
 0x257   : > { %3612 = vst.msk [vmem:[%s5944_s12 + $0x128] sm:$0xf] %vm3537_vm3, %v4638_v25  ;;  %v4639_v32 = vpack.c.bf16 %v2972_v48, %v2972_v48  ;;  %v2146_v46 = vadd.f32 %v6250_v58, %v2145_v36  ;;  %v2147_v50 = vpop.f32.mrb[153].mxu0  ;;  %v6308_v10 = vpop.f32.mrb[153].mxu1 }
 0x258   : > { %v2148_v3 = vpop.f32.mrb[154].mxu0  ;;  %v6310_v40 = vpop.f32.mrb[154].mxu1 }
 0x259   : > { %3613 = vst.msk [vmem:[%s5944_s12 + $0x12c] sm:$0xf] %vm3537_vm3, %v4639_v32  ;;  %v2691_v45 = vadd.f32 %v2690_v62, %v2146_v46  ;;  %v2149_v9 = vadd.f32 %v6250_v58, %v2148_v3  ;;  %v2150_v61 = vpop.f32.mrb[155].mxu0  ;;  %v6315_v2 = vpop.f32.mrb[155].mxu1 }
 0x25b   : > { %v2973_v42 = vmax.f32 %v2691_v45, 0.0  ;;  %v2694_v0 = vadd.f32 %v2693_v39, %v2149_v9 }
 0x25d   : > { %v4640_v18 = vpack.c.bf16 %v2973_v42, %v2973_v42  ;;  %v2974_v55 = vmax.f32 %v2694_v0, 0.0 }
 0x25e   : > { %v2153_v30 = vpop.f32.mrb[156].mxu0  ;;  %v6317_v51 = vpop.f32.mrb[156].mxu1 }
 0x25f   : > { %3614 = vst.msk [vmem:[%s5944_s12 + $0x130] sm:$0xf] %vm3537_vm3, %v4640_v18  ;;  %v4641_v37 = vpack.c.bf16 %v2974_v55, %v2974_v55  ;;  %v2154_v27 = vadd.f32 %v6250_v58, %v2153_v30  ;;  %v2155_v60 = vpop.f32.mrb[157].mxu0  ;;  %v6322_v62 = vpop.f32.mrb[157].mxu1 }
 0x260   : > { %v2156_v16 = vpop.f32.mrb[158].mxu0  ;;  %v6324_v5 = vpop.f32.mrb[158].mxu1 }
 0x261   : > { %3615 = vst.msk [vmem:[%s5944_s12 + $0x134] sm:$0xf] %vm3537_vm3, %v4641_v37  ;;  %v2699_v39 = vadd.f32 %v6264_v56, %v2154_v27  ;;  %v2157_v49 = vadd.f32 %v6250_v58, %v2156_v16  ;;  %v2158_v34 = vpop.f32.mrb[159].mxu0  ;;  %v6330_v28 = vpop.f32.mrb[159].mxu1  ;;  %v2237_v56 = vadd.f32 %v6250_v58, %v5716_v29  ;;  %v2242_v16 = vadd.f32 %v6250_v58, %v5724_v35 }
 0x262   : > { %v2253_v34 = vadd.f32 %v6250_v58, %v5744_v53  ;;  %v2245_v35 = vadd.f32 %v6250_v58, %v5730_v41 }
 0x263   : > { %v2975_v24 = vmax.f32 %v2699_v39, 0.0  ;;  %v2702_v6 = vadd.f32 %v6269_v19, %v2157_v49 }
 0x265   : > { %v4642_v14 = vpack.c.bf16 %v2975_v24, %v2975_v24  ;;  %v2976_v12 = vmax.f32 %v2702_v6, 0.0 }
 0x266   : > { %v2161_v31 = vpop.f32.mrb[160].mxu0  ;;  %v4878_v26 = vpop.f32.mrb[160].mxu1 }
 0x267   : > { %3616 = vst.msk [vmem:[%s5944_s12 + $0x138] sm:$0xf] %vm3537_vm3, %v4642_v14  ;;  %v4643_v8 = vpack.c.bf16 %v2976_v12, %v2976_v12  ;;  %v2162_v57 = vadd.f32 %v6250_v58, %v2161_v31  ;;  %v2779_v19 = vadd.f32 %v4878_v26, %v2234_v38  ;;  %v2163_v52 = vpop.f32.mrb[161].mxu0  ;;  %v2770_v25 = vpop.f32.mrb[161].mxu1 }
 0x268   : > { %v2771_v48 = vadd.f32 %v2770_v25, %v2226_v13  ;;  %v2164_v36 = vpop.f32.mrb[162].mxu0  ;;  %v4879_v32 = vpop.f32.mrb[162].mxu1 }
 0x269   : > { %3617 = vst.msk [vmem:[%s5944_s12 + $0x13c] sm:$0xf] %vm3537_vm3, %v4643_v8  ;;  %v2707_v11 = vadd.f32 %v6279_v43, %v2162_v57  ;;  %v2995_v29 = vmax.f32 %v2779_v19, 0.0  ;;  %v2165_v46 = vadd.f32 %v6250_v58, %v2164_v36  ;;  %v2782_v50 = vadd.f32 %v4879_v32, %v2237_v56  ;;  %v2166_v3 = vpop.f32.mrb[163].mxu0  ;;  %v2773_v45 = vpop.f32.mrb[163].mxu1 }
 0x26a   : > { %v2993_v9 = vmax.f32 %v2771_v48, 0.0  ;;  %v2774_v61 = vadd.f32 %v2773_v45, %v2229_v23  ;;  %v2250_v43 = vadd.f32 %v6250_v58, %v5738_v47  ;;  %v2258_v3 = vadd.f32 %v6250_v58, %v5752_v59 }
 0x26b   : > { %v2977_v42 = vmax.f32 %v2707_v11, 0.0  ;;  %v4662_v0 = vpack.c.bf16 %v2995_v29, %v2995_v29  ;;  %v2710_v17 = vadd.f32 %v6286_v22, %v2165_v46  ;;  %v2996_v18 = vmax.f32 %v2782_v50, 0.0 }
 0x26c   : > { %v4660_v55 = vpack.c.bf16 %v2993_v9, %v2993_v9  ;;  %v2994_v30 = vmax.f32 %v2774_v61, 0.0  ;;  %v2269_v61 = vadd.f32 %v6250_v58, %v5772_v15  ;;  %v2261_v59 = vadd.f32 %v6250_v58, %v5758_v1 }
 0x26d   : > { %v4644_v37 = vpack.c.bf16 %v2977_v42, %v2977_v42  ;;  %3636 = vst.msk [vmem:[%s5944_s12 + $0x188] sm:$0xf] %vm3537_vm3, %v4662_v0  ;;  %v2978_v27 = vmax.f32 %v2710_v17, 0.0  ;;  %v4663_v60 = vpack.c.bf16 %v2996_v18, %v2996_v18 }
 0x26e   : > { %3634 = vst.msk [vmem:[%s5944_s12 + $0x180] sm:$0xf] %vm3537_vm3, %v4660_v55  ;;  %v4661_v39 = vpack.c.bf16 %v2994_v30, %v2994_v30  ;;  %v2169_v22 = vpop.f32.mrb[164].mxu0  ;;  %v4882_v49 = vpop.f32.mrb[164].mxu1 }
 0x26f   : > { %3618 = vst.msk [vmem:[%s5944_s12 + $0x140] sm:$0xf] %vm3537_vm3, %v4644_v37  ;;  %v4645_v47 = vpack.c.bf16 %v2978_v27, %v2978_v27  ;;  %3637 = vst.msk [vmem:[%s5944_s12 + $0x18c] sm:$0xf] %vm3537_vm3, %v4663_v60  ;;  %v2170_v24 = vadd.f32 %v6250_v58, %v2169_v22  ;;  %v2795_v6 = vadd.f32 %v4882_v49, %v2250_v43  ;;  %v2171_v38 = vpop.f32.mrb[165].mxu0  ;;  %v2786_v14 = vpop.f32.mrb[165].mxu1 }
 0x270   : > { %3635 = vst.msk [vmem:[%s5944_s12 + $0x184] sm:$0xf] %vm3537_vm3, %v4661_v39  ;;  %v2787_v12 = vadd.f32 %v2786_v14, %v2242_v16  ;;  %v2172_v13 = vpop.f32.mrb[166].mxu0  ;;  %v4883_v31 = vpop.f32.mrb[166].mxu1 }
 0x271   : > { %3619 = vst.msk [vmem:[%s5944_s12 + $0x144] sm:$0xf] %vm3537_vm3, %v4645_v47  ;;  %v2715_v53 = vadd.f32 %v6274_v44, %v2170_v24  ;;  %v2999_v26 = vmax.f32 %v2795_v6, 0.0  ;;  %v2173_v56 = vadd.f32 %v6250_v58, %v2172_v13  ;;  %v2798_v8 = vadd.f32 %v4883_v31, %v2253_v34  ;;  %v2174_v57 = vpop.f32.mrb[167].mxu0  ;;  %v2789_v19 = vpop.f32.mrb[167].mxu1  ;;  %v6754_v31 = vld [vmem:[#allocation3_spill] sm:$0xff] }
 0x272   : > { %v2997_v52 = vmax.f32 %v2787_v12, 0.0  ;;  %v2790_v25 = vadd.f32 %v2789_v19, %v2245_v35  ;;  %v2266_v44 = vadd.f32 %v6250_v58, %v5766_v7 }
 0x273   : > { %v2979_v41 = vmax.f32 %v2715_v53, 0.0  ;;  %v4666_v23 = vpack.c.bf16 %v2999_v26, %v2999_v26  ;;  %v2718_v48 = vadd.f32 %v6281_v54, %v2173_v56  ;;  %v3000_v36 = vmax.f32 %v2798_v8, 0.0  ;;  %v6755_v8 = vld [vmem:[#allocation6_spill] sm:$0xff] }
 0x274   : > { %v4664_v32 = vpack.c.bf16 %v2997_v52, %v2997_v52  ;;  %v2998_v11 = vmax.f32 %v2790_v25, 0.0  ;;  %v2274_v53 = vadd.f32 %v6250_v58, %v6754_v31  ;;  %v2285_v57 = vadd.f32 %v6250_v58, %v6755_v8 }
 0x275   : > { %v4646_v29 = vpack.c.bf16 %v2979_v41, %v2979_v41  ;;  %3640 = vst.msk [vmem:[%s5944_s12 + $0x198] sm:$0xf] %vm3537_vm3, %v4666_v23  ;;  %v2980_v46 = vmax.f32 %v2718_v48, 0.0  ;;  %v4667_v50 = vpack.c.bf16 %v3000_v36, %v3000_v36  ;;  %v6756_v48 = vld [vmem:[#allocation4_spill] sm:$0xff] }
 0x276   : > { %3638 = vst.msk [vmem:[%s5944_s12 + $0x190] sm:$0xf] %vm3537_vm3, %v4664_v32  ;;  %v4665_v45 = vpack.c.bf16 %v2998_v11, %v2998_v11  ;;  %v2177_v54 = vpop.f32.mrb[168].mxu0  ;;  %v4886_v9 = vpop.f32.mrb[168].mxu1  ;;  %v2277_v36 = vadd.f32 %v6250_v58, %v6756_v48 }
 0x277   : > { %3620 = vst.msk [vmem:[%s5944_s12 + $0x148] sm:$0xf] %vm3537_vm3, %v4646_v29  ;;  %v4647_v7 = vpack.c.bf16 %v2980_v46, %v2980_v46  ;;  %3641 = vst.msk [vmem:[%s5944_s12 + $0x19c] sm:$0xf] %vm3537_vm3, %v4667_v50  ;;  %v2178_v42 = vadd.f32 %v6250_v58, %v2177_v54  ;;  %v2811_v0 = vadd.f32 %v4886_v9, %v2266_v44  ;;  %v2179_v17 = vpop.f32.mrb[169].mxu0  ;;  %v2802_v18 = vpop.f32.mrb[169].mxu1 }
 0x278   : > { %3639 = vst.msk [vmem:[%s5944_s12 + $0x194] sm:$0xf] %vm3537_vm3, %v4665_v45  ;;  %v2803_v55 = vadd.f32 %v2802_v18, %v2258_v3  ;;  %v2180_v30 = vpop.f32.mrb[170].mxu0  ;;  %v4887_v43 = vpop.f32.mrb[170].mxu1 }
 0x279   : > { %3621 = vst.msk [vmem:[%s5944_s12 + $0x14c] sm:$0xf] %vm3537_vm3, %v4647_v7  ;;  %v2723_v15 = vadd.f32 %v6293_v20, %v2178_v42  ;;  %v3003_v37 = vmax.f32 %v2811_v0, 0.0  ;;  %v2181_v27 = vadd.f32 %v6250_v58, %v2180_v30  ;;  %v2814_v60 = vadd.f32 %v4887_v43, %v2269_v61  ;;  %v2182_v16 = vpop.f32.mrb[171].mxu0  ;;  %v2805_v39 = vpop.f32.mrb[171].mxu1  ;;  %v6753_v20 = vld [vmem:[#allocation5_spill] sm:$0xff] }
 0x27a   : > { %v3001_v22 = vmax.f32 %v2803_v55, 0.0  ;;  %v2806_v49 = vadd.f32 %v2805_v39, %v2261_v59  ;;  %v2282_v14 = vadd.f32 %v6250_v58, %v6753_v20  ;;  %v6759_v39 = vld [vmem:[#allocation10_spill] sm:$0xff] }
 0x27b   : > { %v2981_v1 = vmax.f32 %v2723_v15, 0.0  ;;  %v4670_v34 = vpack.c.bf16 %v3003_v37, %v3003_v37  ;;  %v2726_v47 = vadd.f32 %v6301_v63, %v2181_v27  ;;  %v3004_v24 = vmax.f32 %v2814_v60, 0.0  ;;  %v6758_v37 = vld [vmem:[#allocation7_spill] sm:$0xff] }
 0x27c   : > { %v4668_v6 = vpack.c.bf16 %v3001_v22, %v3001_v22  ;;  %v3002_v38 = vmax.f32 %v2806_v49, 0.0  ;;  %v2290_v27 = vadd.f32 %v6250_v58, %v6758_v37  ;;  %v2301_v22 = vadd.f32 %v6250_v58, %v6759_v39 }
 0x27d   : > { %v4648_v35 = vpack.c.bf16 %v2981_v1, %v2981_v1  ;;  %3644 = vst.msk [vmem:[%s5944_s12 + $0x1a8] sm:$0xf] %vm3537_vm3, %v4670_v34  ;;  %v2982_v12 = vmax.f32 %v2726_v47, 0.0  ;;  %v4671_v13 = vpack.c.bf16 %v3004_v24, %v3004_v24 }
 0x27e   : > { %3642 = vst.msk [vmem:[%s5944_s12 + $0x1a0] sm:$0xf] %vm3537_vm3, %v4668_v6  ;;  %v4669_v26 = vpack.c.bf16 %v3002_v38, %v3002_v38  ;;  %v2185_v63 = vpop.f32.mrb[172].mxu0  ;;  %v4890_v56 = vpop.f32.mrb[172].mxu1  ;;  %v6760_v6 = vld [vmem:[#allocation8_spill] sm:$0xff] }
 0x27f   : > { %3622 = vst.msk [vmem:[%s5944_s12 + $0x150] sm:$0xf] %vm3537_vm3, %v4648_v35  ;;  %v4649_v19 = vpack.c.bf16 %v2982_v12, %v2982_v12  ;;  %3645 = vst.msk [vmem:[%s5944_s12 + $0x1ac] sm:$0xf] %vm3537_vm3, %v4671_v13  ;;  %v2186_v52 = vadd.f32 %v6250_v58, %v2185_v63  ;;  %v2827_v25 = vadd.f32 %v4890_v56, %v2282_v14  ;;  %v2187_v41 = vpop.f32.mrb[173].mxu0  ;;  %v2818_v23 = vpop.f32.mrb[173].mxu1 }
 0x280   : > { %3643 = vst.msk [vmem:[%s5944_s12 + $0x1a4] sm:$0xf] %vm3537_vm3, %v4669_v26  ;;  %v2819_v32 = vadd.f32 %v2818_v23, %v2274_v53  ;;  %v2188_v11 = vpop.f32.mrb[174].mxu0  ;;  %v4891_v44 = vpop.f32.mrb[174].mxu1  ;;  %v2293_v38 = vadd.f32 %v6250_v58, %v6760_v6 }
 0x281   : > { %3623 = vst.msk [vmem:[%s5944_s12 + $0x154] sm:$0xf] %vm3537_vm3, %v4649_v19  ;;  %v2731_v29 = vadd.f32 %v6288_v21, %v2186_v52  ;;  %v3007_v46 = vmax.f32 %v2827_v25, 0.0  ;;  %v2189_v50 = vadd.f32 %v6250_v58, %v2188_v11  ;;  %v2830_v3 = vadd.f32 %v4891_v44, %v2285_v57  ;;  %v2190_v45 = vpop.f32.mrb[175].mxu0  ;;  %v2821_v54 = vpop.f32.mrb[175].mxu1  ;;  %v6757_v21 = vld [vmem:[#allocation9_spill] sm:$0xff] }
 0x282   : > { %v3005_v9 = vmax.f32 %v2819_v32, 0.0  ;;  %v2822_v61 = vadd.f32 %v2821_v54, %v2277_v36  ;;  %v2298_v55 = vadd.f32 %v6250_v58, %v6757_v21  ;;  %v6762_v44 = vld [vmem:[#allocation11_spill] sm:$0xff] }
 0x283   : > { %v2983_v7 = vmax.f32 %v2731_v29, 0.0  ;;  %v4674_v42 = vpack.c.bf16 %v3007_v46, %v3007_v46  ;;  %v2734_v0 = vadd.f32 %v6295_v4, %v2189_v50  ;;  %v3008_v17 = vmax.f32 %v2830_v3, 0.0  ;;  %v6763_v3 = vld [vmem:[#allocation14_spill] sm:$0xff] }
 0x284   : > { %v4672_v18 = vpack.c.bf16 %v3005_v9, %v3005_v9  ;;  %v3006_v59 = vmax.f32 %v2822_v61, 0.0  ;;  %v2306_v29 = vadd.f32 %v6250_v58, %v6762_v44  ;;  %v2317_v45 = vadd.f32 %v6250_v58, %v6763_v3 }
 0x285   : > { %v4650_v30 = vpack.c.bf16 %v2983_v7, %v2983_v7  ;;  %3648 = vst.msk [vmem:[%s5944_s12 + $0x1b8] sm:$0xf] %vm3537_vm3, %v4674_v42  ;;  %v2984_v43 = vmax.f32 %v2734_v0, 0.0  ;;  %v4675_v15 = vpack.c.bf16 %v3008_v17, %v3008_v17  ;;  %v6764_v0 = vld [vmem:[#allocation12_spill] sm:$0xff] }
 0x286   : > { %3646 = vst.msk [vmem:[%s5944_s12 + $0x1b0] sm:$0xf] %vm3537_vm3, %v4672_v18  ;;  %v4673_v60 = vpack.c.bf16 %v3006_v59, %v3006_v59  ;;  %v2193_v4 = vpop.f32.mrb[176].mxu0  ;;  %v4894_v16 = vpop.f32.mrb[176].mxu1  ;;  %v2309_v17 = vadd.f32 %v6250_v58, %v6764_v0  ;;  %v6770_v0 = vld [vmem:[#allocation19_spill] sm:$0xff] }
 0x287   : > { %3624 = vst.msk [vmem:[%s5944_s12 + $0x158] sm:$0xf] %vm3537_vm3, %v4650_v30  ;;  %v4651_v49 = vpack.c.bf16 %v2984_v43, %v2984_v43  ;;  %3649 = vst.msk [vmem:[%s5944_s12 + $0x1bc] sm:$0xf] %vm3537_vm3, %v4675_v15  ;;  %v2194_v1 = vadd.f32 %v6250_v58, %v2193_v4  ;;  %v2843_v34 = vadd.f32 %v4894_v16, %v2298_v55  ;;  %v2195_v47 = vpop.f32.mrb[177].mxu0  ;;  %v2834_v24 = vpop.f32.mrb[177].mxu1 }
 0x288   : > { %3647 = vst.msk [vmem:[%s5944_s12 + $0x1b4] sm:$0xf] %vm3537_vm3, %v4673_v60  ;;  %v2835_v20 = vadd.f32 %v2834_v24, %v2290_v27  ;;  %v2196_v14 = vpop.f32.mrb[178].mxu0  ;;  %v4895_v35 = vpop.f32.mrb[178].mxu1 }
 0x289   : > { %3625 = vst.msk [vmem:[%s5944_s12 + $0x15c] sm:$0xf] %vm3537_vm3, %v4651_v49  ;;  %v2739_v12 = vadd.f32 %v6308_v10, %v2194_v1  ;;  %v3011_v13 = vmax.f32 %v2843_v34, 0.0  ;;  %v2197_v31 = vadd.f32 %v6250_v58, %v2196_v14  ;;  %v2846_v53 = vadd.f32 %v4895_v35, %v2301_v22  ;;  %v2198_v26 = vpop.f32.mrb[179].mxu0  ;;  %v2837_v63 = vpop.f32.mrb[179].mxu1  ;;  %v6761_v10 = vld [vmem:[#allocation13_spill] sm:$0xff] }
 0x28a   : > { %v3009_v56 = vmax.f32 %v2835_v20, 0.0  ;;  %v2838_v8 = vadd.f32 %v2837_v63, %v2293_v38  ;;  %v2314_v48 = vadd.f32 %v6250_v58, %v6761_v10  ;;  %v6766_v20 = vld [vmem:[#allocation15_spill] sm:$0xff] }
 0x28b   : > { %v2985_v57 = vmax.f32 %v2739_v12, 0.0  ;;  %v4678_v19 = vpack.c.bf16 %v3011_v13, %v3011_v13  ;;  %v2742_v52 = vadd.f32 %v6315_v2, %v2197_v31  ;;  %v3012_v25 = vmax.f32 %v2846_v53, 0.0  ;;  %v6767_v13 = vld [vmem:[#allocation18_spill] sm:$0xff] }
 0x28c   : > { %v4676_v41 = vpack.c.bf16 %v3009_v56, %v3009_v56  ;;  %v3010_v23 = vmax.f32 %v2838_v8, 0.0  ;;  %v2322_v14 = vadd.f32 %v6250_v58, %v6766_v20  ;;  %v2333_v31 = vadd.f32 %v6250_v58, %v6767_v13 }
 0x28d   : > { %v4652_v36 = vpack.c.bf16 %v2985_v57, %v2985_v57  ;;  %3652 = vst.msk [vmem:[%s5944_s12 + $0x1c8] sm:$0xf] %vm3537_vm3, %v4678_v19  ;;  %v2986_v32 = vmax.f32 %v2742_v52, 0.0  ;;  %v4679_v11 = vpack.c.bf16 %v3012_v25, %v3012_v25  ;;  %v6768_v57 = vld [vmem:[#allocation16_spill] sm:$0xff] }
 0x28e   : > { %3650 = vst.msk [vmem:[%s5944_s12 + $0x1c0] sm:$0xf] %vm3537_vm3, %v4676_v41  ;;  %v4677_v46 = vpack.c.bf16 %v3010_v23, %v3010_v23  ;;  %v2201_v2 = vpop.f32.mrb[180].mxu0  ;;  %v4898_v50 = vpop.f32.mrb[180].mxu1  ;;  %v2325_v19 = vadd.f32 %v6250_v58, %v6768_v57 }
 0x28f   : > { %3626 = vst.msk [vmem:[%s5944_s12 + $0x160] sm:$0xf] %vm3537_vm3, %v4652_v36  ;;  %v4653_v54 = vpack.c.bf16 %v2986_v32, %v2986_v32  ;;  %3653 = vst.msk [vmem:[%s5944_s12 + $0x1cc] sm:$0xf] %vm3537_vm3, %v4679_v11  ;;  %v2202_v9 = vadd.f32 %v6250_v58, %v2201_v2  ;;  %v2859_v61 = vadd.f32 %v4898_v50, %v2314_v48  ;;  %v2203_v7 = vpop.f32.mrb[181].mxu0  ;;  %v2850_v42 = vpop.f32.mrb[181].mxu1 }
 0x290   : > { %3651 = vst.msk [vmem:[%s5944_s12 + $0x1c4] sm:$0xf] %vm3537_vm3, %v4677_v46  ;;  %v2851_v18 = vadd.f32 %v2850_v42, %v2306_v29  ;;  %v2204_v59 = vpop.f32.mrb[182].mxu0  ;;  %v4899_v21 = vpop.f32.mrb[182].mxu1 }
 0x291   : > { %3627 = vst.msk [vmem:[%s5944_s12 + $0x164] sm:$0xf] %vm3537_vm3, %v4653_v54  ;;  %v2747_v55 = vadd.f32 %v6303_v33, %v2202_v9  ;;  %v3015_v30 = vmax.f32 %v2859_v61, 0.0  ;;  %v2205_v43 = vadd.f32 %v6250_v58, %v2204_v59  ;;  %v2862_v15 = vadd.f32 %v4899_v21, %v2317_v45  ;;  %v2206_v37 = vpop.f32.mrb[183].mxu0  ;;  %v2853_v27 = vpop.f32.mrb[183].mxu1  ;;  %v6765_v33 = vld [vmem:[#allocation17_spill] sm:$0xff] }
 0x292   : > { %v3013_v60 = vmax.f32 %v2851_v18, 0.0  ;;  %v2854_v4 = vadd.f32 %v2853_v27, %v2309_v17  ;;  %v2330_v47 = vadd.f32 %v6250_v58, %v6765_v33  ;;  %v2338_v17 = vadd.f32 %v6250_v58, %v6770_v0  ;;  %v6771_v21 = vld [vmem:[#allocation22_spill] sm:$0xff] }
 0x293   : > { %v2987_v16 = vmax.f32 %v2747_v55, 0.0  ;;  %v4682_v39 = vpack.c.bf16 %v3015_v30, %v3015_v30  ;;  %v2750_v22 = vadd.f32 %v6310_v40, %v2205_v43  ;;  %v3016_v49 = vmax.f32 %v2862_v15, 0.0 }
 0x294   : > { %v4680_v1 = vpack.c.bf16 %v3013_v60, %v3013_v60  ;;  %v3014_v34 = vmax.f32 %v2854_v4, 0.0  ;;  %v2349_v55 = vadd.f32 %v6250_v58, %v6771_v21  ;;  %v6772_v60 = vld [vmem:[#allocation20_spill] sm:$0xff] }
 0x295   : > { %v4654_v24 = vpack.c.bf16 %v2987_v16, %v2987_v16  ;;  %3656 = vst.msk [vmem:[%s5944_s12 + $0x1d8] sm:$0xf] %vm3537_vm3, %v4682_v39  ;;  %v2988_v6 = vmax.f32 %v2750_v22, 0.0  ;;  %v4683_v38 = vpack.c.bf16 %v3016_v49, %v3016_v49  ;;  %v2341_v4 = vadd.f32 %v6250_v58, %v6772_v60 }
 0x296   : > { %3654 = vst.msk [vmem:[%s5944_s12 + $0x1d0] sm:$0xf] %vm3537_vm3, %v4680_v1  ;;  %v4681_v35 = vpack.c.bf16 %v3014_v34, %v3014_v34  ;;  %v2209_v40 = vpop.f32.mrb[184].mxu0  ;;  %v4902_v12 = vpop.f32.mrb[184].mxu1 }
 0x297   : > { %3628 = vst.msk [vmem:[%s5944_s12 + $0x168] sm:$0xf] %vm3537_vm3, %v4654_v24  ;;  %v4655_v53 = vpack.c.bf16 %v2988_v6, %v2988_v6  ;;  %3657 = vst.msk [vmem:[%s5944_s12 + $0x1dc] sm:$0xf] %vm3537_vm3, %v4683_v38  ;;  %v2210_v26 = vadd.f32 %v6250_v58, %v2209_v40  ;;  %v2875_v63 = vadd.f32 %v4902_v12, %v2330_v47  ;;  %v2211_v56 = vpop.f32.mrb[185].mxu0  ;;  %v2866_v8 = vpop.f32.mrb[185].mxu1 }
 0x298   : > { %3655 = vst.msk [vmem:[%s5944_s12 + $0x1d4] sm:$0xf] %vm3537_vm3, %v4681_v35  ;;  %v2867_v52 = vadd.f32 %v2866_v8, %v2322_v14  ;;  %v2212_v25 = vpop.f32.mrb[186].mxu0  ;;  %v4903_v41 = vpop.f32.mrb[186].mxu1 }
 0x299   : > { %3629 = vst.msk [vmem:[%s5944_s12 + $0x16c] sm:$0xf] %vm3537_vm3, %v4655_v53  ;;  %v2755_v23 = vadd.f32 %v6322_v62, %v2210_v26  ;;  %v3019_v10 = vmax.f32 %v2875_v63, 0.0  ;;  %v2213_v48 = vadd.f32 %v6250_v58, %v2212_v25  ;;  %v2878_v36 = vadd.f32 %v4903_v41, %v2333_v31  ;;  %v2214_v32 = vpop.f32.mrb[187].mxu0  ;;  %v2869_v11 = vpop.f32.mrb[187].mxu1  ;;  %v6769_v62 = vld [vmem:[#allocation21_spill] sm:$0xff] }
 0x29a   : > { %v3017_v44 = vmax.f32 %v2867_v52, 0.0  ;;  %v2870_v29 = vadd.f32 %v2869_v11, %v2325_v19  ;;  %v2346_v9 = vadd.f32 %v6250_v58, %v6769_v62 }
 0x29b   : > { %v2989_v46 = vmax.f32 %v2755_v23, 0.0  ;;  %v4686_v2 = vpack.c.bf16 %v3019_v10, %v3019_v10  ;;  %v2758_v50 = vadd.f32 %v6330_v28, %v2213_v48  ;;  %v3020_v3 = vmax.f32 %v2878_v36, 0.0 }
 0x29c   : > { %v4684_v45 = vpack.c.bf16 %v3017_v44, %v3017_v44  ;;  %v3018_v54 = vmax.f32 %v2870_v29, 0.0 }
 0x29d   : > { %v4656_v61 = vpack.c.bf16 %v2989_v46, %v2989_v46  ;;  %3660 = vst.msk [vmem:[%s5944_s12 + $0x1e8] sm:$0xf] %vm3537_vm3, %v4686_v2  ;;  %v2990_v7 = vmax.f32 %v2758_v50, 0.0  ;;  %v4687_v42 = vpack.c.bf16 %v3020_v3, %v3020_v3 }
 0x29e   : > { %3658 = vst.msk [vmem:[%s5944_s12 + $0x1e0] sm:$0xf] %vm3537_vm3, %v4684_v45  ;;  %v4685_v18 = vpack.c.bf16 %v3018_v54, %v3018_v54  ;;  %v2217_v28 = vpop.f32.mrb[188].mxu0  ;;  %v4906_v59 = vpop.f32.mrb[188].mxu1 }
 0x29f   : > { %3630 = vst.msk [vmem:[%s5944_s12 + $0x170] sm:$0xf] %vm3537_vm3, %v4656_v61  ;;  %v4657_v30 = vpack.c.bf16 %v2990_v7, %v2990_v7  ;;  %3661 = vst.msk [vmem:[%s5944_s12 + $0x1ec] sm:$0xf] %vm3537_vm3, %v4687_v42  ;;  %v2218_v43 = vadd.f32 %v6250_v58, %v2217_v28  ;;  %v2891_v15 = vadd.f32 %v4906_v59, %v2346_v9  ;;  %v2219_v37 = vpop.f32.mrb[189].mxu0  ;;  %v2882_v27 = vpop.f32.mrb[189].mxu1 }
 0x2a0   : > { %3659 = vst.msk [vmem:[%s5944_s12 + $0x1e4] sm:$0xf] %vm3537_vm3, %v4685_v18  ;;  %v2883_v16 = vadd.f32 %v2882_v27, %v2338_v17  ;;  %v2220_v39 = vpop.f32.mrb[190].mxu0  ;;  %v4907_v22 = vpop.f32.mrb[190].mxu1 }
 0x2a1   : > { %3631 = vst.msk [vmem:[%s5944_s12 + $0x174] sm:$0xf] %vm3537_vm3, %v4657_v30  ;;  %v2763_v49 = vadd.f32 %v6317_v51, %v2218_v43  ;;  %v3023_v1 = vmax.f32 %v2891_v15, 0.0  ;;  %v2221_v34 = vadd.f32 %v6250_v58, %v2220_v39  ;;  %v2894_v33 = vadd.f32 %v4907_v22, %v2349_v55  ;;  %v2222_v47 = vpop.f32.mrb[191].mxu0  ;;  %v2885_v24 = vpop.f32.mrb[191].mxu1 }
 0x2a2   : > { %v3021_v6 = vmax.f32 %v2883_v16, 0.0  ;;  %v2886_v38 = vadd.f32 %v2885_v24, %v2341_v4 }
 0x2a3   : > { %v2991_v20 = vmax.f32 %v2763_v49, 0.0  ;;  %v4690_v14 = vpack.c.bf16 %v3023_v1, %v3023_v1  ;;  %v2766_v35 = vadd.f32 %v6324_v5, %v2221_v34  ;;  %v3024_v40 = vmax.f32 %v2894_v33, 0.0  ;;  %3672 = sbr.rel (!%p5446_p4) target bundleno = 773 (0x305), region = 36 }
 0x2a4   : > { %v4688_v12 = vpack.c.bf16 %v3021_v6, %v3021_v6  ;;  %v3022_v51 = vmax.f32 %v2886_v38, 0.0 }
 0x2a5   : > { %v4658_v13 = vpack.c.bf16 %v2991_v20, %v2991_v20  ;;  %3664 = vst.msk [vmem:[%s5944_s12 + $0x1f8] sm:$0xf] %vm3537_vm3, %v4690_v14  ;;  %v2992_v58 = vmax.f32 %v2766_v35, 0.0  ;;  %v4691_v31 = vpack.c.bf16 %v3024_v40, %v3024_v40 }
 0x2a6   : > { %3662 = vst.msk [vmem:[%s5944_s12 + $0x1f0] sm:$0xf] %vm3537_vm3, %v4688_v12  ;;  %v4689_v53 = vpack.c.bf16 %v3022_v51, %v3022_v51 }
 0x2a7   : > { %3632 = vst.msk [vmem:[%s5944_s12 + $0x178] sm:$0xf] %vm3537_vm3, %v4658_v13  ;;  %v4659_v26 = vpack.c.bf16 %v2992_v58, %v2992_v58  ;;  %3665 = vst.msk [vmem:[%s5944_s12 + $0x1fc] sm:$0xf] %vm3537_vm3, %v4691_v31 }
 0x2a8   : > { %3663 = vst.msk [vmem:[%s5944_s12 + $0x1f4] sm:$0xf] %vm3537_vm3, %v4689_v53 }
 0x2a9   : > { %3633 = vst.msk [vmem:[%s5944_s12 + $0x17c] sm:$0xf] %vm3537_vm3, %v4659_v26 }
 0x2aa   : > { %s6780_s17 = smov (!%p3675_p8, %s3674_s17), 128 }
 0x2ab   : > { %s4549_s25 = sshll.u32 %s6780_s17, 6 }
 0x2ac   : > { %p4552_p9 = scmp.eq.s32.totalorder %s4549_s25, 0 }
 0x2ad   : > { %s6542_s26 = sshrl.u32 (!%p4552_p9), %s6780_s17, 6 }
 0x2ae   : > { %3683 = sbr.rel (%p4552_p9) target bundleno = 773 (0x305), region = 40  ;;  %p4553_p10 = scmp.le.s32.totalorder (!%p4552_p9), %s6542_s26, 0 }
 0x2b5   : > { %4088 = sbr.rel (%p4553_p10) target bundleno = 752 (0x2f0), region = 112  ;;  %s6773_s15 = smov (!%p4553_p10), %s6536_s24 }
 0x2b6   : > { %s6774_s20 = smov (!%p4553_p10), %s5944_s12  ;;  %s6551_s23 = smov (!%p4553_p10), 0  }
 0x2b7   : > { %s6553_s27 = smov (!%p4553_p10), 0  }
 0x2bc LB: >> { %v3699_v5 = vld [vmem:[%s5373_s20] sm:$0xf]  ;;  %v3701_v63 = vld [vmem:[%s5373_s20 + $0x4] sm:$0xf]  ;;  %v3703_v56 = vld [vmem:[%s5373_s20 + $0x8] sm:$0xf]  ;;  %s5381_s27 = sphi %s6553_s27, %s3693_s27   ;;  %s5377_s23 = sphi %s6551_s23, %s6775_s23   ;;  %s5373_s20 = sphi %s6774_s20, %s3832_s20   ;;  %s5369_s15 = sphi %s6773_s15, %s3833_s15  }
 0x2bd   : >> { %3700 = vst [vmem:[%s5369_s15] sm:$0xf] %v3699_v5  ;;  %3702 = vst [vmem:[%s5369_s15 + $0x4] sm:$0xf] %v3701_v63  ;;  %v3705_v8 = vld [vmem:[%s5373_s20 + $0xc] sm:$0xf]  ;;  %s3827_s28 = sadd.s32 1, %s5377_s23 }
 0x2be   : >> { %3704 = vst [vmem:[%s5369_s15 + $0x8] sm:$0xf] %v3703_v56  ;;  %v3707_v57 = vld [vmem:[%s5373_s20 + $0x10] sm:$0xf]  ;;  %v3709_v19 = vld [vmem:[%s5373_s20 + $0x14] sm:$0xf]  ;;  %p3828_p11 = scmp.ge.s32.totalorder %s3827_s28, %s6542_s26 }
 0x2bf   : >> { %3706 = vst [vmem:[%s5369_s15 + $0xc] sm:$0xf] %v3705_v8  ;;  %3708 = vst [vmem:[%s5369_s15 + $0x10] sm:$0xf] %v3707_v57  ;;  %v3711_v52 = vld [vmem:[%s5373_s20 + $0x18] sm:$0xf] }
 0x2c0   : >> { %3710 = vst [vmem:[%s5369_s15 + $0x14] sm:$0xf] %v3709_v19  ;;  %v3713_v25 = vld [vmem:[%s5373_s20 + $0x1c] sm:$0xf]  ;;  %v3715_v41 = vld [vmem:[%s5373_s20 + $0x20] sm:$0xf] }
 0x2c1   : >> { %3712 = vst [vmem:[%s5369_s15 + $0x18] sm:$0xf] %v3711_v52  ;;  %3714 = vst [vmem:[%s5369_s15 + $0x1c] sm:$0xf] %v3713_v25  ;;  %v3717_v23 = vld [vmem:[%s5373_s20 + $0x24] sm:$0xf] }
 0x2c2   : >> { %3716 = vst [vmem:[%s5369_s15 + $0x20] sm:$0xf] %v3715_v41  ;;  %v3719_v10 = vld [vmem:[%s5373_s20 + $0x28] sm:$0xf]  ;;  %v3721_v48 = vld [vmem:[%s5373_s20 + $0x2c] sm:$0xf] }
 0x2c3   : >> { %3718 = vst [vmem:[%s5369_s15 + $0x24] sm:$0xf] %v3717_v23  ;;  %3720 = vst [vmem:[%s5369_s15 + $0x28] sm:$0xf] %v3719_v10  ;;  %v3723_v36 = vld [vmem:[%s5373_s20 + $0x30] sm:$0xf] }
 0x2c4   : >> { %3722 = vst [vmem:[%s5369_s15 + $0x2c] sm:$0xf] %v3721_v48  ;;  %v3725_v32 = vld [vmem:[%s5373_s20 + $0x34] sm:$0xf]  ;;  %v3727_v11 = vld [vmem:[%s5373_s20 + $0x38] sm:$0xf] }
 0x2c5   : >> { %3724 = vst [vmem:[%s5369_s15 + $0x30] sm:$0xf] %v3723_v36  ;;  %3726 = vst [vmem:[%s5369_s15 + $0x34] sm:$0xf] %v3725_v32  ;;  %v3729_v44 = vld [vmem:[%s5373_s20 + $0x3c] sm:$0xf] }
 0x2c6   : >> { %3728 = vst [vmem:[%s5369_s15 + $0x38] sm:$0xf] %v3727_v11  ;;  %v3731_v29 = vld [vmem:[%s5373_s20 + $0x40] sm:$0xf]  ;;  %v3733_v46 = vld [vmem:[%s5373_s20 + $0x44] sm:$0xf] }
 0x2c7   : >> { %3730 = vst [vmem:[%s5369_s15 + $0x3c] sm:$0xf] %v3729_v44  ;;  %3732 = vst [vmem:[%s5369_s15 + $0x40] sm:$0xf] %v3731_v29  ;;  %v3735_v2 = vld [vmem:[%s5373_s20 + $0x48] sm:$0xf] }
 0x2c8   : >> { %3734 = vst [vmem:[%s5369_s15 + $0x44] sm:$0xf] %v3733_v46  ;;  %v3737_v50 = vld [vmem:[%s5373_s20 + $0x4c] sm:$0xf]  ;;  %v3739_v3 = vld [vmem:[%s5373_s20 + $0x50] sm:$0xf] }
 0x2c9   : >> { %3736 = vst [vmem:[%s5369_s15 + $0x48] sm:$0xf] %v3735_v2  ;;  %3738 = vst [vmem:[%s5369_s15 + $0x4c] sm:$0xf] %v3737_v50  ;;  %v3741_v45 = vld [vmem:[%s5373_s20 + $0x54] sm:$0xf] }
 0x2ca   : >> { %3740 = vst [vmem:[%s5369_s15 + $0x50] sm:$0xf] %v3739_v3  ;;  %v3743_v54 = vld [vmem:[%s5373_s20 + $0x58] sm:$0xf]  ;;  %v3745_v62 = vld [vmem:[%s5373_s20 + $0x5c] sm:$0xf] }
 0x2cb   : >> { %3742 = vst [vmem:[%s5369_s15 + $0x54] sm:$0xf] %v3741_v45  ;;  %3744 = vst [vmem:[%s5369_s15 + $0x58] sm:$0xf] %v3743_v54  ;;  %v3747_v9 = vld [vmem:[%s5373_s20 + $0x60] sm:$0xf] }
 0x2cc   : >> { %3746 = vst [vmem:[%s5369_s15 + $0x5c] sm:$0xf] %v3745_v62  ;;  %v3749_v61 = vld [vmem:[%s5373_s20 + $0x64] sm:$0xf]  ;;  %v3751_v7 = vld [vmem:[%s5373_s20 + $0x68] sm:$0xf] }
 0x2cd   : >> { %3748 = vst [vmem:[%s5369_s15 + $0x60] sm:$0xf] %v3747_v9  ;;  %3750 = vst [vmem:[%s5369_s15 + $0x64] sm:$0xf] %v3749_v61  ;;  %v3753_v42 = vld [vmem:[%s5373_s20 + $0x6c] sm:$0xf] }
 0x2ce   : >> { %3752 = vst [vmem:[%s5369_s15 + $0x68] sm:$0xf] %v3751_v7  ;;  %v3755_v0 = vld [vmem:[%s5373_s20 + $0x70] sm:$0xf]  ;;  %v3757_v17 = vld [vmem:[%s5373_s20 + $0x74] sm:$0xf] }
 0x2cf   : >> { %3754 = vst [vmem:[%s5369_s15 + $0x6c] sm:$0xf] %v3753_v42  ;;  %3756 = vst [vmem:[%s5369_s15 + $0x70] sm:$0xf] %v3755_v0  ;;  %v3759_v18 = vld [vmem:[%s5373_s20 + $0x78] sm:$0xf] }
 0x2d0   : >> { %3758 = vst [vmem:[%s5369_s15 + $0x74] sm:$0xf] %v3757_v17  ;;  %v3761_v28 = vld [vmem:[%s5373_s20 + $0x7c] sm:$0xf]  ;;  %v3763_v59 = vld [vmem:[%s5373_s20 + $0x80] sm:$0xf] }
 0x2d1   : >> { %3760 = vst [vmem:[%s5369_s15 + $0x78] sm:$0xf] %v3759_v18  ;;  %3762 = vst [vmem:[%s5369_s15 + $0x7c] sm:$0xf] %v3761_v28  ;;  %v3765_v21 = vld [vmem:[%s5373_s20 + $0x84] sm:$0xf] }
 0x2d2   : >> { %3764 = vst [vmem:[%s5369_s15 + $0x80] sm:$0xf] %v3763_v59  ;;  %v3767_v55 = vld [vmem:[%s5373_s20 + $0x88] sm:$0xf]  ;;  %v3769_v30 = vld [vmem:[%s5373_s20 + $0x8c] sm:$0xf] }
 0x2d3   : >> { %3766 = vst [vmem:[%s5369_s15 + $0x84] sm:$0xf] %v3765_v21  ;;  %3768 = vst [vmem:[%s5369_s15 + $0x88] sm:$0xf] %v3767_v55  ;;  %v3771_v43 = vld [vmem:[%s5373_s20 + $0x90] sm:$0xf] }
 0x2d4   : >> { %3770 = vst [vmem:[%s5369_s15 + $0x8c] sm:$0xf] %v3769_v30  ;;  %v3773_v15 = vld [vmem:[%s5373_s20 + $0x94] sm:$0xf]  ;;  %v3775_v37 = vld [vmem:[%s5373_s20 + $0x98] sm:$0xf] }
 0x2d5   : >> { %3772 = vst [vmem:[%s5369_s15 + $0x90] sm:$0xf] %v3771_v43  ;;  %3774 = vst [vmem:[%s5369_s15 + $0x94] sm:$0xf] %v3773_v15  ;;  %v3777_v27 = vld [vmem:[%s5373_s20 + $0x9c] sm:$0xf] }
 0x2d6   : >> { %3776 = vst [vmem:[%s5369_s15 + $0x98] sm:$0xf] %v3775_v37  ;;  %v3779_v60 = vld [vmem:[%s5373_s20 + $0xa0] sm:$0xf]  ;;  %v3781_v4 = vld [vmem:[%s5373_s20 + $0xa4] sm:$0xf] }
 0x2d7   : >> { %3778 = vst [vmem:[%s5369_s15 + $0x9c] sm:$0xf] %v3777_v27  ;;  %3780 = vst [vmem:[%s5369_s15 + $0xa0] sm:$0xf] %v3779_v60  ;;  %v3783_v16 = vld [vmem:[%s5373_s20 + $0xa8] sm:$0xf] }
 0x2d8   : >> { %3782 = vst [vmem:[%s5369_s15 + $0xa4] sm:$0xf] %v3781_v4  ;;  %v3785_v39 = vld [vmem:[%s5373_s20 + $0xac] sm:$0xf]  ;;  %v3787_v22 = vld [vmem:[%s5373_s20 + $0xb0] sm:$0xf] }
 0x2d9   : >> { %3784 = vst [vmem:[%s5369_s15 + $0xa8] sm:$0xf] %v3783_v16  ;;  %3786 = vst [vmem:[%s5369_s15 + $0xac] sm:$0xf] %v3785_v39  ;;  %v3789_v49 = vld [vmem:[%s5373_s20 + $0xb4] sm:$0xf] }
 0x2da   : >> { %3788 = vst [vmem:[%s5369_s15 + $0xb0] sm:$0xf] %v3787_v22  ;;  %v3791_v1 = vld [vmem:[%s5373_s20 + $0xb8] sm:$0xf]  ;;  %v3793_v34 = vld [vmem:[%s5373_s20 + $0xbc] sm:$0xf] }
 0x2db   : >> { %3790 = vst [vmem:[%s5369_s15 + $0xb4] sm:$0xf] %v3789_v49  ;;  %3792 = vst [vmem:[%s5369_s15 + $0xb8] sm:$0xf] %v3791_v1  ;;  %v3795_v33 = vld [vmem:[%s5373_s20 + $0xc0] sm:$0xf] }
 0x2dc   : >> { %3794 = vst [vmem:[%s5369_s15 + $0xbc] sm:$0xf] %v3793_v34  ;;  %v3797_v47 = vld [vmem:[%s5373_s20 + $0xc4] sm:$0xf]  ;;  %v3799_v24 = vld [vmem:[%s5373_s20 + $0xc8] sm:$0xf] }
 0x2dd   : >> { %3796 = vst [vmem:[%s5369_s15 + $0xc0] sm:$0xf] %v3795_v33  ;;  %3798 = vst [vmem:[%s5369_s15 + $0xc4] sm:$0xf] %v3797_v47  ;;  %v3801_v6 = vld [vmem:[%s5373_s20 + $0xcc] sm:$0xf] }
 0x2de   : >> { %3800 = vst [vmem:[%s5369_s15 + $0xc8] sm:$0xf] %v3799_v24  ;;  %v3803_v38 = vld [vmem:[%s5373_s20 + $0xd0] sm:$0xf]  ;;  %v3805_v20 = vld [vmem:[%s5373_s20 + $0xd4] sm:$0xf] }
 0x2df   : >> { %3802 = vst [vmem:[%s5369_s15 + $0xcc] sm:$0xf] %v3801_v6  ;;  %3804 = vst [vmem:[%s5369_s15 + $0xd0] sm:$0xf] %v3803_v38  ;;  %v3807_v14 = vld [vmem:[%s5373_s20 + $0xd8] sm:$0xf] }
 0x2e0   : >> { %3806 = vst [vmem:[%s5369_s15 + $0xd4] sm:$0xf] %v3805_v20  ;;  %v3809_v35 = vld [vmem:[%s5373_s20 + $0xdc] sm:$0xf]  ;;  %v3811_v40 = vld [vmem:[%s5373_s20 + $0xe0] sm:$0xf] }
 0x2e1   : >> { %3808 = vst [vmem:[%s5369_s15 + $0xd8] sm:$0xf] %v3807_v14  ;;  %3810 = vst [vmem:[%s5369_s15 + $0xdc] sm:$0xf] %v3809_v35  ;;  %v3813_v12 = vld [vmem:[%s5373_s20 + $0xe4] sm:$0xf] }
 0x2e2   : >> { %3812 = vst [vmem:[%s5369_s15 + $0xe0] sm:$0xf] %v3811_v40  ;;  %v3815_v51 = vld [vmem:[%s5373_s20 + $0xe8] sm:$0xf]  ;;  %v3817_v13 = vld [vmem:[%s5373_s20 + $0xec] sm:$0xf] }
 0x2e3   : >> { %3814 = vst [vmem:[%s5369_s15 + $0xe4] sm:$0xf] %v3813_v12  ;;  %3816 = vst [vmem:[%s5369_s15 + $0xe8] sm:$0xf] %v3815_v51  ;;  %v3819_v58 = vld [vmem:[%s5373_s20 + $0xf0] sm:$0xf] }
 0x2e4   : >> { %3818 = vst [vmem:[%s5369_s15 + $0xec] sm:$0xf] %v3817_v13  ;;  %v3821_v31 = vld [vmem:[%s5373_s20 + $0xf4] sm:$0xf]  ;;  %v3823_v53 = vld [vmem:[%s5373_s20 + $0xf8] sm:$0xf] }
 0x2e5   : >> { %3820 = vst [vmem:[%s5369_s15 + $0xf0] sm:$0xf] %v3819_v58  ;;  %3822 = vst [vmem:[%s5369_s15 + $0xf4] sm:$0xf] %v3821_v31  ;;  %v3825_v26 = vld [vmem:[%s5373_s20 + $0xfc] sm:$0xf] }
 0x2e6   : >> { %3824 = vst [vmem:[%s5369_s15 + $0xf8] sm:$0xf] %v3823_v53  ;;  %3826 = vst [vmem:[%s5369_s15 + $0xfc] sm:$0xf] %v3825_v26  ;;  %s6782_s28 = smov (%p3828_p11, %s3827_s28), 0  ;;  %s3693_s27 = sadd.s32 1, %s5381_s27  }
 0x2e7   : >> { %s4554_s29 = sshll.u32 %s6782_s28, 8  ;;  %p3692_p12 = scmp.ge.s32.totalorder %s3693_s27, %s6542_s26 }
 0x2e8   : >> { %s3832_s20 = scalar_lea.vmem %s5944_s12, %s4554_s29 [#allocation2]   ;;  %s3833_s15 = scalar_lea.vmem %s6536_s24, %s4554_s29  }
 0x2e9   : >> { %s6775_s23 = smov %s6782_s28  ;;  %3695 = sbr.rel (!%p3692_p12) target bundleno = 700 (0x2bc), region = 118 }
 0x2f0 PF: > { %s6710_s30 = sand.u32 63, %s6780_s17   ;;  %s4693_s4 = sshll.u32 %s6542_s26, 8 }
 0x2f1   : > { %s3838_s5 = scalar_lea.vmem %s5944_s12, %s4693_s4 [#allocation2]   ;;  %s3840_s6 = scalar_lea.vmem %s6536_s24, %s4693_s4  }
 0x2f2   : > { %p4559_p13 = scmp.le.s32.totalorder %s6710_s30, 0 }
 0x2f3   : > { %s5383_s7 = smov (!%p4559_p13), %s3840_s6   ;;  %s5387_s8 = smov (!%p4559_p13), %s3838_s5  }
 0x2f4   : > { %4102 = sbr.rel (%p4559_p13) target bundleno = 773 (0x305), region = 123  ;;  %s5391_s10 = smov (!%p4559_p13), 0  }
 0x2f5   : > { %s5395_s11 = smov (!%p4559_p13), 0  }
 0x2fb LB: >> { %v3850_v5 = vld [vmem:[%s5389_s8] sm:$0xf]  ;;  %s3852_s9 = sadd.s32 1, %s5393_s10  ;;  %s3844_s11 = sadd.s32 1, %s5397_s11   ;;  %s5397_s11 = sphi %s5395_s11, %s3844_s11   ;;  %s5393_s10 = sphi %s5391_s10, %s5392_s10   ;;  %s5389_s8 = sphi %s5387_s8, %s3857_s8   ;;  %s5385_s7 = sphi %s5383_s7, %s3858_s7  }
 0x2fc   : >> { %3851 = vst [vmem:[%s5385_s7] sm:$0xf] %v3850_v5  ;;  %p3853_p0 = scmp.ge.s32.totalorder %s3852_s9, %s6710_s30  ;;  %p3843_p1 = scmp.ge.s32.totalorder %s3844_s11, %s6710_s30 }
 0x2fe   : >> { %s6784_s9 = smov (%p3853_p0, %s3852_s9), 0  ;;  %3846 = sbr.rel (!%p3843_p1) target bundleno = 763 (0x2fb), region = 129 }
 0x2ff   : >> { %s4560_s12 = sshll.u32 %s6784_s9, 2  ;;  %s5392_s10 = smov %s6784_s9  }
 0x300   : >> { %s3857_s8 = scalar_lea.vmem %s3838_s5, %s4560_s12 [#allocation2]   ;;  %s3858_s7 = scalar_lea.vmem %s3840_s6, %s4560_s12  }
 0x305 PF: > { %p10_p2 = scmp.ge.s32.totalorder %s5436_s16, 8   ;;  %s6776_s12 = smov %s5361_s13 }
 0x306   : > { %s6777_s13 = smov %s5444_s19  ;;  %s6778_s14 = smov %s5436_s16 }
 0x307   :  { %12 = sbr.rel (!%p10_p2) target bundleno = 2 (0x2), region = 140 }

// kernel: mini_model_forward.3
= control target key start
LH: loop header
LB: loop body
LE: loop exit
PB: predicated region body
PF: predicated region fallthrough
CT: control target
= control target key end

     0   :  { %8 = vsyncpa [#allocation4], 0  ;;  %s9742_s12 = smov 0   ;;  %s9744_s13 = smov 0   ;;  %s10824_s0 = inlined_call_operand.vmem [shape: bf16[2,196608], index: 0, kind: input, shape index: {}]   ;;  %s10825_s1 = inlined_call_operand.vmem [shape: bf16[16,196608], index: 1, kind: input, shape index: {}]   ;;  %s10826_s2 = inlined_call_operand.vmem [shape: f32[1,16], index: 2, kind: input, shape index: {}]   ;;  %s10827_s3 = inlined_call_operand.hbm [shape: f32[2,16], index: 3, kind: output, shape index: {}]  }
   0x1   :  { %s9746_s14 = smov 0  }
   0x2 LB: > { %s9758_s15 = sadd.s32 4294967295, %s9718_s14   ;;  %s9761_s16 = sadd.s32 1, %s9718_s14   ;;  %s9718_s14 = sphi %s9746_s14, %s10830_s14   ;;  %s9714_s13 = sphi %s9744_s13, %s10829_s13   ;;  %s9710_s12 = sphi %s9742_s12, %s10828_s12  }
   0x3   : > { %s44_s17 = ssub.s32 %s9718_s14, %s9761_s16  ;;  %s47_s18 = sadd.s32 1, %s9714_s13 }
   0x4   : > { %p45_p0 = scmp.eq.s32.totalorder %s44_s17, 0  ;;  %p54_p1 = scmp.ne.s32.totalorder %s9714_s13, %s9710_s12 }
   0x5   : > { %p55_p2 = scmp.eq.s32.totalorder %s9718_s14, 0  ;;  %p9332_p4 = scmp.ge.s32.totalorder %s9718_s14, 6 }
   0x6   : > { %s9770_s19 = scalar_select %p45_p0, %s9714_s13, %s47_s18  }
   0x7   : > { %p56_p3 = por %p55_p2, %p54_p1  ;;  %125 = sbr.rel (%p9332_p4) target bundleno = 146 (0x92), region = 20 }
   0xe   : > { %136 = sbr.rel (!%p56_p3) target bundleno = 146 (0x92), region = 28  ;;  %s138_s20 = sand.u32 (%p56_p3), 1, %s9714_s13  }
   0xf   : > { %s9601_s21 = sshll.u32 (%p56_p3), %s9718_s14, 10  ;;  %s9333_s22 = sshll.u32 (%p56_p3), %s138_s20, 11 }
  0x10   : > { %s9778_s25 = scalar_lea.vmem (%p56_p3), %s10825_s1, %s9601_s21  ;;  %s9783_s26 = scalar_lea.vmem (%p56_p3), [#allocation2], %s9333_s22 }
  0x11   : > { %v156_v0 = vld [vmem:[%s9778_s25] sm:$0xff] (%p56_p3)  ;;  %v158_v1 = vld [vmem:[%s9778_s25 + $0x8] sm:$0xff] (%p56_p3)  ;;  %v160_v2 = vld [vmem:[%s9778_s25 + $0x10] sm:$0xff] (%p56_p3) }
  0x12   : > { %157 = vst [vmem:[%s9783_s26] sm:$0xff] (%p56_p3), %v156_v0  ;;  %159 = vst [vmem:[%s9783_s26 + $0x8] sm:$0xff] (%p56_p3), %v158_v1  ;;  %v162_v3 = vld [vmem:[%s9778_s25 + $0x18] sm:$0xff] (%p56_p3)  ;;  %v164_v4 = vld [vmem:[%s9778_s25 + $0x20] sm:$0xff] (%p56_p3) }
  0x13   : > { %161 = vst [vmem:[%s9783_s26 + $0x10] sm:$0xff] (%p56_p3), %v160_v2  ;;  %v166_v5 = vld [vmem:[%s9778_s25 + $0x28] sm:$0xff] (%p56_p3)  ;;  %163 = vst [vmem:[%s9783_s26 + $0x18] sm:$0xff] (%p56_p3), %v162_v3  ;;  %v168_v6 = vld [vmem:[%s9778_s25 + $0x30] sm:$0xff] (%p56_p3) }
  0x14   : > { %165 = vst [vmem:[%s9783_s26 + $0x20] sm:$0xff] (%p56_p3), %v164_v4  ;;  %167 = vst [vmem:[%s9783_s26 + $0x28] sm:$0xff] (%p56_p3), %v166_v5  ;;  %v170_v7 = vld [vmem:[%s9778_s25 + $0x38] sm:$0xff] (%p56_p3)  ;;  %v172_v8 = vld [vmem:[%s9778_s25 + $0x40] sm:$0xff] (%p56_p3) }
  0x15   : > { %169 = vst [vmem:[%s9783_s26 + $0x30] sm:$0xff] %v168_v6  ;;  %171 = vst [vmem:[%s9783_s26 + $0x38] sm:$0xff] %v170_v7  ;;  %v174_v9 = vld [vmem:[%s9778_s25 + $0x48] sm:$0xff]  ;;  %v176_v10 = vld [vmem:[%s9778_s25 + $0x50] sm:$0xff] }
  0x16   : > { %173 = vst [vmem:[%s9783_s26 + $0x40] sm:$0xff] %v172_v8  ;;  %v178_v11 = vld [vmem:[%s9778_s25 + $0x58] sm:$0xff]  ;;  %175 = vst [vmem:[%s9783_s26 + $0x48] sm:$0xff] %v174_v9  ;;  %v180_v12 = vld [vmem:[%s9778_s25 + $0x60] sm:$0xff] }
  0x17   : > { %177 = vst [vmem:[%s9783_s26 + $0x50] sm:$0xff] %v176_v10  ;;  %179 = vst [vmem:[%s9783_s26 + $0x58] sm:$0xff] %v178_v11  ;;  %v182_v13 = vld [vmem:[%s9778_s25 + $0x68] sm:$0xff]  ;;  %v184_v14 = vld [vmem:[%s9778_s25 + $0x70] sm:$0xff] }
  0x18   : > { %181 = vst [vmem:[%s9783_s26 + $0x60] sm:$0xff] %v180_v12  ;;  %183 = vst [vmem:[%s9783_s26 + $0x68] sm:$0xff] %v182_v13  ;;  %v186_v15 = vld [vmem:[%s9778_s25 + $0x78] sm:$0xff]  ;;  %v188_v16 = vld [vmem:[%s9778_s25 + $0x80] sm:$0xff] }
  0x19   : > { %185 = vst [vmem:[%s9783_s26 + $0x70] sm:$0xff] %v184_v14  ;;  %v190_v17 = vld [vmem:[%s9778_s25 + $0x88] sm:$0xff]  ;;  %187 = vst [vmem:[%s9783_s26 + $0x78] sm:$0xff] %v186_v15  ;;  %v192_v18 = vld [vmem:[%s9778_s25 + $0x90] sm:$0xff] }
  0x1a   : > { %189 = vst [vmem:[%s9783_s26 + $0x80] sm:$0xff] %v188_v16  ;;  %191 = vst [vmem:[%s9783_s26 + $0x88] sm:$0xff] %v190_v17  ;;  %v194_v19 = vld [vmem:[%s9778_s25 + $0x98] sm:$0xff]  ;;  %v196_v20 = vld [vmem:[%s9778_s25 + $0xa0] sm:$0xff] }
  0x1b   : > { %193 = vst [vmem:[%s9783_s26 + $0x90] sm:$0xff] %v192_v18  ;;  %195 = vst [vmem:[%s9783_s26 + $0x98] sm:$0xff] %v194_v19  ;;  %v198_v21 = vld [vmem:[%s9778_s25 + $0xa8] sm:$0xff]  ;;  %v200_v22 = vld [vmem:[%s9778_s25 + $0xb0] sm:$0xff] }
  0x1c   : > { %197 = vst [vmem:[%s9783_s26 + $0xa0] sm:$0xff] %v196_v20  ;;  %v202_v23 = vld [vmem:[%s9778_s25 + $0xb8] sm:$0xff]  ;;  %199 = vst [vmem:[%s9783_s26 + $0xa8] sm:$0xff] %v198_v21  ;;  %v204_v24 = vld [vmem:[%s9778_s25 + $0xc0] sm:$0xff] }
  0x1d   : > { %201 = vst [vmem:[%s9783_s26 + $0xb0] sm:$0xff] %v200_v22  ;;  %203 = vst [vmem:[%s9783_s26 + $0xb8] sm:$0xff] %v202_v23  ;;  %v206_v25 = vld [vmem:[%s9778_s25 + $0xc8] sm:$0xff]  ;;  %v208_v26 = vld [vmem:[%s9778_s25 + $0xd0] sm:$0xff] }
  0x1e   : > { %205 = vst [vmem:[%s9783_s26 + $0xc0] sm:$0xff] %v204_v24  ;;  %207 = vst [vmem:[%s9783_s26 + $0xc8] sm:$0xff] %v206_v25  ;;  %v210_v27 = vld [vmem:[%s9778_s25 + $0xd8] sm:$0xff]  ;;  %v212_v28 = vld [vmem:[%s9778_s25 + $0xe0] sm:$0xff] }
  0x1f   : > { %209 = vst [vmem:[%s9783_s26 + $0xd0] sm:$0xff] %v208_v26  ;;  %v214_v29 = vld [vmem:[%s9778_s25 + $0xe8] sm:$0xff]  ;;  %211 = vst [vmem:[%s9783_s26 + $0xd8] sm:$0xff] %v210_v27  ;;  %v216_v30 = vld [vmem:[%s9778_s25 + $0xf0] sm:$0xff] }
  0x20   : > { %213 = vst [vmem:[%s9783_s26 + $0xe0] sm:$0xff] %v212_v28  ;;  %215 = vst [vmem:[%s9783_s26 + $0xe8] sm:$0xff] %v214_v29  ;;  %v218_v31 = vld [vmem:[%s9778_s25 + $0xf8] sm:$0xff]  ;;  %v220_v32 = vld [vmem:[%s9778_s25 + $0x100] sm:$0xff] }
  0x21   : > { %217 = vst [vmem:[%s9783_s26 + $0xf0] sm:$0xff] %v216_v30  ;;  %219 = vst [vmem:[%s9783_s26 + $0xf8] sm:$0xff] %v218_v31  ;;  %v222_v33 = vld [vmem:[%s9778_s25 + $0x108] sm:$0xff]  ;;  %v224_v34 = vld [vmem:[%s9778_s25 + $0x110] sm:$0xff] }
  0x22   : > { %221 = vst [vmem:[%s9783_s26 + $0x100] sm:$0xff] %v220_v32  ;;  %v226_v35 = vld [vmem:[%s9778_s25 + $0x118] sm:$0xff]  ;;  %223 = vst [vmem:[%s9783_s26 + $0x108] sm:$0xff] %v222_v33  ;;  %v228_v36 = vld [vmem:[%s9778_s25 + $0x120] sm:$0xff] }
  0x23   : > { %225 = vst [vmem:[%s9783_s26 + $0x110] sm:$0xff] %v224_v34  ;;  %227 = vst [vmem:[%s9783_s26 + $0x118] sm:$0xff] %v226_v35  ;;  %v230_v37 = vld [vmem:[%s9778_s25 + $0x128] sm:$0xff]  ;;  %v232_v38 = vld [vmem:[%s9778_s25 + $0x130] sm:$0xff] }
  0x24   : > { %229 = vst [vmem:[%s9783_s26 + $0x120] sm:$0xff] %v228_v36  ;;  %231 = vst [vmem:[%s9783_s26 + $0x128] sm:$0xff] %v230_v37  ;;  %v234_v39 = vld [vmem:[%s9778_s25 + $0x138] sm:$0xff]  ;;  %v236_v40 = vld [vmem:[%s9778_s25 + $0x140] sm:$0xff] }
  0x25   : > { %233 = vst [vmem:[%s9783_s26 + $0x130] sm:$0xff] %v232_v38  ;;  %v238_v41 = vld [vmem:[%s9778_s25 + $0x148] sm:$0xff]  ;;  %235 = vst [vmem:[%s9783_s26 + $0x138] sm:$0xff] %v234_v39  ;;  %v240_v42 = vld [vmem:[%s9778_s25 + $0x150] sm:$0xff] }
  0x26   : > { %237 = vst [vmem:[%s9783_s26 + $0x140] sm:$0xff] %v236_v40  ;;  %239 = vst [vmem:[%s9783_s26 + $0x148] sm:$0xff] %v238_v41  ;;  %v242_v43 = vld [vmem:[%s9778_s25 + $0x158] sm:$0xff]  ;;  %v244_v44 = vld [vmem:[%s9778_s25 + $0x160] sm:$0xff] }
  0x27   : > { %241 = vst [vmem:[%s9783_s26 + $0x150] sm:$0xff] %v240_v42  ;;  %243 = vst [vmem:[%s9783_s26 + $0x158] sm:$0xff] %v242_v43  ;;  %v246_v45 = vld [vmem:[%s9778_s25 + $0x168] sm:$0xff]  ;;  %v248_v46 = vld [vmem:[%s9778_s25 + $0x170] sm:$0xff] }
  0x28   : > { %245 = vst [vmem:[%s9783_s26 + $0x160] sm:$0xff] %v244_v44  ;;  %v250_v47 = vld [vmem:[%s9778_s25 + $0x178] sm:$0xff]  ;;  %247 = vst [vmem:[%s9783_s26 + $0x168] sm:$0xff] %v246_v45  ;;  %v252_v48 = vld [vmem:[%s9778_s25 + $0x180] sm:$0xff] }
  0x29   : > { %249 = vst [vmem:[%s9783_s26 + $0x170] sm:$0xff] %v248_v46  ;;  %251 = vst [vmem:[%s9783_s26 + $0x178] sm:$0xff] %v250_v47  ;;  %v254_v49 = vld [vmem:[%s9778_s25 + $0x188] sm:$0xff]  ;;  %v256_v50 = vld [vmem:[%s9778_s25 + $0x190] sm:$0xff] }
  0x2a   : > { %253 = vst [vmem:[%s9783_s26 + $0x180] sm:$0xff] %v252_v48  ;;  %255 = vst [vmem:[%s9783_s26 + $0x188] sm:$0xff] %v254_v49  ;;  %v258_v51 = vld [vmem:[%s9778_s25 + $0x198] sm:$0xff]  ;;  %v260_v52 = vld [vmem:[%s9778_s25 + $0x1a0] sm:$0xff] }
  0x2b   : > { %257 = vst [vmem:[%s9783_s26 + $0x190] sm:$0xff] %v256_v50  ;;  %v262_v53 = vld [vmem:[%s9778_s25 + $0x1a8] sm:$0xff]  ;;  %259 = vst [vmem:[%s9783_s26 + $0x198] sm:$0xff] %v258_v51  ;;  %v264_v54 = vld [vmem:[%s9778_s25 + $0x1b0] sm:$0xff] }
  0x2c   : > { %261 = vst [vmem:[%s9783_s26 + $0x1a0] sm:$0xff] %v260_v52  ;;  %263 = vst [vmem:[%s9783_s26 + $0x1a8] sm:$0xff] %v262_v53  ;;  %v266_v55 = vld [vmem:[%s9778_s25 + $0x1b8] sm:$0xff]  ;;  %v268_v56 = vld [vmem:[%s9778_s25 + $0x1c0] sm:$0xff] }
  0x2d   : > { %265 = vst [vmem:[%s9783_s26 + $0x1b0] sm:$0xff] %v264_v54  ;;  %267 = vst [vmem:[%s9783_s26 + $0x1b8] sm:$0xff] %v266_v55  ;;  %v270_v57 = vld [vmem:[%s9778_s25 + $0x1c8] sm:$0xff]  ;;  %v272_v58 = vld [vmem:[%s9778_s25 + $0x1d0] sm:$0xff] }
  0x2e   : > { %269 = vst [vmem:[%s9783_s26 + $0x1c0] sm:$0xff] %v268_v56  ;;  %v274_v59 = vld [vmem:[%s9778_s25 + $0x1d8] sm:$0xff]  ;;  %271 = vst [vmem:[%s9783_s26 + $0x1c8] sm:$0xff] %v270_v57  ;;  %v276_v60 = vld [vmem:[%s9778_s25 + $0x1e0] sm:$0xff] }
  0x2f   : > { %273 = vst [vmem:[%s9783_s26 + $0x1d0] sm:$0xff] %v272_v58  ;;  %275 = vst [vmem:[%s9783_s26 + $0x1d8] sm:$0xff] %v274_v59  ;;  %v278_v61 = vld [vmem:[%s9778_s25 + $0x1e8] sm:$0xff]  ;;  %v280_v62 = vld [vmem:[%s9778_s25 + $0x1f0] sm:$0xff] }
  0x30   : > { %277 = vst [vmem:[%s9783_s26 + $0x1e0] sm:$0xff] %v276_v60  ;;  %279 = vst [vmem:[%s9783_s26 + $0x1e8] sm:$0xff] %v278_v61  ;;  %v282_v63 = vld [vmem:[%s9778_s25 + $0x1f8] sm:$0xff]  ;;  %v284_v0 = vld [vmem:[%s9778_s25 + $0x200] sm:$0xff] }
  0x31   : > { %281 = vst [vmem:[%s9783_s26 + $0x1f0] sm:$0xff] %v280_v62  ;;  %v286_v1 = vld [vmem:[%s9778_s25 + $0x208] sm:$0xff]  ;;  %283 = vst [vmem:[%s9783_s26 + $0x1f8] sm:$0xff] %v282_v63  ;;  %v288_v2 = vld [vmem:[%s9778_s25 + $0x210] sm:$0xff] }
  0x32   : > { %285 = vst [vmem:[%s9783_s26 + $0x200] sm:$0xff] %v284_v0  ;;  %287 = vst [vmem:[%s9783_s26 + $0x208] sm:$0xff] %v286_v1  ;;  %v290_v3 = vld [vmem:[%s9778_s25 + $0x218] sm:$0xff]  ;;  %v292_v4 = vld [vmem:[%s9778_s25 + $0x220] sm:$0xff] }
  0x33   : > { %289 = vst [vmem:[%s9783_s26 + $0x210] sm:$0xff] %v288_v2  ;;  %291 = vst [vmem:[%s9783_s26 + $0x218] sm:$0xff] %v290_v3  ;;  %v294_v5 = vld [vmem:[%s9778_s25 + $0x228] sm:$0xff]  ;;  %v296_v6 = vld [vmem:[%s9778_s25 + $0x230] sm:$0xff] }
  0x34   : > { %293 = vst [vmem:[%s9783_s26 + $0x220] sm:$0xff] %v292_v4  ;;  %v298_v7 = vld [vmem:[%s9778_s25 + $0x238] sm:$0xff]  ;;  %295 = vst [vmem:[%s9783_s26 + $0x228] sm:$0xff] %v294_v5  ;;  %v300_v8 = vld [vmem:[%s9778_s25 + $0x240] sm:$0xff] }
  0x35   : > { %297 = vst [vmem:[%s9783_s26 + $0x230] sm:$0xff] %v296_v6  ;;  %299 = vst [vmem:[%s9783_s26 + $0x238] sm:$0xff] %v298_v7  ;;  %v302_v9 = vld [vmem:[%s9778_s25 + $0x248] sm:$0xff]  ;;  %v304_v10 = vld [vmem:[%s9778_s25 + $0x250] sm:$0xff] }
  0x36   : > { %301 = vst [vmem:[%s9783_s26 + $0x240] sm:$0xff] %v300_v8  ;;  %303 = vst [vmem:[%s9783_s26 + $0x248] sm:$0xff] %v302_v9  ;;  %v306_v11 = vld [vmem:[%s9778_s25 + $0x258] sm:$0xff]  ;;  %v308_v12 = vld [vmem:[%s9778_s25 + $0x260] sm:$0xff] }
  0x37   : > { %305 = vst [vmem:[%s9783_s26 + $0x250] sm:$0xff] %v304_v10  ;;  %v310_v13 = vld [vmem:[%s9778_s25 + $0x268] sm:$0xff]  ;;  %307 = vst [vmem:[%s9783_s26 + $0x258] sm:$0xff] %v306_v11  ;;  %v312_v14 = vld [vmem:[%s9778_s25 + $0x270] sm:$0xff] }
  0x38   : > { %309 = vst [vmem:[%s9783_s26 + $0x260] sm:$0xff] %v308_v12  ;;  %311 = vst [vmem:[%s9783_s26 + $0x268] sm:$0xff] %v310_v13  ;;  %v314_v15 = vld [vmem:[%s9778_s25 + $0x278] sm:$0xff]  ;;  %v316_v16 = vld [vmem:[%s9778_s25 + $0x280] sm:$0xff] }
  0x39   : > { %313 = vst [vmem:[%s9783_s26 + $0x270] sm:$0xff] %v312_v14  ;;  %315 = vst [vmem:[%s9783_s26 + $0x278] sm:$0xff] %v314_v15  ;;  %v318_v17 = vld [vmem:[%s9778_s25 + $0x288] sm:$0xff]  ;;  %v320_v18 = vld [vmem:[%s9778_s25 + $0x290] sm:$0xff] }
  0x3a   : > { %317 = vst [vmem:[%s9783_s26 + $0x280] sm:$0xff] %v316_v16  ;;  %v322_v19 = vld [vmem:[%s9778_s25 + $0x298] sm:$0xff]  ;;  %319 = vst [vmem:[%s9783_s26 + $0x288] sm:$0xff] %v318_v17  ;;  %v324_v20 = vld [vmem:[%s9778_s25 + $0x2a0] sm:$0xff] }
  0x3b   : > { %321 = vst [vmem:[%s9783_s26 + $0x290] sm:$0xff] %v320_v18  ;;  %323 = vst [vmem:[%s9783_s26 + $0x298] sm:$0xff] %v322_v19  ;;  %v326_v21 = vld [vmem:[%s9778_s25 + $0x2a8] sm:$0xff]  ;;  %v328_v22 = vld [vmem:[%s9778_s25 + $0x2b0] sm:$0xff] }
  0x3c   : > { %325 = vst [vmem:[%s9783_s26 + $0x2a0] sm:$0xff] %v324_v20  ;;  %327 = vst [vmem:[%s9783_s26 + $0x2a8] sm:$0xff] %v326_v21  ;;  %v330_v23 = vld [vmem:[%s9778_s25 + $0x2b8] sm:$0xff]  ;;  %v332_v24 = vld [vmem:[%s9778_s25 + $0x2c0] sm:$0xff] }
  0x3d   : > { %329 = vst [vmem:[%s9783_s26 + $0x2b0] sm:$0xff] %v328_v22  ;;  %v334_v25 = vld [vmem:[%s9778_s25 + $0x2c8] sm:$0xff]  ;;  %331 = vst [vmem:[%s9783_s26 + $0x2b8] sm:$0xff] %v330_v23  ;;  %v336_v26 = vld [vmem:[%s9778_s25 + $0x2d0] sm:$0xff] }
  0x3e   : > { %333 = vst [vmem:[%s9783_s26 + $0x2c0] sm:$0xff] %v332_v24  ;;  %335 = vst [vmem:[%s9783_s26 + $0x2c8] sm:$0xff] %v334_v25  ;;  %v338_v27 = vld [vmem:[%s9778_s25 + $0x2d8] sm:$0xff]  ;;  %v340_v28 = vld [vmem:[%s9778_s25 + $0x2e0] sm:$0xff] }
  0x3f   : > { %337 = vst [vmem:[%s9783_s26 + $0x2d0] sm:$0xff] %v336_v26  ;;  %339 = vst [vmem:[%s9783_s26 + $0x2d8] sm:$0xff] %v338_v27  ;;  %v342_v29 = vld [vmem:[%s9778_s25 + $0x2e8] sm:$0xff]  ;;  %v344_v30 = vld [vmem:[%s9778_s25 + $0x2f0] sm:$0xff] }
  0x40   : > { %341 = vst [vmem:[%s9783_s26 + $0x2e0] sm:$0xff] %v340_v28  ;;  %v346_v31 = vld [vmem:[%s9778_s25 + $0x2f8] sm:$0xff]  ;;  %343 = vst [vmem:[%s9783_s26 + $0x2e8] sm:$0xff] %v342_v29  ;;  %v348_v32 = vld [vmem:[%s9778_s25 + $0x300] sm:$0xff] }
  0x41   : > { %345 = vst [vmem:[%s9783_s26 + $0x2f0] sm:$0xff] %v344_v30  ;;  %347 = vst [vmem:[%s9783_s26 + $0x2f8] sm:$0xff] %v346_v31  ;;  %v350_v33 = vld [vmem:[%s9778_s25 + $0x308] sm:$0xff]  ;;  %v352_v34 = vld [vmem:[%s9778_s25 + $0x310] sm:$0xff] }
  0x42   : > { %349 = vst [vmem:[%s9783_s26 + $0x300] sm:$0xff] %v348_v32  ;;  %351 = vst [vmem:[%s9783_s26 + $0x308] sm:$0xff] %v350_v33  ;;  %v354_v35 = vld [vmem:[%s9778_s25 + $0x318] sm:$0xff]  ;;  %v356_v36 = vld [vmem:[%s9778_s25 + $0x320] sm:$0xff] }
  0x43   : > { %353 = vst [vmem:[%s9783_s26 + $0x310] sm:$0xff] %v352_v34  ;;  %v358_v37 = vld [vmem:[%s9778_s25 + $0x328] sm:$0xff]  ;;  %355 = vst [vmem:[%s9783_s26 + $0x318] sm:$0xff] %v354_v35  ;;  %v360_v38 = vld [vmem:[%s9778_s25 + $0x330] sm:$0xff] }
  0x44   : > { %357 = vst [vmem:[%s9783_s26 + $0x320] sm:$0xff] %v356_v36  ;;  %359 = vst [vmem:[%s9783_s26 + $0x328] sm:$0xff] %v358_v37  ;;  %v362_v39 = vld [vmem:[%s9778_s25 + $0x338] sm:$0xff]  ;;  %v364_v40 = vld [vmem:[%s9778_s25 + $0x340] sm:$0xff] }
  0x45   : > { %361 = vst [vmem:[%s9783_s26 + $0x330] sm:$0xff] %v360_v38  ;;  %363 = vst [vmem:[%s9783_s26 + $0x338] sm:$0xff] %v362_v39  ;;  %v366_v41 = vld [vmem:[%s9778_s25 + $0x348] sm:$0xff]  ;;  %v368_v42 = vld [vmem:[%s9778_s25 + $0x350] sm:$0xff] }
  0x46   : > { %365 = vst [vmem:[%s9783_s26 + $0x340] sm:$0xff] %v364_v40  ;;  %v370_v43 = vld [vmem:[%s9778_s25 + $0x358] sm:$0xff]  ;;  %367 = vst [vmem:[%s9783_s26 + $0x348] sm:$0xff] %v366_v41  ;;  %v372_v44 = vld [vmem:[%s9778_s25 + $0x360] sm:$0xff] }
  0x47   : > { %369 = vst [vmem:[%s9783_s26 + $0x350] sm:$0xff] %v368_v42  ;;  %371 = vst [vmem:[%s9783_s26 + $0x358] sm:$0xff] %v370_v43  ;;  %v374_v45 = vld [vmem:[%s9778_s25 + $0x368] sm:$0xff]  ;;  %v376_v46 = vld [vmem:[%s9778_s25 + $0x370] sm:$0xff] }
  0x48   : > { %373 = vst [vmem:[%s9783_s26 + $0x360] sm:$0xff] %v372_v44  ;;  %375 = vst [vmem:[%s9783_s26 + $0x368] sm:$0xff] %v374_v45  ;;  %v378_v47 = vld [vmem:[%s9778_s25 + $0x378] sm:$0xff]  ;;  %v380_v48 = vld [vmem:[%s9778_s25 + $0x380] sm:$0xff] }
  0x49   : > { %377 = vst [vmem:[%s9783_s26 + $0x370] sm:$0xff] %v376_v46  ;;  %v382_v49 = vld [vmem:[%s9778_s25 + $0x388] sm:$0xff]  ;;  %379 = vst [vmem:[%s9783_s26 + $0x378] sm:$0xff] %v378_v47  ;;  %v384_v50 = vld [vmem:[%s9778_s25 + $0x390] sm:$0xff] }
  0x4a   : > { %381 = vst [vmem:[%s9783_s26 + $0x380] sm:$0xff] %v380_v48  ;;  %383 = vst [vmem:[%s9783_s26 + $0x388] sm:$0xff] %v382_v49  ;;  %v386_v51 = vld [vmem:[%s9778_s25 + $0x398] sm:$0xff]  ;;  %v388_v52 = vld [vmem:[%s9778_s25 + $0x3a0] sm:$0xff] }
  0x4b   : > { %385 = vst [vmem:[%s9783_s26 + $0x390] sm:$0xff] %v384_v50  ;;  %387 = vst [vmem:[%s9783_s26 + $0x398] sm:$0xff] %v386_v51  ;;  %v390_v53 = vld [vmem:[%s9778_s25 + $0x3a8] sm:$0xff]  ;;  %v392_v54 = vld [vmem:[%s9778_s25 + $0x3b0] sm:$0xff] }
  0x4c   : > { %389 = vst [vmem:[%s9783_s26 + $0x3a0] sm:$0xff] %v388_v52  ;;  %v394_v55 = vld [vmem:[%s9778_s25 + $0x3b8] sm:$0xff]  ;;  %391 = vst [vmem:[%s9783_s26 + $0x3a8] sm:$0xff] %v390_v53  ;;  %v396_v56 = vld [vmem:[%s9778_s25 + $0x3c0] sm:$0xff] }
  0x4d   : > { %393 = vst [vmem:[%s9783_s26 + $0x3b0] sm:$0xff] %v392_v54  ;;  %395 = vst [vmem:[%s9783_s26 + $0x3b8] sm:$0xff] %v394_v55  ;;  %v398_v57 = vld [vmem:[%s9778_s25 + $0x3c8] sm:$0xff]  ;;  %v400_v58 = vld [vmem:[%s9778_s25 + $0x3d0] sm:$0xff] }
  0x4e   : > { %397 = vst [vmem:[%s9783_s26 + $0x3c0] sm:$0xff] %v396_v56  ;;  %399 = vst [vmem:[%s9783_s26 + $0x3c8] sm:$0xff] %v398_v57  ;;  %v402_v59 = vld [vmem:[%s9778_s25 + $0x3d8] sm:$0xff]  ;;  %v404_v60 = vld [vmem:[%s9778_s25 + $0x3e0] sm:$0xff] }
  0x4f   : > { %401 = vst [vmem:[%s9783_s26 + $0x3d0] sm:$0xff] %v400_v58  ;;  %v406_v61 = vld [vmem:[%s9778_s25 + $0x3e8] sm:$0xff]  ;;  %403 = vst [vmem:[%s9783_s26 + $0x3d8] sm:$0xff] %v402_v59  ;;  %v408_v62 = vld [vmem:[%s9778_s25 + $0x3f0] sm:$0xff] }
  0x50   : > { %405 = vst [vmem:[%s9783_s26 + $0x3e0] sm:$0xff] %v404_v60  ;;  %407 = vst [vmem:[%s9783_s26 + $0x3e8] sm:$0xff] %v406_v61  ;;  %v410_v63 = vld [vmem:[%s9778_s25 + $0x3f8] sm:$0xff]  ;;  %v412_v0 = vld [vmem:[%s9778_s25 + $0x1800] sm:$0xff] }
  0x51   : > { %409 = vst [vmem:[%s9783_s26 + $0x3f0] sm:$0xff] %v408_v62  ;;  %411 = vst [vmem:[%s9783_s26 + $0x3f8] sm:$0xff] %v410_v63  ;;  %v414_v1 = vld [vmem:[%s9778_s25 + $0x1808] sm:$0xff]  ;;  %v416_v2 = vld [vmem:[%s9778_s25 + $0x1810] sm:$0xff] }
  0x52   : > { %413 = vst [vmem:[%s9783_s26 + $0x400] sm:$0xff] %v412_v0  ;;  %v418_v3 = vld [vmem:[%s9778_s25 + $0x1818] sm:$0xff]  ;;  %415 = vst [vmem:[%s9783_s26 + $0x408] sm:$0xff] %v414_v1  ;;  %v420_v4 = vld [vmem:[%s9778_s25 + $0x1820] sm:$0xff] }
  0x53   : > { %417 = vst [vmem:[%s9783_s26 + $0x410] sm:$0xff] %v416_v2  ;;  %419 = vst [vmem:[%s9783_s26 + $0x418] sm:$0xff] %v418_v3  ;;  %v422_v5 = vld [vmem:[%s9778_s25 + $0x1828] sm:$0xff]  ;;  %v424_v6 = vld [vmem:[%s9778_s25 + $0x1830] sm:$0xff] }
  0x54   : > { %421 = vst [vmem:[%s9783_s26 + $0x420] sm:$0xff] %v420_v4  ;;  %423 = vst [vmem:[%s9783_s26 + $0x428] sm:$0xff] %v422_v5  ;;  %v426_v7 = vld [vmem:[%s9778_s25 + $0x1838] sm:$0xff]  ;;  %v428_v8 = vld [vmem:[%s9778_s25 + $0x1840] sm:$0xff] }
  0x55   : > { %425 = vst [vmem:[%s9783_s26 + $0x430] sm:$0xff] %v424_v6  ;;  %v430_v9 = vld [vmem:[%s9778_s25 + $0x1848] sm:$0xff]  ;;  %427 = vst [vmem:[%s9783_s26 + $0x438] sm:$0xff] %v426_v7  ;;  %v432_v10 = vld [vmem:[%s9778_s25 + $0x1850] sm:$0xff] }
  0x56   : > { %429 = vst [vmem:[%s9783_s26 + $0x440] sm:$0xff] %v428_v8  ;;  %431 = vst [vmem:[%s9783_s26 + $0x448] sm:$0xff] %v430_v9  ;;  %v434_v11 = vld [vmem:[%s9778_s25 + $0x1858] sm:$0xff]  ;;  %v436_v12 = vld [vmem:[%s9778_s25 + $0x1860] sm:$0xff] }
  0x57   : > { %433 = vst [vmem:[%s9783_s26 + $0x450] sm:$0xff] %v432_v10  ;;  %435 = vst [vmem:[%s9783_s26 + $0x458] sm:$0xff] %v434_v11  ;;  %v438_v13 = vld [vmem:[%s9778_s25 + $0x1868] sm:$0xff]  ;;  %v440_v14 = vld [vmem:[%s9778_s25 + $0x1870] sm:$0xff] }
  0x58   : > { %437 = vst [vmem:[%s9783_s26 + $0x460] sm:$0xff] %v436_v12  ;;  %v442_v15 = vld [vmem:[%s9778_s25 + $0x1878] sm:$0xff]  ;;  %439 = vst [vmem:[%s9783_s26 + $0x468] sm:$0xff] %v438_v13  ;;  %v444_v16 = vld [vmem:[%s9778_s25 + $0x1880] sm:$0xff] }
  0x59   : > { %441 = vst [vmem:[%s9783_s26 + $0x470] sm:$0xff] %v440_v14  ;;  %443 = vst [vmem:[%s9783_s26 + $0x478] sm:$0xff] %v442_v15  ;;  %v446_v17 = vld [vmem:[%s9778_s25 + $0x1888] sm:$0xff]  ;;  %v448_v18 = vld [vmem:[%s9778_s25 + $0x1890] sm:$0xff] }
  0x5a   : > { %445 = vst [vmem:[%s9783_s26 + $0x480] sm:$0xff] %v444_v16  ;;  %447 = vst [vmem:[%s9783_s26 + $0x488] sm:$0xff] %v446_v17  ;;  %v450_v19 = vld [vmem:[%s9778_s25 + $0x1898] sm:$0xff]  ;;  %v452_v20 = vld [vmem:[%s9778_s25 + $0x18a0] sm:$0xff] }
  0x5b   : > { %449 = vst [vmem:[%s9783_s26 + $0x490] sm:$0xff] %v448_v18  ;;  %v454_v21 = vld [vmem:[%s9778_s25 + $0x18a8] sm:$0xff]  ;;  %451 = vst [vmem:[%s9783_s26 + $0x498] sm:$0xff] %v450_v19  ;;  %v456_v22 = vld [vmem:[%s9778_s25 + $0x18b0] sm:$0xff] }
  0x5c   : > { %453 = vst [vmem:[%s9783_s26 + $0x4a0] sm:$0xff] %v452_v20  ;;  %455 = vst [vmem:[%s9783_s26 + $0x4a8] sm:$0xff] %v454_v21  ;;  %v458_v23 = vld [vmem:[%s9778_s25 + $0x18b8] sm:$0xff]  ;;  %v460_v24 = vld [vmem:[%s9778_s25 + $0x18c0] sm:$0xff] }
  0x5d   : > { %457 = vst [vmem:[%s9783_s26 + $0x4b0] sm:$0xff] %v456_v22  ;;  %459 = vst [vmem:[%s9783_s26 + $0x4b8] sm:$0xff] %v458_v23  ;;  %v462_v25 = vld [vmem:[%s9778_s25 + $0x18c8] sm:$0xff]  ;;  %v464_v26 = vld [vmem:[%s9778_s25 + $0x18d0] sm:$0xff] }
  0x5e   : > { %461 = vst [vmem:[%s9783_s26 + $0x4c0] sm:$0xff] %v460_v24  ;;  %v466_v27 = vld [vmem:[%s9778_s25 + $0x18d8] sm:$0xff]  ;;  %463 = vst [vmem:[%s9783_s26 + $0x4c8] sm:$0xff] %v462_v25  ;;  %v468_v28 = vld [vmem:[%s9778_s25 + $0x18e0] sm:$0xff] }
  0x5f   : > { %465 = vst [vmem:[%s9783_s26 + $0x4d0] sm:$0xff] %v464_v26  ;;  %467 = vst [vmem:[%s9783_s26 + $0x4d8] sm:$0xff] %v466_v27  ;;  %v470_v29 = vld [vmem:[%s9778_s25 + $0x18e8] sm:$0xff]  ;;  %v472_v30 = vld [vmem:[%s9778_s25 + $0x18f0] sm:$0xff] }
  0x60   : > { %469 = vst [vmem:[%s9783_s26 + $0x4e0] sm:$0xff] %v468_v28  ;;  %471 = vst [vmem:[%s9783_s26 + $0x4e8] sm:$0xff] %v470_v29  ;;  %v474_v31 = vld [vmem:[%s9778_s25 + $0x18f8] sm:$0xff]  ;;  %v476_v32 = vld [vmem:[%s9778_s25 + $0x1900] sm:$0xff] }
  0x61   : > { %473 = vst [vmem:[%s9783_s26 + $0x4f0] sm:$0xff] %v472_v30  ;;  %v478_v33 = vld [vmem:[%s9778_s25 + $0x1908] sm:$0xff]  ;;  %475 = vst [vmem:[%s9783_s26 + $0x4f8] sm:$0xff] %v474_v31  ;;  %v480_v34 = vld [vmem:[%s9778_s25 + $0x1910] sm:$0xff] }
  0x62   : > { %477 = vst [vmem:[%s9783_s26 + $0x500] sm:$0xff] %v476_v32  ;;  %479 = vst [vmem:[%s9783_s26 + $0x508] sm:$0xff] %v478_v33  ;;  %v482_v35 = vld [vmem:[%s9778_s25 + $0x1918] sm:$0xff]  ;;  %v484_v36 = vld [vmem:[%s9778_s25 + $0x1920] sm:$0xff] }
  0x63   : > { %481 = vst [vmem:[%s9783_s26 + $0x510] sm:$0xff] %v480_v34  ;;  %483 = vst [vmem:[%s9783_s26 + $0x518] sm:$0xff] %v482_v35  ;;  %v486_v37 = vld [vmem:[%s9778_s25 + $0x1928] sm:$0xff]  ;;  %v488_v38 = vld [vmem:[%s9778_s25 + $0x1930] sm:$0xff] }
  0x64   : > { %485 = vst [vmem:[%s9783_s26 + $0x520] sm:$0xff] %v484_v36  ;;  %v490_v39 = vld [vmem:[%s9778_s25 + $0x1938] sm:$0xff]  ;;  %487 = vst [vmem:[%s9783_s26 + $0x528] sm:$0xff] %v486_v37  ;;  %v492_v40 = vld [vmem:[%s9778_s25 + $0x1940] sm:$0xff] }
  0x65   : > { %489 = vst [vmem:[%s9783_s26 + $0x530] sm:$0xff] %v488_v38  ;;  %491 = vst [vmem:[%s9783_s26 + $0x538] sm:$0xff] %v490_v39  ;;  %v494_v41 = vld [vmem:[%s9778_s25 + $0x1948] sm:$0xff]  ;;  %v496_v42 = vld [vmem:[%s9778_s25 + $0x1950] sm:$0xff] }
  0x66   : > { %493 = vst [vmem:[%s9783_s26 + $0x540] sm:$0xff] %v492_v40  ;;  %495 = vst [vmem:[%s9783_s26 + $0x548] sm:$0xff] %v494_v41  ;;  %v498_v43 = vld [vmem:[%s9778_s25 + $0x1958] sm:$0xff]  ;;  %v500_v44 = vld [vmem:[%s9778_s25 + $0x1960] sm:$0xff] }
  0x67   : > { %497 = vst [vmem:[%s9783_s26 + $0x550] sm:$0xff] %v496_v42  ;;  %v502_v45 = vld [vmem:[%s9778_s25 + $0x1968] sm:$0xff]  ;;  %499 = vst [vmem:[%s9783_s26 + $0x558] sm:$0xff] %v498_v43  ;;  %v504_v46 = vld [vmem:[%s9778_s25 + $0x1970] sm:$0xff] }
  0x68   : > { %501 = vst [vmem:[%s9783_s26 + $0x560] sm:$0xff] %v500_v44  ;;  %503 = vst [vmem:[%s9783_s26 + $0x568] sm:$0xff] %v502_v45  ;;  %v506_v47 = vld [vmem:[%s9778_s25 + $0x1978] sm:$0xff]  ;;  %v508_v48 = vld [vmem:[%s9778_s25 + $0x1980] sm:$0xff] }
  0x69   : > { %505 = vst [vmem:[%s9783_s26 + $0x570] sm:$0xff] %v504_v46  ;;  %507 = vst [vmem:[%s9783_s26 + $0x578] sm:$0xff] %v506_v47  ;;  %v510_v49 = vld [vmem:[%s9778_s25 + $0x1988] sm:$0xff]  ;;  %v512_v50 = vld [vmem:[%s9778_s25 + $0x1990] sm:$0xff] }
  0x6a   : > { %509 = vst [vmem:[%s9783_s26 + $0x580] sm:$0xff] %v508_v48  ;;  %v514_v51 = vld [vmem:[%s9778_s25 + $0x1998] sm:$0xff]  ;;  %511 = vst [vmem:[%s9783_s26 + $0x588] sm:$0xff] %v510_v49  ;;  %v516_v52 = vld [vmem:[%s9778_s25 + $0x19a0] sm:$0xff] }
  0x6b   : > { %513 = vst [vmem:[%s9783_s26 + $0x590] sm:$0xff] %v512_v50  ;;  %515 = vst [vmem:[%s9783_s26 + $0x598] sm:$0xff] %v514_v51  ;;  %v518_v53 = vld [vmem:[%s9778_s25 + $0x19a8] sm:$0xff]  ;;  %v520_v54 = vld [vmem:[%s9778_s25 + $0x19b0] sm:$0xff] }
  0x6c   : > { %517 = vst [vmem:[%s9783_s26 + $0x5a0] sm:$0xff] %v516_v52  ;;  %519 = vst [vmem:[%s9783_s26 + $0x5a8] sm:$0xff] %v518_v53  ;;  %v522_v55 = vld [vmem:[%s9778_s25 + $0x19b8] sm:$0xff]  ;;  %v524_v56 = vld [vmem:[%s9778_s25 + $0x19c0] sm:$0xff] }
  0x6d   : > { %521 = vst [vmem:[%s9783_s26 + $0x5b0] sm:$0xff] %v520_v54  ;;  %v526_v57 = vld [vmem:[%s9778_s25 + $0x19c8] sm:$0xff]  ;;  %523 = vst [vmem:[%s9783_s26 + $0x5b8] sm:$0xff] %v522_v55  ;;  %v528_v58 = vld [vmem:[%s9778_s25 + $0x19d0] sm:$0xff] }
  0x6e   : > { %525 = vst [vmem:[%s9783_s26 + $0x5c0] sm:$0xff] %v524_v56  ;;  %527 = vst [vmem:[%s9783_s26 + $0x5c8] sm:$0xff] %v526_v57  ;;  %v530_v59 = vld [vmem:[%s9778_s25 + $0x19d8] sm:$0xff]  ;;  %v532_v60 = vld [vmem:[%s9778_s25 + $0x19e0] sm:$0xff] }
  0x6f   : > { %529 = vst [vmem:[%s9783_s26 + $0x5d0] sm:$0xff] %v528_v58  ;;  %531 = vst [vmem:[%s9783_s26 + $0x5d8] sm:$0xff] %v530_v59  ;;  %v534_v61 = vld [vmem:[%s9778_s25 + $0x19e8] sm:$0xff]  ;;  %v536_v62 = vld [vmem:[%s9778_s25 + $0x19f0] sm:$0xff] }
  0x70   : > { %533 = vst [vmem:[%s9783_s26 + $0x5e0] sm:$0xff] %v532_v60  ;;  %v538_v63 = vld [vmem:[%s9778_s25 + $0x19f8] sm:$0xff]  ;;  %535 = vst [vmem:[%s9783_s26 + $0x5e8] sm:$0xff] %v534_v61  ;;  %v540_v0 = vld [vmem:[%s9778_s25 + $0x1a00] sm:$0xff] }
  0x71   : > { %537 = vst [vmem:[%s9783_s26 + $0x5f0] sm:$0xff] %v536_v62  ;;  %539 = vst [vmem:[%s9783_s26 + $0x5f8] sm:$0xff] %v538_v63  ;;  %v542_v1 = vld [vmem:[%s9778_s25 + $0x1a08] sm:$0xff]  ;;  %v544_v2 = vld [vmem:[%s9778_s25 + $0x1a10] sm:$0xff] }
  0x72   : > { %541 = vst [vmem:[%s9783_s26 + $0x600] sm:$0xff] %v540_v0  ;;  %543 = vst [vmem:[%s9783_s26 + $0x608] sm:$0xff] %v542_v1  ;;  %v546_v3 = vld [vmem:[%s9778_s25 + $0x1a18] sm:$0xff]  ;;  %v548_v4 = vld [vmem:[%s9778_s25 + $0x1a20] sm:$0xff] }
  0x73   : > { %545 = vst [vmem:[%s9783_s26 + $0x610] sm:$0xff] %v544_v2  ;;  %v550_v5 = vld [vmem:[%s9778_s25 + $0x1a28] sm:$0xff]  ;;  %547 = vst [vmem:[%s9783_s26 + $0x618] sm:$0xff] %v546_v3  ;;  %v552_v6 = vld [vmem:[%s9778_s25 + $0x1a30] sm:$0xff] }
  0x74   : > { %549 = vst [vmem:[%s9783_s26 + $0x620] sm:$0xff] %v548_v4  ;;  %551 = vst [vmem:[%s9783_s26 + $0x628] sm:$0xff] %v550_v5  ;;  %v554_v7 = vld [vmem:[%s9778_s25 + $0x1a38] sm:$0xff]  ;;  %v556_v8 = vld [vmem:[%s9778_s25 + $0x1a40] sm:$0xff] }
  0x75   : > { %553 = vst [vmem:[%s9783_s26 + $0x630] sm:$0xff] %v552_v6  ;;  %555 = vst [vmem:[%s9783_s26 + $0x638] sm:$0xff] %v554_v7  ;;  %v558_v9 = vld [vmem:[%s9778_s25 + $0x1a48] sm:$0xff]  ;;  %v560_v10 = vld [vmem:[%s9778_s25 + $0x1a50] sm:$0xff] }
  0x76   : > { %557 = vst [vmem:[%s9783_s26 + $0x640] sm:$0xff] %v556_v8  ;;  %v562_v11 = vld [vmem:[%s9778_s25 + $0x1a58] sm:$0xff]  ;;  %559 = vst [vmem:[%s9783_s26 + $0x648] sm:$0xff] %v558_v9  ;;  %v564_v12 = vld [vmem:[%s9778_s25 + $0x1a60] sm:$0xff] }
  0x77   : > { %561 = vst [vmem:[%s9783_s26 + $0x650] sm:$0xff] %v560_v10  ;;  %563 = vst [vmem:[%s9783_s26 + $0x658] sm:$0xff] %v562_v11  ;;  %v566_v13 = vld [vmem:[%s9778_s25 + $0x1a68] sm:$0xff]  ;;  %v568_v14 = vld [vmem:[%s9778_s25 + $0x1a70] sm:$0xff] }
  0x78   : > { %565 = vst [vmem:[%s9783_s26 + $0x660] sm:$0xff] %v564_v12  ;;  %567 = vst [vmem:[%s9783_s26 + $0x668] sm:$0xff] %v566_v13  ;;  %v570_v15 = vld [vmem:[%s9778_s25 + $0x1a78] sm:$0xff]  ;;  %v572_v16 = vld [vmem:[%s9778_s25 + $0x1a80] sm:$0xff] }
  0x79   : > { %569 = vst [vmem:[%s9783_s26 + $0x670] sm:$0xff] %v568_v14  ;;  %v574_v17 = vld [vmem:[%s9778_s25 + $0x1a88] sm:$0xff]  ;;  %571 = vst [vmem:[%s9783_s26 + $0x678] sm:$0xff] %v570_v15  ;;  %v576_v18 = vld [vmem:[%s9778_s25 + $0x1a90] sm:$0xff] }
  0x7a   : > { %573 = vst [vmem:[%s9783_s26 + $0x680] sm:$0xff] %v572_v16  ;;  %575 = vst [vmem:[%s9783_s26 + $0x688] sm:$0xff] %v574_v17  ;;  %v578_v19 = vld [vmem:[%s9778_s25 + $0x1a98] sm:$0xff]  ;;  %v580_v20 = vld [vmem:[%s9778_s25 + $0x1aa0] sm:$0xff] }
  0x7b   : > { %577 = vst [vmem:[%s9783_s26 + $0x690] sm:$0xff] %v576_v18  ;;  %579 = vst [vmem:[%s9783_s26 + $0x698] sm:$0xff] %v578_v19  ;;  %v582_v21 = vld [vmem:[%s9778_s25 + $0x1aa8] sm:$0xff]  ;;  %v584_v22 = vld [vmem:[%s9778_s25 + $0x1ab0] sm:$0xff] }
  0x7c   : > { %581 = vst [vmem:[%s9783_s26 + $0x6a0] sm:$0xff] %v580_v20  ;;  %v586_v23 = vld [vmem:[%s9778_s25 + $0x1ab8] sm:$0xff]  ;;  %583 = vst [vmem:[%s9783_s26 + $0x6a8] sm:$0xff] %v582_v21  ;;  %v588_v24 = vld [vmem:[%s9778_s25 + $0x1ac0] sm:$0xff] }
  0x7d   : > { %585 = vst [vmem:[%s9783_s26 + $0x6b0] sm:$0xff] %v584_v22  ;;  %587 = vst [vmem:[%s9783_s26 + $0x6b8] sm:$0xff] %v586_v23  ;;  %v590_v25 = vld [vmem:[%s9778_s25 + $0x1ac8] sm:$0xff]  ;;  %v592_v26 = vld [vmem:[%s9778_s25 + $0x1ad0] sm:$0xff] }
  0x7e   : > { %589 = vst [vmem:[%s9783_s26 + $0x6c0] sm:$0xff] %v588_v24  ;;  %591 = vst [vmem:[%s9783_s26 + $0x6c8] sm:$0xff] %v590_v25  ;;  %v594_v27 = vld [vmem:[%s9778_s25 + $0x1ad8] sm:$0xff]  ;;  %v596_v28 = vld [vmem:[%s9778_s25 + $0x1ae0] sm:$0xff] }
  0x7f   : > { %593 = vst [vmem:[%s9783_s26 + $0x6d0] sm:$0xff] %v592_v26  ;;  %v598_v29 = vld [vmem:[%s9778_s25 + $0x1ae8] sm:$0xff]  ;;  %595 = vst [vmem:[%s9783_s26 + $0x6d8] sm:$0xff] %v594_v27  ;;  %v600_v30 = vld [vmem:[%s9778_s25 + $0x1af0] sm:$0xff] }
  0x80   : > { %597 = vst [vmem:[%s9783_s26 + $0x6e0] sm:$0xff] %v596_v28  ;;  %599 = vst [vmem:[%s9783_s26 + $0x6e8] sm:$0xff] %v598_v29  ;;  %v602_v31 = vld [vmem:[%s9778_s25 + $0x1af8] sm:$0xff]  ;;  %v604_v32 = vld [vmem:[%s9778_s25 + $0x1b00] sm:$0xff] }
  0x81   : > { %601 = vst [vmem:[%s9783_s26 + $0x6f0] sm:$0xff] %v600_v30  ;;  %603 = vst [vmem:[%s9783_s26 + $0x6f8] sm:$0xff] %v602_v31  ;;  %v606_v33 = vld [vmem:[%s9778_s25 + $0x1b08] sm:$0xff]  ;;  %v608_v34 = vld [vmem:[%s9778_s25 + $0x1b10] sm:$0xff] }
  0x82   : > { %605 = vst [vmem:[%s9783_s26 + $0x700] sm:$0xff] %v604_v32  ;;  %v610_v35 = vld [vmem:[%s9778_s25 + $0x1b18] sm:$0xff]  ;;  %607 = vst [vmem:[%s9783_s26 + $0x708] sm:$0xff] %v606_v33  ;;  %v612_v36 = vld [vmem:[%s9778_s25 + $0x1b20] sm:$0xff] }
  0x83   : > { %609 = vst [vmem:[%s9783_s26 + $0x710] sm:$0xff] %v608_v34  ;;  %611 = vst [vmem:[%s9783_s26 + $0x718] sm:$0xff] %v610_v35  ;;  %v614_v37 = vld [vmem:[%s9778_s25 + $0x1b28] sm:$0xff]  ;;  %v616_v38 = vld [vmem:[%s9778_s25 + $0x1b30] sm:$0xff] }
  0x84   : > { %613 = vst [vmem:[%s9783_s26 + $0x720] sm:$0xff] %v612_v36  ;;  %615 = vst [vmem:[%s9783_s26 + $0x728] sm:$0xff] %v614_v37  ;;  %v618_v39 = vld [vmem:[%s9778_s25 + $0x1b38] sm:$0xff]  ;;  %v620_v40 = vld [vmem:[%s9778_s25 + $0x1b40] sm:$0xff] }
  0x85   : > { %617 = vst [vmem:[%s9783_s26 + $0x730] sm:$0xff] %v616_v38  ;;  %v622_v41 = vld [vmem:[%s9778_s25 + $0x1b48] sm:$0xff]  ;;  %619 = vst [vmem:[%s9783_s26 + $0x738] sm:$0xff] %v618_v39  ;;  %v624_v42 = vld [vmem:[%s9778_s25 + $0x1b50] sm:$0xff] }
  0x86   : > { %621 = vst [vmem:[%s9783_s26 + $0x740] sm:$0xff] %v620_v40  ;;  %623 = vst [vmem:[%s9783_s26 + $0x748] sm:$0xff] %v622_v41  ;;  %v626_v43 = vld [vmem:[%s9778_s25 + $0x1b58] sm:$0xff]  ;;  %v628_v44 = vld [vmem:[%s9778_s25 + $0x1b60] sm:$0xff] }
  0x87   : > { %625 = vst [vmem:[%s9783_s26 + $0x750] sm:$0xff] %v624_v42  ;;  %627 = vst [vmem:[%s9783_s26 + $0x758] sm:$0xff] %v626_v43  ;;  %v630_v45 = vld [vmem:[%s9778_s25 + $0x1b68] sm:$0xff]  ;;  %v632_v46 = vld [vmem:[%s9778_s25 + $0x1b70] sm:$0xff] }
  0x88   : > { %629 = vst [vmem:[%s9783_s26 + $0x760] sm:$0xff] %v628_v44  ;;  %v634_v47 = vld [vmem:[%s9778_s25 + $0x1b78] sm:$0xff]  ;;  %631 = vst [vmem:[%s9783_s26 + $0x768] sm:$0xff] %v630_v45  ;;  %v636_v48 = vld [vmem:[%s9778_s25 + $0x1b80] sm:$0xff] }
  0x89   : > { %633 = vst [vmem:[%s9783_s26 + $0x770] sm:$0xff] %v632_v46  ;;  %635 = vst [vmem:[%s9783_s26 + $0x778] sm:$0xff] %v634_v47  ;;  %v638_v49 = vld [vmem:[%s9778_s25 + $0x1b88] sm:$0xff]  ;;  %v640_v50 = vld [vmem:[%s9778_s25 + $0x1b90] sm:$0xff] }
  0x8a   : > { %637 = vst [vmem:[%s9783_s26 + $0x780] sm:$0xff] %v636_v48  ;;  %639 = vst [vmem:[%s9783_s26 + $0x788] sm:$0xff] %v638_v49  ;;  %v642_v51 = vld [vmem:[%s9778_s25 + $0x1b98] sm:$0xff]  ;;  %v644_v52 = vld [vmem:[%s9778_s25 + $0x1ba0] sm:$0xff] }
  0x8b   : > { %641 = vst [vmem:[%s9783_s26 + $0x790] sm:$0xff] %v640_v50  ;;  %v646_v53 = vld [vmem:[%s9778_s25 + $0x1ba8] sm:$0xff]  ;;  %643 = vst [vmem:[%s9783_s26 + $0x798] sm:$0xff] %v642_v51  ;;  %v648_v54 = vld [vmem:[%s9778_s25 + $0x1bb0] sm:$0xff] }
  0x8c   : > { %645 = vst [vmem:[%s9783_s26 + $0x7a0] sm:$0xff] %v644_v52  ;;  %647 = vst [vmem:[%s9783_s26 + $0x7a8] sm:$0xff] %v646_v53  ;;  %v650_v55 = vld [vmem:[%s9778_s25 + $0x1bb8] sm:$0xff]  ;;  %v652_v56 = vld [vmem:[%s9778_s25 + $0x1bc0] sm:$0xff] }
  0x8d   : > { %649 = vst [vmem:[%s9783_s26 + $0x7b0] sm:$0xff] %v648_v54  ;;  %651 = vst [vmem:[%s9783_s26 + $0x7b8] sm:$0xff] %v650_v55  ;;  %v654_v57 = vld [vmem:[%s9778_s25 + $0x1bc8] sm:$0xff]  ;;  %v656_v58 = vld [vmem:[%s9778_s25 + $0x1bd0] sm:$0xff] }
  0x8e   : > { %653 = vst [vmem:[%s9783_s26 + $0x7c0] sm:$0xff] %v652_v56  ;;  %v658_v59 = vld [vmem:[%s9778_s25 + $0x1bd8] sm:$0xff]  ;;  %655 = vst [vmem:[%s9783_s26 + $0x7c8] sm:$0xff] %v654_v57  ;;  %v660_v60 = vld [vmem:[%s9778_s25 + $0x1be0] sm:$0xff] }
  0x8f   : > { %657 = vst [vmem:[%s9783_s26 + $0x7d0] sm:$0xff] %v656_v58  ;;  %659 = vst [vmem:[%s9783_s26 + $0x7d8] sm:$0xff] %v658_v59  ;;  %v662_v61 = vld [vmem:[%s9778_s25 + $0x1be8] sm:$0xff]  ;;  %v664_v62 = vld [vmem:[%s9778_s25 + $0x1bf0] sm:$0xff] }
  0x90   : > { %661 = vst [vmem:[%s9783_s26 + $0x7e0] sm:$0xff] %v660_v60  ;;  %663 = vst [vmem:[%s9783_s26 + $0x7e8] sm:$0xff] %v662_v61  ;;  %v666_v63 = vld [vmem:[%s9778_s25 + $0x1bf8] sm:$0xff] }
  0x91   : > { %665 = vst [vmem:[%s9783_s26 + $0x7f0] sm:$0xff] %v664_v62  ;;  %667 = vst [vmem:[%s9783_s26 + $0x7f8] sm:$0xff] %v666_v63 }
  0x92 PF: > { %p9336_p5 = scmp.ge.s32.totalorder %s9718_s14, 1  ;;  %p672_p6 = scmp.lt.s32.totalorder %s9718_s14, 7 }
  0x94   : > { %p673_p7 = pnand %p9336_p5, %p672_p6 }
  0x95   : > { %s679_s27 = sand.u32 (!%p673_p7), 1, %s9710_s12   ;;  %s9338_s28 = sshll.u32 (!%p673_p7), %s9758_s15, 8 }
  0x96   : > { %676 = sbr.rel (%p673_p7) target bundleno = 915 (0x393), region = 51  ;;  %s9337_s29 = sshll.u32 (!%p673_p7), %s679_s27, 11 }
  0x97   : > { %p702_p8 = scmp.lt.s32.totalorder (!%p673_p7), %s9338_s28, 1535  ;;  %s10303_s6 = scalar_lea.vmem (!%p673_p7), [#allocation2], %s9337_s29 }
  0x98   : > { %p9339_p9 = scmp.ne.s32.totalorder (!%p673_p7), %s9758_s15, 0 }
  0x9d   : > { %s10832_s28 = smov (!%p702_p8, %s9338_s28), 1535  ;;  %711 = sbr.rel (%p9339_p9) target bundleno = 164 (0xa4), region = 59 }
  0x9e   : > { %s10301_s5 = scalar_lea.vmem %s10824_s0, %s10832_s28  ;;  %v9340_v0 = vld [vmem:[%s10826_s2] ss:$0 sm:$0xff] (!%p9339_p9)  ;;  %vm719_vm0 = vcmask (!%p9339_p9), 123904  }
  0x9f   : > { %720 = vst.msk [vmem:[#allocation3] sm:$0x3] (!%p9339_p9), %vm719_vm0, %v9340_v0 }
  0xa4 PF: > { %v754_v1 = vld [vmem:[%s10303_s6] sm:$0xff]  ;;  %v755_v3 = vld [vmem:[%s10303_s6 + $0x8] sm:$0xff]  ;;  %v1046_v4 = vlaneseq  ;;  %v9720_v9 = vmov 1966171168   ;;  %v756_v11 = vld [vmem:[%s10303_s6 + $0x10] sm:$0xff]  ;;  %s9721_s9 = smov [#allocation3]  }
  0xa5   : > { %v882_v2 = vld [vmem:[%s10303_s6 + $0x400] sm:$0xff]  ;;  %v883_v7 = vld [vmem:[%s10303_s6 + $0x408] sm:$0xff]  ;;  %v1044_v10 = vunpack.c.l.s4 %v9720_v9  ;;  %v884_v15 = vld [vmem:[%s10303_s6 + $0x410] sm:$0xff]  ;;  %s9276_s10 = sshll.u32 %s9721_s9, 4  ;;  %vm9267_vm1 = vcmask 123904   ;;  %p9606_p10 = scmp.eq.s32.totalorder %s9758_s15, 5  ;;  %s9277_s10 = int_to_ptr.vmem [resolvable:$true] %s9276_s10 }
  0xa6   : > { %v9342_v5 = vcombine.high %v754_v1, %v882_v2  ;;  %v9341_v6 = vcombine.low %v754_v1, %v882_v2  ;;  %v722_v8 = vld [vmem:[%s10301_s5] sm:$0xff]  ;;  %v9344_v12 = vcombine.high %v755_v3, %v883_v7  ;;  %v9343_v13 = vcombine.low %v755_v3, %v883_v7  ;;  %v757_v16 = vld [vmem:[%s10303_s6 + $0x18] sm:$0xff]  ;;  %v723_v23 = vld [vmem:[%s10301_s5 + $0x8] sm:$0xff]  ;;  %s9666_s11 = scalar_lea.vmem %s9277_s10, 32  ;;  %p9673_p0 = scmp.lt.s32.totalorder %s9277_s10, %s9277_s10 }
  0xa7   : > { %v1047_v14 = vshrl.u32 %v1046_v4, 7  ;;  %v885_v17 = vld [vmem:[%s10303_s6 + $0x418] sm:$0xff]  ;;  %v1042_v18 = vcombine.high %v722_v8, %v722_v8  ;;  %v1045_v19 = vunpack.c.0.s8 %v1044_v10  ;;  %v9346_v20 = vcombine.high %v756_v11, %v884_v15  ;;  %v758_v30 = vld [vmem:[%s10303_s6 + $0x20] sm:$0xff]  ;;  %v759_v35 = vld [vmem:[%s10303_s6 + $0x28] sm:$0xff]  ;;  %p9667_p11 = scmp.ne.s32.totalorder %s9277_s10, %s9666_s11  ;;  %p9674_p1 = scmp.lt.s32.totalorder %s9666_s11, %s9666_s11 }
  0xa8   : > { %4146 = vmatprep.subr.bf16.mxu0 %v9342_v5  ;;  %4186 = vmatprep.subr.bf16.mxu1 %v9344_v12  ;;  %v9348_v21 = vcombine.high %v757_v16, %v885_v17  ;;  %v886_v31 = vld [vmem:[%s10303_s6 + $0x420] sm:$0xff]  ;;  %v9345_v33 = vcombine.low %v756_v11, %v884_v15  ;;  %v887_v36 = vld [vmem:[%s10303_s6 + $0x428] sm:$0xff]  ;;  %v9347_v37 = vcombine.low %v757_v16, %v885_v17  ;;  %v760_v47 = vld [vmem:[%s10303_s6 + $0x30] sm:$0xff] }
  0xa9   : > { %4147 = vmatpush1.bf16.xpose.msra.mxu0 %v9341_v6  ;;  %4187 = vmatpush1.bf16.xpose.msra.mxu1 %v9343_v13  ;;  %v10318_v22 = vsub.s32 %v1045_v19, %v1047_v14  ;;  %v9350_v40 = vcombine.high %v758_v30, %v886_v31  ;;  %v1091_v42 = vcombine.high %v723_v23, %v723_v23  ;;  %v888_v48 = vld [vmem:[%s10303_s6 + $0x430] sm:$0xff]  ;;  %v761_v51 = vld [vmem:[%s10303_s6 + $0x38] sm:$0xff]  ;;  %v762_v62 = vld [vmem:[%s10303_s6 + $0x40] sm:$0xff]  ;;  %p9668_p12 = pnand %p9667_p11, %p9606_p10  ;;  %p9675_p2 = por %p9674_p1, %p9673_p0 }
  0xaa   : > { %4226 = vmatprep.subr.bf16.mxu0 %v9346_v20  ;;  %4266 = vmatprep.subr.bf16.mxu1 %v9348_v21  ;;  %v9352_v44 = vcombine.high %v759_v35, %v887_v36  ;;  %v9349_v50 = vcombine.low %v758_v30, %v886_v31  ;;  %v889_v52 = vld [vmem:[%s10303_s6 + $0x438] sm:$0xff]  ;;  %v9354_v54 = vcombine.high %v760_v47, %v888_v48  ;;  %v724_v59 = vld [vmem:[%s10301_s5 + $0x10] sm:$0xff]  ;;  %v890_v63 = vld [vmem:[%s10303_s6 + $0x440] sm:$0xff] }
  0xab   : > { %v1049_v24 = vrot.slane %v722_v8, %v10318_v22  ;;  %v1056_v25 = vrot.slane %v1042_v18, %v10318_v22  ;;  %v1098_v29 = vrot.slane %v723_v23, %v10318_v22  ;;  %v1105_v49 = vrot.slane %v1091_v42, %v10318_v22  ;;  %v763_v2 = vld [vmem:[%s10303_s6 + $0x48] sm:$0xff]  ;;  %v764_v13 = vld [vmem:[%s10303_s6 + $0x50] sm:$0xff]  ;;  %v765_v17 = vld [vmem:[%s10303_s6 + $0x58] sm:$0xff]  ;;  %p9669_p13 = pneg %p9668_p12 }
  0xac   : > { %v9351_v55 = vcombine.low %v759_v35, %v887_v36  ;;  %v9356_v58 = vcombine.high %v761_v51, %v889_v52  ;;  %v1147_v0 = vrot.slane %v724_v59, %v10318_v22  ;;  %v9353_v1 = vcombine.low %v760_v47, %v888_v48  ;;  %v891_v3 = vld [vmem:[%s10303_s6 + $0x448] sm:$0xff]  ;;  %v892_v14 = vld [vmem:[%s10303_s6 + $0x450] sm:$0xff]  ;;  %v893_v18 = vld [vmem:[%s10303_s6 + $0x458] sm:$0xff] }
  0xad   : > { %v1057_v26 = vcombine.high %v1049_v24, %v1049_v24  ;;  %v1065_v27 = vrot.slane %v1049_v24, %v10318_v22  ;;  %v1058_v28 = vcombine.high %v1056_v25, %v1056_v25  ;;  %v1106_v41 = vcombine.high %v1098_v29, %v1098_v29  ;;  %v894_v30 = vld [vmem:[%s10303_s6 + $0x460] sm:$0xff]  ;;  %v769_v48 = vld [vmem:[%s10303_s6 + $0x78] sm:$0xff]  ;;  %p9676_p3 = pnand %p9675_p2, %p9669_p13 }
  0xae   : > { %v1072_v45 = vrot.slane %v1056_v25, %v10318_v22  ;;  %v1107_v57 = vcombine.high %v1105_v49, %v1105_v49  ;;  %v1114_v60 = vrot.slane %v1098_v29, %v10318_v22  ;;  %v9358_v5 = vcombine.high %v762_v62, %v890_v63  ;;  %v766_v29 = vld [vmem:[%s10303_s6 + $0x60] sm:$0xff] }
  0xaf   : > { %v1079_v32 = vrot.slane %v1057_v26, %v10318_v22  ;;  %v1086_v34 = vrot.slane %v1058_v28, %v10318_v22  ;;  %v1087_v38 = vcombine.high %v1065_v27, %v1065_v27  ;;  %v1128_v46 = vrot.slane %v1106_v41, %v10318_v22  ;;  %v725_v26 = vld [vmem:[%s10301_s5 + $0x18] sm:$0xff] }
  0xb0   : > { %v1088_v53 = vcombine.high %v1072_v45, %v1072_v45  ;;  %v1135_v61 = vrot.slane %v1107_v57, %v10318_v22  ;;  %v1136_v4 = vcombine.high %v1114_v60, %v1114_v60  ;;  %v9355_v6 = vcombine.low %v761_v51, %v889_v52 }
  0xb1   : > { %4178 = vmatprep.mubr.bf16.mxu0 %v1079_v32  ;;  %v1089_v39 = vcombine.high %v1079_v32, %v1079_v32  ;;  %v1090_v43 = vcombine.high %v1086_v34, %v1086_v34  ;;  %v1138_v56 = vcombine.high %v1128_v46, %v1128_v46  ;;  %v1155_v8 = vcombine.high %v1147_v0, %v1147_v0 }
  0xb2   : > { %4179 = vmatmul.mubr.bf16.vlgmr.msra.gmra.mrb[0].mxu0 %v1065_v27  ;;  %v1139_v7 = vcombine.high %v1135_v61, %v1135_v61  ;;  %v1140_v9 = vcombine.high %v724_v59, %v724_v59  ;;  %v9360_v10 = vcombine.high %v763_v2, %v891_v3  ;;  %v1121_v11 = vrot.slane %v1105_v49, %v10318_v22  ;;  %v897_v49 = vld [vmem:[%s10303_s6 + $0x478] sm:$0xff]  ;;  %v770_v59 = vld [vmem:[%s10303_s6 + $0x80] sm:$0xff] }
  0xb3   : > { %4227 = vmatpush1.bf16.xpose.msra.mxu0 %v9345_v33  ;;  %4218 = vmatprep.mubr.bf16.mxu1 %v1089_v39  ;;  %v1177_v12 = vrot.slane %v1155_v8, %v10318_v22  ;;  %v9357_v16 = vcombine.low %v762_v62, %v890_v63  ;;  %v9362_v20 = vcombine.high %v764_v13, %v892_v14  ;;  %v767_v33 = vld [vmem:[%s10303_s6 + $0x68] sm:$0xff] }
  0xb4   : > { %4219 = vmatmul.mubr.bf16.vlgmr.msra.gmra.mrb[0].mxu1 %v1087_v38  ;;  %4258 = vmatprep.mubr.bf16.mxu0 %v1086_v34  ;;  %v1154_v15 = vrot.slane %v1140_v9, %v10318_v22  ;;  %v1137_v19 = vcombine.high %v1121_v11, %v1121_v11  ;;  %v9359_v21 = vcombine.low %v763_v2, %v891_v3  ;;  %v895_v34 = vld [vmem:[%s10303_s6 + $0x468] sm:$0xff] }
  0xb5   : > { %4267 = vmatpush1.bf16.xpose.msra.mxu1 %v9347_v37  ;;  %4306 = vmatprep.subr.bf16.mxu0 %v9350_v40  ;;  %v1187_v23 = vcombine.high %v1177_v12, %v1177_v12  ;;  %v9364_v25 = vcombine.high %v765_v17, %v893_v18  ;;  %v1163_v27 = vrot.slane %v1147_v0, %v10318_v22  ;;  %v771_v63 = vld [vmem:[%s10303_s6 + $0x88] sm:$0xff] }
  0xb6   : > { %4298 = vmatprep.mubr.bf16.mxu1 %v1090_v43  ;;  %4346 = vmatprep.subr.bf16.mxu1 %v9352_v44  ;;  %v1156_v24 = vcombine.high %v1154_v15, %v1154_v15  ;;  %v1196_v31 = vrot.slane %v725_v26, %v10318_v22  ;;  %v9361_v32 = vcombine.low %v764_v13, %v892_v14  ;;  %v768_v44 = vld [vmem:[%s10303_s6 + $0x70] sm:$0xff]  ;;  %v899_v0 = vld [vmem:[%s10303_s6 + $0x488] sm:$0xff]  ;;  %v773_v14 = vld [vmem:[%s10303_s6 + $0x98] sm:$0xff] }
  0xb7   : > { %v1185_v35 = vcombine.high %v1163_v27, %v1163_v27  ;;  %v9366_v36 = vcombine.high %v766_v29, %v894_v30  ;;  %v9363_v37 = vcombine.low %v765_v17, %v893_v18  ;;  %v1189_v40 = vcombine.high %v725_v26, %v725_v26  ;;  %v774_v26 = vld [vmem:[%s10303_s6 + $0xa0] sm:$0xff] }
  0xb8   : > { %v1184_v28 = vrot.slane %v1156_v24, %v10318_v22  ;;  %v1204_v39 = vcombine.high %v1196_v31, %v1196_v31  ;;  %v9368_v41 = vcombine.high %v767_v33, %v895_v34  ;;  %v1170_v42 = vrot.slane %v1154_v15, %v10318_v22  ;;  %v901_v15 = vld [vmem:[%s10303_s6 + $0x498] sm:$0xff] }
  0xb9   : > { %v9365_v47 = vcombine.low %v766_v29, %v894_v30  ;;  %v9367_v52 = vcombine.low %v767_v33, %v895_v34  ;;  %v1212_v57 = vrot.slane %v1196_v31, %v10318_v22  ;;  %v9371_v3 = vcombine.low %v769_v48, %v897_v49  ;;  %v775_v30 = vld [vmem:[%s10303_s6 + $0xa8] sm:$0xff] }
  0xba   : > { %4259 = vmatmul.mubr.bf16.vlgmr.msra.gmra.mrb[4].mxu0 %v1072_v45  ;;  %v1188_v38 = vcombine.high %v1184_v28, %v1184_v28  ;;  %v1226_v43 = vrot.slane %v1204_v39, %v10318_v22  ;;  %v896_v45 = vld [vmem:[%s10303_s6 + $0x470] sm:$0xff]  ;;  %v9375_v18 = vcombine.low %v771_v63, %v899_v0  ;;  %v903_v31 = vld [vmem:[%s10303_s6 + $0x4a8] sm:$0xff]  ;;  %v9379_v34 = vcombine.low %v773_v14, %v901_v15 }
  0xbb   : > { %4307 = vmatpush1.bf16.xpose.msra.mxu0 %v9349_v50  ;;  %4338 = vmatprep.mubr.bf16.mxu0 %v1128_v46  ;;  %v1203_v46 = vrot.slane %v1189_v40, %v10318_v22  ;;  %v1186_v50 = vcombine.high %v1170_v42, %v1170_v42  ;;  %v9370_v51 = vcombine.high %v768_v44, %v896_v45 }
  0xbc   : > { %4299 = vmatmul.mubr.bf16.vlgmr.msra.gmra.mrb[4].mxu1 %v1088_v53  ;;  %4386 = vmatprep.subr.bf16.mxu0 %v9354_v54  ;;  %v1236_v53 = vcombine.high %v1226_v43, %v1226_v43  ;;  %v9369_v62 = vcombine.low %v768_v44, %v896_v45  ;;  %v777_v45 = vld [vmem:[%s10303_s6 + $0xb8] sm:$0xff] }
  0xbd   : > { %4347 = vmatpush1.bf16.xpose.msra.mxu1 %v9351_v55  ;;  %4378 = vmatprep.mubr.bf16.mxu1 %v1138_v56  ;;  %v1205_v54 = vcombine.high %v1203_v46, %v1203_v46  ;;  %v9372_v55 = vcombine.high %v769_v48, %v897_v49  ;;  %v726_v56 = vld [vmem:[%s10301_s5 + $0x20] sm:$0xff]  ;;  %v1219_v8 = vrot.slane %v1203_v46, %v10318_v22  ;;  %v905_v46 = vld [vmem:[%s10303_s6 + $0x4b8] sm:$0xff] }
  0xbe   : > { %4426 = vmatprep.subr.bf16.mxu1 %v9356_v58  ;;  %v9383_v49 = vcombine.low %v775_v30, %v903_v31 }
  0xbf   : > { %v1233_v58 = vrot.slane %v1205_v54, %v10318_v22 }
  0xc2   : > { %4339 = vmatmul.mubr.bf16.vlgmr.msra.gmra.mrb[8].mxu0 %v1114_v60  ;;  %v898_v60 = vld [vmem:[%s10303_s6 + $0x480] sm:$0xff] }
  0xc3   : > { %4387 = vmatpush1.bf16.xpose.msra.mxu0 %v9353_v1  ;;  %4418 = vmatprep.mubr.bf16.mxu0 %v1135_v61  ;;  %v1245_v61 = vrot.slane %v726_v56, %v10318_v22  ;;  %v1234_v1 = vcombine.high %v1212_v57, %v1212_v57  ;;  %v9374_v2 = vcombine.high %v770_v59, %v898_v60 }
  0xc4   : > { %4379 = vmatmul.mubr.bf16.vlgmr.msra.gmra.mrb[8].mxu1 %v1136_v4  ;;  %4466 = vmatprep.subr.bf16.mxu0 %v9358_v5  ;;  %v1237_v4 = vcombine.high %v1233_v58, %v1233_v58  ;;  %v9373_v13 = vcombine.low %v770_v59, %v898_v60  ;;  %v779_v60 = vld [vmem:[%s10303_s6 + $0xc8] sm:$0xff] }
  0xc5   : > { %4427 = vmatpush1.bf16.xpose.msra.mxu1 %v9355_v6  ;;  %4458 = vmatprep.mubr.bf16.mxu1 %v1139_v7  ;;  %v1253_v5 = vcombine.high %v1245_v61, %v1245_v61  ;;  %v1238_v6 = vcombine.high %v726_v56, %v726_v56  ;;  %v9376_v7 = vcombine.high %v771_v63, %v899_v0  ;;  %v778_v56 = vld [vmem:[%s10303_s6 + $0xc0] sm:$0xff] }
  0xc6   : > { %4506 = vmatprep.subr.bf16.mxu1 %v9360_v10  ;;  %v772_v10 = vld [vmem:[%s10303_s6 + $0x90] sm:$0xff]  ;;  %v1261_v24 = vrot.slane %v1245_v61, %v10318_v22  ;;  %v907_v61 = vld [vmem:[%s10303_s6 + $0x4c8] sm:$0xff]  ;;  %v9387_v0 = vcombine.low %v777_v45, %v905_v46 }
  0xc7   : > { %v1275_v9 = vrot.slane %v1253_v5, %v10318_v22 }
  0xca   : > { %4419 = vmatmul.mubr.bf16.vlgmr.msra.gmra.mrb[12].mxu0 %v1121_v11  ;;  %v900_v11 = vld [vmem:[%s10303_s6 + $0x490] sm:$0xff] }
  0xcb   : > { %4467 = vmatpush1.bf16.xpose.msra.mxu0 %v9357_v16  ;;  %4498 = vmatprep.mubr.bf16.mxu0 %v1177_v12  ;;  %v1252_v12 = vrot.slane %v1238_v6, %v10318_v22  ;;  %v1235_v16 = vcombine.high %v1219_v8, %v1219_v8  ;;  %v9378_v17 = vcombine.high %v772_v10, %v900_v11 }
  0xcc   : > { %4459 = vmatmul.mubr.bf16.vlgmr.msra.gmra.mrb[12].mxu1 %v1137_v19  ;;  %4546 = vmatprep.subr.bf16.mxu0 %v9362_v20  ;;  %v1285_v19 = vcombine.high %v1275_v9, %v1275_v9  ;;  %v9377_v29 = vcombine.low %v772_v10, %v900_v11  ;;  %v781_v11 = vld [vmem:[%s10303_s6 + $0xd8] sm:$0xff] }
  0xcd   : > { %4507 = vmatpush1.bf16.xpose.msra.mxu1 %v9359_v21  ;;  %4538 = vmatprep.mubr.bf16.mxu1 %v1187_v23  ;;  %v1254_v20 = vcombine.high %v1252_v12, %v1252_v12  ;;  %v9380_v21 = vcombine.high %v773_v14, %v901_v15  ;;  %v727_v23 = vld [vmem:[%s10301_s5 + $0x28] sm:$0xff]  ;;  %v1268_v39 = vrot.slane %v1252_v12, %v10318_v22  ;;  %v909_v12 = vld [vmem:[%s10303_s6 + $0x4d8] sm:$0xff] }
  0xce   : > { %4586 = vmatprep.subr.bf16.mxu1 %v9364_v25  ;;  %v9391_v15 = vcombine.low %v779_v60, %v907_v61 }
  0xcf   : > { %v1282_v25 = vrot.slane %v1254_v20, %v10318_v22 }
  0xd2   : > { %4499 = vmatmul.mubr.bf16.vlgmr.msra.gmra.mrb[16].mxu0 %v1163_v27  ;;  %v902_v27 = vld [vmem:[%s10303_s6 + $0x4a0] sm:$0xff] }
  0xd3   : > { %4547 = vmatpush1.bf16.xpose.msra.mxu0 %v9361_v32  ;;  %4578 = vmatprep.mubr.bf16.mxu0 %v1184_v28  ;;  %v1294_v28 = vrot.slane %v727_v23, %v10318_v22  ;;  %v1283_v32 = vcombine.high %v1261_v24, %v1261_v24  ;;  %v9382_v33 = vcombine.high %v774_v26, %v902_v27 }
  0xd4   : > { %4539 = vmatmul.mubr.bf16.vlgmr.msra.gmra.mrb[16].mxu1 %v1185_v35  ;;  %4626 = vmatprep.subr.bf16.mxu0 %v9366_v36  ;;  %v1286_v35 = vcombine.high %v1282_v25, %v1282_v25  ;;  %v9381_v44 = vcombine.low %v774_v26, %v902_v27  ;;  %v783_v27 = vld [vmem:[%s10303_s6 + $0xe8] sm:$0xff] }
  0xd5   : > { %4587 = vmatpush1.bf16.xpose.msra.mxu1 %v9363_v37  ;;  %4618 = vmatprep.mubr.bf16.mxu1 %v1188_v38  ;;  %v1302_v36 = vcombine.high %v1294_v28, %v1294_v28  ;;  %v1287_v37 = vcombine.high %v727_v23, %v727_v23  ;;  %v9384_v38 = vcombine.high %v775_v30, %v903_v31  ;;  %v782_v23 = vld [vmem:[%s10303_s6 + $0xe0] sm:$0xff] }
  0xd6   : > { %4666 = vmatprep.subr.bf16.mxu1 %v9368_v41  ;;  %v776_v41 = vld [vmem:[%s10303_s6 + $0xb0] sm:$0xff]  ;;  %v1310_v54 = vrot.slane %v1294_v28, %v10318_v22  ;;  %v911_v28 = vld [vmem:[%s10303_s6 + $0x4e8] sm:$0xff]  ;;  %v9395_v31 = vcombine.low %v781_v11, %v909_v12 }
  0xd7   : > { %v1324_v40 = vrot.slane %v1302_v36, %v10318_v22 }
  0xda   : > { %4579 = vmatmul.mubr.bf16.vlgmr.msra.gmra.mrb[20].mxu0 %v1170_v42  ;;  %v904_v42 = vld [vmem:[%s10303_s6 + $0x4b0] sm:$0xff] }
  0xdb   : > { %4627 = vmatpush1.bf16.xpose.msra.mxu0 %v9365_v47  ;;  %4658 = vmatprep.mubr.bf16.mxu0 %v1226_v43  ;;  %v1301_v43 = vrot.slane %v1287_v37, %v10318_v22  ;;  %v1284_v47 = vcombine.high %v1268_v39, %v1268_v39  ;;  %v9386_v48 = vcombine.high %v776_v41, %v904_v42 }
  0xdc   : > { %4619 = vmatmul.mubr.bf16.vlgmr.msra.gmra.mrb[20].mxu1 %v1186_v50  ;;  %4706 = vmatprep.subr.bf16.mxu0 %v9370_v51  ;;  %v1334_v50 = vcombine.high %v1324_v40, %v1324_v40  ;;  %v9385_v59 = vcombine.low %v776_v41, %v904_v42  ;;  %v785_v42 = vld [vmem:[%s10303_s6 + $0xf8] sm:$0xff] }
  0xdd   : > { %4667 = vmatpush1.bf16.xpose.msra.mxu1 %v9367_v52  ;;  %4698 = vmatprep.mubr.bf16.mxu1 %v1236_v53  ;;  %v1303_v51 = vcombine.high %v1301_v43, %v1301_v43  ;;  %v9388_v52 = vcombine.high %v777_v45, %v905_v46  ;;  %v728_v53 = vld [vmem:[%s10301_s5 + $0x30] sm:$0xff]  ;;  %v1317_v5 = vrot.slane %v1301_v43, %v10318_v22  ;;  %v913_v43 = vld [vmem:[%s10303_s6 + $0x4f8] sm:$0xff] }
  0xde   : > { %4746 = vmatprep.subr.bf16.mxu1 %v9372_v55  ;;  %v9399_v46 = vcombine.low %v783_v27, %v911_v28 }
  0xdf   : > { %v1331_v55 = vrot.slane %v1303_v51, %v10318_v22 }
  0xe2   : > { %4659 = vmatmul.mubr.bf16.vlgmr.msra.gmra.mrb[24].mxu0 %v1212_v57  ;;  %v906_v57 = vld [vmem:[%s10303_s6 + $0x4c0] sm:$0xff] }
  0xe3   : > { %4707 = vmatpush1.bf16.xpose.msra.mxu0 %v9369_v62  ;;  %4738 = vmatprep.mubr.bf16.mxu0 %v1233_v58  ;;  %v1343_v58 = vrot.slane %v728_v53, %v10318_v22  ;;  %v1332_v62 = vcombine.high %v1310_v54, %v1310_v54  ;;  %v9390_v63 = vcombine.high %v778_v56, %v906_v57 }
  0xe4   : > { %4699 = vmatmul.mubr.bf16.vlgmr.msra.gmra.mrb[24].mxu1 %v1234_v1  ;;  %4786 = vmatprep.subr.bf16.mxu0 %v9374_v2  ;;  %v1335_v1 = vcombine.high %v1331_v55, %v1331_v55  ;;  %v9389_v10 = vcombine.low %v778_v56, %v906_v57  ;;  %v787_v57 = vld [vmem:[%s10303_s6 + $0x108] sm:$0xff] }
  0xe5   : > { %4747 = vmatpush1.bf16.xpose.msra.mxu1 %v9371_v3  ;;  %4778 = vmatprep.mubr.bf16.mxu1 %v1237_v4  ;;  %v1351_v2 = vcombine.high %v1343_v58, %v1343_v58  ;;  %v1336_v3 = vcombine.high %v728_v53, %v728_v53  ;;  %v9392_v4 = vcombine.high %v779_v60, %v907_v61  ;;  %v786_v53 = vld [vmem:[%s10303_s6 + $0x100] sm:$0xff] }
  0xe6   : > { %4826 = vmatprep.subr.bf16.mxu1 %v9376_v7  ;;  %v780_v7 = vld [vmem:[%s10303_s6 + $0xd0] sm:$0xff]  ;;  %v1359_v20 = vrot.slane %v1343_v58, %v10318_v22  ;;  %v915_v58 = vld [vmem:[%s10303_s6 + $0x508] sm:$0xff]  ;;  %v9403_v61 = vcombine.low %v785_v42, %v913_v43 }
  0xe7   : > { %v1373_v6 = vrot.slane %v1351_v2, %v10318_v22 }
  0xea   : > { %4739 = vmatmul.mubr.bf16.vlgmr.msra.gmra.mrb[28].mxu0 %v1219_v8  ;;  %v908_v8 = vld [vmem:[%s10303_s6 + $0x4d0] sm:$0xff] }
  0xeb   : > { %4787 = vmatpush1.bf16.xpose.msra.mxu0 %v9373_v13  ;;  %4818 = vmatprep.mubr.bf16.mxu0 %v1275_v9  ;;  %v1350_v9 = vrot.slane %v1336_v3, %v10318_v22  ;;  %v1333_v13 = vcombine.high %v1317_v5, %v1317_v5  ;;  %v9394_v14 = vcombine.high %v780_v7, %v908_v8 }
  0xec   : > { %4779 = vmatmul.mubr.bf16.vlgmr.msra.gmra.mrb[28].mxu1 %v1235_v16  ;;  %4866 = vmatprep.subr.bf16.mxu0 %v9378_v17  ;;  %v1383_v16 = vcombine.high %v1373_v6, %v1373_v6  ;;  %v9393_v26 = vcombine.low %v780_v7, %v908_v8  ;;  %v789_v8 = vld [vmem:[%s10303_s6 + $0x118] sm:$0xff] }
  0xed   : > { %4827 = vmatpush1.bf16.xpose.msra.mxu1 %v9375_v18  ;;  %4858 = vmatprep.mubr.bf16.mxu1 %v1285_v19  ;;  %v1352_v17 = vcombine.high %v1350_v9, %v1350_v9  ;;  %v9396_v18 = vcombine.high %v781_v11, %v909_v12  ;;  %v729_v19 = vld [vmem:[%s10301_s5 + $0x38] sm:$0xff]  ;;  %v1366_v36 = vrot.slane %v1350_v9, %v10318_v22 }
  0xee   : > { %4906 = vmatprep.subr.bf16.mxu1 %v9380_v21  ;;  %v917_v9 = vld [vmem:[%s10303_s6 + $0x518] sm:$0xff]  ;;  %v9407_v12 = vcombine.low %v787_v57, %v915_v58 }
  0xef   : > { %v1380_v21 = vrot.slane %v1352_v17, %v10318_v22 }
  0xf2   : > { %4819 = vmatmul.mubr.bf16.vlgmr.msra.gmra.mrb[32].mxu0 %v1261_v24  ;;  %v910_v24 = vld [vmem:[%s10303_s6 + $0x4e0] sm:$0xff] }
  0xf3   : > { %4867 = vmatpush1.bf16.xpose.msra.mxu0 %v9377_v29  ;;  %4898 = vmatprep.mubr.bf16.mxu0 %v1282_v25  ;;  %v1392_v25 = vrot.slane %v729_v19, %v10318_v22  ;;  %v1381_v29 = vcombine.high %v1359_v20, %v1359_v20  ;;  %v9398_v30 = vcombine.high %v782_v23, %v910_v24 }
  0xf4   : > { %4859 = vmatmul.mubr.bf16.vlgmr.msra.gmra.mrb[32].mxu1 %v1283_v32  ;;  %4946 = vmatprep.subr.bf16.mxu0 %v9382_v33  ;;  %v1384_v32 = vcombine.high %v1380_v21, %v1380_v21  ;;  %v9397_v41 = vcombine.low %v782_v23, %v910_v24  ;;  %v791_v24 = vld [vmem:[%s10303_s6 + $0x128] sm:$0xff] }
  0xf5   : > { %4907 = vmatpush1.bf16.xpose.msra.mxu1 %v9379_v34  ;;  %4938 = vmatprep.mubr.bf16.mxu1 %v1286_v35  ;;  %v1400_v33 = vcombine.high %v1392_v25, %v1392_v25  ;;  %v1385_v34 = vcombine.high %v729_v19, %v729_v19  ;;  %v9400_v35 = vcombine.high %v783_v27, %v911_v28  ;;  %v790_v19 = vld [vmem:[%s10303_s6 + $0x120] sm:$0xff] }
  0xf6   : > { %4986 = vmatprep.subr.bf16.mxu1 %v9384_v38  ;;  %v784_v38 = vld [vmem:[%s10303_s6 + $0xf0] sm:$0xff]  ;;  %v1408_v51 = vrot.slane %v1392_v25, %v10318_v22  ;;  %v919_v25 = vld [vmem:[%s10303_s6 + $0x528] sm:$0xff]  ;;  %v9411_v28 = vcombine.low %v789_v8, %v917_v9 }
  0xf7   : > { %v1422_v37 = vrot.slane %v1400_v33, %v10318_v22 }
  0xfa   : > { %4899 = vmatmul.mubr.bf16.vlgmr.msra.gmra.mrb[36].mxu0 %v1268_v39  ;;  %v912_v39 = vld [vmem:[%s10303_s6 + $0x4f0] sm:$0xff] }
  0xfb   : > { %4947 = vmatpush1.bf16.xpose.msra.mxu0 %v9381_v44  ;;  %4978 = vmatprep.mubr.bf16.mxu0 %v1324_v40  ;;  %v1399_v40 = vrot.slane %v1385_v34, %v10318_v22  ;;  %v1382_v44 = vcombine.high %v1366_v36, %v1366_v36  ;;  %v9402_v45 = vcombine.high %v784_v38, %v912_v39 }
  0xfc   : > { %4939 = vmatmul.mubr.bf16.vlgmr.msra.gmra.mrb[36].mxu1 %v1284_v47  ;;  %5026 = vmatprep.subr.bf16.mxu0 %v9386_v48  ;;  %v1432_v47 = vcombine.high %v1422_v37, %v1422_v37  ;;  %v9401_v56 = vcombine.low %v784_v38, %v912_v39  ;;  %v793_v39 = vld [vmem:[%s10303_s6 + $0x138] sm:$0xff] }
  0xfd   : > { %4987 = vmatpush1.bf16.xpose.msra.mxu1 %v9383_v49  ;;  %5018 = vmatprep.mubr.bf16.mxu1 %v1334_v50  ;;  %v1401_v48 = vcombine.high %v1399_v40, %v1399_v40  ;;  %v9404_v49 = vcombine.high %v785_v42, %v913_v43  ;;  %v730_v50 = vld [vmem:[%s10301_s5 + $0x40] sm:$0xff]  ;;  %v1415_v2 = vrot.slane %v1399_v40, %v10318_v22  ;;  %v921_v40 = vld [vmem:[%s10303_s6 + $0x538] sm:$0xff] }
  0xfe   : > { %5066 = vmatprep.subr.bf16.mxu1 %v9388_v52  ;;  %v9415_v43 = vcombine.low %v791_v24, %v919_v25 }
  0xff   : > { %v1429_v52 = vrot.slane %v1401_v48, %v10318_v22 }
 0x102   : > { %4979 = vmatmul.mubr.bf16.vlgmr.msra.gmra.mrb[40].mxu0 %v1310_v54  ;;  %v914_v54 = vld [vmem:[%s10303_s6 + $0x500] sm:$0xff] }
 0x103   : > { %5027 = vmatpush1.bf16.xpose.msra.mxu0 %v9385_v59  ;;  %5058 = vmatprep.mubr.bf16.mxu0 %v1331_v55  ;;  %v1441_v55 = vrot.slane %v730_v50, %v10318_v22  ;;  %v1430_v59 = vcombine.high %v1408_v51, %v1408_v51  ;;  %v9406_v60 = vcombine.high %v786_v53, %v914_v54 }
 0x104   : > { %5019 = vmatmul.mubr.bf16.vlgmr.msra.gmra.mrb[40].mxu1 %v1332_v62  ;;  %5106 = vmatprep.subr.bf16.mxu0 %v9390_v63  ;;  %v1433_v62 = vcombine.high %v1429_v52, %v1429_v52  ;;  %v9405_v7 = vcombine.low %v786_v53, %v914_v54  ;;  %v795_v54 = vld [vmem:[%s10303_s6 + $0x148] sm:$0xff] }
 0x105   : > { %5067 = vmatpush1.bf16.xpose.msra.mxu1 %v9387_v0  ;;  %5098 = vmatprep.mubr.bf16.mxu1 %v1335_v1  ;;  %v1449_v63 = vcombine.high %v1441_v55, %v1441_v55  ;;  %v1434_v0 = vcombine.high %v730_v50, %v730_v50  ;;  %v9408_v1 = vcombine.high %v787_v57, %v915_v58  ;;  %v794_v50 = vld [vmem:[%s10303_s6 + $0x140] sm:$0xff] }
 0x106   : > { %5146 = vmatprep.subr.bf16.mxu1 %v9392_v4  ;;  %v788_v4 = vld [vmem:[%s10303_s6 + $0x110] sm:$0xff]  ;;  %v1457_v17 = vrot.slane %v1441_v55, %v10318_v22  ;;  %v923_v55 = vld [vmem:[%s10303_s6 + $0x548] sm:$0xff]  ;;  %v9419_v58 = vcombine.low %v793_v39, %v921_v40 }
 0x107   : > { %v1471_v3 = vrot.slane %v1449_v63, %v10318_v22 }
 0x10a   : > { %5059 = vmatmul.mubr.bf16.vlgmr.msra.gmra.mrb[44].mxu0 %v1317_v5  ;;  %v916_v5 = vld [vmem:[%s10303_s6 + $0x510] sm:$0xff] }
 0x10b   : > { %5107 = vmatpush1.bf16.xpose.msra.mxu0 %v9389_v10  ;;  %5138 = vmatprep.mubr.bf16.mxu0 %v1373_v6  ;;  %v1448_v6 = vrot.slane %v1434_v0, %v10318_v22  ;;  %v1431_v10 = vcombine.high %v1415_v2, %v1415_v2  ;;  %v9410_v11 = vcombine.high %v788_v4, %v916_v5 }
 0x10c   : > { %5099 = vmatmul.mubr.bf16.vlgmr.msra.gmra.mrb[44].mxu1 %v1333_v13  ;;  %5186 = vmatprep.subr.bf16.mxu0 %v9394_v14  ;;  %v1481_v13 = vcombine.high %v1471_v3, %v1471_v3  ;;  %v9409_v23 = vcombine.low %v788_v4, %v916_v5  ;;  %v797_v5 = vld [vmem:[%s10303_s6 + $0x158] sm:$0xff] }
 0x10d   : > { %5147 = vmatpush1.bf16.xpose.msra.mxu1 %v9391_v15  ;;  %5178 = vmatprep.mubr.bf16.mxu1 %v1383_v16  ;;  %v1450_v14 = vcombine.high %v1448_v6, %v1448_v6  ;;  %v9412_v15 = vcombine.high %v789_v8, %v917_v9  ;;  %v731_v16 = vld [vmem:[%s10301_s5 + $0x48] sm:$0xff]  ;;  %v1464_v33 = vrot.slane %v1448_v6, %v10318_v22  ;;  %v925_v6 = vld [vmem:[%s10303_s6 + $0x558] sm:$0xff] }
 0x10e   : > { %5226 = vmatprep.subr.bf16.mxu1 %v9396_v18  ;;  %v9423_v9 = vcombine.low %v795_v54, %v923_v55 }
 0x10f   : > { %v1478_v18 = vrot.slane %v1450_v14, %v10318_v22 }
 0x112   : > { %5139 = vmatmul.mubr.bf16.vlgmr.msra.gmra.mrb[48].mxu0 %v1359_v20  ;;  %v918_v20 = vld [vmem:[%s10303_s6 + $0x520] sm:$0xff] }
 0x113   : > { %5187 = vmatpush1.bf16.xpose.msra.mxu0 %v9393_v26  ;;  %5218 = vmatprep.mubr.bf16.mxu0 %v1380_v21  ;;  %v1490_v21 = vrot.slane %v731_v16, %v10318_v22  ;;  %v1479_v26 = vcombine.high %v1457_v17, %v1457_v17  ;;  %v9414_v27 = vcombine.high %v790_v19, %v918_v20 }
 0x114   : > { %5179 = vmatmul.mubr.bf16.vlgmr.msra.gmra.mrb[48].mxu1 %v1381_v29  ;;  %5266 = vmatprep.subr.bf16.mxu0 %v9398_v30  ;;  %v1482_v29 = vcombine.high %v1478_v18, %v1478_v18  ;;  %v9413_v38 = vcombine.low %v790_v19, %v918_v20  ;;  %v799_v20 = vld [vmem:[%s10303_s6 + $0x168] sm:$0xff] }
 0x115   : > { %5227 = vmatpush1.bf16.xpose.msra.mxu1 %v9395_v31  ;;  %5258 = vmatprep.mubr.bf16.mxu1 %v1384_v32  ;;  %v1498_v30 = vcombine.high %v1490_v21, %v1490_v21  ;;  %v1483_v31 = vcombine.high %v731_v16, %v731_v16  ;;  %v9416_v32 = vcombine.high %v791_v24, %v919_v25  ;;  %v798_v16 = vld [vmem:[%s10303_s6 + $0x160] sm:$0xff] }
 0x116   : > { %5306 = vmatprep.subr.bf16.mxu1 %v9400_v35  ;;  %v792_v35 = vld [vmem:[%s10303_s6 + $0x130] sm:$0xff]  ;;  %v1506_v48 = vrot.slane %v1490_v21, %v10318_v22  ;;  %v927_v21 = vld [vmem:[%s10303_s6 + $0x568] sm:$0xff]  ;;  %v9427_v25 = vcombine.low %v797_v5, %v925_v6 }
 0x117   : > { %v1520_v34 = vrot.slane %v1498_v30, %v10318_v22 }
 0x11a   : > { %5219 = vmatmul.mubr.bf16.vlgmr.msra.gmra.mrb[52].mxu0 %v1366_v36  ;;  %v920_v36 = vld [vmem:[%s10303_s6 + $0x530] sm:$0xff] }
 0x11b   : > { %5267 = vmatpush1.bf16.xpose.msra.mxu0 %v9397_v41  ;;  %5298 = vmatprep.mubr.bf16.mxu0 %v1422_v37  ;;  %v1497_v37 = vrot.slane %v1483_v31, %v10318_v22  ;;  %v1480_v41 = vcombine.high %v1464_v33, %v1464_v33  ;;  %v9418_v42 = vcombine.high %v792_v35, %v920_v36 }
 0x11c   : > { %5259 = vmatmul.mubr.bf16.vlgmr.msra.gmra.mrb[52].mxu1 %v1382_v44  ;;  %5346 = vmatprep.subr.bf16.mxu0 %v9402_v45  ;;  %v1530_v44 = vcombine.high %v1520_v34, %v1520_v34  ;;  %v9417_v53 = vcombine.low %v792_v35, %v920_v36  ;;  %v801_v36 = vld [vmem:[%s10303_s6 + $0x178] sm:$0xff] }
 0x11d   : > { %5307 = vmatpush1.bf16.xpose.msra.mxu1 %v9399_v46  ;;  %5338 = vmatprep.mubr.bf16.mxu1 %v1432_v47  ;;  %v1499_v45 = vcombine.high %v1497_v37, %v1497_v37  ;;  %v9420_v46 = vcombine.high %v793_v39, %v921_v40  ;;  %v732_v47 = vld [vmem:[%s10301_s5 + $0x50] sm:$0xff]  ;;  %v1513_v63 = vrot.slane %v1497_v37, %v10318_v22  ;;  %v929_v37 = vld [vmem:[%s10303_s6 + $0x578] sm:$0xff] }
 0x11e   : > { %5386 = vmatprep.subr.bf16.mxu1 %v9404_v49  ;;  %v9431_v40 = vcombine.low %v799_v20, %v927_v21 }
 0x11f   : > { %v1527_v49 = vrot.slane %v1499_v45, %v10318_v22 }
 0x122   : > { %5299 = vmatmul.mubr.bf16.vlgmr.msra.gmra.mrb[56].mxu0 %v1408_v51  ;;  %v922_v51 = vld [vmem:[%s10303_s6 + $0x540] sm:$0xff] }
 0x123   : > { %5347 = vmatpush1.bf16.xpose.msra.mxu0 %v9401_v56  ;;  %5378 = vmatprep.mubr.bf16.mxu0 %v1429_v52  ;;  %v1539_v52 = vrot.slane %v732_v47, %v10318_v22  ;;  %v1528_v56 = vcombine.high %v1506_v48, %v1506_v48  ;;  %v9422_v57 = vcombine.high %v794_v50, %v922_v51 }
 0x124   : > { %5339 = vmatmul.mubr.bf16.vlgmr.msra.gmra.mrb[56].mxu1 %v1430_v59  ;;  %5426 = vmatprep.subr.bf16.mxu0 %v9406_v60  ;;  %v1531_v59 = vcombine.high %v1527_v49, %v1527_v49  ;;  %v9421_v4 = vcombine.low %v794_v50, %v922_v51  ;;  %v803_v51 = vld [vmem:[%s10303_s6 + $0x188] sm:$0xff] }
 0x125   : > { %5387 = vmatpush1.bf16.xpose.msra.mxu1 %v9403_v61  ;;  %5418 = vmatprep.mubr.bf16.mxu1 %v1433_v62  ;;  %v1547_v60 = vcombine.high %v1539_v52, %v1539_v52  ;;  %v1532_v61 = vcombine.high %v732_v47, %v732_v47  ;;  %v9424_v62 = vcombine.high %v795_v54, %v923_v55  ;;  %v802_v47 = vld [vmem:[%s10303_s6 + $0x180] sm:$0xff] }
 0x126   : > { %5466 = vmatprep.subr.bf16.mxu1 %v9408_v1  ;;  %v796_v1 = vld [vmem:[%s10303_s6 + $0x150] sm:$0xff]  ;;  %v1555_v14 = vrot.slane %v1539_v52, %v10318_v22  ;;  %v931_v52 = vld [vmem:[%s10303_s6 + $0x588] sm:$0xff]  ;;  %v9435_v55 = vcombine.low %v801_v36, %v929_v37 }
 0x127   : > { %v1569_v0 = vrot.slane %v1547_v60, %v10318_v22 }
 0x12a   : > { %5379 = vmatmul.mubr.bf16.vlgmr.msra.gmra.mrb[60].mxu0 %v1415_v2  ;;  %v924_v2 = vld [vmem:[%s10303_s6 + $0x550] sm:$0xff] }
 0x12b   : > { %5427 = vmatpush1.bf16.xpose.msra.mxu0 %v9405_v7  ;;  %5458 = vmatprep.mubr.bf16.mxu0 %v1471_v3  ;;  %v1546_v3 = vrot.slane %v1532_v61, %v10318_v22  ;;  %v1529_v7 = vcombine.high %v1513_v63, %v1513_v63  ;;  %v9426_v8 = vcombine.high %v796_v1, %v924_v2 }
 0x12c   : > { %5419 = vmatmul.mubr.bf16.vlgmr.msra.gmra.mrb[60].mxu1 %v1431_v10  ;;  %5506 = vmatprep.subr.bf16.mxu0 %v9410_v11  ;;  %v1579_v10 = vcombine.high %v1569_v0, %v1569_v0  ;;  %v9425_v19 = vcombine.low %v796_v1, %v924_v2  ;;  %v805_v2 = vld [vmem:[%s10303_s6 + $0x198] sm:$0xff] }
 0x12d   : > { %5467 = vmatpush1.bf16.xpose.msra.mxu1 %v9407_v12  ;;  %5498 = vmatprep.mubr.bf16.mxu1 %v1481_v13  ;;  %v1548_v11 = vcombine.high %v1546_v3, %v1546_v3  ;;  %v9428_v12 = vcombine.high %v797_v5, %v925_v6  ;;  %v733_v13 = vld [vmem:[%s10301_s5 + $0x58] sm:$0xff]  ;;  %v1562_v30 = vrot.slane %v1546_v3, %v10318_v22 }
 0x12e   : > { %5546 = vmatprep.subr.bf16.mxu1 %v9412_v15  ;;  %v933_v3 = vld [vmem:[%s10303_s6 + $0x598] sm:$0xff]  ;;  %v9439_v6 = vcombine.low %v803_v51, %v931_v52 }
 0x12f   : > { %v1576_v15 = vrot.slane %v1548_v11, %v10318_v22 }
 0x132   : > { %5459 = vmatmul.mubr.bf16.vlgmr.msra.gmra.mrb[64].mxu0 %v1457_v17  ;;  %v926_v17 = vld [vmem:[%s10303_s6 + $0x560] sm:$0xff] }
 0x133   : > { %5507 = vmatpush1.bf16.xpose.msra.mxu0 %v9409_v23  ;;  %5538 = vmatprep.mubr.bf16.mxu0 %v1478_v18  ;;  %v1588_v18 = vrot.slane %v733_v13, %v10318_v22  ;;  %v1577_v23 = vcombine.high %v1555_v14, %v1555_v14  ;;  %v9430_v24 = vcombine.high %v798_v16, %v926_v17 }
 0x134   : > { %5499 = vmatmul.mubr.bf16.vlgmr.msra.gmra.mrb[64].mxu1 %v1479_v26  ;;  %5586 = vmatprep.subr.bf16.mxu0 %v9414_v27  ;;  %v1580_v26 = vcombine.high %v1576_v15, %v1576_v15  ;;  %v9429_v35 = vcombine.low %v798_v16, %v926_v17  ;;  %v807_v17 = vld [vmem:[%s10303_s6 + $0x1a8] sm:$0xff] }
 0x135   : > { %5547 = vmatpush1.bf16.xpose.msra.mxu1 %v9411_v28  ;;  %5578 = vmatprep.mubr.bf16.mxu1 %v1482_v29  ;;  %v1596_v27 = vcombine.high %v1588_v18, %v1588_v18  ;;  %v1581_v28 = vcombine.high %v733_v13, %v733_v13  ;;  %v9432_v29 = vcombine.high %v799_v20, %v927_v21  ;;  %v806_v13 = vld [vmem:[%s10303_s6 + $0x1a0] sm:$0xff] }
 0x136   : > { %5626 = vmatprep.subr.bf16.mxu1 %v9416_v32  ;;  %v800_v32 = vld [vmem:[%s10303_s6 + $0x170] sm:$0xff]  ;;  %v1604_v45 = vrot.slane %v1588_v18, %v10318_v22  ;;  %v935_v18 = vld [vmem:[%s10303_s6 + $0x5a8] sm:$0xff]  ;;  %v9443_v21 = vcombine.low %v805_v2, %v933_v3 }
 0x137   : > { %v1618_v31 = vrot.slane %v1596_v27, %v10318_v22 }
 0x13a   : > { %5539 = vmatmul.mubr.bf16.vlgmr.msra.gmra.mrb[68].mxu0 %v1464_v33  ;;  %v928_v33 = vld [vmem:[%s10303_s6 + $0x570] sm:$0xff] }
 0x13b   : > { %5587 = vmatpush1.bf16.xpose.msra.mxu0 %v9413_v38  ;;  %5618 = vmatprep.mubr.bf16.mxu0 %v1520_v34  ;;  %v1595_v34 = vrot.slane %v1581_v28, %v10318_v22  ;;  %v1578_v38 = vcombine.high %v1562_v30, %v1562_v30  ;;  %v9434_v39 = vcombine.high %v800_v32, %v928_v33 }
 0x13c   : > { %5579 = vmatmul.mubr.bf16.vlgmr.msra.gmra.mrb[68].mxu1 %v1480_v41  ;;  %5666 = vmatprep.subr.bf16.mxu0 %v9418_v42  ;;  %v1628_v41 = vcombine.high %v1618_v31, %v1618_v31  ;;  %v9433_v50 = vcombine.low %v800_v32, %v928_v33  ;;  %v809_v33 = vld [vmem:[%s10303_s6 + $0x1b8] sm:$0xff] }
 0x13d   : > { %5627 = vmatpush1.bf16.xpose.msra.mxu1 %v9415_v43  ;;  %5658 = vmatprep.mubr.bf16.mxu1 %v1530_v44  ;;  %v1597_v42 = vcombine.high %v1595_v34, %v1595_v34  ;;  %v9436_v43 = vcombine.high %v801_v36, %v929_v37  ;;  %v734_v44 = vld [vmem:[%s10301_s5 + $0x60] sm:$0xff]  ;;  %v1611_v60 = vrot.slane %v1595_v34, %v10318_v22  ;;  %v937_v34 = vld [vmem:[%s10303_s6 + $0x5b8] sm:$0xff] }
 0x13e   : > { %5706 = vmatprep.subr.bf16.mxu1 %v9420_v46  ;;  %v9447_v37 = vcombine.low %v807_v17, %v935_v18 }
 0x13f   : > { %v1625_v46 = vrot.slane %v1597_v42, %v10318_v22 }
 0x142   : > { %5619 = vmatmul.mubr.bf16.vlgmr.msra.gmra.mrb[72].mxu0 %v1506_v48  ;;  %v930_v48 = vld [vmem:[%s10303_s6 + $0x580] sm:$0xff] }
 0x143   : > { %5667 = vmatpush1.bf16.xpose.msra.mxu0 %v9417_v53  ;;  %5698 = vmatprep.mubr.bf16.mxu0 %v1527_v49  ;;  %v1637_v49 = vrot.slane %v734_v44, %v10318_v22  ;;  %v1626_v53 = vcombine.high %v1604_v45, %v1604_v45  ;;  %v9438_v54 = vcombine.high %v802_v47, %v930_v48 }
 0x144   : > { %5659 = vmatmul.mubr.bf16.vlgmr.msra.gmra.mrb[72].mxu1 %v1528_v56  ;;  %5746 = vmatprep.subr.bf16.mxu0 %v9422_v57  ;;  %v1629_v56 = vcombine.high %v1625_v46, %v1625_v46  ;;  %v9437_v1 = vcombine.low %v802_v47, %v930_v48  ;;  %v811_v48 = vld [vmem:[%s10303_s6 + $0x1c8] sm:$0xff] }
 0x145   : > { %5707 = vmatpush1.bf16.xpose.msra.mxu1 %v9419_v58  ;;  %5738 = vmatprep.mubr.bf16.mxu1 %v1531_v59  ;;  %v1645_v57 = vcombine.high %v1637_v49, %v1637_v49  ;;  %v1630_v58 = vcombine.high %v734_v44, %v734_v44  ;;  %v9440_v59 = vcombine.high %v803_v51, %v931_v52  ;;  %v810_v44 = vld [vmem:[%s10303_s6 + $0x1c0] sm:$0xff] }
 0x146   : > { %5786 = vmatprep.subr.bf16.mxu1 %v9424_v62  ;;  %v804_v62 = vld [vmem:[%s10303_s6 + $0x190] sm:$0xff]  ;;  %v1653_v11 = vrot.slane %v1637_v49, %v10318_v22  ;;  %v939_v49 = vld [vmem:[%s10303_s6 + $0x5c8] sm:$0xff]  ;;  %v9451_v52 = vcombine.low %v809_v33, %v937_v34 }
 0x147   : > { %v1667_v61 = vrot.slane %v1645_v57, %v10318_v22 }
 0x14a   : > { %5699 = vmatmul.mubr.bf16.vlgmr.msra.gmra.mrb[76].mxu0 %v1513_v63  ;;  %v932_v63 = vld [vmem:[%s10303_s6 + $0x590] sm:$0xff] }
 0x14b   : > { %5747 = vmatpush1.bf16.xpose.msra.mxu0 %v9421_v4  ;;  %5778 = vmatprep.mubr.bf16.mxu0 %v1569_v0  ;;  %v1644_v0 = vrot.slane %v1630_v58, %v10318_v22  ;;  %v1627_v4 = vcombine.high %v1611_v60, %v1611_v60  ;;  %v9442_v5 = vcombine.high %v804_v62, %v932_v63 }
 0x14c   : > { %5739 = vmatmul.mubr.bf16.vlgmr.msra.gmra.mrb[76].mxu1 %v1529_v7  ;;  %5826 = vmatprep.subr.bf16.mxu0 %v9426_v8  ;;  %v1677_v7 = vcombine.high %v1667_v61, %v1667_v61  ;;  %v9441_v16 = vcombine.low %v804_v62, %v932_v63 }
 0x14d   : > { %5787 = vmatpush1.bf16.xpose.msra.mxu1 %v9423_v9  ;;  %5818 = vmatprep.mubr.bf16.mxu1 %v1579_v10  ;;  %v1646_v8 = vcombine.high %v1644_v0, %v1644_v0  ;;  %v9444_v9 = vcombine.high %v805_v2, %v933_v3  ;;  %v735_v10 = vld [vmem:[%s10301_s5 + $0x68] sm:$0xff]  ;;  %v1660_v27 = vrot.slane %v1644_v0, %v10318_v22  ;;  %v813_v3 = vld [vmem:[%s10303_s6 + $0x1d8] sm:$0xff] }
 0x14e   : > { %5866 = vmatprep.subr.bf16.mxu1 %v9428_v12 }
 0x14f   : > { %v1674_v12 = vrot.slane %v1646_v8, %v10318_v22 }
 0x152   : > { %5779 = vmatmul.mubr.bf16.vlgmr.msra.gmra.mrb[80].mxu0 %v1555_v14  ;;  %v934_v14 = vld [vmem:[%s10303_s6 + $0x5a0] sm:$0xff] }
 0x153   : > { %5827 = vmatpush1.bf16.xpose.msra.mxu0 %v9425_v19  ;;  %5858 = vmatprep.mubr.bf16.mxu0 %v1576_v15  ;;  %v1686_v15 = vrot.slane %v735_v10, %v10318_v22  ;;  %v1675_v19 = vcombine.high %v1653_v11, %v1653_v11  ;;  %v9446_v20 = vcombine.high %v806_v13, %v934_v14 }
 0x154   : > { %5819 = vmatmul.mubr.bf16.vlgmr.msra.gmra.mrb[80].mxu1 %v1577_v23  ;;  %5906 = vmatprep.subr.bf16.mxu0 %v9430_v24  ;;  %v1678_v23 = vcombine.high %v1674_v12, %v1674_v12  ;;  %v9445_v32 = vcombine.low %v806_v13, %v934_v14 }
 0x155   : > { %5867 = vmatpush1.bf16.xpose.msra.mxu1 %v9427_v25  ;;  %5898 = vmatprep.mubr.bf16.mxu1 %v1580_v26  ;;  %v1694_v24 = vcombine.high %v1686_v15, %v1686_v15  ;;  %v1679_v25 = vcombine.high %v735_v10, %v735_v10  ;;  %v9448_v26 = vcombine.high %v807_v17, %v935_v18 }
 0x156   : > { %5946 = vmatprep.subr.bf16.mxu1 %v9432_v29  ;;  %v808_v29 = vld [vmem:[%s10303_s6 + $0x1b0] sm:$0xff]  ;;  %v1702_v42 = vrot.slane %v1686_v15, %v10318_v22 }
 0x157   : > { %v1716_v28 = vrot.slane %v1694_v24, %v10318_v22 }
 0x15a   : > { %5859 = vmatmul.mubr.bf16.vlgmr.msra.gmra.mrb[84].mxu0 %v1562_v30  ;;  %v936_v30 = vld [vmem:[%s10303_s6 + $0x5b0] sm:$0xff] }
 0x15b   : > { %5907 = vmatpush1.bf16.xpose.msra.mxu0 %v9429_v35  ;;  %5938 = vmatprep.mubr.bf16.mxu0 %v1618_v31  ;;  %v1693_v31 = vrot.slane %v1679_v25, %v10318_v22  ;;  %v1676_v35 = vcombine.high %v1660_v27, %v1660_v27  ;;  %v9450_v36 = vcombine.high %v808_v29, %v936_v30 }
 0x15c   : > { %5899 = vmatmul.mubr.bf16.vlgmr.msra.gmra.mrb[84].mxu1 %v1578_v38  ;;  %5986 = vmatprep.subr.bf16.mxu0 %v9434_v39  ;;  %v1726_v38 = vcombine.high %v1716_v28, %v1716_v28  ;;  %v9449_v47 = vcombine.low %v808_v29, %v936_v30  ;;  %v815_v29 = vld [vmem:[%s10303_s6 + $0x1e8] sm:$0xff] }
 0x15d   : > { %5947 = vmatpush1.bf16.xpose.msra.mxu1 %v9431_v40  ;;  %5978 = vmatprep.mubr.bf16.mxu1 %v1628_v41  ;;  %v1695_v39 = vcombine.high %v1693_v31, %v1693_v31  ;;  %v9452_v40 = vcombine.high %v809_v33, %v937_v34  ;;  %v736_v41 = vld [vmem:[%s10301_s5 + $0x70] sm:$0xff]  ;;  %v1709_v57 = vrot.slane %v1693_v31, %v10318_v22  ;;  %v943_v30 = vld [vmem:[%s10303_s6 + $0x5e8] sm:$0xff] }
 0x15e   : > { %6026 = vmatprep.subr.bf16.mxu1 %v9436_v43 }
 0x15f   : > { %v1723_v43 = vrot.slane %v1695_v39, %v10318_v22  ;;  %v1725_v8 = vcombine.high %v1709_v57, %v1709_v57 }
 0x162   : > { %5939 = vmatmul.mubr.bf16.vlgmr.msra.gmra.mrb[88].mxu0 %v1604_v45  ;;  %v938_v45 = vld [vmem:[%s10303_s6 + $0x5c0] sm:$0xff] }
 0x163   : > { %5987 = vmatpush1.bf16.xpose.msra.mxu0 %v9433_v50  ;;  %6018 = vmatprep.mubr.bf16.mxu0 %v1625_v46  ;;  %v1735_v46 = vrot.slane %v736_v41, %v10318_v22  ;;  %v1724_v50 = vcombine.high %v1702_v42, %v1702_v42  ;;  %v9454_v51 = vcombine.high %v810_v44, %v938_v45 }
 0x164   : > { %5979 = vmatmul.mubr.bf16.vlgmr.msra.gmra.mrb[88].mxu1 %v1626_v53  ;;  %6066 = vmatprep.subr.bf16.mxu0 %v9438_v54  ;;  %v1727_v53 = vcombine.high %v1723_v43, %v1723_v43  ;;  %v9453_v2 = vcombine.low %v810_v44, %v938_v45 }
 0x165   : > { %6027 = vmatpush1.bf16.xpose.msra.mxu1 %v9435_v55  ;;  %6058 = vmatprep.mubr.bf16.mxu1 %v1629_v56  ;;  %v1743_v54 = vcombine.high %v1735_v46, %v1735_v46  ;;  %v1728_v55 = vcombine.high %v736_v41, %v736_v41  ;;  %v9456_v56 = vcombine.high %v811_v48, %v939_v49 }
 0x166   : > { %6106 = vmatprep.subr.bf16.mxu1 %v9440_v59  ;;  %v1751_v17 = vrot.slane %v1735_v46, %v10318_v22  ;;  %v816_v46 = vld [vmem:[%s10303_s6 + $0x1f0] sm:$0xff] }
 0x167   : > { %v1765_v59 = vrot.slane %v1743_v54, %v10318_v22  ;;  %v1742_v62 = vrot.slane %v1728_v55, %v10318_v22  ;;  %v817_v54 = vld [vmem:[%s10303_s6 + $0x1f8] sm:$0xff] }
 0x168   : > { %v1773_v34 = vcombine.high %v1751_v17, %v1751_v17  ;;  %v945_v55 = vld [vmem:[%s10303_s6 + $0x5f8] sm:$0xff] }
 0x169   : > { %v1744_v13 = vcombine.high %v1742_v62, %v1742_v62 }
 0x16a   : > { %6019 = vmatmul.mubr.bf16.vlgmr.msra.gmra.mrb[92].mxu0 %v1611_v60  ;;  %v812_v60 = vld [vmem:[%s10303_s6 + $0x1d0] sm:$0xff] }
 0x16b   : > { %6067 = vmatpush1.bf16.xpose.msra.mxu0 %v9437_v1  ;;  %6098 = vmatprep.mubr.bf16.mxu0 %v1667_v61  ;;  %v940_v61 = vld [vmem:[%s10303_s6 + $0x5d0] sm:$0xff] }
 0x16c   : > { %6059 = vmatmul.mubr.bf16.vlgmr.msra.gmra.mrb[92].mxu1 %v1627_v4  ;;  %6146 = vmatprep.subr.bf16.mxu0 %v9442_v5  ;;  %v941_v4 = vld [vmem:[%s10303_s6 + $0x5d8] sm:$0xff] }
 0x16d   : > { %6107 = vmatpush1.bf16.xpose.msra.mxu1 %v9439_v6  ;;  %6138 = vmatprep.mubr.bf16.mxu1 %v1677_v7  ;;  %v9460_v15 = vcombine.high %v813_v3, %v941_v4 }
 0x16e   : > { %6186 = vmatprep.subr.bf16.mxu1 %v9444_v9  ;;  %v9458_v9 = vcombine.high %v812_v60, %v940_v61 }
 0x172   : > { %6099 = vmatmul.mubr.bf16.vlgmr.msra.gmra.mrb[96].mxu0 %v1653_v11  ;;  %v9455_v11 = vcombine.low %v811_v48, %v939_v49 }
 0x173   : > { %6147 = vmatpush1.bf16.xpose.msra.mxu0 %v9441_v16  ;;  %6178 = vmatprep.mubr.bf16.mxu0 %v1674_v12  ;;  %v1775_v12 = vcombine.high %v1765_v59, %v1765_v59  ;;  %v737_v16 = vld [vmem:[%s10301_s5 + $0x78] sm:$0xff] }
 0x174   : > { %6139 = vmatmul.mubr.bf16.vlgmr.msra.gmra.mrb[96].mxu1 %v1675_v19  ;;  %6226 = vmatprep.subr.bf16.mxu0 %v9446_v20  ;;  %v1772_v19 = vrot.slane %v1744_v13, %v10318_v22  ;;  %v814_v20 = vld [vmem:[%s10303_s6 + $0x1e0] sm:$0xff] }
 0x175   : > { %6187 = vmatpush1.bf16.xpose.msra.mxu1 %v9443_v21  ;;  %6218 = vmatprep.mubr.bf16.mxu1 %v1678_v23  ;;  %v942_v21 = vld [vmem:[%s10303_s6 + $0x5e0] sm:$0xff]  ;;  %v1784_v23 = vrot.slane %v737_v16, %v10318_v22 }
 0x176   : > { %6266 = vmatprep.subr.bf16.mxu1 %v9448_v26 }
 0x177   : > { %v1792_v39 = vcombine.high %v1784_v23, %v1784_v23 }
 0x179   : > { %v1814_v45 = vrot.slane %v1792_v39, %v10318_v22 }
 0x17a   : > { %6179 = vmatmul.mubr.bf16.vlgmr.msra.gmra.mrb[100].mxu0 %v1660_v27 }
 0x17b   : > { %6227 = vmatpush1.bf16.xpose.msra.mxu0 %v9445_v32  ;;  %6258 = vmatprep.mubr.bf16.mxu0 %v1716_v28  ;;  %v9457_v28 = vcombine.low %v812_v60, %v940_v61 }
 0x17c   : > { %6219 = vmatmul.mubr.bf16.vlgmr.msra.gmra.mrb[100].mxu1 %v1676_v35  ;;  %6306 = vmatprep.subr.bf16.mxu0 %v9450_v36  ;;  %v9462_v35 = vcombine.high %v814_v20, %v942_v21 }
 0x17d   : > { %6267 = vmatpush1.bf16.xpose.msra.mxu1 %v9447_v37  ;;  %6298 = vmatprep.mubr.bf16.mxu1 %v1726_v38  ;;  %v9459_v37 = vcombine.low %v813_v3, %v941_v4  ;;  %v1776_v38 = vcombine.high %v1772_v19, %v1772_v19  ;;  %v738_v3 = vld [vmem:[%s10301_s5 + $0x80] sm:$0xff]  ;;  %v1800_v4 = vrot.slane %v1784_v23, %v10318_v22 }
 0x17e   : > { %6346 = vmatprep.subr.bf16.mxu1 %v9452_v40  ;;  %v1777_v40 = vcombine.high %v737_v16, %v737_v16  ;;  %v947_v16 = vld [vmem:[%s10303_s6 + $0x608] sm:$0xff] }
 0x180   : > { %v1791_v48 = vrot.slane %v1777_v40, %v10318_v22 }
 0x182   : > { %6259 = vmatmul.mubr.bf16.vlgmr.msra.gmra.mrb[104].mxu0 %v1702_v42  ;;  %v9464_v42 = vcombine.high %v815_v29, %v943_v30 }
 0x183   : > { %6307 = vmatpush1.bf16.xpose.msra.mxu0 %v9449_v47  ;;  %6338 = vmatprep.mubr.bf16.mxu0 %v1723_v43  ;;  %v1758_v43 = vrot.slane %v1742_v62, %v10318_v22  ;;  %v944_v47 = vld [vmem:[%s10303_s6 + $0x5f0] sm:$0xff]  ;;  %v9463_v62 = vcombine.low %v815_v29, %v943_v30  ;;  %v1807_v30 = vrot.slane %v1791_v48, %v10318_v22 }
 0x184   : > { %6299 = vmatmul.mubr.bf16.vlgmr.msra.gmra.mrb[104].mxu1 %v1724_v50  ;;  %6386 = vmatprep.subr.bf16.mxu0 %v9454_v51  ;;  %v9466_v60 = vcombine.high %v816_v46, %v944_v47 }
 0x185   : > { %6347 = vmatpush1.bf16.xpose.msra.mxu1 %v9451_v52  ;;  %v4180_v58 = vpop.f32.mrb[0].mxu0  ;;  %6378 = vmatprep.mubr.bf16.mxu1 %v1727_v53  ;;  %v9461_v53 = vcombine.low %v814_v20, %v942_v21  ;;  %v1822_v20 = vcombine.high %v1800_v4, %v1800_v4 }
 0x186   : > { %v4182_v63 = vpop.f32.mrb[1].mxu0  ;;  %6426 = vmatprep.subr.bf16.mxu1 %v9456_v56 }
 0x187   : > { %v4183_v0 = vpop.f32.mrb[2].mxu0  ;;  %v4220_v1 = vpop.f32.mrb[0].mxu1  ;;  %v1824_v63 = vcombine.high %v1814_v45, %v1814_v45 }
 0x188   : > { %v4221_v5 = vadd.f32 %v4220_v1, %v4180_v58  ;;  %v4184_v6 = vpop.f32.mrb[3].mxu0  ;;  %v4222_v7 = vpop.f32.mrb[1].mxu1  ;;  %v1793_v0 = vcombine.high %v1791_v48, %v1791_v48 }
 0x189   : > { %v4223_v10 = vpop.f32.mrb[2].mxu1  ;;  %v818_v7 = vld [vmem:[%s10303_s6 + $0x200] sm:$0xff] }
 0x18a   : > { %v4224_v14 = vpop.f32.mrb[3].mxu1  ;;  %6339 = vmatmul.mubr.bf16.vlgmr.msra.gmra.mrb[108].mxu0 %v1709_v57  ;;  %v1821_v6 = vrot.slane %v1793_v0, %v10318_v22 }
 0x18b   : > { %6387 = vmatpush1.bf16.xpose.msra.mxu0 %v9453_v2  ;;  %6418 = vmatprep.mubr.bf16.mxu0 %v1765_v59  ;;  %v1774_v59 = vcombine.high %v1758_v43, %v1758_v43  ;;  %v9468_v2 = vcombine.high %v817_v54, %v945_v55  ;;  %v9465_v14 = vcombine.low %v816_v46, %v944_v47 }
 0x18c   : > { %6379 = vmatmul.mubr.bf16.vlgmr.msra.gmra.mrb[108].mxu1 %v1725_v8  ;;  %6466 = vmatprep.subr.bf16.mxu0 %v9458_v9  ;;  %v946_v8 = vld [vmem:[%s10303_s6 + $0x600] sm:$0xff]  ;;  %v1833_v9 = vrot.slane %v738_v3, %v10318_v22  ;;  %v1823_v46 = vcombine.high %v1807_v30, %v1807_v30 }
 0x18d   : > { %6427 = vmatpush1.bf16.xpose.msra.mxu1 %v9455_v11  ;;  %v4260_v18 = vpop.f32.mrb[4].mxu0  ;;  %6458 = vmatprep.mubr.bf16.mxu1 %v1775_v12  ;;  %v9470_v21 = vcombine.high %v818_v7, %v946_v8  ;;  %v9469_v40 = vcombine.low %v818_v7, %v946_v8 }
 0x18e   : > { %v4261_v24 = vadd.f32 %v4260_v18, %v4221_v5  ;;  %v4262_v25 = vpop.f32.mrb[5].mxu0  ;;  %6506 = vmatprep.subr.bf16.mxu1 %v9460_v15  ;;  %v819_v15 = vld [vmem:[%s10303_s6 + $0x208] sm:$0xff] }
 0x18f   : > { %v4263_v26 = vpop.f32.mrb[6].mxu0  ;;  %v4300_v27 = vpop.f32.mrb[4].mxu1  ;;  %v1825_v25 = vcombine.high %v1821_v6, %v1821_v6  ;;  %v9472_v29 = vcombine.high %v819_v15, %v947_v16 }
 0x190   : > { %v4301_v31 = vadd.f32 %v4300_v27, %v4261_v24  ;;  %v4264_v32 = vpop.f32.mrb[7].mxu0  ;;  %v4302_v33 = vpop.f32.mrb[5].mxu1  ;;  %v9467_v24 = vcombine.low %v817_v54, %v945_v55  ;;  %v1841_v26 = vcombine.high %v1833_v9, %v1833_v9  ;;  %v1826_v27 = vcombine.high %v738_v3, %v738_v3  ;;  %v739_v54 = vld [vmem:[%s10301_s5 + $0x88] sm:$0xff] }
 0x191   : > { %v4303_v36 = vpop.f32.mrb[6].mxu1  ;;  %v820_v33 = vld [vmem:[%s10303_s6 + $0x210] sm:$0xff]  ;;  %v1849_v55 = vrot.slane %v1833_v9, %v10318_v22  ;;  %v951_v3 = vld [vmem:[%s10303_s6 + $0x628] sm:$0xff] }
 0x192   : > { %v4304_v41 = vpop.f32.mrb[7].mxu1  ;;  %6419 = vmatmul.mubr.bf16.vlgmr.msra.gmra.mrb[112].mxu0 %v1751_v17  ;;  %v1863_v32 = vrot.slane %v1841_v26, %v10318_v22 }
 0x193   : > { %6467 = vmatpush1.bf16.xpose.msra.mxu0 %v9457_v28  ;;  %6498 = vmatprep.mubr.bf16.mxu0 %v1772_v19  ;;  %v821_v41 = vld [vmem:[%s10303_s6 + $0x218] sm:$0xff]  ;;  %v1871_v7 = vcombine.high %v1849_v55, %v1849_v55 }
 0x194   : > { %6459 = vmatmul.mubr.bf16.vlgmr.msra.gmra.mrb[112].mxu1 %v1773_v34  ;;  %6546 = vmatprep.subr.bf16.mxu0 %v9462_v35  ;;  %v948_v34 = vld [vmem:[%s10303_s6 + $0x610] sm:$0xff]  ;;  %v1840_v35 = vrot.slane %v1826_v27, %v10318_v22 }
 0x195   : > { %6507 = vmatpush1.bf16.xpose.msra.mxu1 %v9459_v37  ;;  %v4340_v44 = vpop.f32.mrb[8].mxu0  ;;  %6538 = vmatprep.mubr.bf16.mxu1 %v1776_v38  ;;  %v9474_v47 = vcombine.high %v820_v33, %v948_v34 }
 0x196   : > { %v4341_v49 = vadd.f32 %v4340_v44, %v4301_v31  ;;  %v4342_v50 = vpop.f32.mrb[9].mxu0  ;;  %6586 = vmatprep.subr.bf16.mxu1 %v9464_v42  ;;  %v949_v42 = vld [vmem:[%s10303_s6 + $0x618] sm:$0xff] }
 0x197   : > { %v4343_v51 = vpop.f32.mrb[10].mxu0  ;;  %v4380_v52 = vpop.f32.mrb[8].mxu1  ;;  %v1873_v50 = vcombine.high %v1863_v32, %v1863_v32 }
 0x198   : > { %v4381_v56 = vadd.f32 %v4380_v52, %v4341_v49  ;;  %v4344_v57 = vpop.f32.mrb[11].mxu0  ;;  %v4382_v58 = vpop.f32.mrb[9].mxu1  ;;  %v9471_v49 = vcombine.low %v819_v15, %v947_v16  ;;  %v1842_v51 = vcombine.high %v1840_v35, %v1840_v35  ;;  %v1856_v16 = vrot.slane %v1840_v35, %v10318_v22 }
 0x199   : > { %v4383_v61 = vpop.f32.mrb[10].mxu1  ;;  %v822_v58 = vld [vmem:[%s10303_s6 + $0x220] sm:$0xff] }
 0x19a   : > { %v4384_v1 = vpop.f32.mrb[11].mxu1  ;;  %6499 = vmatmul.mubr.bf16.vlgmr.msra.gmra.mrb[116].mxu0 %v1758_v43  ;;  %v1870_v57 = vrot.slane %v1842_v51, %v10318_v22 }
 0x19b   : > { %6547 = vmatpush1.bf16.xpose.msra.mxu0 %v9461_v53  ;;  %6578 = vmatprep.mubr.bf16.mxu0 %v1814_v45  ;;  %v9476_v53 = vcombine.high %v821_v41, %v949_v42  ;;  %v9473_v1 = vcombine.low %v820_v33, %v948_v34  ;;  %v1872_v33 = vcombine.high %v1856_v16, %v1856_v16 }
 0x19c   : > { %6539 = vmatmul.mubr.bf16.vlgmr.msra.gmra.mrb[116].mxu1 %v1774_v59  ;;  %6626 = vmatprep.subr.bf16.mxu0 %v9466_v60  ;;  %v950_v59 = vld [vmem:[%s10303_s6 + $0x620] sm:$0xff]  ;;  %v1882_v60 = vrot.slane %v739_v54, %v10318_v22 }
 0x19d   : > { %6587 = vmatpush1.bf16.xpose.msra.mxu1 %v9463_v62  ;;  %v4420_v5 = vpop.f32.mrb[12].mxu0  ;;  %6618 = vmatprep.mubr.bf16.mxu1 %v1824_v63  ;;  %v9478_v8 = vcombine.high %v822_v58, %v950_v59  ;;  %v9477_v27 = vcombine.low %v822_v58, %v950_v59 }
 0x19e   : > { %v4421_v10 = vadd.f32 %v4420_v5, %v4381_v56  ;;  %v4422_v11 = vpop.f32.mrb[13].mxu0  ;;  %6666 = vmatprep.subr.bf16.mxu1 %v9468_v2  ;;  %v823_v2 = vld [vmem:[%s10303_s6 + $0x228] sm:$0xff] }
 0x19f   : > { %v4423_v12 = vpop.f32.mrb[14].mxu0  ;;  %v4460_v13 = vpop.f32.mrb[12].mxu1  ;;  %v1874_v11 = vcombine.high %v1870_v57, %v1870_v57  ;;  %v9480_v15 = vcombine.high %v823_v2, %v951_v3 }
 0x1a0   : > { %v4461_v17 = vadd.f32 %v4460_v13, %v4421_v10  ;;  %v4424_v18 = vpop.f32.mrb[15].mxu0  ;;  %v4462_v19 = vpop.f32.mrb[13].mxu1  ;;  %v9475_v10 = vcombine.low %v821_v41, %v949_v42  ;;  %v1890_v12 = vcombine.high %v1882_v60, %v1882_v60  ;;  %v1875_v13 = vcombine.high %v739_v54, %v739_v54  ;;  %v740_v41 = vld [vmem:[%s10301_s5 + $0x90] sm:$0xff]  ;;  %v955_v54 = vld [vmem:[%s10303_s6 + $0x648] sm:$0xff] }
 0x1a1   : > { %v4463_v23 = vpop.f32.mrb[14].mxu1  ;;  %v824_v19 = vld [vmem:[%s10303_s6 + $0x230] sm:$0xff]  ;;  %v1898_v42 = vrot.slane %v1882_v60, %v10318_v22 }
 0x1a2   : > { %v4464_v28 = vpop.f32.mrb[15].mxu1  ;;  %6579 = vmatmul.mubr.bf16.vlgmr.msra.gmra.mrb[120].mxu0 %v1800_v4  ;;  %v1912_v18 = vrot.slane %v1890_v12, %v10318_v22 }
 0x1a3   : > { %6627 = vmatpush1.bf16.xpose.msra.mxu0 %v9465_v14  ;;  %6658 = vmatprep.mubr.bf16.mxu0 %v1821_v6  ;;  %v825_v28 = vld [vmem:[%s10303_s6 + $0x238] sm:$0xff]  ;;  %v1920_v58 = vcombine.high %v1898_v42, %v1898_v42 }
 0x1a4   : > { %6619 = vmatmul.mubr.bf16.vlgmr.msra.gmra.mrb[120].mxu1 %v1822_v20  ;;  %6706 = vmatprep.subr.bf16.mxu0 %v9470_v21  ;;  %v952_v20 = vld [vmem:[%s10303_s6 + $0x630] sm:$0xff]  ;;  %v1889_v21 = vrot.slane %v1875_v13, %v10318_v22 }
 0x1a5   : > { %6667 = vmatpush1.bf16.xpose.msra.mxu1 %v9467_v24  ;;  %v4500_v31 = vpop.f32.mrb[16].mxu0  ;;  %6698 = vmatprep.mubr.bf16.mxu1 %v1825_v25  ;;  %v9482_v34 = vcombine.high %v824_v19, %v952_v20 }
 0x1a6   : > { %v4501_v36 = vadd.f32 %v4500_v31, %v4461_v17  ;;  %v4502_v37 = vpop.f32.mrb[17].mxu0  ;;  %6746 = vmatprep.subr.bf16.mxu1 %v9472_v29  ;;  %v953_v29 = vld [vmem:[%s10303_s6 + $0x638] sm:$0xff] }
 0x1a7   : > { %v4503_v38 = vpop.f32.mrb[18].mxu0  ;;  %v4540_v39 = vpop.f32.mrb[16].mxu1  ;;  %v1922_v37 = vcombine.high %v1912_v18, %v1912_v18 }
 0x1a8   : > { %v4541_v43 = vadd.f32 %v4540_v39, %v4501_v36  ;;  %v4504_v44 = vpop.f32.mrb[19].mxu0  ;;  %v4542_v45 = vpop.f32.mrb[17].mxu1  ;;  %v9479_v36 = vcombine.low %v823_v2, %v951_v3  ;;  %v1891_v38 = vcombine.high %v1889_v21, %v1889_v21  ;;  %v1905_v3 = vrot.slane %v1889_v21, %v10318_v22 }
 0x1a9   : > { %v4543_v48 = vpop.f32.mrb[18].mxu1  ;;  %v826_v45 = vld [vmem:[%s10303_s6 + $0x240] sm:$0xff] }
 0x1aa   : > { %v4544_v52 = vpop.f32.mrb[19].mxu1  ;;  %6659 = vmatmul.mubr.bf16.vlgmr.msra.gmra.mrb[124].mxu0 %v1807_v30  ;;  %v1919_v44 = vrot.slane %v1891_v38, %v10318_v22 }
 0x1ab   : > { %6707 = vmatpush1.bf16.xpose.msra.mxu0 %v9469_v40  ;;  %6738 = vmatprep.mubr.bf16.mxu0 %v1863_v32  ;;  %v9484_v40 = vcombine.high %v825_v28, %v953_v29  ;;  %v9481_v52 = vcombine.low %v824_v19, %v952_v20  ;;  %v1921_v19 = vcombine.high %v1905_v3, %v1905_v3 }
 0x1ac   : > { %6699 = vmatmul.mubr.bf16.vlgmr.msra.gmra.mrb[124].mxu1 %v1823_v46  ;;  %6786 = vmatprep.subr.bf16.mxu0 %v9474_v47  ;;  %v954_v46 = vld [vmem:[%s10303_s6 + $0x640] sm:$0xff]  ;;  %v1931_v47 = vrot.slane %v740_v41, %v10318_v22 }
 0x1ad   : > { %6747 = vmatpush1.bf16.xpose.msra.mxu1 %v9471_v49  ;;  %v4580_v56 = vpop.f32.mrb[20].mxu0  ;;  %6778 = vmatprep.mubr.bf16.mxu1 %v1873_v50  ;;  %v9486_v59 = vcombine.high %v826_v45, %v954_v46  ;;  %v9485_v13 = vcombine.low %v826_v45, %v954_v46 }
 0x1ae   : > { %v4581_v61 = vadd.f32 %v4580_v56, %v4541_v43  ;;  %v4582_v62 = vpop.f32.mrb[21].mxu0  ;;  %6826 = vmatprep.subr.bf16.mxu1 %v9476_v53  ;;  %v827_v53 = vld [vmem:[%s10303_s6 + $0x248] sm:$0xff] }
 0x1af   : > { %v4583_v63 = vpop.f32.mrb[22].mxu0  ;;  %v4620_v0 = vpop.f32.mrb[20].mxu1  ;;  %v1923_v62 = vcombine.high %v1919_v44, %v1919_v44  ;;  %v9488_v2 = vcombine.high %v827_v53, %v955_v54 }
 0x1b0   : > { %v4621_v4 = vadd.f32 %v4620_v0, %v4581_v61  ;;  %v4584_v5 = vpop.f32.mrb[23].mxu0  ;;  %v4622_v6 = vpop.f32.mrb[21].mxu1  ;;  %v9483_v61 = vcombine.low %v825_v28, %v953_v29  ;;  %v1939_v63 = vcombine.high %v1931_v47, %v1931_v47  ;;  %v1924_v0 = vcombine.high %v740_v41, %v740_v41  ;;  %v741_v28 = vld [vmem:[%s10301_s5 + $0x98] sm:$0xff]  ;;  %v959_v41 = vld [vmem:[%s10303_s6 + $0x668] sm:$0xff] }
 0x1b1   : > { %v4623_v9 = vpop.f32.mrb[22].mxu1  ;;  %v828_v6 = vld [vmem:[%s10303_s6 + $0x250] sm:$0xff]  ;;  %v1947_v29 = vrot.slane %v1931_v47, %v10318_v22 }
 0x1b2   : > { %v4624_v14 = vpop.f32.mrb[23].mxu1  ;;  %6739 = vmatmul.mubr.bf16.vlgmr.msra.gmra.mrb[128].mxu0 %v1849_v55  ;;  %v1961_v5 = vrot.slane %v1939_v63, %v10318_v22 }
 0x1b3   : > { %6787 = vmatpush1.bf16.xpose.msra.mxu0 %v9473_v1  ;;  %6818 = vmatprep.mubr.bf16.mxu0 %v1870_v57  ;;  %v829_v14 = vld [vmem:[%s10303_s6 + $0x258] sm:$0xff]  ;;  %v1969_v45 = vcombine.high %v1947_v29, %v1947_v29 }
 0x1b4   : > { %6779 = vmatmul.mubr.bf16.vlgmr.msra.gmra.mrb[128].mxu1 %v1871_v7  ;;  %6866 = vmatprep.subr.bf16.mxu0 %v9478_v8  ;;  %v956_v7 = vld [vmem:[%s10303_s6 + $0x650] sm:$0xff]  ;;  %v1938_v8 = vrot.slane %v1924_v0, %v10318_v22 }
 0x1b5   : > { %6827 = vmatpush1.bf16.xpose.msra.mxu1 %v9475_v10  ;;  %v4660_v17 = vpop.f32.mrb[24].mxu0  ;;  %6858 = vmatprep.mubr.bf16.mxu1 %v1874_v11  ;;  %v9490_v20 = vcombine.high %v828_v6, %v956_v7 }
 0x1b6   : > { %v4661_v23 = vadd.f32 %v4660_v17, %v4621_v4  ;;  %v4662_v24 = vpop.f32.mrb[25].mxu0  ;;  %6906 = vmatprep.subr.bf16.mxu1 %v9480_v15  ;;  %v957_v15 = vld [vmem:[%s10303_s6 + $0x658] sm:$0xff] }
 0x1b7   : > { %v4663_v25 = vpop.f32.mrb[26].mxu0  ;;  %v4700_v26 = vpop.f32.mrb[24].mxu1  ;;  %v1971_v24 = vcombine.high %v1961_v5, %v1961_v5 }
 0x1b8   : > { %v4701_v30 = vadd.f32 %v4700_v26, %v4661_v23  ;;  %v4664_v31 = vpop.f32.mrb[27].mxu0  ;;  %v4702_v32 = vpop.f32.mrb[25].mxu1  ;;  %v9487_v23 = vcombine.low %v827_v53, %v955_v54  ;;  %v1940_v25 = vcombine.high %v1938_v8, %v1938_v8  ;;  %v1954_v54 = vrot.slane %v1938_v8, %v10318_v22 }
 0x1b9   : > { %v4703_v35 = vpop.f32.mrb[26].mxu1  ;;  %v830_v32 = vld [vmem:[%s10303_s6 + $0x260] sm:$0xff] }
 0x1ba   : > { %v4704_v39 = vpop.f32.mrb[27].mxu1  ;;  %6819 = vmatmul.mubr.bf16.vlgmr.msra.gmra.mrb[132].mxu0 %v1856_v16  ;;  %v1968_v31 = vrot.slane %v1940_v25, %v10318_v22 }
 0x1bb   : > { %6867 = vmatpush1.bf16.xpose.msra.mxu0 %v9477_v27  ;;  %6898 = vmatprep.mubr.bf16.mxu0 %v1912_v18  ;;  %v9492_v27 = vcombine.high %v829_v14, %v957_v15  ;;  %v9489_v39 = vcombine.low %v828_v6, %v956_v7  ;;  %v1970_v6 = vcombine.high %v1954_v54, %v1954_v54 }
 0x1bc   : > { %6859 = vmatmul.mubr.bf16.vlgmr.msra.gmra.mrb[132].mxu1 %v1872_v33  ;;  %6946 = vmatprep.subr.bf16.mxu0 %v9482_v34  ;;  %v958_v33 = vld [vmem:[%s10303_s6 + $0x660] sm:$0xff]  ;;  %v1980_v34 = vrot.slane %v741_v28, %v10318_v22 }
 0x1bd   : > { %6907 = vmatpush1.bf16.xpose.msra.mxu1 %v9479_v36  ;;  %v4740_v43 = vpop.f32.mrb[28].mxu0  ;;  %6938 = vmatprep.mubr.bf16.mxu1 %v1922_v37  ;;  %v9494_v46 = vcombine.high %v830_v32, %v958_v33  ;;  %v9493_v0 = vcombine.low %v830_v32, %v958_v33 }
 0x1be   : > { %v4741_v48 = vadd.f32 %v4740_v43, %v4701_v30  ;;  %v4742_v49 = vpop.f32.mrb[29].mxu0  ;;  %6986 = vmatprep.subr.bf16.mxu1 %v9484_v40  ;;  %v831_v40 = vld [vmem:[%s10303_s6 + $0x268] sm:$0xff] }
 0x1bf   : > { %v4743_v50 = vpop.f32.mrb[30].mxu0  ;;  %v4780_v51 = vpop.f32.mrb[28].mxu1  ;;  %v1972_v49 = vcombine.high %v1968_v31, %v1968_v31  ;;  %v9496_v53 = vcombine.high %v831_v40, %v959_v41 }
 0x1c0   : > { %v4781_v55 = vadd.f32 %v4780_v51, %v4741_v48  ;;  %v4744_v56 = vpop.f32.mrb[31].mxu0  ;;  %v4782_v57 = vpop.f32.mrb[29].mxu1  ;;  %v9491_v48 = vcombine.low %v829_v14, %v957_v15  ;;  %v1988_v50 = vcombine.high %v1980_v34, %v1980_v34  ;;  %v1973_v51 = vcombine.high %v741_v28, %v741_v28  ;;  %v742_v14 = vld [vmem:[%s10301_s5 + $0xa0] sm:$0xff]  ;;  %v963_v28 = vld [vmem:[%s10303_s6 + $0x688] sm:$0xff] }
 0x1c1   : > { %v4783_v60 = vpop.f32.mrb[30].mxu1  ;;  %v832_v57 = vld [vmem:[%s10303_s6 + $0x270] sm:$0xff]  ;;  %v1996_v15 = vrot.slane %v1980_v34, %v10318_v22 }
 0x1c2   : > { %v4784_v1 = vpop.f32.mrb[31].mxu1  ;;  %6899 = vmatmul.mubr.bf16.vlgmr.msra.gmra.mrb[136].mxu0 %v1898_v42  ;;  %v2010_v56 = vrot.slane %v1988_v50, %v10318_v22 }
 0x1c3   : > { %6947 = vmatpush1.bf16.xpose.msra.mxu0 %v9481_v52  ;;  %6978 = vmatprep.mubr.bf16.mxu0 %v1919_v44  ;;  %v833_v1 = vld [vmem:[%s10303_s6 + $0x278] sm:$0xff]  ;;  %v2018_v32 = vcombine.high %v1996_v15, %v1996_v15 }
 0x1c4   : > { %6939 = vmatmul.mubr.bf16.vlgmr.msra.gmra.mrb[136].mxu1 %v1920_v58  ;;  %7026 = vmatprep.subr.bf16.mxu0 %v9486_v59  ;;  %v960_v58 = vld [vmem:[%s10303_s6 + $0x670] sm:$0xff]  ;;  %v1987_v59 = vrot.slane %v1973_v51, %v10318_v22 }
 0x1c5   : > { %6987 = vmatpush1.bf16.xpose.msra.mxu1 %v9483_v61  ;;  %v4820_v4 = vpop.f32.mrb[32].mxu0  ;;  %7018 = vmatprep.mubr.bf16.mxu1 %v1923_v62  ;;  %v9498_v7 = vcombine.high %v832_v57, %v960_v58 }
 0x1c6   : > { %v4821_v9 = vadd.f32 %v4820_v4, %v4781_v55  ;;  %v4822_v10 = vpop.f32.mrb[33].mxu0  ;;  %7066 = vmatprep.subr.bf16.mxu1 %v9488_v2  ;;  %v961_v2 = vld [vmem:[%s10303_s6 + $0x678] sm:$0xff] }
 0x1c7   : > { %v4823_v11 = vpop.f32.mrb[34].mxu0  ;;  %v4860_v12 = vpop.f32.mrb[32].mxu1  ;;  %v2020_v10 = vcombine.high %v2010_v56, %v2010_v56 }
 0x1c8   : > { %v4861_v16 = vadd.f32 %v4860_v12, %v4821_v9  ;;  %v4824_v17 = vpop.f32.mrb[35].mxu0  ;;  %v4862_v18 = vpop.f32.mrb[33].mxu1  ;;  %v9495_v9 = vcombine.low %v831_v40, %v959_v41  ;;  %v1989_v11 = vcombine.high %v1987_v59, %v1987_v59  ;;  %v2003_v41 = vrot.slane %v1987_v59, %v10318_v22 }
 0x1c9   : > { %v4863_v21 = vpop.f32.mrb[34].mxu1  ;;  %v834_v18 = vld [vmem:[%s10303_s6 + $0x280] sm:$0xff] }
 0x1ca   : > { %v4864_v26 = vpop.f32.mrb[35].mxu1  ;;  %6979 = vmatmul.mubr.bf16.vlgmr.msra.gmra.mrb[140].mxu0 %v1905_v3  ;;  %v2017_v17 = vrot.slane %v1989_v11, %v10318_v22 }
 0x1cb   : > { %7027 = vmatpush1.bf16.xpose.msra.mxu0 %v9485_v13  ;;  %7058 = vmatprep.mubr.bf16.mxu0 %v1961_v5  ;;  %v9500_v13 = vcombine.high %v833_v1, %v961_v2  ;;  %v9497_v26 = vcombine.low %v832_v57, %v960_v58  ;;  %v2019_v57 = vcombine.high %v2003_v41, %v2003_v41 }
 0x1cc   : > { %7019 = vmatmul.mubr.bf16.vlgmr.msra.gmra.mrb[140].mxu1 %v1921_v19  ;;  %7106 = vmatprep.subr.bf16.mxu0 %v9490_v20  ;;  %v962_v19 = vld [vmem:[%s10303_s6 + $0x680] sm:$0xff]  ;;  %v2029_v20 = vrot.slane %v742_v14, %v10318_v22 }
 0x1cd   : > { %7067 = vmatpush1.bf16.xpose.msra.mxu1 %v9487_v23  ;;  %v4900_v30 = vpop.f32.mrb[36].mxu0  ;;  %7098 = vmatprep.mubr.bf16.mxu1 %v1971_v24  ;;  %v9502_v33 = vcombine.high %v834_v18, %v962_v19  ;;  %v9501_v51 = vcombine.low %v834_v18, %v962_v19 }
 0x1ce   : > { %v4901_v35 = vadd.f32 %v4900_v30, %v4861_v16  ;;  %v4902_v36 = vpop.f32.mrb[37].mxu0  ;;  %7146 = vmatprep.subr.bf16.mxu1 %v9492_v27  ;;  %v835_v27 = vld [vmem:[%s10303_s6 + $0x288] sm:$0xff] }
 0x1cf   : > { %v4903_v37 = vpop.f32.mrb[38].mxu0  ;;  %v4940_v38 = vpop.f32.mrb[36].mxu1  ;;  %v2021_v36 = vcombine.high %v2017_v17, %v2017_v17  ;;  %v9504_v40 = vcombine.high %v835_v27, %v963_v28 }
 0x1d0   : > { %v4941_v42 = vadd.f32 %v4940_v38, %v4901_v35  ;;  %v4904_v43 = vpop.f32.mrb[39].mxu0  ;;  %v4942_v44 = vpop.f32.mrb[37].mxu1  ;;  %v9499_v35 = vcombine.low %v833_v1, %v961_v2  ;;  %v2037_v37 = vcombine.high %v2029_v20, %v2029_v20  ;;  %v2022_v38 = vcombine.high %v742_v14, %v742_v14  ;;  %v743_v1 = vld [vmem:[%s10301_s5 + $0xa8] sm:$0xff] }
 0x1d1   : > { %v4943_v47 = vpop.f32.mrb[38].mxu1  ;;  %v836_v44 = vld [vmem:[%s10303_s6 + $0x290] sm:$0xff]  ;;  %v2045_v2 = vrot.slane %v2029_v20, %v10318_v22  ;;  %v967_v14 = vld [vmem:[%s10303_s6 + $0x6a8] sm:$0xff] }
 0x1d2   : > { %v4944_v52 = vpop.f32.mrb[39].mxu1  ;;  %7059 = vmatmul.mubr.bf16.vlgmr.msra.gmra.mrb[144].mxu0 %v1947_v29  ;;  %v2059_v43 = vrot.slane %v2037_v37, %v10318_v22 }
 0x1d3   : > { %7107 = vmatpush1.bf16.xpose.msra.mxu0 %v9489_v39  ;;  %7138 = vmatprep.mubr.bf16.mxu0 %v1968_v31  ;;  %v837_v52 = vld [vmem:[%s10303_s6 + $0x298] sm:$0xff]  ;;  %v2067_v18 = vcombine.high %v2045_v2, %v2045_v2 }
 0x1d4   : > { %7099 = vmatmul.mubr.bf16.vlgmr.msra.gmra.mrb[144].mxu1 %v1969_v45  ;;  %7186 = vmatprep.subr.bf16.mxu0 %v9494_v46  ;;  %v964_v45 = vld [vmem:[%s10303_s6 + $0x690] sm:$0xff]  ;;  %v2036_v46 = vrot.slane %v2022_v38, %v10318_v22 }
 0x1d5   : > { %7147 = vmatpush1.bf16.xpose.msra.mxu1 %v9491_v48  ;;  %v4980_v55 = vpop.f32.mrb[40].mxu0  ;;  %7178 = vmatprep.mubr.bf16.mxu1 %v1972_v49  ;;  %v9506_v58 = vcombine.high %v836_v44, %v964_v45 }
 0x1d6   : > { %v4981_v60 = vadd.f32 %v4980_v55, %v4941_v42  ;;  %v4982_v61 = vpop.f32.mrb[41].mxu0  ;;  %7226 = vmatprep.subr.bf16.mxu1 %v9496_v53  ;;  %v965_v53 = vld [vmem:[%s10303_s6 + $0x698] sm:$0xff] }
 0x1d7   : > { %v4983_v62 = vpop.f32.mrb[42].mxu0  ;;  %v5020_v63 = vpop.f32.mrb[40].mxu1  ;;  %v2069_v61 = vcombine.high %v2059_v43, %v2059_v43 }
 0x1d8   : > { %v5021_v3 = vadd.f32 %v5020_v63, %v4981_v60  ;;  %v4984_v4 = vpop.f32.mrb[43].mxu0  ;;  %v5022_v5 = vpop.f32.mrb[41].mxu1  ;;  %v9503_v60 = vcombine.low %v835_v27, %v963_v28  ;;  %v2038_v62 = vcombine.high %v2036_v46, %v2036_v46  ;;  %v2052_v28 = vrot.slane %v2036_v46, %v10318_v22 }
 0x1d9   : > { %v5023_v8 = vpop.f32.mrb[42].mxu1  ;;  %v838_v5 = vld [vmem:[%s10303_s6 + $0x2a0] sm:$0xff] }
 0x1da   : > { %v5024_v12 = vpop.f32.mrb[43].mxu1  ;;  %7139 = vmatmul.mubr.bf16.vlgmr.msra.gmra.mrb[148].mxu0 %v1954_v54  ;;  %v2066_v4 = vrot.slane %v2038_v62, %v10318_v22 }
 0x1db   : > { %7187 = vmatpush1.bf16.xpose.msra.mxu0 %v9493_v0  ;;  %7218 = vmatprep.mubr.bf16.mxu0 %v2010_v56  ;;  %v9508_v0 = vcombine.high %v837_v52, %v965_v53  ;;  %v9505_v12 = vcombine.low %v836_v44, %v964_v45  ;;  %v2068_v44 = vcombine.high %v2052_v28, %v2052_v28 }
 0x1dc   : > { %7179 = vmatmul.mubr.bf16.vlgmr.msra.gmra.mrb[148].mxu1 %v1970_v6  ;;  %7266 = vmatprep.subr.bf16.mxu0 %v9498_v7  ;;  %v966_v6 = vld [vmem:[%s10303_s6 + $0x6a0] sm:$0xff]  ;;  %v2078_v7 = vrot.slane %v743_v1, %v10318_v22 }
 0x1dd   : > { %7227 = vmatpush1.bf16.xpose.msra.mxu1 %v9495_v9  ;;  %v5060_v16 = vpop.f32.mrb[44].mxu0  ;;  %7258 = vmatprep.mubr.bf16.mxu1 %v2020_v10  ;;  %v9510_v19 = vcombine.high %v838_v5, %v966_v6  ;;  %v9509_v38 = vcombine.low %v838_v5, %v966_v6 }
 0x1de   : > { %v5061_v21 = vadd.f32 %v5060_v16, %v5021_v3  ;;  %v5062_v23 = vpop.f32.mrb[45].mxu0  ;;  %7306 = vmatprep.subr.bf16.mxu1 %v9500_v13  ;;  %v839_v13 = vld [vmem:[%s10303_s6 + $0x2a8] sm:$0xff] }
 0x1df   : > { %v5063_v24 = vpop.f32.mrb[46].mxu0  ;;  %v5100_v25 = vpop.f32.mrb[44].mxu1  ;;  %v2070_v23 = vcombine.high %v2066_v4, %v2066_v4  ;;  %v9512_v27 = vcombine.high %v839_v13, %v967_v14 }
 0x1e0   : > { %v5101_v29 = vadd.f32 %v5100_v25, %v5061_v21  ;;  %v5064_v30 = vpop.f32.mrb[47].mxu0  ;;  %v5102_v31 = vpop.f32.mrb[45].mxu1  ;;  %v9507_v21 = vcombine.low %v837_v52, %v965_v53  ;;  %v2086_v24 = vcombine.high %v2078_v7, %v2078_v7  ;;  %v2071_v25 = vcombine.high %v743_v1, %v743_v1  ;;  %v744_v52 = vld [vmem:[%s10301_s5 + $0xb0] sm:$0xff]  ;;  %v971_v1 = vld [vmem:[%s10303_s6 + $0x6c8] sm:$0xff] }
 0x1e1   : > { %v5103_v34 = vpop.f32.mrb[46].mxu1  ;;  %v840_v31 = vld [vmem:[%s10303_s6 + $0x2b0] sm:$0xff]  ;;  %v2094_v53 = vrot.slane %v2078_v7, %v10318_v22 }
 0x1e2   : > { %v5104_v39 = vpop.f32.mrb[47].mxu1  ;;  %7219 = vmatmul.mubr.bf16.vlgmr.msra.gmra.mrb[152].mxu0 %v1996_v15  ;;  %v2108_v30 = vrot.slane %v2086_v24, %v10318_v22 }
 0x1e3   : > { %7267 = vmatpush1.bf16.xpose.msra.mxu0 %v9497_v26  ;;  %7298 = vmatprep.mubr.bf16.mxu0 %v2017_v17  ;;  %v841_v39 = vld [vmem:[%s10303_s6 + $0x2b8] sm:$0xff]  ;;  %v2116_v5 = vcombine.high %v2094_v53, %v2094_v53 }
 0x1e4   : > { %7259 = vmatmul.mubr.bf16.vlgmr.msra.gmra.mrb[152].mxu1 %v2018_v32  ;;  %7346 = vmatprep.subr.bf16.mxu0 %v9502_v33  ;;  %v968_v32 = vld [vmem:[%s10303_s6 + $0x6b0] sm:$0xff]  ;;  %v2085_v33 = vrot.slane %v2071_v25, %v10318_v22 }
 0x1e5   : > { %7307 = vmatpush1.bf16.xpose.msra.mxu1 %v9499_v35  ;;  %v5140_v42 = vpop.f32.mrb[48].mxu0  ;;  %7338 = vmatprep.mubr.bf16.mxu1 %v2021_v36  ;;  %v9514_v45 = vcombine.high %v840_v31, %v968_v32 }
 0x1e6   : > { %v5141_v47 = vadd.f32 %v5140_v42, %v5101_v29  ;;  %v5142_v48 = vpop.f32.mrb[49].mxu0  ;;  %7386 = vmatprep.subr.bf16.mxu1 %v9504_v40  ;;  %v969_v40 = vld [vmem:[%s10303_s6 + $0x6b8] sm:$0xff] }
 0x1e7   : > { %v5143_v49 = vpop.f32.mrb[50].mxu0  ;;  %v5180_v50 = vpop.f32.mrb[48].mxu1  ;;  %v2118_v48 = vcombine.high %v2108_v30, %v2108_v30 }
 0x1e8   : > { %v5181_v54 = vadd.f32 %v5180_v50, %v5141_v47  ;;  %v5144_v55 = vpop.f32.mrb[51].mxu0  ;;  %v5182_v56 = vpop.f32.mrb[49].mxu1  ;;  %v9511_v47 = vcombine.low %v839_v13, %v967_v14  ;;  %v2087_v49 = vcombine.high %v2085_v33, %v2085_v33  ;;  %v2101_v14 = vrot.slane %v2085_v33, %v10318_v22 }
 0x1e9   : > { %v5183_v59 = vpop.f32.mrb[50].mxu1  ;;  %v842_v56 = vld [vmem:[%s10303_s6 + $0x2c0] sm:$0xff] }
 0x1ea   : > { %v5184_v63 = vpop.f32.mrb[51].mxu1  ;;  %7299 = vmatmul.mubr.bf16.vlgmr.msra.gmra.mrb[156].mxu0 %v2003_v41  ;;  %v2115_v55 = vrot.slane %v2087_v49, %v10318_v22 }
 0x1eb   : > { %7347 = vmatpush1.bf16.xpose.msra.mxu0 %v9501_v51  ;;  %7378 = vmatprep.mubr.bf16.mxu0 %v2059_v43  ;;  %v9516_v51 = vcombine.high %v841_v39, %v969_v40  ;;  %v9513_v63 = vcombine.low %v840_v31, %v968_v32  ;;  %v2117_v31 = vcombine.high %v2101_v14, %v2101_v14 }
 0x1ec   : > { %7339 = vmatmul.mubr.bf16.vlgmr.msra.gmra.mrb[156].mxu1 %v2019_v57  ;;  %7426 = vmatprep.subr.bf16.mxu0 %v9506_v58  ;;  %v970_v57 = vld [vmem:[%s10303_s6 + $0x6c0] sm:$0xff]  ;;  %v2127_v58 = vrot.slane %v744_v52, %v10318_v22 }
 0x1ed   : > { %7387 = vmatpush1.bf16.xpose.msra.mxu1 %v9503_v60  ;;  %v5220_v3 = vpop.f32.mrb[52].mxu0  ;;  %7418 = vmatprep.mubr.bf16.mxu1 %v2069_v61  ;;  %v9518_v6 = vcombine.high %v842_v56, %v970_v57  ;;  %v9517_v25 = vcombine.low %v842_v56, %v970_v57 }
 0x1ee   : > { %v5221_v8 = vadd.f32 %v5220_v3, %v5181_v54  ;;  %v5222_v9 = vpop.f32.mrb[53].mxu0  ;;  %7466 = vmatprep.subr.bf16.mxu1 %v9508_v0  ;;  %v843_v0 = vld [vmem:[%s10303_s6 + $0x2c8] sm:$0xff] }
 0x1ef   : > { %v5223_v10 = vpop.f32.mrb[54].mxu0  ;;  %v5260_v11 = vpop.f32.mrb[52].mxu1  ;;  %v2119_v9 = vcombine.high %v2115_v55, %v2115_v55  ;;  %v9520_v13 = vcombine.high %v843_v0, %v971_v1 }
 0x1f0   : > { %v5261_v15 = vadd.f32 %v5260_v11, %v5221_v8  ;;  %v5224_v16 = vpop.f32.mrb[55].mxu0  ;;  %v5262_v17 = vpop.f32.mrb[53].mxu1  ;;  %v9515_v8 = vcombine.low %v841_v39, %v969_v40  ;;  %v2135_v10 = vcombine.high %v2127_v58, %v2127_v58  ;;  %v2120_v11 = vcombine.high %v744_v52, %v744_v52  ;;  %v745_v39 = vld [vmem:[%s10301_s5 + $0xb8] sm:$0xff]  ;;  %v975_v52 = vld [vmem:[%s10303_s6 + $0x6e8] sm:$0xff] }
 0x1f1   : > { %v5263_v20 = vpop.f32.mrb[54].mxu1  ;;  %v844_v17 = vld [vmem:[%s10303_s6 + $0x2d0] sm:$0xff]  ;;  %v2143_v40 = vrot.slane %v2127_v58, %v10318_v22 }
 0x1f2   : > { %v5264_v26 = vpop.f32.mrb[55].mxu1  ;;  %7379 = vmatmul.mubr.bf16.vlgmr.msra.gmra.mrb[160].mxu0 %v2045_v2  ;;  %v2157_v16 = vrot.slane %v2135_v10, %v10318_v22 }
 0x1f3   : > { %7427 = vmatpush1.bf16.xpose.msra.mxu0 %v9505_v12  ;;  %7458 = vmatprep.mubr.bf16.mxu0 %v2066_v4  ;;  %v845_v26 = vld [vmem:[%s10303_s6 + $0x2d8] sm:$0xff]  ;;  %v2165_v56 = vcombine.high %v2143_v40, %v2143_v40 }
 0x1f4   : > { %7419 = vmatmul.mubr.bf16.vlgmr.msra.gmra.mrb[160].mxu1 %v2067_v18  ;;  %7506 = vmatprep.subr.bf16.mxu0 %v9510_v19  ;;  %v972_v18 = vld [vmem:[%s10303_s6 + $0x6d0] sm:$0xff]  ;;  %v2134_v19 = vrot.slane %v2120_v11, %v10318_v22 }
 0x1f5   : > { %7467 = vmatpush1.bf16.xpose.msra.mxu1 %v9507_v21  ;;  %v5300_v29 = vpop.f32.mrb[56].mxu0  ;;  %7498 = vmatprep.mubr.bf16.mxu1 %v2070_v23  ;;  %v9522_v32 = vcombine.high %v844_v17, %v972_v18 }
 0x1f6   : > { %v5301_v34 = vadd.f32 %v5300_v29, %v5261_v15  ;;  %v5302_v35 = vpop.f32.mrb[57].mxu0  ;;  %7546 = vmatprep.subr.bf16.mxu1 %v9512_v27  ;;  %v973_v27 = vld [vmem:[%s10303_s6 + $0x6d8] sm:$0xff] }
 0x1f7   : > { %v5303_v36 = vpop.f32.mrb[58].mxu0  ;;  %v5340_v37 = vpop.f32.mrb[56].mxu1  ;;  %v2167_v35 = vcombine.high %v2157_v16, %v2157_v16 }
 0x1f8   : > { %v5341_v41 = vadd.f32 %v5340_v37, %v5301_v34  ;;  %v5304_v42 = vpop.f32.mrb[59].mxu0  ;;  %v5342_v43 = vpop.f32.mrb[57].mxu1  ;;  %v9519_v34 = vcombine.low %v843_v0, %v971_v1  ;;  %v2136_v36 = vcombine.high %v2134_v19, %v2134_v19  ;;  %v2150_v1 = vrot.slane %v2134_v19, %v10318_v22 }
 0x1f9   : > { %v5343_v46 = vpop.f32.mrb[58].mxu1  ;;  %v846_v43 = vld [vmem:[%s10303_s6 + $0x2e0] sm:$0xff] }
 0x1fa   : > { %v5344_v50 = vpop.f32.mrb[59].mxu1  ;;  %7459 = vmatmul.mubr.bf16.vlgmr.msra.gmra.mrb[164].mxu0 %v2052_v28  ;;  %v2164_v42 = vrot.slane %v2136_v36, %v10318_v22 }
 0x1fb   : > { %7507 = vmatpush1.bf16.xpose.msra.mxu0 %v9509_v38  ;;  %7538 = vmatprep.mubr.bf16.mxu0 %v2108_v30  ;;  %v9524_v38 = vcombine.high %v845_v26, %v973_v27  ;;  %v9521_v50 = vcombine.low %v844_v17, %v972_v18  ;;  %v2166_v17 = vcombine.high %v2150_v1, %v2150_v1 }
 0x1fc   : > { %7499 = vmatmul.mubr.bf16.vlgmr.msra.gmra.mrb[164].mxu1 %v2068_v44  ;;  %7586 = vmatprep.subr.bf16.mxu0 %v9514_v45  ;;  %v974_v44 = vld [vmem:[%s10303_s6 + $0x6e0] sm:$0xff]  ;;  %v2176_v45 = vrot.slane %v745_v39, %v10318_v22 }
 0x1fd   : > { %7547 = vmatpush1.bf16.xpose.msra.mxu1 %v9511_v47  ;;  %v5380_v54 = vpop.f32.mrb[60].mxu0  ;;  %7578 = vmatprep.mubr.bf16.mxu1 %v2118_v48  ;;  %v9526_v57 = vcombine.high %v846_v43, %v974_v44  ;;  %v9525_v11 = vcombine.low %v846_v43, %v974_v44 }
 0x1fe   : > { %v5381_v59 = vadd.f32 %v5380_v54, %v5341_v41  ;;  %v5382_v60 = vpop.f32.mrb[61].mxu0  ;;  %7626 = vmatprep.subr.bf16.mxu1 %v9516_v51  ;;  %v847_v51 = vld [vmem:[%s10303_s6 + $0x2e8] sm:$0xff] }
 0x1ff   : > { %v5383_v61 = vpop.f32.mrb[62].mxu0  ;;  %v5420_v62 = vpop.f32.mrb[60].mxu1  ;;  %v2168_v60 = vcombine.high %v2164_v42, %v2164_v42  ;;  %v9528_v0 = vcombine.high %v847_v51, %v975_v52 }
 0x200   : > { %v5421_v2 = vadd.f32 %v5420_v62, %v5381_v59  ;;  %v5384_v3 = vpop.f32.mrb[63].mxu0  ;;  %v5422_v4 = vpop.f32.mrb[61].mxu1  ;;  %v9523_v59 = vcombine.low %v845_v26, %v973_v27  ;;  %v2184_v61 = vcombine.high %v2176_v45, %v2176_v45  ;;  %v2169_v62 = vcombine.high %v745_v39, %v745_v39  ;;  %v746_v26 = vld [vmem:[%s10301_s5 + $0xc0] sm:$0xff]  ;;  %v979_v39 = vld [vmem:[%s10303_s6 + $0x708] sm:$0xff] }
 0x201   : > { %v5423_v7 = vpop.f32.mrb[62].mxu1  ;;  %v848_v4 = vld [vmem:[%s10303_s6 + $0x2f0] sm:$0xff]  ;;  %v2192_v27 = vrot.slane %v2176_v45, %v10318_v22 }
 0x202   : > { %v5424_v12 = vpop.f32.mrb[63].mxu1  ;;  %7539 = vmatmul.mubr.bf16.vlgmr.msra.gmra.mrb[168].mxu0 %v2094_v53  ;;  %v2206_v3 = vrot.slane %v2184_v61, %v10318_v22 }
 0x203   : > { %7587 = vmatpush1.bf16.xpose.msra.mxu0 %v9513_v63  ;;  %7618 = vmatprep.mubr.bf16.mxu0 %v2115_v55  ;;  %v849_v12 = vld [vmem:[%s10303_s6 + $0x2f8] sm:$0xff]  ;;  %v2214_v43 = vcombine.high %v2192_v27, %v2192_v27 }
 0x204   : > { %7579 = vmatmul.mubr.bf16.vlgmr.msra.gmra.mrb[168].mxu1 %v2116_v5  ;;  %7666 = vmatprep.subr.bf16.mxu0 %v9518_v6  ;;  %v976_v5 = vld [vmem:[%s10303_s6 + $0x6f0] sm:$0xff]  ;;  %v2183_v6 = vrot.slane %v2169_v62, %v10318_v22 }
 0x205   : > { %7627 = vmatpush1.bf16.xpose.msra.mxu1 %v9515_v8  ;;  %v5460_v15 = vpop.f32.mrb[64].mxu0  ;;  %7658 = vmatprep.mubr.bf16.mxu1 %v2119_v9  ;;  %v9530_v18 = vcombine.high %v848_v4, %v976_v5 }
 0x206   : > { %v5461_v20 = vadd.f32 %v5460_v15, %v5421_v2  ;;  %v5462_v21 = vpop.f32.mrb[65].mxu0  ;;  %7706 = vmatprep.subr.bf16.mxu1 %v9520_v13  ;;  %v977_v13 = vld [vmem:[%s10303_s6 + $0x6f8] sm:$0xff] }
 0x207   : > { %v5463_v23 = vpop.f32.mrb[66].mxu0  ;;  %v5500_v24 = vpop.f32.mrb[64].mxu1  ;;  %v2216_v21 = vcombine.high %v2206_v3, %v2206_v3 }
 0x208   : > { %v5501_v28 = vadd.f32 %v5500_v24, %v5461_v20  ;;  %v5464_v29 = vpop.f32.mrb[67].mxu0  ;;  %v5502_v30 = vpop.f32.mrb[65].mxu1  ;;  %v9527_v20 = vcombine.low %v847_v51, %v975_v52  ;;  %v2185_v23 = vcombine.high %v2183_v6, %v2183_v6  ;;  %v2199_v52 = vrot.slane %v2183_v6, %v10318_v22 }
 0x209   : > { %v5503_v33 = vpop.f32.mrb[66].mxu1  ;;  %v850_v30 = vld [vmem:[%s10303_s6 + $0x300] sm:$0xff] }
 0x20a   : > { %v5504_v37 = vpop.f32.mrb[67].mxu1  ;;  %7619 = vmatmul.mubr.bf16.vlgmr.msra.gmra.mrb[172].mxu0 %v2101_v14  ;;  %v2213_v29 = vrot.slane %v2185_v23, %v10318_v22 }
 0x20b   : > { %7667 = vmatpush1.bf16.xpose.msra.mxu0 %v9517_v25  ;;  %7698 = vmatprep.mubr.bf16.mxu0 %v2157_v16  ;;  %v9532_v25 = vcombine.high %v849_v12, %v977_v13  ;;  %v9529_v37 = vcombine.low %v848_v4, %v976_v5  ;;  %v2215_v4 = vcombine.high %v2199_v52, %v2199_v52 }
 0x20c   : > { %7659 = vmatmul.mubr.bf16.vlgmr.msra.gmra.mrb[172].mxu1 %v2117_v31  ;;  %7746 = vmatprep.subr.bf16.mxu0 %v9522_v32  ;;  %v978_v31 = vld [vmem:[%s10303_s6 + $0x700] sm:$0xff]  ;;  %v2225_v32 = vrot.slane %v746_v26, %v10318_v22 }
 0x20d   : > { %7707 = vmatpush1.bf16.xpose.msra.mxu1 %v9519_v34  ;;  %v5540_v41 = vpop.f32.mrb[68].mxu0  ;;  %7738 = vmatprep.mubr.bf16.mxu1 %v2167_v35  ;;  %v9534_v44 = vcombine.high %v850_v30, %v978_v31  ;;  %v9533_v62 = vcombine.low %v850_v30, %v978_v31 }
 0x20e   : > { %v5541_v46 = vadd.f32 %v5540_v41, %v5501_v28  ;;  %v5542_v47 = vpop.f32.mrb[69].mxu0  ;;  %7786 = vmatprep.subr.bf16.mxu1 %v9524_v38  ;;  %v851_v38 = vld [vmem:[%s10303_s6 + $0x308] sm:$0xff] }
 0x20f   : > { %v5543_v48 = vpop.f32.mrb[70].mxu0  ;;  %v5580_v49 = vpop.f32.mrb[68].mxu1  ;;  %v2217_v47 = vcombine.high %v2213_v29, %v2213_v29  ;;  %v9536_v51 = vcombine.high %v851_v38, %v979_v39 }
 0x210   : > { %v5581_v53 = vadd.f32 %v5580_v49, %v5541_v46  ;;  %v5544_v54 = vpop.f32.mrb[71].mxu0  ;;  %v5582_v55 = vpop.f32.mrb[69].mxu1  ;;  %v9531_v46 = vcombine.low %v849_v12, %v977_v13  ;;  %v2233_v48 = vcombine.high %v2225_v32, %v2225_v32  ;;  %v2218_v49 = vcombine.high %v746_v26, %v746_v26  ;;  %v747_v12 = vld [vmem:[%s10301_s5 + $0xc8] sm:$0xff] }
 0x211   : > { %v5583_v58 = vpop.f32.mrb[70].mxu1  ;;  %v852_v55 = vld [vmem:[%s10303_s6 + $0x310] sm:$0xff]  ;;  %v2241_v13 = vrot.slane %v2225_v32, %v10318_v22  ;;  %v983_v26 = vld [vmem:[%s10303_s6 + $0x728] sm:$0xff] }
 0x212   : > { %v5584_v63 = vpop.f32.mrb[71].mxu1  ;;  %7699 = vmatmul.mubr.bf16.vlgmr.msra.gmra.mrb[176].mxu0 %v2143_v40  ;;  %v2255_v54 = vrot.slane %v2233_v48, %v10318_v22 }
 0x213   : > { %7747 = vmatpush1.bf16.xpose.msra.mxu0 %v9521_v50  ;;  %7778 = vmatprep.mubr.bf16.mxu0 %v2164_v42  ;;  %v853_v63 = vld [vmem:[%s10303_s6 + $0x318] sm:$0xff]  ;;  %v2263_v30 = vcombine.high %v2241_v13, %v2241_v13 }
 0x214   : > { %7739 = vmatmul.mubr.bf16.vlgmr.msra.gmra.mrb[176].mxu1 %v2165_v56  ;;  %7826 = vmatprep.subr.bf16.mxu0 %v9526_v57  ;;  %v980_v56 = vld [vmem:[%s10303_s6 + $0x710] sm:$0xff]  ;;  %v2232_v57 = vrot.slane %v2218_v49, %v10318_v22 }
 0x215   : > { %7787 = vmatpush1.bf16.xpose.msra.mxu1 %v9523_v59  ;;  %v5620_v2 = vpop.f32.mrb[72].mxu0  ;;  %7818 = vmatprep.mubr.bf16.mxu1 %v2168_v60  ;;  %v9538_v5 = vcombine.high %v852_v55, %v980_v56 }
 0x216   : > { %v5621_v7 = vadd.f32 %v5620_v2, %v5581_v53  ;;  %v5622_v8 = vpop.f32.mrb[73].mxu0  ;;  %7866 = vmatprep.subr.bf16.mxu1 %v9528_v0  ;;  %v981_v0 = vld [vmem:[%s10303_s6 + $0x718] sm:$0xff] }
 0x217   : > { %v5623_v9 = vpop.f32.mrb[74].mxu0  ;;  %v5660_v10 = vpop.f32.mrb[72].mxu1  ;;  %v2265_v8 = vcombine.high %v2255_v54, %v2255_v54 }
 0x218   : > { %v5661_v14 = vadd.f32 %v5660_v10, %v5621_v7  ;;  %v5624_v15 = vpop.f32.mrb[75].mxu0  ;;  %v5662_v16 = vpop.f32.mrb[73].mxu1  ;;  %v9535_v7 = vcombine.low %v851_v38, %v979_v39  ;;  %v2234_v9 = vcombine.high %v2232_v57, %v2232_v57  ;;  %v2248_v39 = vrot.slane %v2232_v57, %v10318_v22 }
 0x219   : > { %v5663_v19 = vpop.f32.mrb[74].mxu1  ;;  %v854_v16 = vld [vmem:[%s10303_s6 + $0x320] sm:$0xff] }
 0x21a   : > { %v5664_v24 = vpop.f32.mrb[75].mxu1  ;;  %7779 = vmatmul.mubr.bf16.vlgmr.msra.gmra.mrb[180].mxu0 %v2150_v1  ;;  %v2262_v15 = vrot.slane %v2234_v9, %v10318_v22 }
 0x21b   : > { %7827 = vmatpush1.bf16.xpose.msra.mxu0 %v9525_v11  ;;  %7858 = vmatprep.mubr.bf16.mxu0 %v2206_v3  ;;  %v9540_v11 = vcombine.high %v853_v63, %v981_v0  ;;  %v9537_v24 = vcombine.low %v852_v55, %v980_v56  ;;  %v2264_v55 = vcombine.high %v2248_v39, %v2248_v39 }
 0x21c   : > { %7819 = vmatmul.mubr.bf16.vlgmr.msra.gmra.mrb[180].mxu1 %v2166_v17  ;;  %7906 = vmatprep.subr.bf16.mxu0 %v9530_v18  ;;  %v982_v17 = vld [vmem:[%s10303_s6 + $0x720] sm:$0xff]  ;;  %v2274_v18 = vrot.slane %v747_v12, %v10318_v22 }
 0x21d   : > { %7867 = vmatpush1.bf16.xpose.msra.mxu1 %v9527_v20  ;;  %v5700_v28 = vpop.f32.mrb[76].mxu0  ;;  %7898 = vmatprep.mubr.bf16.mxu1 %v2216_v21  ;;  %v9542_v31 = vcombine.high %v854_v16, %v982_v17  ;;  %v9541_v49 = vcombine.low %v854_v16, %v982_v17 }
 0x21e   : > { %v5701_v33 = vadd.f32 %v5700_v28, %v5661_v14  ;;  %v5702_v34 = vpop.f32.mrb[77].mxu0  ;;  %7946 = vmatprep.subr.bf16.mxu1 %v9532_v25  ;;  %v855_v25 = vld [vmem:[%s10303_s6 + $0x328] sm:$0xff] }
 0x21f   : > { %v5703_v35 = vpop.f32.mrb[78].mxu0  ;;  %v5740_v36 = vpop.f32.mrb[76].mxu1  ;;  %v2266_v34 = vcombine.high %v2262_v15, %v2262_v15  ;;  %v9544_v38 = vcombine.high %v855_v25, %v983_v26 }
 0x220   : > { %v5741_v40 = vadd.f32 %v5740_v36, %v5701_v33  ;;  %v5704_v41 = vpop.f32.mrb[79].mxu0  ;;  %v5742_v42 = vpop.f32.mrb[77].mxu1  ;;  %v9539_v33 = vcombine.low %v853_v63, %v981_v0  ;;  %v2282_v35 = vcombine.high %v2274_v18, %v2274_v18  ;;  %v2267_v36 = vcombine.high %v747_v12, %v747_v12  ;;  %v748_v63 = vld [vmem:[%s10301_s5 + $0xd0] sm:$0xff]  ;;  %v987_v12 = vld [vmem:[%s10303_s6 + $0x748] sm:$0xff] }
 0x221   : > { %v5743_v45 = vpop.f32.mrb[78].mxu1  ;;  %v856_v42 = vld [vmem:[%s10303_s6 + $0x330] sm:$0xff]  ;;  %v2290_v0 = vrot.slane %v2274_v18, %v10318_v22 }
 0x222   : > { %v5744_v50 = vpop.f32.mrb[79].mxu1  ;;  %7859 = vmatmul.mubr.bf16.vlgmr.msra.gmra.mrb[184].mxu0 %v2192_v27  ;;  %v2304_v41 = vrot.slane %v2282_v35, %v10318_v22 }
 0x223   : > { %7907 = vmatpush1.bf16.xpose.msra.mxu0 %v9529_v37  ;;  %7938 = vmatprep.mubr.bf16.mxu0 %v2213_v29  ;;  %v857_v50 = vld [vmem:[%s10303_s6 + $0x338] sm:$0xff]  ;;  %v2312_v16 = vcombine.high %v2290_v0, %v2290_v0 }
 0x224   : > { %7899 = vmatmul.mubr.bf16.vlgmr.msra.gmra.mrb[184].mxu1 %v2214_v43  ;;  %7986 = vmatprep.subr.bf16.mxu0 %v9534_v44  ;;  %v984_v43 = vld [vmem:[%s10303_s6 + $0x730] sm:$0xff]  ;;  %v2281_v44 = vrot.slane %v2267_v36, %v10318_v22 }
 0x225   : > { %7947 = vmatpush1.bf16.xpose.msra.mxu1 %v9531_v46  ;;  %v5780_v53 = vpop.f32.mrb[80].mxu0  ;;  %7978 = vmatprep.mubr.bf16.mxu1 %v2217_v47  ;;  %v9546_v56 = vcombine.high %v856_v42, %v984_v43 }
 0x226   : > { %v5781_v58 = vadd.f32 %v5780_v53, %v5741_v40  ;;  %v5782_v59 = vpop.f32.mrb[81].mxu0  ;;  %8026 = vmatprep.subr.bf16.mxu1 %v9536_v51  ;;  %v985_v51 = vld [vmem:[%s10303_s6 + $0x738] sm:$0xff] }
 0x227   : > { %v5783_v60 = vpop.f32.mrb[82].mxu0  ;;  %v5820_v61 = vpop.f32.mrb[80].mxu1  ;;  %v2314_v59 = vcombine.high %v2304_v41, %v2304_v41 }
 0x228   : > { %v5821_v1 = vadd.f32 %v5820_v61, %v5781_v58  ;;  %v5784_v2 = vpop.f32.mrb[83].mxu0  ;;  %v5822_v3 = vpop.f32.mrb[81].mxu1  ;;  %v9543_v58 = vcombine.low %v855_v25, %v983_v26  ;;  %v2283_v60 = vcombine.high %v2281_v44, %v2281_v44  ;;  %v2297_v26 = vrot.slane %v2281_v44, %v10318_v22 }
 0x229   : > { %v5823_v6 = vpop.f32.mrb[82].mxu1  ;;  %v858_v3 = vld [vmem:[%s10303_s6 + $0x340] sm:$0xff] }
 0x22a   : > { %v5824_v10 = vpop.f32.mrb[83].mxu1  ;;  %7939 = vmatmul.mubr.bf16.vlgmr.msra.gmra.mrb[188].mxu0 %v2199_v52  ;;  %v2311_v2 = vrot.slane %v2283_v60, %v10318_v22 }
 0x22b   : > { %7987 = vmatpush1.bf16.xpose.msra.mxu0 %v9533_v62  ;;  %8018 = vmatprep.mubr.bf16.mxu0 %v2255_v54  ;;  %v9548_v62 = vcombine.high %v857_v50, %v985_v51  ;;  %v9545_v10 = vcombine.low %v856_v42, %v984_v43  ;;  %v2313_v42 = vcombine.high %v2297_v26, %v2297_v26 }
 0x22c   : > { %7979 = vmatmul.mubr.bf16.vlgmr.msra.gmra.mrb[188].mxu1 %v2215_v4  ;;  %8066 = vmatprep.subr.bf16.mxu0 %v9538_v5  ;;  %v986_v4 = vld [vmem:[%s10303_s6 + $0x740] sm:$0xff]  ;;  %v2323_v5 = vrot.slane %v748_v63, %v10318_v22 }
 0x22d   : > { %8027 = vmatpush1.bf16.xpose.msra.mxu1 %v9535_v7  ;;  %v5860_v14 = vpop.f32.mrb[84].mxu0  ;;  %8058 = vmatprep.mubr.bf16.mxu1 %v2265_v8  ;;  %v9550_v17 = vcombine.high %v858_v3, %v986_v4  ;;  %v9549_v36 = vcombine.low %v858_v3, %v986_v4 }
 0x22e   : > { %v5861_v19 = vadd.f32 %v5860_v14, %v5821_v1  ;;  %v5862_v20 = vpop.f32.mrb[85].mxu0  ;;  %8106 = vmatprep.subr.bf16.mxu1 %v9540_v11  ;;  %v859_v11 = vld [vmem:[%s10303_s6 + $0x348] sm:$0xff] }
 0x22f   : > { %v5863_v21 = vpop.f32.mrb[86].mxu0  ;;  %v5900_v23 = vpop.f32.mrb[84].mxu1  ;;  %v2315_v20 = vcombine.high %v2311_v2, %v2311_v2  ;;  %v9552_v25 = vcombine.high %v859_v11, %v987_v12 }
 0x230   : > { %v5901_v27 = vadd.f32 %v5900_v23, %v5861_v19  ;;  %v5864_v28 = vpop.f32.mrb[87].mxu0  ;;  %v5902_v29 = vpop.f32.mrb[85].mxu1  ;;  %v9547_v19 = vcombine.low %v857_v50, %v985_v51  ;;  %v2331_v21 = vcombine.high %v2323_v5, %v2323_v5  ;;  %v2316_v23 = vcombine.high %v748_v63, %v748_v63  ;;  %v749_v50 = vld [vmem:[%s10301_s5 + $0xd8] sm:$0xff]  ;;  %v991_v63 = vld [vmem:[%s10303_s6 + $0x768] sm:$0xff] }
 0x231   : > { %v5903_v32 = vpop.f32.mrb[86].mxu1  ;;  %v860_v29 = vld [vmem:[%s10303_s6 + $0x350] sm:$0xff]  ;;  %v2339_v51 = vrot.slane %v2323_v5, %v10318_v22 }
 0x232   : > { %v5904_v37 = vpop.f32.mrb[87].mxu1  ;;  %8019 = vmatmul.mubr.bf16.vlgmr.msra.gmra.mrb[192].mxu0 %v2241_v13  ;;  %v2353_v28 = vrot.slane %v2331_v21, %v10318_v22 }
 0x233   : > { %8067 = vmatpush1.bf16.xpose.msra.mxu0 %v9537_v24  ;;  %8098 = vmatprep.mubr.bf16.mxu0 %v2262_v15  ;;  %v861_v37 = vld [vmem:[%s10303_s6 + $0x358] sm:$0xff]  ;;  %v2361_v3 = vcombine.high %v2339_v51, %v2339_v51 }
 0x234   : > { %8059 = vmatmul.mubr.bf16.vlgmr.msra.gmra.mrb[192].mxu1 %v2263_v30  ;;  %8146 = vmatprep.subr.bf16.mxu0 %v9542_v31  ;;  %v988_v30 = vld [vmem:[%s10303_s6 + $0x750] sm:$0xff]  ;;  %v2330_v31 = vrot.slane %v2316_v23, %v10318_v22 }
 0x235   : > { %8107 = vmatpush1.bf16.xpose.msra.mxu1 %v9539_v33  ;;  %v5940_v40 = vpop.f32.mrb[88].mxu0  ;;  %8138 = vmatprep.mubr.bf16.mxu1 %v2266_v34  ;;  %v9554_v43 = vcombine.high %v860_v29, %v988_v30 }
 0x236   : > { %v5941_v45 = vadd.f32 %v5940_v40, %v5901_v27  ;;  %v5942_v46 = vpop.f32.mrb[89].mxu0  ;;  %8186 = vmatprep.subr.bf16.mxu1 %v9544_v38  ;;  %v989_v38 = vld [vmem:[%s10303_s6 + $0x758] sm:$0xff] }
 0x237   : > { %v5943_v47 = vpop.f32.mrb[90].mxu0  ;;  %v5980_v48 = vpop.f32.mrb[88].mxu1  ;;  %v2363_v46 = vcombine.high %v2353_v28, %v2353_v28 }
 0x238   : > { %v5981_v52 = vadd.f32 %v5980_v48, %v5941_v45  ;;  %v5944_v53 = vpop.f32.mrb[91].mxu0  ;;  %v5982_v54 = vpop.f32.mrb[89].mxu1  ;;  %v9551_v45 = vcombine.low %v859_v11, %v987_v12  ;;  %v2332_v47 = vcombine.high %v2330_v31, %v2330_v31  ;;  %v2346_v12 = vrot.slane %v2330_v31, %v10318_v22 }
 0x239   : > { %v5983_v57 = vpop.f32.mrb[90].mxu1  ;;  %v862_v54 = vld [vmem:[%s10303_s6 + $0x360] sm:$0xff] }
 0x23a   : > { %v5984_v61 = vpop.f32.mrb[91].mxu1  ;;  %8099 = vmatmul.mubr.bf16.vlgmr.msra.gmra.mrb[196].mxu0 %v2248_v39  ;;  %v2360_v53 = vrot.slane %v2332_v47, %v10318_v22 }
 0x23b   : > { %8147 = vmatpush1.bf16.xpose.msra.mxu0 %v9541_v49  ;;  %8178 = vmatprep.mubr.bf16.mxu0 %v2304_v41  ;;  %v9556_v49 = vcombine.high %v861_v37, %v989_v38  ;;  %v9553_v61 = vcombine.low %v860_v29, %v988_v30  ;;  %v2362_v29 = vcombine.high %v2346_v12, %v2346_v12 }
 0x23c   : > { %8139 = vmatmul.mubr.bf16.vlgmr.msra.gmra.mrb[196].mxu1 %v2264_v55  ;;  %8226 = vmatprep.subr.bf16.mxu0 %v9546_v56  ;;  %v990_v55 = vld [vmem:[%s10303_s6 + $0x760] sm:$0xff]  ;;  %v2372_v56 = vrot.slane %v749_v50, %v10318_v22 }
 0x23d   : > { %8187 = vmatpush1.bf16.xpose.msra.mxu1 %v9543_v58  ;;  %v6020_v1 = vpop.f32.mrb[92].mxu0  ;;  %8218 = vmatprep.mubr.bf16.mxu1 %v2314_v59  ;;  %v9558_v4 = vcombine.high %v862_v54, %v990_v55  ;;  %v9557_v23 = vcombine.low %v862_v54, %v990_v55 }
 0x23e   : > { %v6021_v6 = vadd.f32 %v6020_v1, %v5981_v52  ;;  %v6022_v7 = vpop.f32.mrb[93].mxu0  ;;  %8266 = vmatprep.subr.bf16.mxu1 %v9548_v62  ;;  %v863_v62 = vld [vmem:[%s10303_s6 + $0x368] sm:$0xff] }
 0x23f   : > { %v6023_v8 = vpop.f32.mrb[94].mxu0  ;;  %v6060_v9 = vpop.f32.mrb[92].mxu1  ;;  %v2364_v7 = vcombine.high %v2360_v53, %v2360_v53  ;;  %v9560_v11 = vcombine.high %v863_v62, %v991_v63 }
 0x240   : > { %v6061_v13 = vadd.f32 %v6060_v9, %v6021_v6  ;;  %v6024_v14 = vpop.f32.mrb[95].mxu0  ;;  %v6062_v15 = vpop.f32.mrb[93].mxu1  ;;  %v9555_v6 = vcombine.low %v861_v37, %v989_v38  ;;  %v2380_v8 = vcombine.high %v2372_v56, %v2372_v56  ;;  %v2365_v9 = vcombine.high %v749_v50, %v749_v50  ;;  %v750_v37 = vld [vmem:[%s10301_s5 + $0xe0] sm:$0xff]  ;;  %v995_v50 = vld [vmem:[%s10303_s6 + $0x788] sm:$0xff] }
 0x241   : > { %v6063_v18 = vpop.f32.mrb[94].mxu1  ;;  %v864_v15 = vld [vmem:[%s10303_s6 + $0x370] sm:$0xff]  ;;  %v2388_v38 = vrot.slane %v2372_v56, %v10318_v22 }
 0x242   : > { %v6064_v24 = vpop.f32.mrb[95].mxu1  ;;  %8179 = vmatmul.mubr.bf16.vlgmr.msra.gmra.mrb[200].mxu0 %v2290_v0  ;;  %v2402_v14 = vrot.slane %v2380_v8, %v10318_v22 }
 0x243   : > { %8227 = vmatpush1.bf16.xpose.msra.mxu0 %v9545_v10  ;;  %8258 = vmatprep.mubr.bf16.mxu0 %v2311_v2  ;;  %v865_v24 = vld [vmem:[%s10303_s6 + $0x378] sm:$0xff]  ;;  %v2410_v54 = vcombine.high %v2388_v38, %v2388_v38 }
 0x244   : > { %8219 = vmatmul.mubr.bf16.vlgmr.msra.gmra.mrb[200].mxu1 %v2312_v16  ;;  %8306 = vmatprep.subr.bf16.mxu0 %v9550_v17  ;;  %v992_v16 = vld [vmem:[%s10303_s6 + $0x770] sm:$0xff]  ;;  %v2379_v17 = vrot.slane %v2365_v9, %v10318_v22 }
 0x245   : > { %8267 = vmatpush1.bf16.xpose.msra.mxu1 %v9547_v19  ;;  %v6100_v27 = vpop.f32.mrb[96].mxu0  ;;  %8298 = vmatprep.mubr.bf16.mxu1 %v2315_v20  ;;  %v9562_v30 = vcombine.high %v864_v15, %v992_v16 }
 0x246   : > { %v6101_v32 = vadd.f32 %v6100_v27, %v6061_v13  ;;  %v6102_v33 = vpop.f32.mrb[97].mxu0  ;;  %8346 = vmatprep.subr.bf16.mxu1 %v9552_v25  ;;  %v993_v25 = vld [vmem:[%s10303_s6 + $0x778] sm:$0xff] }
 0x247   : > { %v6103_v34 = vpop.f32.mrb[98].mxu0  ;;  %v6140_v35 = vpop.f32.mrb[96].mxu1  ;;  %v2412_v33 = vcombine.high %v2402_v14, %v2402_v14 }
 0x248   : > { %v6141_v39 = vadd.f32 %v6140_v35, %v6101_v32  ;;  %v6104_v40 = vpop.f32.mrb[99].mxu0  ;;  %v6142_v41 = vpop.f32.mrb[97].mxu1  ;;  %v9559_v32 = vcombine.low %v863_v62, %v991_v63  ;;  %v2381_v34 = vcombine.high %v2379_v17, %v2379_v17  ;;  %v2395_v63 = vrot.slane %v2379_v17, %v10318_v22 }
 0x249   : > { %v6143_v44 = vpop.f32.mrb[98].mxu1  ;;  %v866_v41 = vld [vmem:[%s10303_s6 + $0x380] sm:$0xff] }
 0x24a   : > { %v6144_v48 = vpop.f32.mrb[99].mxu1  ;;  %8259 = vmatmul.mubr.bf16.vlgmr.msra.gmra.mrb[204].mxu0 %v2297_v26  ;;  %v2409_v40 = vrot.slane %v2381_v34, %v10318_v22 }
 0x24b   : > { %8307 = vmatpush1.bf16.xpose.msra.mxu0 %v9549_v36  ;;  %8338 = vmatprep.mubr.bf16.mxu0 %v2353_v28  ;;  %v9564_v36 = vcombine.high %v865_v24, %v993_v25  ;;  %v9561_v48 = vcombine.low %v864_v15, %v992_v16  ;;  %v2411_v15 = vcombine.high %v2395_v63, %v2395_v63 }
 0x24c   : > { %8299 = vmatmul.mubr.bf16.vlgmr.msra.gmra.mrb[204].mxu1 %v2313_v42  ;;  %8386 = vmatprep.subr.bf16.mxu0 %v9554_v43  ;;  %v994_v42 = vld [vmem:[%s10303_s6 + $0x780] sm:$0xff]  ;;  %v2421_v43 = vrot.slane %v750_v37, %v10318_v22 }
 0x24d   : > { %8347 = vmatpush1.bf16.xpose.msra.mxu1 %v9551_v45  ;;  %v6180_v52 = vpop.f32.mrb[100].mxu0  ;;  %8378 = vmatprep.mubr.bf16.mxu1 %v2363_v46  ;;  %v9566_v55 = vcombine.high %v866_v41, %v994_v42  ;;  %v9565_v9 = vcombine.low %v866_v41, %v994_v42 }
 0x24e   : > { %v6181_v57 = vadd.f32 %v6180_v52, %v6141_v39  ;;  %v6182_v58 = vpop.f32.mrb[101].mxu0  ;;  %8426 = vmatprep.subr.bf16.mxu1 %v9556_v49  ;;  %v867_v49 = vld [vmem:[%s10303_s6 + $0x388] sm:$0xff] }
 0x24f   : > { %v6183_v59 = vpop.f32.mrb[102].mxu0  ;;  %v6220_v60 = vpop.f32.mrb[100].mxu1  ;;  %v2413_v58 = vcombine.high %v2409_v40, %v2409_v40  ;;  %v9568_v62 = vcombine.high %v867_v49, %v995_v50 }
 0x250   : > { %v6221_v0 = vadd.f32 %v6220_v60, %v6181_v57  ;;  %v6184_v1 = vpop.f32.mrb[103].mxu0  ;;  %v6222_v2 = vpop.f32.mrb[101].mxu1  ;;  %v9563_v57 = vcombine.low %v865_v24, %v993_v25  ;;  %v2429_v59 = vcombine.high %v2421_v43, %v2421_v43  ;;  %v2414_v60 = vcombine.high %v750_v37, %v750_v37  ;;  %v751_v24 = vld [vmem:[%s10301_s5 + $0xe8] sm:$0xff] }
 0x251   : > { %v6223_v5 = vpop.f32.mrb[102].mxu1  ;;  %v868_v2 = vld [vmem:[%s10303_s6 + $0x390] sm:$0xff]  ;;  %v2437_v25 = vrot.slane %v2421_v43, %v10318_v22  ;;  %v999_v37 = vld [vmem:[%s10303_s6 + $0x7a8] sm:$0xff] }
 0x252   : > { %v6224_v10 = vpop.f32.mrb[103].mxu1  ;;  %8339 = vmatmul.mubr.bf16.vlgmr.msra.gmra.mrb[208].mxu0 %v2339_v51  ;;  %v2451_v1 = vrot.slane %v2429_v59, %v10318_v22 }
 0x253   : > { %8387 = vmatpush1.bf16.xpose.msra.mxu0 %v9553_v61  ;;  %8418 = vmatprep.mubr.bf16.mxu0 %v2360_v53  ;;  %v869_v10 = vld [vmem:[%s10303_s6 + $0x398] sm:$0xff]  ;;  %v2459_v41 = vcombine.high %v2437_v25, %v2437_v25 }
 0x254   : > { %8379 = vmatmul.mubr.bf16.vlgmr.msra.gmra.mrb[208].mxu1 %v2361_v3  ;;  %8466 = vmatprep.subr.bf16.mxu0 %v9558_v4  ;;  %v996_v3 = vld [vmem:[%s10303_s6 + $0x790] sm:$0xff]  ;;  %v2428_v4 = vrot.slane %v2414_v60, %v10318_v22 }
 0x255   : > { %8427 = vmatpush1.bf16.xpose.msra.mxu1 %v9555_v6  ;;  %v6260_v13 = vpop.f32.mrb[104].mxu0  ;;  %8458 = vmatprep.mubr.bf16.mxu1 %v2364_v7  ;;  %v9570_v16 = vcombine.high %v868_v2, %v996_v3 }
 0x256   : > { %v6261_v18 = vadd.f32 %v6260_v13, %v6221_v0  ;;  %v6262_v19 = vpop.f32.mrb[105].mxu0  ;;  %8506 = vmatprep.subr.bf16.mxu1 %v9560_v11  ;;  %v997_v11 = vld [vmem:[%s10303_s6 + $0x798] sm:$0xff] }
 0x257   : > { %v6263_v20 = vpop.f32.mrb[106].mxu0  ;;  %v6300_v21 = vpop.f32.mrb[104].mxu1  ;;  %v2461_v19 = vcombine.high %v2451_v1, %v2451_v1 }
 0x258   : > { %v6301_v26 = vadd.f32 %v6300_v21, %v6261_v18  ;;  %v6264_v27 = vpop.f32.mrb[107].mxu0  ;;  %v6302_v28 = vpop.f32.mrb[105].mxu1  ;;  %v9567_v18 = vcombine.low %v867_v49, %v995_v50  ;;  %v2430_v20 = vcombine.high %v2428_v4, %v2428_v4  ;;  %v2444_v50 = vrot.slane %v2428_v4, %v10318_v22 }
 0x259   : > { %v6303_v31 = vpop.f32.mrb[106].mxu1  ;;  %v870_v28 = vld [vmem:[%s10303_s6 + $0x3a0] sm:$0xff] }
 0x25a   : > { %v6304_v35 = vpop.f32.mrb[107].mxu1  ;;  %8419 = vmatmul.mubr.bf16.vlgmr.msra.gmra.mrb[212].mxu0 %v2346_v12  ;;  %v2458_v27 = vrot.slane %v2430_v20, %v10318_v22 }
 0x25b   : > { %8467 = vmatpush1.bf16.xpose.msra.mxu0 %v9557_v23  ;;  %8498 = vmatprep.mubr.bf16.mxu0 %v2402_v14  ;;  %v9572_v23 = vcombine.high %v869_v10, %v997_v11  ;;  %v9569_v35 = vcombine.low %v868_v2, %v996_v3  ;;  %v2460_v2 = vcombine.high %v2444_v50, %v2444_v50 }
 0x25c   : > { %8459 = vmatmul.mubr.bf16.vlgmr.msra.gmra.mrb[212].mxu1 %v2362_v29  ;;  %8546 = vmatprep.subr.bf16.mxu0 %v9562_v30  ;;  %v998_v29 = vld [vmem:[%s10303_s6 + $0x7a0] sm:$0xff]  ;;  %v2470_v30 = vrot.slane %v751_v24, %v10318_v22 }
 0x25d   : > { %8507 = vmatpush1.bf16.xpose.msra.mxu1 %v9559_v32  ;;  %v6340_v39 = vpop.f32.mrb[108].mxu0  ;;  %8538 = vmatprep.mubr.bf16.mxu1 %v2412_v33  ;;  %v9574_v42 = vcombine.high %v870_v28, %v998_v29  ;;  %v9573_v60 = vcombine.low %v870_v28, %v998_v29 }
 0x25e   : > { %v6341_v44 = vadd.f32 %v6340_v39, %v6301_v26  ;;  %v6342_v45 = vpop.f32.mrb[109].mxu0  ;;  %8586 = vmatprep.subr.bf16.mxu1 %v9564_v36  ;;  %v871_v36 = vld [vmem:[%s10303_s6 + $0x3a8] sm:$0xff] }
 0x25f   : > { %v6343_v46 = vpop.f32.mrb[110].mxu0  ;;  %v6380_v47 = vpop.f32.mrb[108].mxu1  ;;  %v2462_v45 = vcombine.high %v2458_v27, %v2458_v27  ;;  %v9576_v49 = vcombine.high %v871_v36, %v999_v37 }
 0x260   : > { %v6381_v51 = vadd.f32 %v6380_v47, %v6341_v44  ;;  %v6344_v52 = vpop.f32.mrb[111].mxu0  ;;  %v6382_v53 = vpop.f32.mrb[109].mxu1  ;;  %v9571_v44 = vcombine.low %v869_v10, %v997_v11  ;;  %v2478_v46 = vcombine.high %v2470_v30, %v2470_v30  ;;  %v2463_v47 = vcombine.high %v751_v24, %v751_v24  ;;  %v752_v10 = vld [vmem:[%s10301_s5 + $0xf0] sm:$0xff]  ;;  %v1003_v24 = vld [vmem:[%s10303_s6 + $0x7c8] sm:$0xff] }
 0x261   : > { %v6383_v56 = vpop.f32.mrb[110].mxu1  ;;  %v872_v53 = vld [vmem:[%s10303_s6 + $0x3b0] sm:$0xff]  ;;  %v2486_v11 = vrot.slane %v2470_v30, %v10318_v22 }
 0x262   : > { %v6384_v61 = vpop.f32.mrb[111].mxu1  ;;  %8499 = vmatmul.mubr.bf16.vlgmr.msra.gmra.mrb[216].mxu0 %v2388_v38  ;;  %v2500_v52 = vrot.slane %v2478_v46, %v10318_v22 }
 0x263   : > { %8547 = vmatpush1.bf16.xpose.msra.mxu0 %v9561_v48  ;;  %8578 = vmatprep.mubr.bf16.mxu0 %v2409_v40  ;;  %v873_v61 = vld [vmem:[%s10303_s6 + $0x3b8] sm:$0xff]  ;;  %v2508_v28 = vcombine.high %v2486_v11, %v2486_v11 }
 0x264   : > { %8539 = vmatmul.mubr.bf16.vlgmr.msra.gmra.mrb[216].mxu1 %v2410_v54  ;;  %8626 = vmatprep.subr.bf16.mxu0 %v9566_v55  ;;  %v1000_v54 = vld [vmem:[%s10303_s6 + $0x7b0] sm:$0xff]  ;;  %v2477_v55 = vrot.slane %v2463_v47, %v10318_v22 }
 0x265   : > { %8587 = vmatpush1.bf16.xpose.msra.mxu1 %v9563_v57  ;;  %v6420_v0 = vpop.f32.mrb[112].mxu0  ;;  %8618 = vmatprep.mubr.bf16.mxu1 %v2413_v58  ;;  %v9578_v3 = vcombine.high %v872_v53, %v1000_v54 }
 0x266   : > { %v6421_v5 = vadd.f32 %v6420_v0, %v6381_v51  ;;  %v6422_v6 = vpop.f32.mrb[113].mxu0  ;;  %8666 = vmatprep.subr.bf16.mxu1 %v9568_v62  ;;  %v1001_v62 = vld [vmem:[%s10303_s6 + $0x7b8] sm:$0xff] }
 0x267   : > { %v6423_v7 = vpop.f32.mrb[114].mxu0  ;;  %v6460_v8 = vpop.f32.mrb[112].mxu1  ;;  %v2510_v6 = vcombine.high %v2500_v52, %v2500_v52 }
 0x268   : > { %v6461_v12 = vadd.f32 %v6460_v8, %v6421_v5  ;;  %v6424_v13 = vpop.f32.mrb[115].mxu0  ;;  %v6462_v14 = vpop.f32.mrb[113].mxu1  ;;  %v9575_v5 = vcombine.low %v871_v36, %v999_v37  ;;  %v2479_v7 = vcombine.high %v2477_v55, %v2477_v55  ;;  %v2493_v37 = vrot.slane %v2477_v55, %v10318_v22 }
 0x269   : > { %v6463_v17 = vpop.f32.mrb[114].mxu1  ;;  %v874_v14 = vld [vmem:[%s10303_s6 + $0x3c0] sm:$0xff] }
 0x26a   : > { %v6464_v21 = vpop.f32.mrb[115].mxu1  ;;  %8579 = vmatmul.mubr.bf16.vlgmr.msra.gmra.mrb[220].mxu0 %v2395_v63  ;;  %v2507_v13 = vrot.slane %v2479_v7, %v10318_v22 }
 0x26b   : > { %8627 = vmatpush1.bf16.xpose.msra.mxu0 %v9565_v9  ;;  %8658 = vmatprep.mubr.bf16.mxu0 %v2451_v1  ;;  %v9580_v9 = vcombine.high %v873_v61, %v1001_v62  ;;  %v9577_v21 = vcombine.low %v872_v53, %v1000_v54  ;;  %v2509_v53 = vcombine.high %v2493_v37, %v2493_v37 }
 0x26c   : > { %8619 = vmatmul.mubr.bf16.vlgmr.msra.gmra.mrb[220].mxu1 %v2411_v15  ;;  %8706 = vmatprep.subr.bf16.mxu0 %v9570_v16  ;;  %v1002_v15 = vld [vmem:[%s10303_s6 + $0x7c0] sm:$0xff]  ;;  %v2519_v16 = vrot.slane %v752_v10, %v10318_v22 }
 0x26d   : > { %8667 = vmatpush1.bf16.xpose.msra.mxu1 %v9567_v18  ;;  %v6500_v26 = vpop.f32.mrb[116].mxu0  ;;  %8698 = vmatprep.mubr.bf16.mxu1 %v2461_v19  ;;  %v9582_v29 = vcombine.high %v874_v14, %v1002_v15  ;;  %v9581_v47 = vcombine.low %v874_v14, %v1002_v15 }
 0x26e   : > { %v6501_v31 = vadd.f32 %v6500_v26, %v6461_v12  ;;  %v6502_v32 = vpop.f32.mrb[117].mxu0  ;;  %8746 = vmatprep.subr.bf16.mxu1 %v9572_v23  ;;  %v875_v23 = vld [vmem:[%s10303_s6 + $0x3c8] sm:$0xff] }
 0x26f   : > { %v6503_v33 = vpop.f32.mrb[118].mxu0  ;;  %v6540_v34 = vpop.f32.mrb[116].mxu1  ;;  %v2511_v32 = vcombine.high %v2507_v13, %v2507_v13  ;;  %v9584_v36 = vcombine.high %v875_v23, %v1003_v24 }
 0x270   : > { %v6541_v38 = vadd.f32 %v6540_v34, %v6501_v31  ;;  %v6504_v39 = vpop.f32.mrb[119].mxu0  ;;  %v6542_v40 = vpop.f32.mrb[117].mxu1  ;;  %v9579_v31 = vcombine.low %v873_v61, %v1001_v62  ;;  %v2527_v33 = vcombine.high %v2519_v16, %v2519_v16  ;;  %v2512_v34 = vcombine.high %v752_v10, %v752_v10  ;;  %v753_v61 = vld [vmem:[%s10301_s5 + $0xf8] sm:$0xff]  ;;  %v1007_v10 = vld [vmem:[%s10303_s6 + $0x7e8] sm:$0xff] }
 0x271   : > { %v6543_v43 = vpop.f32.mrb[118].mxu1  ;;  %v876_v40 = vld [vmem:[%s10303_s6 + $0x3d0] sm:$0xff]  ;;  %v2535_v62 = vrot.slane %v2519_v16, %v10318_v22 }
 0x272   : > { %v6544_v48 = vpop.f32.mrb[119].mxu1  ;;  %8659 = vmatmul.mubr.bf16.vlgmr.msra.gmra.mrb[224].mxu0 %v2437_v25  ;;  %v2549_v39 = vrot.slane %v2527_v33, %v10318_v22 }
 0x273   : > { %8707 = vmatpush1.bf16.xpose.msra.mxu0 %v9569_v35  ;;  %8738 = vmatprep.mubr.bf16.mxu0 %v2458_v27  ;;  %v877_v48 = vld [vmem:[%s10303_s6 + $0x3d8] sm:$0xff]  ;;  %v2557_v14 = vcombine.high %v2535_v62, %v2535_v62 }
 0x274   : > { %8699 = vmatmul.mubr.bf16.vlgmr.msra.gmra.mrb[224].mxu1 %v2459_v41  ;;  %8786 = vmatprep.subr.bf16.mxu0 %v9574_v42  ;;  %v1004_v41 = vld [vmem:[%s10303_s6 + $0x7d0] sm:$0xff]  ;;  %v2526_v42 = vrot.slane %v2512_v34, %v10318_v22 }
 0x275   : > { %8747 = vmatpush1.bf16.xpose.msra.mxu1 %v9571_v44  ;;  %v6580_v51 = vpop.f32.mrb[120].mxu0  ;;  %8778 = vmatprep.mubr.bf16.mxu1 %v2462_v45  ;;  %v9586_v54 = vcombine.high %v876_v40, %v1004_v41 }
 0x276   : > { %v6581_v56 = vadd.f32 %v6580_v51, %v6541_v38  ;;  %v6582_v57 = vpop.f32.mrb[121].mxu0  ;;  %8826 = vmatprep.subr.bf16.mxu1 %v9576_v49  ;;  %v1005_v49 = vld [vmem:[%s10303_s6 + $0x7d8] sm:$0xff] }
 0x277   : > { %v6583_v58 = vpop.f32.mrb[122].mxu0  ;;  %v6620_v59 = vpop.f32.mrb[120].mxu1  ;;  %v2559_v57 = vcombine.high %v2549_v39, %v2549_v39 }
 0x278   : > { %v6621_v63 = vadd.f32 %v6620_v59, %v6581_v56  ;;  %v6584_v0 = vpop.f32.mrb[123].mxu0  ;;  %v6622_v1 = vpop.f32.mrb[121].mxu1  ;;  %v9583_v56 = vcombine.low %v875_v23, %v1003_v24  ;;  %v2528_v58 = vcombine.high %v2526_v42, %v2526_v42  ;;  %v2542_v24 = vrot.slane %v2526_v42, %v10318_v22 }
 0x279   : > { %v6623_v4 = vpop.f32.mrb[122].mxu1  ;;  %v878_v1 = vld [vmem:[%s10303_s6 + $0x3e0] sm:$0xff] }
 0x27a   : > { %v6624_v8 = vpop.f32.mrb[123].mxu1  ;;  %8739 = vmatmul.mubr.bf16.vlgmr.msra.gmra.mrb[228].mxu0 %v2444_v50  ;;  %v2556_v0 = vrot.slane %v2528_v58, %v10318_v22 }
 0x27b   : > { %8787 = vmatpush1.bf16.xpose.msra.mxu0 %v9573_v60  ;;  %8818 = vmatprep.mubr.bf16.mxu0 %v2500_v52  ;;  %v9588_v60 = vcombine.high %v877_v48, %v1005_v49  ;;  %v9585_v8 = vcombine.low %v876_v40, %v1004_v41  ;;  %v2558_v40 = vcombine.high %v2542_v24, %v2542_v24 }
 0x27c   : > { %8779 = vmatmul.mubr.bf16.vlgmr.msra.gmra.mrb[228].mxu1 %v2460_v2  ;;  %8866 = vmatprep.subr.bf16.mxu0 %v9578_v3  ;;  %v1006_v2 = vld [vmem:[%s10303_s6 + $0x7e0] sm:$0xff]  ;;  %v2568_v3 = vrot.slane %v753_v61, %v10318_v22 }
 0x27d   : > { %8827 = vmatpush1.bf16.xpose.msra.mxu1 %v9575_v5  ;;  %v6660_v12 = vpop.f32.mrb[124].mxu0  ;;  %8858 = vmatprep.mubr.bf16.mxu1 %v2510_v6  ;;  %v9590_v15 = vcombine.high %v878_v1, %v1006_v2  ;;  %v9589_v34 = vcombine.low %v878_v1, %v1006_v2 }
 0x27e   : > { %v6661_v17 = vadd.f32 %v6660_v12, %v6621_v63  ;;  %v6662_v18 = vpop.f32.mrb[125].mxu0  ;;  %8906 = vmatprep.subr.bf16.mxu1 %v9580_v9  ;;  %v879_v9 = vld [vmem:[%s10303_s6 + $0x3e8] sm:$0xff] }
 0x27f   : > { %v6663_v19 = vpop.f32.mrb[126].mxu0  ;;  %v6700_v20 = vpop.f32.mrb[124].mxu1  ;;  %v2560_v18 = vcombine.high %v2556_v0, %v2556_v0  ;;  %v9592_v23 = vcombine.high %v879_v9, %v1007_v10 }
 0x280   : > { %v6701_v25 = vadd.f32 %v6700_v20, %v6661_v17  ;;  %v6664_v26 = vpop.f32.mrb[127].mxu0  ;;  %v6702_v27 = vpop.f32.mrb[125].mxu1  ;;  %v9587_v17 = vcombine.low %v877_v48, %v1005_v49  ;;  %v2576_v19 = vcombine.high %v2568_v3, %v2568_v3  ;;  %v2561_v20 = vcombine.high %v753_v61, %v753_v61 }
 0x281   : > { %v6703_v30 = vpop.f32.mrb[126].mxu1  ;;  %v880_v27 = vld [vmem:[%s10303_s6 + $0x3f0] sm:$0xff]  ;;  %v2584_v48 = vrot.slane %v2568_v3, %v10318_v22 }
 0x282   : > { %v6704_v35 = vpop.f32.mrb[127].mxu1  ;;  %8819 = vmatmul.mubr.bf16.vlgmr.msra.gmra.mrb[232].mxu0 %v2486_v11  ;;  %v2598_v26 = vrot.slane %v2576_v19, %v10318_v22 }
 0x283   : > { %8867 = vmatpush1.bf16.xpose.msra.mxu0 %v9577_v21  ;;  %8898 = vmatprep.mubr.bf16.mxu0 %v2507_v13  ;;  %v881_v35 = vld [vmem:[%s10303_s6 + $0x3f8] sm:$0xff] }
 0x284   : > { %8859 = vmatmul.mubr.bf16.vlgmr.msra.gmra.mrb[232].mxu1 %v2508_v28  ;;  %8946 = vmatprep.subr.bf16.mxu0 %v9582_v29  ;;  %v1008_v28 = vld [vmem:[%s10303_s6 + $0x7f0] sm:$0xff]  ;;  %v2575_v29 = vrot.slane %v2561_v20, %v10318_v22 }
 0x285   : > { %8907 = vmatpush1.bf16.xpose.msra.mxu1 %v9579_v31  ;;  %v6740_v38 = vpop.f32.mrb[128].mxu0  ;;  %8938 = vmatprep.mubr.bf16.mxu1 %v2511_v32  ;;  %v9594_v41 = vcombine.high %v880_v27, %v1008_v28 }
 0x286   : > { %v6741_v43 = vadd.f32 %v6740_v38, %v6701_v25  ;;  %v6742_v44 = vpop.f32.mrb[129].mxu0  ;;  %8986 = vmatprep.subr.bf16.mxu1 %v9584_v36  ;;  %v1009_v36 = vld [vmem:[%s10303_s6 + $0x7f8] sm:$0xff] }
 0x287   : > { %v6743_v45 = vpop.f32.mrb[130].mxu0  ;;  %v6780_v46 = vpop.f32.mrb[128].mxu1  ;;  %v2608_v44 = vcombine.high %v2598_v26, %v2598_v26  ;;  %v9595_v61 = vcombine.low %v881_v35, %v1009_v36 }
 0x288   : > { %v6781_v50 = vadd.f32 %v6780_v46, %v6741_v43  ;;  %v6744_v51 = vpop.f32.mrb[131].mxu0  ;;  %v6782_v52 = vpop.f32.mrb[129].mxu1  ;;  %v9591_v43 = vcombine.low %v879_v9, %v1007_v10  ;;  %v2577_v45 = vcombine.high %v2575_v29, %v2575_v29 }
 0x289   : > { %v6783_v55 = vpop.f32.mrb[130].mxu1 }
 0x28a   : > { %v6784_v59 = vpop.f32.mrb[131].mxu1  ;;  %8899 = vmatmul.mubr.bf16.vlgmr.msra.gmra.mrb[236].mxu0 %v2493_v37  ;;  %v9593_v55 = vcombine.low %v880_v27, %v1008_v28 }
 0x28b   : > { %8947 = vmatpush1.bf16.xpose.msra.mxu0 %v9581_v47  ;;  %8978 = vmatprep.mubr.bf16.mxu0 %v2549_v39  ;;  %v9596_v47 = vcombine.high %v881_v35, %v1009_v36  ;;  %v2606_v59 = vcombine.high %v2584_v48, %v2584_v48 }
 0x28c   : > { %8939 = vmatmul.mubr.bf16.vlgmr.msra.gmra.mrb[236].mxu1 %v2509_v53  ;;  %9026 = vmatprep.subr.bf16.mxu0 %v9586_v54 }
 0x28d   : > { %8987 = vmatpush1.bf16.xpose.msra.mxu1 %v9583_v56  ;;  %v6820_v63 = vpop.f32.mrb[132].mxu0  ;;  %9018 = vmatprep.mubr.bf16.mxu1 %v2559_v57 }
 0x28e   : > { %v6821_v4 = vadd.f32 %v6820_v63, %v6781_v50  ;;  %v6822_v5 = vpop.f32.mrb[133].mxu0  ;;  %9066 = vmatprep.subr.bf16.mxu1 %v9588_v60  ;;  %v2605_v50 = vrot.slane %v2577_v45, %v10318_v22 }
 0x28f   : > { %v6823_v6 = vpop.f32.mrb[134].mxu0  ;;  %v6860_v7 = vpop.f32.mrb[132].mxu1 }
 0x290   : > { %v6861_v11 = vadd.f32 %v6860_v7, %v6821_v4  ;;  %v6824_v12 = vpop.f32.mrb[135].mxu0  ;;  %v6862_v13 = vpop.f32.mrb[133].mxu1 }
 0x291   : > { %v6863_v16 = vpop.f32.mrb[134].mxu1 }
 0x292   : > { %v6864_v21 = vpop.f32.mrb[135].mxu1  ;;  %8979 = vmatmul.mubr.bf16.vlgmr.msra.gmra.mrb[240].mxu0 %v2535_v62  ;;  %v2609_v62 = vcombine.high %v2605_v50, %v2605_v50 }
 0x293   : > { %9027 = vmatpush1.bf16.xpose.msra.mxu0 %v9585_v8  ;;  %9058 = vmatprep.mubr.bf16.mxu0 %v2556_v0  ;;  %v2591_v0 = vrot.slane %v2575_v29, %v10318_v22 }
 0x294   : > { %9019 = vmatmul.mubr.bf16.vlgmr.msra.gmra.mrb[240].mxu1 %v2557_v14  ;;  %9106 = vmatprep.subr.bf16.mxu0 %v9590_v15 }
 0x295   : > { %9067 = vmatpush1.bf16.xpose.msra.mxu1 %v9587_v17  ;;  %v6900_v25 = vpop.f32.mrb[136].mxu0  ;;  %9098 = vmatprep.mubr.bf16.mxu1 %v2560_v18  ;;  %v2607_v9 = vcombine.high %v2591_v0, %v2591_v0 }
 0x296   : > { %v6901_v30 = vadd.f32 %v6900_v25, %v6861_v11  ;;  %v6902_v31 = vpop.f32.mrb[137].mxu0  ;;  %9146 = vmatprep.subr.bf16.mxu1 %v9592_v23 }
 0x297   : > { %v6903_v32 = vpop.f32.mrb[138].mxu0  ;;  %v6940_v33 = vpop.f32.mrb[136].mxu1 }
 0x298   : > { %v6941_v37 = vadd.f32 %v6940_v33, %v6901_v30  ;;  %v6904_v38 = vpop.f32.mrb[139].mxu0  ;;  %v6942_v39 = vpop.f32.mrb[137].mxu1 }
 0x299   : > { %v6943_v42 = vpop.f32.mrb[138].mxu1 }
 0x29a   : > { %v6944_v46 = vpop.f32.mrb[139].mxu1  ;;  %9059 = vmatmul.mubr.bf16.vlgmr.msra.gmra.mrb[244].mxu0 %v2542_v24 }
 0x29b   : > { %9107 = vmatpush1.bf16.xpose.msra.mxu0 %v9589_v34  ;;  %9138 = vmatprep.mubr.bf16.mxu0 %v2598_v26 }
 0x29c   : > { %9099 = vmatmul.mubr.bf16.vlgmr.msra.gmra.mrb[244].mxu1 %v2558_v40  ;;  %9186 = vmatprep.subr.bf16.mxu0 %v9594_v41 }
 0x29d   : > { %9147 = vmatpush1.bf16.xpose.msra.mxu1 %v9591_v43  ;;  %v6980_v49 = vpop.f32.mrb[140].mxu0  ;;  %9178 = vmatprep.mubr.bf16.mxu1 %v2608_v44 }
 0x29e   : > { %v6981_v51 = vadd.f32 %v6980_v49, %v6941_v37  ;;  %v6982_v52 = vpop.f32.mrb[141].mxu0  ;;  %9226 = vmatprep.subr.bf16.mxu1 %v9596_v47 }
 0x29f   : > { %v6983_v53 = vpop.f32.mrb[142].mxu0  ;;  %v7020_v54 = vpop.f32.mrb[140].mxu1 }
 0x2a0   : > { %v7021_v56 = vadd.f32 %v7020_v54, %v6981_v51  ;;  %v6984_v57 = vpop.f32.mrb[143].mxu0  ;;  %v7022_v58 = vpop.f32.mrb[141].mxu1 }
 0x2a1   : > { %v7023_v60 = vpop.f32.mrb[142].mxu1 }
 0x2a2   : > { %v7024_v63 = vpop.f32.mrb[143].mxu1  ;;  %9139 = vmatmul.mubr.bf16.vlgmr.msra.gmra.mrb[248].mxu0 %v2584_v48 }
 0x2a3   : > { %9187 = vmatpush1.bf16.xpose.msra.mxu0 %v9593_v55  ;;  %9218 = vmatprep.mubr.bf16.mxu0 %v2605_v50 }
 0x2a4   : > { %9179 = vmatmul.mubr.bf16.vlgmr.msra.gmra.mrb[248].mxu1 %v2606_v59 }
 0x2a5   : > { %9227 = vmatpush1.bf16.xpose.msra.mxu1 %v9595_v61  ;;  %v7060_v1 = vpop.f32.mrb[144].mxu0  ;;  %9258 = vmatprep.mubr.bf16.mxu1 %v2609_v62 }
 0x2a6   : > { %v7061_v2 = vadd.f32 %v7060_v1, %v7021_v56  ;;  %v7062_v3 = vpop.f32.mrb[145].mxu0 }
 0x2a7   : > { %v7063_v4 = vpop.f32.mrb[146].mxu0  ;;  %v7100_v5 = vpop.f32.mrb[144].mxu1 }
 0x2a8   : > { %v7101_v6 = vadd.f32 %v7100_v5, %v7061_v2  ;;  %v7064_v7 = vpop.f32.mrb[147].mxu0  ;;  %v7102_v8 = vpop.f32.mrb[145].mxu1 }
 0x2a9   : > { %v7103_v10 = vpop.f32.mrb[146].mxu1 }
 0x2aa   : > { %v7104_v11 = vpop.f32.mrb[147].mxu1  ;;  %9219 = vmatmul.mubr.bf16.vlgmr.msra.gmra.mrb[252].mxu0 %v2591_v0 }
 0x2ac   : > { %9259 = vmatmul.mubr.bf16.vlgmr.msra.gmra.mrb[252].mxu1 %v2607_v9 }
 0x2ad   : > { %v7140_v12 = vpop.f32.mrb[148].mxu0 }
 0x2ae   : > { %v7141_v13 = vadd.f32 %v7140_v12, %v7101_v6  ;;  %v7142_v14 = vpop.f32.mrb[149].mxu0 }
 0x2af   : > { %v7143_v15 = vpop.f32.mrb[150].mxu0  ;;  %v7180_v22 = vpop.f32.mrb[148].mxu1 }
 0x2b0   : > { %v7181_v16 = vadd.f32 %v7180_v22, %v7141_v13  ;;  %v7144_v17 = vpop.f32.mrb[151].mxu0  ;;  %v7182_v18 = vpop.f32.mrb[149].mxu1 }
 0x2b1   : > { %v7183_v19 = vpop.f32.mrb[150].mxu1 }
 0x2b2   : > { %v7184_v20 = vpop.f32.mrb[151].mxu1 }
 0x2b5   : > { %v7220_v21 = vpop.f32.mrb[152].mxu0 }
 0x2b6   : > { %v7221_v23 = vadd.f32 %v7220_v21, %v7181_v16  ;;  %v7222_v24 = vpop.f32.mrb[153].mxu0 }
 0x2b7   : > { %v7223_v25 = vpop.f32.mrb[154].mxu0  ;;  %v7260_v26 = vpop.f32.mrb[152].mxu1 }
 0x2b8   : > { %v7261_v27 = vadd.f32 %v7260_v26, %v7221_v23  ;;  %v7224_v28 = vpop.f32.mrb[155].mxu0  ;;  %v7262_v29 = vpop.f32.mrb[153].mxu1 }
 0x2b9   : > { %v7263_v30 = vpop.f32.mrb[154].mxu1 }
 0x2ba   : > { %v7264_v31 = vpop.f32.mrb[155].mxu1 }
 0x2bd   : > { %v7300_v32 = vpop.f32.mrb[156].mxu0 }
 0x2be   : > { %v7301_v33 = vadd.f32 %v7300_v32, %v7261_v27  ;;  %v7302_v34 = vpop.f32.mrb[157].mxu0 }
 0x2bf   : > { %v7303_v35 = vpop.f32.mrb[158].mxu0  ;;  %v7340_v36 = vpop.f32.mrb[156].mxu1 }
 0x2c0   : > { %v7341_v37 = vadd.f32 %v7340_v36, %v7301_v33  ;;  %v7304_v38 = vpop.f32.mrb[159].mxu0  ;;  %v7342_v39 = vpop.f32.mrb[157].mxu1 }
 0x2c1   : > { %v7343_v40 = vpop.f32.mrb[158].mxu1 }
 0x2c2   : > { %v7344_v41 = vpop.f32.mrb[159].mxu1 }
 0x2c5   : > { %v7380_v42 = vpop.f32.mrb[160].mxu0 }
 0x2c6   : > { %v7381_v43 = vadd.f32 %v7380_v42, %v7341_v37  ;;  %v7382_v44 = vpop.f32.mrb[161].mxu0 }
 0x2c7   : > { %v7383_v45 = vpop.f32.mrb[162].mxu0  ;;  %v7420_v46 = vpop.f32.mrb[160].mxu1 }
 0x2c8   : > { %v7421_v47 = vadd.f32 %v7420_v46, %v7381_v43  ;;  %v7384_v48 = vpop.f32.mrb[163].mxu0  ;;  %v7422_v49 = vpop.f32.mrb[161].mxu1 }
 0x2c9   : > { %v7423_v50 = vpop.f32.mrb[162].mxu1 }
 0x2ca   : > { %v7424_v51 = vpop.f32.mrb[163].mxu1 }
 0x2cd   : > { %v7460_v52 = vpop.f32.mrb[164].mxu0 }
 0x2ce   : > { %v7461_v53 = vadd.f32 %v7460_v52, %v7421_v47  ;;  %v7462_v54 = vpop.f32.mrb[165].mxu0 }
 0x2cf   : > { %v7463_v55 = vpop.f32.mrb[166].mxu0  ;;  %v7500_v56 = vpop.f32.mrb[164].mxu1 }
 0x2d0   : > { %v7501_v57 = vadd.f32 %v7500_v56, %v7461_v53  ;;  %v7464_v58 = vpop.f32.mrb[167].mxu0  ;;  %v7502_v59 = vpop.f32.mrb[165].mxu1 }
 0x2d1   : > { %v7503_v60 = vpop.f32.mrb[166].mxu1 }
 0x2d2   : > { %v7504_v61 = vpop.f32.mrb[167].mxu1 }
 0x2d5   : > { %v7540_v62 = vpop.f32.mrb[168].mxu0 }
 0x2d6   : > { %v7541_v63 = vadd.f32 %v7540_v62, %v7501_v57  ;;  %v7542_v0 = vpop.f32.mrb[169].mxu0 }
 0x2d7   : > { %v7543_v1 = vpop.f32.mrb[170].mxu0  ;;  %v7580_v2 = vpop.f32.mrb[168].mxu1 }
 0x2d8   : > { %v7581_v3 = vadd.f32 %v7580_v2, %v7541_v63  ;;  %v7544_v4 = vpop.f32.mrb[171].mxu0  ;;  %v7582_v5 = vpop.f32.mrb[169].mxu1 }
 0x2d9   : > { %v7583_v6 = vpop.f32.mrb[170].mxu1 }
 0x2da   : > { %v7584_v7 = vpop.f32.mrb[171].mxu1 }
 0x2dd   : > { %v7620_v8 = vpop.f32.mrb[172].mxu0 }
 0x2de   : > { %v7621_v9 = vadd.f32 %v7620_v8, %v7581_v3  ;;  %v7622_v10 = vpop.f32.mrb[173].mxu0 }
 0x2df   : > { %v7623_v11 = vpop.f32.mrb[174].mxu0  ;;  %v7660_v12 = vpop.f32.mrb[172].mxu1 }
 0x2e0   : > { %v7661_v13 = vadd.f32 %v7660_v12, %v7621_v9  ;;  %v7624_v14 = vpop.f32.mrb[175].mxu0  ;;  %v7662_v15 = vpop.f32.mrb[173].mxu1 }
 0x2e1   : > { %v7663_v22 = vpop.f32.mrb[174].mxu1 }
 0x2e2   : > { %v7664_v16 = vpop.f32.mrb[175].mxu1 }
 0x2e5   : > { %v7700_v17 = vpop.f32.mrb[176].mxu0 }
 0x2e6   : > { %v7701_v18 = vadd.f32 %v7700_v17, %v7661_v13  ;;  %v7702_v19 = vpop.f32.mrb[177].mxu0 }
 0x2e7   : > { %v7703_v20 = vpop.f32.mrb[178].mxu0  ;;  %v7740_v21 = vpop.f32.mrb[176].mxu1 }
 0x2e8   : > { %v7741_v23 = vadd.f32 %v7740_v21, %v7701_v18  ;;  %v7704_v24 = vpop.f32.mrb[179].mxu0  ;;  %v7742_v25 = vpop.f32.mrb[177].mxu1 }
 0x2e9   : > { %v7743_v26 = vpop.f32.mrb[178].mxu1 }
 0x2ea   : > { %v7744_v27 = vpop.f32.mrb[179].mxu1 }
 0x2ed   : > { %v7780_v28 = vpop.f32.mrb[180].mxu0 }
 0x2ee   : > { %v7781_v29 = vadd.f32 %v7780_v28, %v7741_v23  ;;  %v7782_v30 = vpop.f32.mrb[181].mxu0 }
 0x2ef   : > { %v7783_v31 = vpop.f32.mrb[182].mxu0  ;;  %v7820_v32 = vpop.f32.mrb[180].mxu1 }
 0x2f0   : > { %v7821_v33 = vadd.f32 %v7820_v32, %v7781_v29  ;;  %v7784_v34 = vpop.f32.mrb[183].mxu0  ;;  %v7822_v35 = vpop.f32.mrb[181].mxu1 }
 0x2f1   : > { %v7823_v36 = vpop.f32.mrb[182].mxu1 }
 0x2f2   : > { %v7824_v37 = vpop.f32.mrb[183].mxu1 }
 0x2f5   : > { %v7860_v38 = vpop.f32.mrb[184].mxu0 }
 0x2f6   : > { %v7861_v39 = vadd.f32 %v7860_v38, %v7821_v33  ;;  %v7862_v40 = vpop.f32.mrb[185].mxu0 }
 0x2f7   : > { %v7863_v41 = vpop.f32.mrb[186].mxu0  ;;  %v7900_v42 = vpop.f32.mrb[184].mxu1 }
 0x2f8   : > { %v7901_v43 = vadd.f32 %v7900_v42, %v7861_v39  ;;  %v7864_v44 = vpop.f32.mrb[187].mxu0  ;;  %v7902_v45 = vpop.f32.mrb[185].mxu1 }
 0x2f9   : > { %v7903_v46 = vpop.f32.mrb[186].mxu1 }
 0x2fa   : > { %v7904_v47 = vpop.f32.mrb[187].mxu1 }
 0x2fd   : > { %v7940_v48 = vpop.f32.mrb[188].mxu0 }
 0x2fe   : > { %v7941_v49 = vadd.f32 %v7940_v48, %v7901_v43  ;;  %v7942_v50 = vpop.f32.mrb[189].mxu0 }
 0x2ff   : > { %v7943_v51 = vpop.f32.mrb[190].mxu0  ;;  %v7980_v52 = vpop.f32.mrb[188].mxu1 }
 0x300   : > { %v7981_v53 = vadd.f32 %v7980_v52, %v7941_v49  ;;  %v7944_v54 = vpop.f32.mrb[191].mxu0  ;;  %v7982_v55 = vpop.f32.mrb[189].mxu1 }
 0x301   : > { %v7983_v56 = vpop.f32.mrb[190].mxu1 }
 0x302   : > { %v7984_v57 = vpop.f32.mrb[191].mxu1 }
 0x305   : > { %v8020_v58 = vpop.f32.mrb[192].mxu0 }
 0x306   : > { %v8021_v59 = vadd.f32 %v8020_v58, %v7981_v53  ;;  %v8022_v60 = vpop.f32.mrb[193].mxu0 }
 0x307   : > { %v8023_v61 = vpop.f32.mrb[194].mxu0  ;;  %v8060_v62 = vpop.f32.mrb[192].mxu1 }
 0x308   : > { %v8061_v63 = vadd.f32 %v8060_v62, %v8021_v59  ;;  %v8024_v0 = vpop.f32.mrb[195].mxu0  ;;  %v8062_v1 = vpop.f32.mrb[193].mxu1 }
 0x309   : > { %v8063_v2 = vpop.f32.mrb[194].mxu1 }
 0x30a   : > { %v8064_v3 = vpop.f32.mrb[195].mxu1 }
 0x30d   : > { %v8100_v4 = vpop.f32.mrb[196].mxu0 }
 0x30e   : > { %v8101_v5 = vadd.f32 %v8100_v4, %v8061_v63  ;;  %v8102_v6 = vpop.f32.mrb[197].mxu0 }
 0x30f   : > { %v8103_v7 = vpop.f32.mrb[198].mxu0  ;;  %v8140_v8 = vpop.f32.mrb[196].mxu1 }
 0x310   : > { %v8141_v9 = vadd.f32 %v8140_v8, %v8101_v5  ;;  %v8104_v10 = vpop.f32.mrb[199].mxu0  ;;  %v8142_v11 = vpop.f32.mrb[197].mxu1 }
 0x311   : > { %v8143_v12 = vpop.f32.mrb[198].mxu1 }
 0x312   : > { %v8144_v13 = vpop.f32.mrb[199].mxu1 }
 0x315   : > { %v8180_v14 = vpop.f32.mrb[200].mxu0 }
 0x316   : > { %v8181_v15 = vadd.f32 %v8180_v14, %v8141_v9  ;;  %v8182_v22 = vpop.f32.mrb[201].mxu0 }
 0x317   : > { %v8183_v16 = vpop.f32.mrb[202].mxu0  ;;  %v8220_v17 = vpop.f32.mrb[200].mxu1 }
 0x318   : > { %v8221_v18 = vadd.f32 %v8220_v17, %v8181_v15  ;;  %v8184_v19 = vpop.f32.mrb[203].mxu0  ;;  %v8222_v20 = vpop.f32.mrb[201].mxu1 }
 0x319   : > { %v8223_v21 = vpop.f32.mrb[202].mxu1 }
 0x31a   : > { %v8224_v23 = vpop.f32.mrb[203].mxu1 }
 0x31d   : > { %v8260_v24 = vpop.f32.mrb[204].mxu0 }
 0x31e   : > { %v8261_v25 = vadd.f32 %v8260_v24, %v8221_v18  ;;  %v8262_v26 = vpop.f32.mrb[205].mxu0 }
 0x31f   : > { %v8263_v27 = vpop.f32.mrb[206].mxu0  ;;  %v8300_v28 = vpop.f32.mrb[204].mxu1 }
 0x320   : > { %v8301_v29 = vadd.f32 %v8300_v28, %v8261_v25  ;;  %v8264_v30 = vpop.f32.mrb[207].mxu0  ;;  %v8302_v31 = vpop.f32.mrb[205].mxu1 }
 0x321   : > { %v8303_v32 = vpop.f32.mrb[206].mxu1 }
 0x322   : > { %v8304_v33 = vpop.f32.mrb[207].mxu1 }
 0x325   : > { %v8340_v34 = vpop.f32.mrb[208].mxu0 }
 0x326   : > { %v8341_v35 = vadd.f32 %v8340_v34, %v8301_v29  ;;  %v8342_v36 = vpop.f32.mrb[209].mxu0 }
 0x327   : > { %v8343_v37 = vpop.f32.mrb[210].mxu0  ;;  %v8380_v38 = vpop.f32.mrb[208].mxu1 }
 0x328   : > { %v8381_v39 = vadd.f32 %v8380_v38, %v8341_v35  ;;  %v8344_v40 = vpop.f32.mrb[211].mxu0  ;;  %v8382_v41 = vpop.f32.mrb[209].mxu1 }
 0x329   : > { %v8383_v42 = vpop.f32.mrb[210].mxu1 }
 0x32a   : > { %v8384_v43 = vpop.f32.mrb[211].mxu1 }
 0x32d   : > { %v8420_v44 = vpop.f32.mrb[212].mxu0 }
 0x32e   : > { %v8421_v45 = vadd.f32 %v8420_v44, %v8381_v39  ;;  %v8422_v46 = vpop.f32.mrb[213].mxu0 }
 0x32f   : > { %v8423_v47 = vpop.f32.mrb[214].mxu0  ;;  %v8460_v48 = vpop.f32.mrb[212].mxu1 }
 0x330   : > { %v8461_v49 = vadd.f32 %v8460_v48, %v8421_v45  ;;  %v8424_v50 = vpop.f32.mrb[215].mxu0  ;;  %v8462_v51 = vpop.f32.mrb[213].mxu1 }
 0x331   : > { %v8463_v52 = vpop.f32.mrb[214].mxu1 }
 0x332   : > { %v8464_v53 = vpop.f32.mrb[215].mxu1 }
 0x335   : > { %v8500_v54 = vpop.f32.mrb[216].mxu0 }
 0x336   : > { %v8501_v55 = vadd.f32 %v8500_v54, %v8461_v49  ;;  %v8502_v56 = vpop.f32.mrb[217].mxu0 }
 0x337   : > { %v8503_v57 = vpop.f32.mrb[218].mxu0  ;;  %v8540_v58 = vpop.f32.mrb[216].mxu1 }
 0x338   : > { %v8541_v59 = vadd.f32 %v8540_v58, %v8501_v55  ;;  %v8504_v60 = vpop.f32.mrb[219].mxu0  ;;  %v8542_v61 = vpop.f32.mrb[217].mxu1 }
 0x339   : > { %v8543_v62 = vpop.f32.mrb[218].mxu1 }
 0x33a   : > { %v8544_v63 = vpop.f32.mrb[219].mxu1 }
 0x33d   : > { %v8580_v0 = vpop.f32.mrb[220].mxu0 }
 0x33e   : > { %v8581_v1 = vadd.f32 %v8580_v0, %v8541_v59  ;;  %v8582_v2 = vpop.f32.mrb[221].mxu0 }
 0x33f   : > { %v8583_v3 = vpop.f32.mrb[222].mxu0  ;;  %v8620_v4 = vpop.f32.mrb[220].mxu1 }
 0x340   : > { %v8621_v5 = vadd.f32 %v8620_v4, %v8581_v1  ;;  %v8584_v6 = vpop.f32.mrb[223].mxu0  ;;  %v8622_v7 = vpop.f32.mrb[221].mxu1 }
 0x341   : > { %v8623_v8 = vpop.f32.mrb[222].mxu1 }
 0x342   : > { %v8624_v9 = vpop.f32.mrb[223].mxu1 }
 0x345   : > { %v8660_v10 = vpop.f32.mrb[224].mxu0 }
 0x346   : > { %v8661_v11 = vadd.f32 %v8660_v10, %v8621_v5  ;;  %v8662_v12 = vpop.f32.mrb[225].mxu0 }
 0x347   : > { %v8663_v13 = vpop.f32.mrb[226].mxu0  ;;  %v8700_v14 = vpop.f32.mrb[224].mxu1 }
 0x348   : > { %v8701_v15 = vadd.f32 %v8700_v14, %v8661_v11  ;;  %v8664_v22 = vpop.f32.mrb[227].mxu0  ;;  %v8702_v16 = vpop.f32.mrb[225].mxu1 }
 0x349   : > { %v8703_v17 = vpop.f32.mrb[226].mxu1 }
 0x34a   : > { %v8704_v18 = vpop.f32.mrb[227].mxu1 }
 0x34d   : > { %v8740_v19 = vpop.f32.mrb[228].mxu0 }
 0x34e   : > { %v8741_v20 = vadd.f32 %v8740_v19, %v8701_v15  ;;  %v8742_v21 = vpop.f32.mrb[229].mxu0  ;;  %v721_v19 = vld [vmem:[#allocation3] sm:$0x3] }
 0x34f   : > { %v8743_v23 = vpop.f32.mrb[230].mxu0  ;;  %v8780_v24 = vpop.f32.mrb[228].mxu1 }
 0x350   : > { %v8781_v25 = vadd.f32 %v8780_v24, %v8741_v20  ;;  %v8744_v26 = vpop.f32.mrb[231].mxu0  ;;  %v8782_v27 = vpop.f32.mrb[229].mxu1 }
 0x351   : > { %v8783_v28 = vpop.f32.mrb[230].mxu1 }
 0x352   : > { %v8784_v29 = vpop.f32.mrb[231].mxu1 }
 0x355   : > { %v8820_v30 = vpop.f32.mrb[232].mxu0 }
 0x356   : > { %v8821_v31 = vadd.f32 %v8820_v30, %v8781_v25  ;;  %v8822_v32 = vpop.f32.mrb[233].mxu0 }
 0x357   : > { %v8823_v33 = vpop.f32.mrb[234].mxu0  ;;  %v8860_v34 = vpop.f32.mrb[232].mxu1 }
 0x358   : > { %v8861_v35 = vadd.f32 %v8860_v34, %v8821_v31  ;;  %v8824_v36 = vpop.f32.mrb[235].mxu0  ;;  %v8862_v37 = vpop.f32.mrb[233].mxu1 }
 0x359   : > { %v8863_v38 = vpop.f32.mrb[234].mxu1 }
 0x35a   : > { %v8864_v39 = vpop.f32.mrb[235].mxu1 }
 0x35d   : > { %v8900_v40 = vpop.f32.mrb[236].mxu0 }
 0x35e   : > { %v8901_v41 = vadd.f32 %v8900_v40, %v8861_v35  ;;  %v8902_v42 = vpop.f32.mrb[237].mxu0 }
 0x35f   : > { %v8903_v43 = vpop.f32.mrb[238].mxu0  ;;  %v8940_v44 = vpop.f32.mrb[236].mxu1 }
 0x360   : > { %v8941_v45 = vadd.f32 %v8940_v44, %v8901_v41  ;;  %v8904_v46 = vpop.f32.mrb[239].mxu0  ;;  %v8942_v47 = vpop.f32.mrb[237].mxu1 }
 0x361   : > { %v8943_v48 = vpop.f32.mrb[238].mxu1 }
 0x362   : > { %v8944_v49 = vpop.f32.mrb[239].mxu1 }
 0x365   : > { %v8980_v50 = vpop.f32.mrb[240].mxu0 }
 0x366   : > { %v8981_v51 = vadd.f32 %v8980_v50, %v8941_v45  ;;  %v8982_v52 = vpop.f32.mrb[241].mxu0 }
 0x367   : > { %v8983_v53 = vpop.f32.mrb[242].mxu0  ;;  %v9020_v54 = vpop.f32.mrb[240].mxu1 }
 0x368   : > { %v9021_v55 = vadd.f32 %v9020_v54, %v8981_v51  ;;  %v8984_v56 = vpop.f32.mrb[243].mxu0  ;;  %v9022_v57 = vpop.f32.mrb[241].mxu1 }
 0x369   : > { %v9023_v58 = vpop.f32.mrb[242].mxu1 }
 0x36a   : > { %v9024_v59 = vpop.f32.mrb[243].mxu1 }
 0x36d   : > { %v9060_v60 = vpop.f32.mrb[244].mxu0 }
 0x36e   : > { %v9061_v61 = vadd.f32 %v9060_v60, %v9021_v55  ;;  %v9062_v62 = vpop.f32.mrb[245].mxu0 }
 0x36f   : > { %v9063_v63 = vpop.f32.mrb[246].mxu0  ;;  %v9100_v0 = vpop.f32.mrb[244].mxu1 }
 0x370   : > { %v9101_v1 = vadd.f32 %v9100_v0, %v9061_v61  ;;  %v9064_v2 = vpop.f32.mrb[247].mxu0  ;;  %v9102_v3 = vpop.f32.mrb[245].mxu1 }
 0x371   : > { %v9103_v4 = vpop.f32.mrb[246].mxu1 }
 0x372   : > { %v9104_v5 = vpop.f32.mrb[247].mxu1 }
 0x375   : > { %v9140_v6 = vpop.f32.mrb[248].mxu0 }
 0x376   : > { %v9141_v7 = vadd.f32 %v9140_v6, %v9101_v1  ;;  %v9142_v8 = vpop.f32.mrb[249].mxu0 }
 0x377   : > { %v9143_v9 = vpop.f32.mrb[250].mxu0  ;;  %v9180_v10 = vpop.f32.mrb[248].mxu1 }
 0x378   : > { %v9181_v11 = vadd.f32 %v9180_v10, %v9141_v7  ;;  %v9144_v12 = vpop.f32.mrb[251].mxu0  ;;  %v9182_v13 = vpop.f32.mrb[249].mxu1 }
 0x379   : > { %v9183_v14 = vpop.f32.mrb[250].mxu1 }
 0x37a   : > { %v9184_v15 = vpop.f32.mrb[251].mxu1 }
 0x37d   : > { %v9220_v22 = vpop.f32.mrb[252].mxu0 }
 0x37e   : > { %v9221_v16 = vadd.f32 %v9220_v22, %v9181_v11  ;;  %v9222_v17 = vpop.f32.mrb[253].mxu0 }
 0x37f   : > { %v9223_v18 = vpop.f32.mrb[254].mxu0  ;;  %v9260_v20 = vpop.f32.mrb[252].mxu1 }
 0x380   : > { %v9261_v21 = vadd.f32 %v9260_v20, %v9221_v16  ;;  %v9224_v23 = vpop.f32.mrb[255].mxu0  ;;  %v9262_v24 = vpop.f32.mrb[253].mxu1 }
 0x381   : > { %v9263_v25 = vpop.f32.mrb[254].mxu1 }
 0x382   : > { %v9266_v26 = vadd.f32 %v9261_v21, %v721_v19  ;;  %v9264_v27 = vpop.f32.mrb[255].mxu1 }
 0x384   : > { %9268 = vst.msk [vmem:[#allocation3] sm:$0x3] %vm9267_vm1, %v9266_v26 }
 0x385   : > { %9679 = shalt.err (!%p9676_p3)
}
 0x386   : > { %s9680_s17 = scalar_lea.hbm %s10827_s3, 32 }
 0x387   : > { %p9681_p4 = scmp.ne.s32.totalorder %s10827_s3, %s9680_s17  ;;  %p9686_p7 = scmp.lt.u32.totalorder %s9680_s17, %s10827_s3 }
 0x389   : > { %p9682_p5 = pnand %p9681_p4, %p9606_p10 }
 0x38b   : > { %p9683_p6 = pneg %p9682_p5 }
 0x38d   : > { %p9688_p8 = pnand %p9686_p7, %p9683_p6 }
 0x38f   : > { %9691 = shalt.err (!%p9688_p8)
}
 0x390   : > { %9603 = dma.vmem_to_hbm [thread:$0]  (%p9606_p10), %s9277_s10, 32, %s10827_s3, [#allocation4]  }
 0x391   : > { %9705 = dma.done.wait (%p9606_p10), [#allocation4], 32  }
 0x392   : > { %9707 = vsyncadd (%p9606_p10), [#allocation4], 4294967264 }
 0x393 PF: > { %p11_p9 = scmp.ge.s32.totalorder %s9761_s16, 8   ;;  %s10828_s12 = smov %s9714_s13 }
 0x394   : > { %s10829_s13 = smov %s9770_s19  ;;  %s10830_s14 = smov %s9761_s16 }
 0x395   :  { %13 = sbr.rel (!%p11_p9) target bundleno = 2 (0x2), region = 94 }
 0x39c   :  { %9289 = vsyncpa [#allocation4], 1 }
 0x39d   :  { %9291 = vsyncpa [#allocation4 + $0x1], 1 }

</bundles_post_ra>
